<compile_context>
chip_gen: v7x
topology: tpu7x:2x2x1
jax: 0.10.0
libtpu: 0.0.40
codegen_flags: <defaults>
</compile_context>

<pallas_src>
import functools

import jax
import jax.numpy as jnp
from jax.experimental import pallas as pl
from jax.experimental.pallas import tpu as pltpu


def _round_up(x, m):
    return (x + m - 1) // m * m


def _k_schedule(k_raw):
    """Pad the reduction dim to 128 and split it into <=1024-wide tiles."""
    q = -(-max(k_raw, 1) // 128)          # number of 128-wide groups
    nk = -(-q // 8)                       # number of K tiles (each <= 1024)
    qt = -(-q // nk)
    tk = 128 * qt
    return tk * nk, tk, nk                # (Kp, TK, nk)


# ----------------------------------------------------------------------------
# Pallas kernel: tiled fused  out = [relu](A @ W + bias) [+ skip]
# ----------------------------------------------------------------------------
def _fused_matmul_kernel(*refs, apply_relu, has_skip):
    if has_skip:
        a_ref, w_ref, b_ref, s_ref, o_ref, acc_ref = refs
    else:
        a_ref, w_ref, b_ref, o_ref, acc_ref = refs
        s_ref = None

    @pl.when(pl.program_id(2) == 0)
    def _init():
        acc_ref[...] = jnp.zeros_like(acc_ref)

    acc_ref[...] += jnp.dot(a_ref[...], w_ref[...],
                            preferred_element_type=jnp.float32)

    @pl.when(pl.program_id(2) == pl.num_programs(2) - 1)
    def _finalize():
        y = acc_ref[...] + b_ref[...]
        if apply_relu:
            y = jnp.maximum(y, 0.0)
        if has_skip:
            y = y + s_ref[...].astype(jnp.float32)
        o_ref[...] = y.astype(o_ref.dtype)


def fused_matmul(patches, w_pad, b_pad, *, apply_relu, skip=None):
    """patches: [M, K] bf16; w_pad: [Kp, Np] bf16 (pre-padded, BN-folded);
    b_pad: [1, Np] f32; skip: optional [M, Np] bf16 added in the epilogue."""
    M, K = patches.shape
    Kp, TK, nk = _k_schedule(K)
    assert w_pad.shape[0] == Kp, (w_pad.shape, Kp)
    Np = w_pad.shape[1]
    TN = 128
    TM = min(512, _round_up(M, 8))
    Mp = _round_up(M, TM)

    a = patches
    if (Mp, Kp) != (M, K):
        a = jnp.pad(a, ((0, Mp - M), (0, Kp - K)))

    ins = [a, w_pad, b_pad]
    in_specs = [
        pl.BlockSpec((TM, TK), lambda i, j, k: (i, k)),
        pl.BlockSpec((TK, TN), lambda i, j, k: (k, j)),
        pl.BlockSpec((1, TN), lambda i, j, k: (0, j)),
    ]
    has_skip = skip is not None
    if has_skip:
        s = skip
        if Mp != M:
            s = jnp.pad(s, ((0, Mp - M), (0, 0)))
        ins.append(s)
        in_specs.append(pl.BlockSpec((TM, TN), lambda i, j, k: (i, j)))

    out = pl.pallas_call(
        functools.partial(_fused_matmul_kernel, apply_relu=apply_relu,
                          has_skip=has_skip),
        out_shape=jax.ShapeDtypeStruct((Mp, Np), jnp.bfloat16),
        grid=(Mp // TM, Np // TN, nk),
        in_specs=in_specs,
        out_specs=pl.BlockSpec((TM, TN), lambda i, j, k: (i, j)),
        scratch_shapes=[pltpu.VMEM((TM, TN), jnp.float32)],
        compiler_params=pltpu.CompilerParams(
            dimension_semantics=("parallel", "parallel", "arbitrary")),
    )(*ins)
    return out[:M] if Mp != M else out


# ----------------------------------------------------------------------------
# Conv / ConvTranspose glue (patch gather stays in XLA, matmul in Pallas)
# ----------------------------------------------------------------------------
def _im2col(x, cin, stride, ksize):
    """x: [N,H,W,Cp] channel-padded -> ([N*Ho*Wo, ksize*ksize*cin], Ho, Wo)."""
    N, H, W, _ = x.shape
    xs = x[..., :cin]
    if ksize == 1:
        return xs.reshape(N * H * W, cin), H, W
    Ho = (H + 2 - ksize) // stride + 1
    Wo = (W + 2 - ksize) // stride + 1
    xp = jnp.pad(xs, ((0, 0), (1, 1), (1, 1), (0, 0)))
    cols = []
    for dh in range(ksize):
        for dw in range(ksize):
            cols.append(xp[:, dh:dh + stride * (Ho - 1) + 1:stride,
                           dw:dw + stride * (Wo - 1) + 1:stride, :])
    patches = jnp.concatenate(cols, axis=-1)
    return patches.reshape(N * Ho * Wo, ksize * ksize * cin), Ho, Wo


def conv_block(x, layer, spec, *, apply_relu=True, skip=None):
    """Conv2d (+ folded BN) (+ ReLU) (+ fused skip add on the output)."""
    cin, _, stride, ksize = spec
    N = x.shape[0]
    patches, Ho, Wo = _im2col(x, cin, stride, ksize)
    skip_flat = None
    if skip is not None:
        skip_flat = skip.reshape(N * Ho * Wo, skip.shape[-1])
    out = fused_matmul(patches, layer["w"], layer["b"],
                       apply_relu=apply_relu, skip=skip_flat)
    return out.reshape(N, Ho, Wo, out.shape[-1])


# Sub-pixel decomposition of ConvTranspose2d(k=3, s=2, p=1, output_padding=1):
# output[2a+pi, 2b+pj] only depends on x[a..a+1, b..b+1] with a fixed tap->kernel
# mapping per phase, so the whole layer is one (M, 4*Cin) x (4*Cin, 4*Cout) matmul.
_TC_TAPS = ((0, 0), (1, 0), (0, 1), (1, 1))      # (dh, dw): reads x[a+dh, b+dw]
_TC_PHASES = ((0, 0), (0, 1), (1, 0), (1, 1))    # (pi, pj): writes out[2a+pi, 2b+pj]


def tconv_s2_block(x, layer, spec, *, apply_relu, skip=None):
    cin, cout = spec
    N, H, W, _ = x.shape
    xs = x[..., :cin]
    xp = jnp.pad(xs, ((0, 0), (0, 1), (0, 1), (0, 0)))     # zero row/col at end
    taps = [xp[:, dh:dh + H, dw:dw + W, :] for dh, dw in _TC_TAPS]
    patches = jnp.concatenate(taps, axis=-1).reshape(N * H * W, 4 * cin)
    out = fused_matmul(patches, layer["w"], layer["b"], apply_relu=apply_relu)
    ph = out[:, :4 * cout].reshape(N, H, W, 2, 2, cout)     # (pi, pj) phases
    y = jnp.transpose(ph, (0, 1, 3, 2, 4, 5)).reshape(N, 2 * H, 2 * W, cout)
    cp = _round_up(cout, 128)
    y = jnp.pad(y, ((0, 0), (0, 0), (0, 0), (0, cp - cout)))
    if skip is not None:
        y = y + skip          # XLA fuses this add into the interleave above
    return y


# ----------------------------------------------------------------------------
# Architecture spec, synthetic parameter init, one-time weight preparation
# ----------------------------------------------------------------------------
_BN_EPS = 1e-5

_CONV_SPECS = {
    # name: (cin, cout, stride, ksize)
    "cb1": (1, 8, 1, 3),   "cb2": (8, 16, 2, 3),   "cb3": (16, 16, 1, 3),
    "cb4": (16, 32, 2, 3), "cb5": (32, 32, 1, 3),  "cb6": (32, 64, 2, 3),
    "cb7": (64, 64, 1, 3), "cb8": (64, 128, 2, 3), "cb9": (128, 128, 1, 3),
    "cb10": (128, 256, 2, 3), "cb11": (256, 256, 1, 3),
    "t1": (256, 256, 1, 3),   # stride-1 ConvTranspose == conv with flipped taps
    "t4": (64, 64, 1, 3), "t6": (32, 32, 1, 3), "t8": (16, 16, 1, 3),
    "out": (8, 1, 1, 1),
}
_TCONV_SPECS = {   # stride-2 ConvTranspose2d layers: (cin, cout)
    "t2": (256, 128), "t3": (128, 64), "t5": (64, 32), "t7": (32, 16),
    "t9": (16, 8),
}


def _init_block(key, w_shape, cout):
    k1, k2, k3, k4 = jax.random.split(key, 4)
    fan_in = 1
    for d in w_shape[1:]:
        fan_in *= d
    bound = 1.0 / (fan_in ** 0.5)
    return dict(
        w=jax.random.uniform(k1, w_shape, jnp.float32, -bound, bound),
        b=jax.random.uniform(k2, (cout,), jnp.float32, -bound, bound),
        gamma=1.0 + 0.1 * jax.random.normal(k3, (cout,), jnp.float32),
        beta=0.1 * jax.random.normal(k4, (cout,), jnp.float32),
        mean=jnp.zeros((cout,), jnp.float32),
        var=jnp.ones((cout,), jnp.float32),
    )


def _fold_bn(p):
    s = p["gamma"] / jnp.sqrt(p["var"] + _BN_EPS)
    bias = (p["b"] - p["mean"]) * s + p["beta"]
    return s, bias


def init_params(seed=0):
    key = jax.random.PRNGKey(seed)
    names = ([n for n in _CONV_SPECS if n not in ("t1", "out")]
             + ["t1"] + list(_TCONV_SPECS) + ["out"])
    keys = jax.random.split(key, len(names))
    params = {}
    for kk, name in zip(keys, names):
        if name == "out":
            k1, k2 = jax.random.split(kk, 2)
            bound = 1.0 / (8 ** 0.5)
            params["out"] = dict(
                w=jax.random.uniform(k1, (1, 8, 1, 1), jnp.float32, -bound, bound),
                b=jax.random.uniform(k2, (1,), jnp.float32, -bound, bound))
        elif name == "t1" or name in _TCONV_SPECS:
            cin, cout = (256, 256) if name == "t1" else _TCONV_SPECS[name]
            params[name] = _init_block(kk, (cin, cout, 3, 3), cout)  # torch layout
        else:
            cin, cout, _, _ = _CONV_SPECS[name]
            params[name] = _init_block(kk, (cout, cin, 3, 3), cout)  # torch layout
    return params


def _pad_weight(w_mat, bias, k_raw, n_raw):
    Kp, _, _ = _k_schedule(k_raw)
    Np = _round_up(n_raw, 128)
    w = jnp.zeros((Kp, Np), jnp.bfloat16).at[:k_raw, :n_raw].set(
        w_mat.astype(jnp.bfloat16))
    b = jnp.zeros((1, Np), jnp.float32).at[0, :n_raw].set(bias)
    return {"w": w, "b": b}


def prepare_params(params):
    """One-time preprocessing: fold BN (eval mode) into weight columns + bias,
    lower to matmul layout, pad to the kernel tile grid, cast to bf16."""
    prep = {}
    for name, (cin, cout, _, ksize) in _CONV_SPECS.items():
        if name == "out":
            w = params["out"]["w"]                              # (1, 8, 1, 1)
            scale = jnp.ones((cout,), jnp.float32)
            bias = params["out"]["b"]
        elif name == "t1":
            p = params["t1"]
            # ConvTranspose2d(s=1,p=1) == Conv2d(p=1) with swapped+flipped taps
            w = jnp.transpose(p["w"][:, :, ::-1, ::-1], (1, 0, 2, 3))
            scale, bias = _fold_bn(p)
        else:
            p = params[name]
            w = p["w"]
            scale, bias = _fold_bn(p)
        k_raw = ksize * ksize * cin
        w_mat = jnp.transpose(w, (2, 3, 1, 0)).reshape(k_raw, cout) * scale[None, :]
        prep[name] = _pad_weight(w_mat, bias, k_raw, cout)

    for name, (cin, cout) in _TCONV_SPECS.items():
        p = params[name]
        scale, bias = _fold_bn(p)
        ws = p["w"] * scale[None, :, None, None]                # (cin, cout, 3, 3)
        rows = []
        for dh, dw in _TC_TAPS:
            blocks = []
            for pi, pj in _TC_PHASES:
                kh = pi + 1 - 2 * dh
                kw = pj + 1 - 2 * dw
                if 0 <= kh <= 2 and 0 <= kw <= 2:
                    blocks.append(ws[:, :, kh, kw])
                else:
                    blocks.append(jnp.zeros((cin, cout), jnp.float32))
            rows.append(jnp.concatenate(blocks, axis=1))
        w_big = jnp.concatenate(rows, axis=0)                   # (4*cin, 4*cout)
        bias_big = jnp.tile(bias, 4)
        prep[name] = _pad_weight(w_big, bias_big, 4 * cin, 4 * cout)
    return prep


# ----------------------------------------------------------------------------
# UNet forward (NCHW in / NCHW out, matching the PyTorch module)
# ----------------------------------------------------------------------------
def unet_forward(x_nchw, prep):
    x0 = jnp.transpose(x_nchw, (0, 2, 3, 1)).astype(jnp.bfloat16)   # NHWC bf16

    def conv(name, x, *, relu=True, skip=None):
        return conv_block(x, prep[name], _CONV_SPECS[name],
                          apply_relu=relu, skip=skip)

    def tconv(name, x, *, relu, skip=None):
        return tconv_s2_block(x, prep[name], _TCONV_SPECS[name],
                              apply_relu=relu, skip=skip)

    x1 = conv("cb1", x0)
    x2 = conv("cb2", x1)
    x3 = conv("cb3", x2)
    x4 = conv("cb4", x3)
    x5 = conv("cb5", x4)
    x6 = conv("cb6", x5)
    x7 = conv("cb7", x6)
    x8 = conv("cb8", x7)
    x9 = conv("cb9", x8)
    x10 = conv("cb10", x9)
    x11 = conv("cb11", x10)

    x12 = conv("t1", x11)                        # relu(t1(x11))
    s13 = tconv("t2", x12, relu=True, skip=x9)   # x9 + relu(t2(x12))
    s14 = tconv("t3", s13, relu=False, skip=x7)  # x7 + t3(x9 + x13)
    s15 = conv("t4", s14, skip=x7)               # x7 + relu(t4(x7 + x14))
    s16 = tconv("t5", s15, relu=False, skip=x5)  # x5 + t5(x7 + x15)
    s17 = conv("t6", s16, skip=x5)               # x5 + relu(t6(x5 + x16))
    s18 = tconv("t7", s17, relu=False, skip=x3)  # x3 + t7(x5 + x17)
    s19 = conv("t8", s18, skip=x3)               # x3 + relu(t8(x3 + x18))
    s20 = conv("t8", s19, skip=x2)               # x2 + t8(x3 + x19)  (t8 reused)
    x21 = tconv("t9", s20, relu=True)            # relu(t9(x2 + x20))

    x22 = conv("out", x21, relu=False)[..., :1]  # 1x1 conv, Cout = 1
    return jnp.transpose(x22, (0, 3, 1, 2)).astype(jnp.float32)


if __name__ == "__main__":
    # Spatial dims must be divisible by 32 (five stride-2 levels); keep small.
    key = jax.random.PRNGKey(0)
    x = jax.random.normal(key, (2, 1, 32, 32), jnp.float32)     # NCHW like torch

    params = init_params(seed=0)
    prep = prepare_params(params)       # one-time: BN fold + pad + bf16 cast
    fwd = jax.jit(unet_forward)
    out = jax.block_until_ready(fwd(x, prep))
    assert out.shape == (2, 1, 32, 32), out.shape
    assert bool(jnp.all(jnp.isfinite(out)))
    print("KERNEL_OK")
</pallas_src>

<mosaic_0001>
module attributes {stable_mosaic.version = 11 : i64} {
  func.func @_fused_matmul_kernel(%arg0: i32, %arg1: i32, %arg2: i32, %arg3: memref<512x128xbf16, #tpu.memory_space<vmem>>, %arg4: memref<128x128xbf16, #tpu.memory_space<vmem>>, %arg5: memref<1x128xf32, #tpu.memory_space<vmem>>, %arg6: memref<512x128xbf16, #tpu.memory_space<vmem>>, %arg7: memref<512x128xf32, #tpu.memory_space<vmem>>) attributes {dimension_semantics = [#tpu.dimension_semantics<parallel>, #tpu.dimension_semantics<parallel>, #tpu.dimension_semantics<arbitrary>], iteration_bounds = array<i64: 4, 1, 1>, scalar_prefetch = 0 : i64, scratch_operands = 1 : i64, tpu.core_type = #tpu.core_type<tc>, window_params = [{transform_indices = @transform_0, window_bounds = array<i64: 512, 128>}, {transform_indices = @transform_1, window_bounds = array<i64: 128, 128>}, {transform_indices = @transform_2, window_bounds = array<i64: 1, 128>}, {transform_indices = @transform_3, window_bounds = array<i64: 512, 128>}]} {
    %c0_i32 = arith.constant 0 : i32
    %0 = arith.cmpi eq, %arg2, %c0_i32 : i32
    %1 = arith.extui %0 : i1 to i32
    %c0_i32_0 = arith.constant 0 : i32
    %2 = arith.cmpi ne, %1, %c0_i32_0 : i32
    scf.if %2 {
      %cst_10 = arith.constant 0.000000e+00 : f32
      %12 = vector.broadcast %cst_10 : f32 to vector<512x128xf32>
      %c0_11 = arith.constant 0 : index
      %c0_12 = arith.constant 0 : index
      %13 = vector.load %arg7[%c0_11, %c0_12] : memref<512x128xf32, #tpu.memory_space<vmem>>, vector<512x128xf32>
      tpu.vector_store %arg7[%c0_11, %c0_12], %12 {strides = array<i32>} : memref<512x128xf32, #tpu.memory_space<vmem>>, vector<512x128xf32>,
    } else {
    }
    %c0 = arith.constant 0 : index
    %c0_1 = arith.constant 0 : index
    %3 = vector.load %arg7[%c0, %c0_1] : memref<512x128xf32, #tpu.memory_space<vmem>>, vector<512x128xf32>
    %c0_2 = arith.constant 0 : index
    %c0_3 = arith.constant 0 : index
    %4 = vector.load %arg3[%c0_2, %c0_3] : memref<512x128xbf16, #tpu.memory_space<vmem>>, vector<512x128xbf16>
    %c0_4 = arith.constant 0 : index
    %c0_5 = arith.constant 0 : index
    %5 = vector.load %arg4[%c0_4, %c0_5] : memref<128x128xbf16, #tpu.memory_space<vmem>>, vector<128x128xbf16>
    %cst = arith.constant dense<0.000000e+00> : vector<512x128xf32>
    %6 = tpu.matmul %4, %5, %cst {dimension_numbers = #tpu.dot_dimension_numbers<[1], [0], [0], [1], [0, 0, 1, 1], [], []>} : vector<512x128xbf16>, vector<128x128xbf16>, vector<512x128xf32> -> vector<512x128xf32>
    %7 = arith.addf %3, %6 : vector<512x128xf32>
    %c0_6 = arith.constant 0 : index
    %c0_7 = arith.constant 0 : index
    %8 = vector.load %arg7[%c0_6, %c0_7] : memref<512x128xf32, #tpu.memory_space<vmem>>, vector<512x128xf32>
    tpu.vector_store %arg7[%c0_6, %c0_7], %7 {strides = array<i32>} : memref<512x128xf32, #tpu.memory_space<vmem>>, vector<512x128xf32>,
    %c0_i32_8 = arith.constant 0 : i32
    %9 = arith.cmpi eq, %arg2, %c0_i32_8 : i32
    %10 = arith.extui %9 : i1 to i32
    %c0_i32_9 = arith.constant 0 : i32
    %11 = arith.cmpi ne, %10, %c0_i32_9 : i32
    scf.if %11 {
      %c0_10 = arith.constant 0 : index
      %c0_11 = arith.constant 0 : index
      %12 = vector.load %arg7[%c0_10, %c0_11] : memref<512x128xf32, #tpu.memory_space<vmem>>, vector<512x128xf32>
      %c0_12 = arith.constant 0 : index
      %c0_13 = arith.constant 0 : index
      %13 = vector.load %arg5[%c0_12, %c0_13] : memref<1x128xf32, #tpu.memory_space<vmem>>, vector<1x128xf32>
      %14 = vector.broadcast %13 : vector<1x128xf32> to vector<512x128xf32>
      %15 = arith.addf %12, %14 : vector<512x128xf32>
      %cst_14 = arith.constant 0.000000e+00 : f32
      %16 = vector.broadcast %cst_14 : f32 to vector<512x128xf32>
      %17 = arith.maximumf %15, %16 : vector<512x128xf32>
      %18 = arith.truncf %17 : vector<512x128xf32> to vector<512x128xbf16>
      %c0_15 = arith.constant 0 : index
      %c0_16 = arith.constant 0 : index
      %19 = vector.load %arg6[%c0_15, %c0_16] : memref<512x128xbf16, #tpu.memory_space<vmem>>, vector<512x128xbf16>
      tpu.vector_store %arg6[%c0_15, %c0_16], %18 {strides = array<i32>} : memref<512x128xbf16, #tpu.memory_space<vmem>>, vector<512x128xbf16>,
    } else {
    }
    return
  }
  func.func @transform_0(%arg0: i32, %arg1: i32, %arg2: i32) -> (i32, i32) {
    %c0_i32 = arith.constant 0 : i32
    return %arg0, %arg2 : i32, i32
  }
  func.func @transform_1(%arg0: i32, %arg1: i32, %arg2: i32) -> (i32, i32) {
    %c0_i32 = arith.constant 0 : i32
    return %arg2, %arg1 : i32, i32
  }
  func.func @transform_2(%arg0: i32, %arg1: i32, %arg2: i32) -> (i32, i32) {
    %c0_i32 = arith.constant 0 : i32
    %c0_i32_0 = arith.constant 0 : i32
    return %c0_i32, %arg1 : i32, i32
  }
  func.func @transform_3(%arg0: i32, %arg1: i32, %arg2: i32) -> (i32, i32) {
    %c0_i32 = arith.constant 0 : i32
    return %arg0, %arg1 : i32, i32
  }
}

module attributes {stable_mosaic.version = 11 : i64} {
  func.func @_fused_matmul_kernel(%arg0: i32, %arg1: i32, %arg2: i32, %arg3: memref<512x128xbf16, #tpu.memory_space<vmem>>, %arg4: memref<128x128xbf16, #tpu.memory_space<vmem>>, %arg5: memref<1x128xf32, #tpu.memory_space<vmem>>, %arg6: memref<512x128xbf16, #tpu.memory_space<vmem>>, %arg7: memref<512x128xf32, #tpu.memory_space<vmem>>) attributes {dimension_semantics = [#tpu.dimension_semantics<parallel>, #tpu.dimension_semantics<parallel>, #tpu.dimension_semantics<arbitrary>], iteration_bounds = array<i64: 1, 1, 1>, scalar_prefetch = 0 : i64, scratch_operands = 1 : i64, tpu.core_type = #tpu.core_type<tc>, window_params = [{transform_indices = @transform_0, window_bounds = array<i64: 512, 128>}, {transform_indices = @transform_1, window_bounds = array<i64: 128, 128>}, {transform_indices = @transform_2, window_bounds = array<i64: 1, 128>}, {transform_indices = @transform_3, window_bounds = array<i64: 512, 128>}]} {
    %c0_i32 = arith.constant 0 : i32
    %0 = arith.cmpi eq, %arg2, %c0_i32 : i32
    %1 = arith.extui %0 : i1 to i32
    %c0_i32_0 = arith.constant 0 : i32
    %2 = arith.cmpi ne, %1, %c0_i32_0 : i32
    scf.if %2 {
      %cst_10 = arith.constant 0.000000e+00 : f32
      %12 = vector.broadcast %cst_10 : f32 to vector<512x128xf32>
      %c0_11 = arith.constant 0 : index
      %c0_12 = arith.constant 0 : index
      %13 = vector.load %arg7[%c0_11, %c0_12] : memref<512x128xf32, #tpu.memory_space<vmem>>, vector<512x128xf32>
      tpu.vector_store %arg7[%c0_11, %c0_12], %12 {strides = array<i32>} : memref<512x128xf32, #tpu.memory_space<vmem>>, vector<512x128xf32>,
    } else {
    }
    %c0 = arith.constant 0 : index
    %c0_1 = arith.constant 0 : index
    %3 = vector.load %arg7[%c0, %c0_1] : memref<512x128xf32, #tpu.memory_space<vmem>>, vector<512x128xf32>
    %c0_2 = arith.constant 0 : index
    %c0_3 = arith.constant 0 : index
    %4 = vector.load %arg3[%c0_2, %c0_3] : memref<512x128xbf16, #tpu.memory_space<vmem>>, vector<512x128xbf16>
    %c0_4 = arith.constant 0 : index
    %c0_5 = arith.constant 0 : index
    %5 = vector.load %arg4[%c0_4, %c0_5] : memref<128x128xbf16, #tpu.memory_space<vmem>>, vector<128x128xbf16>
    %cst = arith.constant dense<0.000000e+00> : vector<512x128xf32>
    %6 = tpu.matmul %4, %5, %cst {dimension_numbers = #tpu.dot_dimension_numbers<[1], [0], [0], [1], [0, 0, 1, 1], [], []>} : vector<512x128xbf16>, vector<128x128xbf16>, vector<512x128xf32> -> vector<512x128xf32>
    %7 = arith.addf %3, %6 : vector<512x128xf32>
    %c0_6 = arith.constant 0 : index
    %c0_7 = arith.constant 0 : index
    %8 = vector.load %arg7[%c0_6, %c0_7] : memref<512x128xf32, #tpu.memory_space<vmem>>, vector<512x128xf32>
    tpu.vector_store %arg7[%c0_6, %c0_7], %7 {strides = array<i32>} : memref<512x128xf32, #tpu.memory_space<vmem>>, vector<512x128xf32>,
    %c0_i32_8 = arith.constant 0 : i32
    %9 = arith.cmpi eq, %arg2, %c0_i32_8 : i32
    %10 = arith.extui %9 : i1 to i32
    %c0_i32_9 = arith.constant 0 : i32
    %11 = arith.cmpi ne, %10, %c0_i32_9 : i32
    scf.if %11 {
      %c0_10 = arith.constant 0 : index
      %c0_11 = arith.constant 0 : index
      %12 = vector.load %arg7[%c0_10, %c0_11] : memref<512x128xf32, #tpu.memory_space<vmem>>, vector<512x128xf32>
      %c0_12 = arith.constant 0 : index
      %c0_13 = arith.constant 0 : index
      %13 = vector.load %arg5[%c0_12, %c0_13] : memref<1x128xf32, #tpu.memory_space<vmem>>, vector<1x128xf32>
      %14 = vector.broadcast %13 : vector<1x128xf32> to vector<512x128xf32>
      %15 = arith.addf %12, %14 : vector<512x128xf32>
      %cst_14 = arith.constant 0.000000e+00 : f32
      %16 = vector.broadcast %cst_14 : f32 to vector<512x128xf32>
      %17 = arith.maximumf %15, %16 : vector<512x128xf32>
      %18 = arith.truncf %17 : vector<512x128xf32> to vector<512x128xbf16>
      %c0_15 = arith.constant 0 : index
      %c0_16 = arith.constant 0 : index
      %19 = vector.load %arg6[%c0_15, %c0_16] : memref<512x128xbf16, #tpu.memory_space<vmem>>, vector<512x128xbf16>
      tpu.vector_store %arg6[%c0_15, %c0_16], %18 {strides = array<i32>} : memref<512x128xbf16, #tpu.memory_space<vmem>>, vector<512x128xbf16>,
    } else {
    }
    return
  }
  func.func @transform_0(%arg0: i32, %arg1: i32, %arg2: i32) -> (i32, i32) {
    %c0_i32 = arith.constant 0 : i32
    return %arg0, %arg2 : i32, i32
  }
  func.func @transform_1(%arg0: i32, %arg1: i32, %arg2: i32) -> (i32, i32) {
    %c0_i32 = arith.constant 0 : i32
    return %arg2, %arg1 : i32, i32
  }
  func.func @transform_2(%arg0: i32, %arg1: i32, %arg2: i32) -> (i32, i32) {
    %c0_i32 = arith.constant 0 : i32
    %c0_i32_0 = arith.constant 0 : i32
    return %c0_i32, %arg1 : i32, i32
  }
  func.func @transform_3(%arg0: i32, %arg1: i32, %arg2: i32) -> (i32, i32) {
    %c0_i32 = arith.constant 0 : i32
    return %arg0, %arg1 : i32, i32
  }
}

module attributes {stable_mosaic.version = 11 : i64} {
  func.func @_fused_matmul_kernel(%arg0: i32, %arg1: i32, %arg2: i32, %arg3: memref<512x256xbf16, #tpu.memory_space<vmem>>, %arg4: memref<256x128xbf16, #tpu.memory_space<vmem>>, %arg5: memref<1x128xf32, #tpu.memory_space<vmem>>, %arg6: memref<512x128xbf16, #tpu.memory_space<vmem>>, %arg7: memref<512x128xf32, #tpu.memory_space<vmem>>) attributes {dimension_semantics = [#tpu.dimension_semantics<parallel>, #tpu.dimension_semantics<parallel>, #tpu.dimension_semantics<arbitrary>], iteration_bounds = array<i64: 1, 1, 1>, scalar_prefetch = 0 : i64, scratch_operands = 1 : i64, tpu.core_type = #tpu.core_type<tc>, window_params = [{transform_indices = @transform_0, window_bounds = array<i64: 512, 256>}, {transform_indices = @transform_1, window_bounds = array<i64: 256, 128>}, {transform_indices = @transform_2, window_bounds = array<i64: 1, 128>}, {transform_indices = @transform_3, window_bounds = array<i64: 512, 128>}]} {
    %c0_i32 = arith.constant 0 : i32
    %0 = arith.cmpi eq, %arg2, %c0_i32 : i32
    %1 = arith.extui %0 : i1 to i32
    %c0_i32_0 = arith.constant 0 : i32
    %2 = arith.cmpi ne, %1, %c0_i32_0 : i32
    scf.if %2 {
      %cst_10 = arith.constant 0.000000e+00 : f32
      %12 = vector.broadcast %cst_10 : f32 to vector<512x128xf32>
      %c0_11 = arith.constant 0 : index
      %c0_12 = arith.constant 0 : index
      %13 = vector.load %arg7[%c0_11, %c0_12] : memref<512x128xf32, #tpu.memory_space<vmem>>, vector<512x128xf32>
      tpu.vector_store %arg7[%c0_11, %c0_12], %12 {strides = array<i32>} : memref<512x128xf32, #tpu.memory_space<vmem>>, vector<512x128xf32>,
    } else {
    }
    %c0 = arith.constant 0 : index
    %c0_1 = arith.constant 0 : index
    %3 = vector.load %arg7[%c0, %c0_1] : memref<512x128xf32, #tpu.memory_space<vmem>>, vector<512x128xf32>
    %c0_2 = arith.constant 0 : index
    %c0_3 = arith.constant 0 : index
    %4 = vector.load %arg3[%c0_2, %c0_3] : memref<512x256xbf16, #tpu.memory_space<vmem>>, vector<512x256xbf16>
    %c0_4 = arith.constant 0 : index
    %c0_5 = arith.constant 0 : index
    %5 = vector.load %arg4[%c0_4, %c0_5] : memref<256x128xbf16, #tpu.memory_space<vmem>>, vector<256x128xbf16>
    %cst = arith.constant dense<0.000000e+00> : vector<512x128xf32>
    %6 = tpu.matmul %4, %5, %cst {dimension_numbers = #tpu.dot_dimension_numbers<[1], [0], [0], [1], [0, 0, 1, 1], [], []>} : vector<512x256xbf16>, vector<256x128xbf16>, vector<512x128xf32> -> vector<512x128xf32>
    %7 = arith.addf %3, %6 : vector<512x128xf32>
    %c0_6 = arith.constant 0 : index
    %c0_7 = arith.constant 0 : index
    %8 = vector.load %arg7[%c0_6, %c0_7] : memref<512x128xf32, #tpu.memory_space<vmem>>, vector<512x128xf32>
    tpu.vector_store %arg7[%c0_6, %c0_7], %7 {strides = array<i32>} : memref<512x128xf32, #tpu.memory_space<vmem>>, vector<512x128xf32>,
    %c0_i32_8 = arith.constant 0 : i32
    %9 = arith.cmpi eq, %arg2, %c0_i32_8 : i32
    %10 = arith.extui %9 : i1 to i32
    %c0_i32_9 = arith.constant 0 : i32
    %11 = arith.cmpi ne, %10, %c0_i32_9 : i32
    scf.if %11 {
      %c0_10 = arith.constant 0 : index
      %c0_11 = arith.constant 0 : index
      %12 = vector.load %arg7[%c0_10, %c0_11] : memref<512x128xf32, #tpu.memory_space<vmem>>, vector<512x128xf32>
      %c0_12 = arith.constant 0 : index
      %c0_13 = arith.constant 0 : index
      %13 = vector.load %arg5[%c0_12, %c0_13] : memref<1x128xf32, #tpu.memory_space<vmem>>, vector<1x128xf32>
      %14 = vector.broadcast %13 : vector<1x128xf32> to vector<512x128xf32>
      %15 = arith.addf %12, %14 : vector<512x128xf32>
      %cst_14 = arith.constant 0.000000e+00 : f32
      %16 = vector.broadcast %cst_14 : f32 to vector<512x128xf32>
      %17 = arith.maximumf %15, %16 : vector<512x128xf32>
      %18 = arith.truncf %17 : vector<512x128xf32> to vector<512x128xbf16>
      %c0_15 = arith.constant 0 : index
      %c0_16 = arith.constant 0 : index
      %19 = vector.load %arg6[%c0_15, %c0_16] : memref<512x128xbf16, #tpu.memory_space<vmem>>, vector<512x128xbf16>
      tpu.vector_store %arg6[%c0_15, %c0_16], %18 {strides = array<i32>} : memref<512x128xbf16, #tpu.memory_space<vmem>>, vector<512x128xbf16>,
    } else {
    }
    return
  }
  func.func @transform_0(%arg0: i32, %arg1: i32, %arg2: i32) -> (i32, i32) {
    %c0_i32 = arith.constant 0 : i32
    return %arg0, %arg2 : i32, i32
  }
  func.func @transform_1(%arg0: i32, %arg1: i32, %arg2: i32) -> (i32, i32) {
    %c0_i32 = arith.constant 0 : i32
    return %arg2, %arg1 : i32, i32
  }
  func.func @transform_2(%arg0: i32, %arg1: i32, %arg2: i32) -> (i32, i32) {
    %c0_i32 = arith.constant 0 : i32
    %c0_i32_0 = arith.constant 0 : i32
    return %c0_i32, %arg1 : i32, i32
  }
  func.func @transform_3(%arg0: i32, %arg1: i32, %arg2: i32) -> (i32, i32) {
    %c0_i32 = arith.constant 0 : i32
    return %arg0, %arg1 : i32, i32
  }
}

module attributes {stable_mosaic.version = 11 : i64} {
  func.func @_fused_matmul_kernel(%arg0: i32, %arg1: i32, %arg2: i32, %arg3: memref<128x256xbf16, #tpu.memory_space<vmem>>, %arg4: memref<256x128xbf16, #tpu.memory_space<vmem>>, %arg5: memref<1x128xf32, #tpu.memory_space<vmem>>, %arg6: memref<128x128xbf16, #tpu.memory_space<vmem>>, %arg7: memref<128x128xf32, #tpu.memory_space<vmem>>) attributes {dimension_semantics = [#tpu.dimension_semantics<parallel>, #tpu.dimension_semantics<parallel>, #tpu.dimension_semantics<arbitrary>], iteration_bounds = array<i64: 1, 1, 1>, scalar_prefetch = 0 : i64, scratch_operands = 1 : i64, tpu.core_type = #tpu.core_type<tc>, window_params = [{transform_indices = @transform_0, window_bounds = array<i64: 128, 256>}, {transform_indices = @transform_1, window_bounds = array<i64: 256, 128>}, {transform_indices = @transform_2, window_bounds = array<i64: 1, 128>}, {transform_indices = @transform_3, window_bounds = array<i64: 128, 128>}]} {
    %c0_i32 = arith.constant 0 : i32
    %0 = arith.cmpi eq, %arg2, %c0_i32 : i32
    %1 = arith.extui %0 : i1 to i32
    %c0_i32_0 = arith.constant 0 : i32
    %2 = arith.cmpi ne, %1, %c0_i32_0 : i32
    scf.if %2 {
      %cst_10 = arith.constant 0.000000e+00 : f32
      %12 = vector.broadcast %cst_10 : f32 to vector<128x128xf32>
      %c0_11 = arith.constant 0 : index
      %c0_12 = arith.constant 0 : index
      %13 = vector.load %arg7[%c0_11, %c0_12] : memref<128x128xf32, #tpu.memory_space<vmem>>, vector<128x128xf32>
      tpu.vector_store %arg7[%c0_11, %c0_12], %12 {strides = array<i32>} : memref<128x128xf32, #tpu.memory_space<vmem>>, vector<128x128xf32>,
    } else {
    }
    %c0 = arith.constant 0 : index
    %c0_1 = arith.constant 0 : index
    %3 = vector.load %arg7[%c0, %c0_1] : memref<128x128xf32, #tpu.memory_space<vmem>>, vector<128x128xf32>
    %c0_2 = arith.constant 0 : index
    %c0_3 = arith.constant 0 : index
    %4 = vector.load %arg3[%c0_2, %c0_3] : memref<128x256xbf16, #tpu.memory_space<vmem>>, vector<128x256xbf16>
    %c0_4 = arith.constant 0 : index
    %c0_5 = arith.constant 0 : index
    %5 = vector.load %arg4[%c0_4, %c0_5] : memref<256x128xbf16, #tpu.memory_space<vmem>>, vector<256x128xbf16>
    %cst = arith.constant dense<0.000000e+00> : vector<128x128xf32>
    %6 = tpu.matmul %4, %5, %cst {dimension_numbers = #tpu.dot_dimension_numbers<[1], [0], [0], [1], [0, 0, 1, 1], [], []>} : vector<128x256xbf16>, vector<256x128xbf16>, vector<128x128xf32> -> vector<128x128xf32>
    %7 = arith.addf %3, %6 : vector<128x128xf32>
    %c0_6 = arith.constant 0 : index
    %c0_7 = arith.constant 0 : index
    %8 = vector.load %arg7[%c0_6, %c0_7] : memref<128x128xf32, #tpu.memory_space<vmem>>, vector<128x128xf32>
    tpu.vector_store %arg7[%c0_6, %c0_7], %7 {strides = array<i32>} : memref<128x128xf32, #tpu.memory_space<vmem>>, vector<128x128xf32>,
    %c0_i32_8 = arith.constant 0 : i32
    %9 = arith.cmpi eq, %arg2, %c0_i32_8 : i32
    %10 = arith.extui %9 : i1 to i32
    %c0_i32_9 = arith.constant 0 : i32
    %11 = arith.cmpi ne, %10, %c0_i32_9 : i32
    scf.if %11 {
      %c0_10 = arith.constant 0 : index
      %c0_11 = arith.constant 0 : index
      %12 = vector.load %arg7[%c0_10, %c0_11] : memref<128x128xf32, #tpu.memory_space<vmem>>, vector<128x128xf32>
      %c0_12 = arith.constant 0 : index
      %c0_13 = arith.constant 0 : index
      %13 = vector.load %arg5[%c0_12, %c0_13] : memref<1x128xf32, #tpu.memory_space<vmem>>, vector<1x128xf32>
      %14 = vector.broadcast %13 : vector<1x128xf32> to vector<128x128xf32>
      %15 = arith.addf %12, %14 : vector<128x128xf32>
      %cst_14 = arith.constant 0.000000e+00 : f32
      %16 = vector.broadcast %cst_14 : f32 to vector<128x128xf32>
      %17 = arith.maximumf %15, %16 : vector<128x128xf32>
      %18 = arith.truncf %17 : vector<128x128xf32> to vector<128x128xbf16>
      %c0_15 = arith.constant 0 : index
      %c0_16 = arith.constant 0 : index
      %19 = vector.load %arg6[%c0_15, %c0_16] : memref<128x128xbf16, #tpu.memory_space<vmem>>, vector<128x128xbf16>
      tpu.vector_store %arg6[%c0_15, %c0_16], %18 {strides = array<i32>} : memref<128x128xbf16, #tpu.memory_space<vmem>>, vector<128x128xbf16>,
    } else {
    }
    return
  }
  func.func @transform_0(%arg0: i32, %arg1: i32, %arg2: i32) -> (i32, i32) {
    %c0_i32 = arith.constant 0 : i32
    return %arg0, %arg2 : i32, i32
  }
  func.func @transform_1(%arg0: i32, %arg1: i32, %arg2: i32) -> (i32, i32) {
    %c0_i32 = arith.constant 0 : i32
    return %arg2, %arg1 : i32, i32
  }
  func.func @transform_2(%arg0: i32, %arg1: i32, %arg2: i32) -> (i32, i32) {
    %c0_i32 = arith.constant 0 : i32
    %c0_i32_0 = arith.constant 0 : i32
    return %c0_i32, %arg1 : i32, i32
  }
  func.func @transform_3(%arg0: i32, %arg1: i32, %arg2: i32) -> (i32, i32) {
    %c0_i32 = arith.constant 0 : i32
    return %arg0, %arg1 : i32, i32
  }
}

module attributes {stable_mosaic.version = 11 : i64} {
  func.func @_fused_matmul_kernel(%arg0: i32, %arg1: i32, %arg2: i32, %arg3: memref<128x384xbf16, #tpu.memory_space<vmem>>, %arg4: memref<384x128xbf16, #tpu.memory_space<vmem>>, %arg5: memref<1x128xf32, #tpu.memory_space<vmem>>, %arg6: memref<128x128xbf16, #tpu.memory_space<vmem>>, %arg7: memref<128x128xf32, #tpu.memory_space<vmem>>) attributes {dimension_semantics = [#tpu.dimension_semantics<parallel>, #tpu.dimension_semantics<parallel>, #tpu.dimension_semantics<arbitrary>], iteration_bounds = array<i64: 1, 1, 1>, scalar_prefetch = 0 : i64, scratch_operands = 1 : i64, tpu.core_type = #tpu.core_type<tc>, window_params = [{transform_indices = @transform_0, window_bounds = array<i64: 128, 384>}, {transform_indices = @transform_1, window_bounds = array<i64: 384, 128>}, {transform_indices = @transform_2, window_bounds = array<i64: 1, 128>}, {transform_indices = @transform_3, window_bounds = array<i64: 128, 128>}]} {
    %c0_i32 = arith.constant 0 : i32
    %0 = arith.cmpi eq, %arg2, %c0_i32 : i32
    %1 = arith.extui %0 : i1 to i32
    %c0_i32_0 = arith.constant 0 : i32
    %2 = arith.cmpi ne, %1, %c0_i32_0 : i32
    scf.if %2 {
      %cst_10 = arith.constant 0.000000e+00 : f32
      %12 = vector.broadcast %cst_10 : f32 to vector<128x128xf32>
      %c0_11 = arith.constant 0 : index
      %c0_12 = arith.constant 0 : index
      %13 = vector.load %arg7[%c0_11, %c0_12] : memref<128x128xf32, #tpu.memory_space<vmem>>, vector<128x128xf32>
      tpu.vector_store %arg7[%c0_11, %c0_12], %12 {strides = array<i32>} : memref<128x128xf32, #tpu.memory_space<vmem>>, vector<128x128xf32>,
    } else {
    }
    %c0 = arith.constant 0 : index
    %c0_1 = arith.constant 0 : index
    %3 = vector.load %arg7[%c0, %c0_1] : memref<128x128xf32, #tpu.memory_space<vmem>>, vector<128x128xf32>
    %c0_2 = arith.constant 0 : index
    %c0_3 = arith.constant 0 : index
    %4 = vector.load %arg3[%c0_2, %c0_3] : memref<128x384xbf16, #tpu.memory_space<vmem>>, vector<128x384xbf16>
    %c0_4 = arith.constant 0 : index
    %c0_5 = arith.constant 0 : index
    %5 = vector.load %arg4[%c0_4, %c0_5] : memref<384x128xbf16, #tpu.memory_space<vmem>>, vector<384x128xbf16>
    %cst = arith.constant dense<0.000000e+00> : vector<128x128xf32>
    %6 = tpu.matmul %4, %5, %cst {dimension_numbers = #tpu.dot_dimension_numbers<[1], [0], [0], [1], [0, 0, 1, 1], [], []>} : vector<128x384xbf16>, vector<384x128xbf16>, vector<128x128xf32> -> vector<128x128xf32>
    %7 = arith.addf %3, %6 : vector<128x128xf32>
    %c0_6 = arith.constant 0 : index
    %c0_7 = arith.constant 0 : index
    %8 = vector.load %arg7[%c0_6, %c0_7] : memref<128x128xf32, #tpu.memory_space<vmem>>, vector<128x128xf32>
    tpu.vector_store %arg7[%c0_6, %c0_7], %7 {strides = array<i32>} : memref<128x128xf32, #tpu.memory_space<vmem>>, vector<128x128xf32>,
    %c0_i32_8 = arith.constant 0 : i32
    %9 = arith.cmpi eq, %arg2, %c0_i32_8 : i32
    %10 = arith.extui %9 : i1 to i32
    %c0_i32_9 = arith.constant 0 : i32
    %11 = arith.cmpi ne, %10, %c0_i32_9 : i32
    scf.if %11 {
      %c0_10 = arith.constant 0 : index
      %c0_11 = arith.constant 0 : index
      %12 = vector.load %arg7[%c0_10, %c0_11] : memref<128x128xf32, #tpu.memory_space<vmem>>, vector<128x128xf32>
      %c0_12 = arith.constant 0 : index
      %c0_13 = arith.constant 0 : index
      %13 = vector.load %arg5[%c0_12, %c0_13] : memref<1x128xf32, #tpu.memory_space<vmem>>, vector<1x128xf32>
      %14 = vector.broadcast %13 : vector<1x128xf32> to vector<128x128xf32>
      %15 = arith.addf %12, %14 : vector<128x128xf32>
      %cst_14 = arith.constant 0.000000e+00 : f32
      %16 = vector.broadcast %cst_14 : f32 to vector<128x128xf32>
      %17 = arith.maximumf %15, %16 : vector<128x128xf32>
      %18 = arith.truncf %17 : vector<128x128xf32> to vector<128x128xbf16>
      %c0_15 = arith.constant 0 : index
      %c0_16 = arith.constant 0 : index
      %19 = vector.load %arg6[%c0_15, %c0_16] : memref<128x128xbf16, #tpu.memory_space<vmem>>, vector<128x128xbf16>
      tpu.vector_store %arg6[%c0_15, %c0_16], %18 {strides = array<i32>} : memref<128x128xbf16, #tpu.memory_space<vmem>>, vector<128x128xbf16>,
    } else {
    }
    return
  }
  func.func @transform_0(%arg0: i32, %arg1: i32, %arg2: i32) -> (i32, i32) {
    %c0_i32 = arith.constant 0 : i32
    return %arg0, %arg2 : i32, i32
  }
  func.func @transform_1(%arg0: i32, %arg1: i32, %arg2: i32) -> (i32, i32) {
    %c0_i32 = arith.constant 0 : i32
    return %arg2, %arg1 : i32, i32
  }
  func.func @transform_2(%arg0: i32, %arg1: i32, %arg2: i32) -> (i32, i32) {
    %c0_i32 = arith.constant 0 : i32
    %c0_i32_0 = arith.constant 0 : i32
    return %c0_i32, %arg1 : i32, i32
  }
  func.func @transform_3(%arg0: i32, %arg1: i32, %arg2: i32) -> (i32, i32) {
    %c0_i32 = arith.constant 0 : i32
    return %arg0, %arg1 : i32, i32
  }
}

module attributes {stable_mosaic.version = 11 : i64} {
  func.func @_fused_matmul_kernel(%arg0: i32, %arg1: i32, %arg2: i32, %arg3: memref<32x384xbf16, #tpu.memory_space<vmem>>, %arg4: memref<384x128xbf16, #tpu.memory_space<vmem>>, %arg5: memref<1x128xf32, #tpu.memory_space<vmem>>, %arg6: memref<32x128xbf16, #tpu.memory_space<vmem>>, %arg7: memref<32x128xf32, #tpu.memory_space<vmem>>) attributes {dimension_semantics = [#tpu.dimension_semantics<parallel>, #tpu.dimension_semantics<parallel>, #tpu.dimension_semantics<arbitrary>], iteration_bounds = array<i64: 1, 1, 1>, scalar_prefetch = 0 : i64, scratch_operands = 1 : i64, tpu.core_type = #tpu.core_type<tc>, window_params = [{transform_indices = @transform_0, window_bounds = array<i64: 32, 384>}, {transform_indices = @transform_1, window_bounds = array<i64: 384, 128>}, {transform_indices = @transform_2, window_bounds = array<i64: 1, 128>}, {transform_indices = @transform_3, window_bounds = array<i64: 32, 128>}]} {
    %c0_i32 = arith.constant 0 : i32
    %0 = arith.cmpi eq, %arg2, %c0_i32 : i32
    %1 = arith.extui %0 : i1 to i32
    %c0_i32_0 = arith.constant 0 : i32
    %2 = arith.cmpi ne, %1, %c0_i32_0 : i32
    scf.if %2 {
      %cst_10 = arith.constant 0.000000e+00 : f32
      %12 = vector.broadcast %cst_10 : f32 to vector<32x128xf32>
      %c0_11 = arith.constant 0 : index
      %c0_12 = arith.constant 0 : index
      %13 = vector.load %arg7[%c0_11, %c0_12] : memref<32x128xf32, #tpu.memory_space<vmem>>, vector<32x128xf32>
      tpu.vector_store %arg7[%c0_11, %c0_12], %12 {strides = array<i32>} : memref<32x128xf32, #tpu.memory_space<vmem>>, vector<32x128xf32>,
    } else {
    }
    %c0 = arith.constant 0 : index
    %c0_1 = arith.constant 0 : index
    %3 = vector.load %arg7[%c0, %c0_1] : memref<32x128xf32, #tpu.memory_space<vmem>>, vector<32x128xf32>
    %c0_2 = arith.constant 0 : index
    %c0_3 = arith.constant 0 : index
    %4 = vector.load %arg3[%c0_2, %c0_3] : memref<32x384xbf16, #tpu.memory_space<vmem>>, vector<32x384xbf16>
    %c0_4 = arith.constant 0 : index
    %c0_5 = arith.constant 0 : index
    %5 = vector.load %arg4[%c0_4, %c0_5] : memref<384x128xbf16, #tpu.memory_space<vmem>>, vector<384x128xbf16>
    %cst = arith.constant dense<0.000000e+00> : vector<32x128xf32>
    %6 = tpu.matmul %4, %5, %cst {dimension_numbers = #tpu.dot_dimension_numbers<[1], [0], [0], [1], [0, 0, 1, 1], [], []>} : vector<32x384xbf16>, vector<384x128xbf16>, vector<32x128xf32> -> vector<32x128xf32>
    %7 = arith.addf %3, %6 : vector<32x128xf32>
    %c0_6 = arith.constant 0 : index
    %c0_7 = arith.constant 0 : index
    %8 = vector.load %arg7[%c0_6, %c0_7] : memref<32x128xf32, #tpu.memory_space<vmem>>, vector<32x128xf32>
    tpu.vector_store %arg7[%c0_6, %c0_7], %7 {strides = array<i32>} : memref<32x128xf32, #tpu.memory_space<vmem>>, vector<32x128xf32>,
    %c0_i32_8 = arith.constant 0 : i32
    %9 = arith.cmpi eq, %arg2, %c0_i32_8 : i32
    %10 = arith.extui %9 : i1 to i32
    %c0_i32_9 = arith.constant 0 : i32
    %11 = arith.cmpi ne, %10, %c0_i32_9 : i32
    scf.if %11 {
      %c0_10 = arith.constant 0 : index
      %c0_11 = arith.constant 0 : index
      %12 = vector.load %arg7[%c0_10, %c0_11] : memref<32x128xf32, #tpu.memory_space<vmem>>, vector<32x128xf32>
      %c0_12 = arith.constant 0 : index
      %c0_13 = arith.constant 0 : index
      %13 = vector.load %arg5[%c0_12, %c0_13] : memref<1x128xf32, #tpu.memory_space<vmem>>, vector<1x128xf32>
      %14 = vector.broadcast %13 : vector<1x128xf32> to vector<32x128xf32>
      %15 = arith.addf %12, %14 : vector<32x128xf32>
      %cst_14 = arith.constant 0.000000e+00 : f32
      %16 = vector.broadcast %cst_14 : f32 to vector<32x128xf32>
      %17 = arith.maximumf %15, %16 : vector<32x128xf32>
      %18 = arith.truncf %17 : vector<32x128xf32> to vector<32x128xbf16>
      %c0_15 = arith.constant 0 : index
      %c0_16 = arith.constant 0 : index
      %19 = vector.load %arg6[%c0_15, %c0_16] : memref<32x128xbf16, #tpu.memory_space<vmem>>, vector<32x128xbf16>
      tpu.vector_store %arg6[%c0_15, %c0_16], %18 {strides = array<i32>} : memref<32x128xbf16, #tpu.memory_space<vmem>>, vector<32x128xbf16>,
    } else {
    }
    return
  }
  func.func @transform_0(%arg0: i32, %arg1: i32, %arg2: i32) -> (i32, i32) {
    %c0_i32 = arith.constant 0 : i32
    return %arg0, %arg2 : i32, i32
  }
  func.func @transform_1(%arg0: i32, %arg1: i32, %arg2: i32) -> (i32, i32) {
    %c0_i32 = arith.constant 0 : i32
    return %arg2, %arg1 : i32, i32
  }
  func.func @transform_2(%arg0: i32, %arg1: i32, %arg2: i32) -> (i32, i32) {
    %c0_i32 = arith.constant 0 : i32
    %c0_i32_0 = arith.constant 0 : i32
    return %c0_i32, %arg1 : i32, i32
  }
  func.func @transform_3(%arg0: i32, %arg1: i32, %arg2: i32) -> (i32, i32) {
    %c0_i32 = arith.constant 0 : i32
    return %arg0, %arg1 : i32, i32
  }
}

module attributes {stable_mosaic.version = 11 : i64} {
  func.func @_fused_matmul_kernel(%arg0: i32, %arg1: i32, %arg2: i32, %arg3: memref<32x640xbf16, #tpu.memory_space<vmem>>, %arg4: memref<640x128xbf16, #tpu.memory_space<vmem>>, %arg5: memref<1x128xf32, #tpu.memory_space<vmem>>, %arg6: memref<32x128xbf16, #tpu.memory_space<vmem>>, %arg7: memref<32x128xf32, #tpu.memory_space<vmem>>) attributes {dimension_semantics = [#tpu.dimension_semantics<parallel>, #tpu.dimension_semantics<parallel>, #tpu.dimension_semantics<arbitrary>], iteration_bounds = array<i64: 1, 1, 1>, scalar_prefetch = 0 : i64, scratch_operands = 1 : i64, tpu.core_type = #tpu.core_type<tc>, window_params = [{transform_indices = @transform_0, window_bounds = array<i64: 32, 640>}, {transform_indices = @transform_1, window_bounds = array<i64: 640, 128>}, {transform_indices = @transform_2, window_bounds = array<i64: 1, 128>}, {transform_indices = @transform_3, window_bounds = array<i64: 32, 128>}]} {
    %c0_i32 = arith.constant 0 : i32
    %0 = arith.cmpi eq, %arg2, %c0_i32 : i32
    %1 = arith.extui %0 : i1 to i32
    %c0_i32_0 = arith.constant 0 : i32
    %2 = arith.cmpi ne, %1, %c0_i32_0 : i32
    scf.if %2 {
      %cst_10 = arith.constant 0.000000e+00 : f32
      %12 = vector.broadcast %cst_10 : f32 to vector<32x128xf32>
      %c0_11 = arith.constant 0 : index
      %c0_12 = arith.constant 0 : index
      %13 = vector.load %arg7[%c0_11, %c0_12] : memref<32x128xf32, #tpu.memory_space<vmem>>, vector<32x128xf32>
      tpu.vector_store %arg7[%c0_11, %c0_12], %12 {strides = array<i32>} : memref<32x128xf32, #tpu.memory_space<vmem>>, vector<32x128xf32>,
    } else {
    }
    %c0 = arith.constant 0 : index
    %c0_1 = arith.constant 0 : index
    %3 = vector.load %arg7[%c0, %c0_1] : memref<32x128xf32, #tpu.memory_space<vmem>>, vector<32x128xf32>
    %c0_2 = arith.constant 0 : index
    %c0_3 = arith.constant 0 : index
    %4 = vector.load %arg3[%c0_2, %c0_3] : memref<32x640xbf16, #tpu.memory_space<vmem>>, vector<32x640xbf16>
    %c0_4 = arith.constant 0 : index
    %c0_5 = arith.constant 0 : index
    %5 = vector.load %arg4[%c0_4, %c0_5] : memref<640x128xbf16, #tpu.memory_space<vmem>>, vector<640x128xbf16>
    %cst = arith.constant dense<0.000000e+00> : vector<32x128xf32>
    %6 = tpu.matmul %4, %5, %cst {dimension_numbers = #tpu.dot_dimension_numbers<[1], [0], [0], [1], [0, 0, 1, 1], [], []>} : vector<32x640xbf16>, vector<640x128xbf16>, vector<32x128xf32> -> vector<32x128xf32>
    %7 = arith.addf %3, %6 : vector<32x128xf32>
    %c0_6 = arith.constant 0 : index
    %c0_7 = arith.constant 0 : index
    %8 = vector.load %arg7[%c0_6, %c0_7] : memref<32x128xf32, #tpu.memory_space<vmem>>, vector<32x128xf32>
    tpu.vector_store %arg7[%c0_6, %c0_7], %7 {strides = array<i32>} : memref<32x128xf32, #tpu.memory_space<vmem>>, vector<32x128xf32>,
    %c0_i32_8 = arith.constant 0 : i32
    %9 = arith.cmpi eq, %arg2, %c0_i32_8 : i32
    %10 = arith.extui %9 : i1 to i32
    %c0_i32_9 = arith.constant 0 : i32
    %11 = arith.cmpi ne, %10, %c0_i32_9 : i32
    scf.if %11 {
      %c0_10 = arith.constant 0 : index
      %c0_11 = arith.constant 0 : index
      %12 = vector.load %arg7[%c0_10, %c0_11] : memref<32x128xf32, #tpu.memory_space<vmem>>, vector<32x128xf32>
      %c0_12 = arith.constant 0 : index
      %c0_13 = arith.constant 0 : index
      %13 = vector.load %arg5[%c0_12, %c0_13] : memref<1x128xf32, #tpu.memory_space<vmem>>, vector<1x128xf32>
      %14 = vector.broadcast %13 : vector<1x128xf32> to vector<32x128xf32>
      %15 = arith.addf %12, %14 : vector<32x128xf32>
      %cst_14 = arith.constant 0.000000e+00 : f32
      %16 = vector.broadcast %cst_14 : f32 to vector<32x128xf32>
      %17 = arith.maximumf %15, %16 : vector<32x128xf32>
      %18 = arith.truncf %17 : vector<32x128xf32> to vector<32x128xbf16>
      %c0_15 = arith.constant 0 : index
      %c0_16 = arith.constant 0 : index
      %19 = vector.load %arg6[%c0_15, %c0_16] : memref<32x128xbf16, #tpu.memory_space<vmem>>, vector<32x128xbf16>
      tpu.vector_store %arg6[%c0_15, %c0_16], %18 {strides = array<i32>} : memref<32x128xbf16, #tpu.memory_space<vmem>>, vector<32x128xbf16>,
    } else {
    }
    return
  }
  func.func @transform_0(%arg0: i32, %arg1: i32, %arg2: i32) -> (i32, i32) {
    %c0_i32 = arith.constant 0 : i32
    return %arg0, %arg2 : i32, i32
  }
  func.func @transform_1(%arg0: i32, %arg1: i32, %arg2: i32) -> (i32, i32) {
    %c0_i32 = arith.constant 0 : i32
    return %arg2, %arg1 : i32, i32
  }
  func.func @transform_2(%arg0: i32, %arg1: i32, %arg2: i32) -> (i32, i32) {
    %c0_i32 = arith.constant 0 : i32
    %c0_i32_0 = arith.constant 0 : i32
    return %c0_i32, %arg1 : i32, i32
  }
  func.func @transform_3(%arg0: i32, %arg1: i32, %arg2: i32) -> (i32, i32) {
    %c0_i32 = arith.constant 0 : i32
    return %arg0, %arg1 : i32, i32
  }
}

module attributes {stable_mosaic.version = 11 : i64} {
  func.func @_fused_matmul_kernel(%arg0: i32, %arg1: i32, %arg2: i32, %arg3: memref<8x640xbf16, #tpu.memory_space<vmem>>, %arg4: memref<640x128xbf16, #tpu.memory_space<vmem>>, %arg5: memref<1x128xf32, #tpu.memory_space<vmem>>, %arg6: memref<8x128xbf16, #tpu.memory_space<vmem>>, %arg7: memref<8x128xf32, #tpu.memory_space<vmem>>) attributes {dimension_semantics = [#tpu.dimension_semantics<parallel>, #tpu.dimension_semantics<parallel>, #tpu.dimension_semantics<arbitrary>], iteration_bounds = array<i64: 1, 1, 1>, scalar_prefetch = 0 : i64, scratch_operands = 1 : i64, tpu.core_type = #tpu.core_type<tc>, window_params = [{transform_indices = @transform_0, window_bounds = array<i64: 8, 640>}, {transform_indices = @transform_1, window_bounds = array<i64: 640, 128>}, {transform_indices = @transform_2, window_bounds = array<i64: 1, 128>}, {transform_indices = @transform_3, window_bounds = array<i64: 8, 128>}]} {
    %c0_i32 = arith.constant 0 : i32
    %0 = arith.cmpi eq, %arg2, %c0_i32 : i32
    %1 = arith.extui %0 : i1 to i32
    %c0_i32_0 = arith.constant 0 : i32
    %2 = arith.cmpi ne, %1, %c0_i32_0 : i32
    scf.if %2 {
      %cst_10 = arith.constant 0.000000e+00 : f32
      %12 = vector.broadcast %cst_10 : f32 to vector<8x128xf32>
      %c0_11 = arith.constant 0 : index
      %c0_12 = arith.constant 0 : index
      %13 = vector.load %arg7[%c0_11, %c0_12] : memref<8x128xf32, #tpu.memory_space<vmem>>, vector<8x128xf32>
      tpu.vector_store %arg7[%c0_11, %c0_12], %12 {strides = array<i32>} : memref<8x128xf32, #tpu.memory_space<vmem>>, vector<8x128xf32>,
    } else {
    }
    %c0 = arith.constant 0 : index
    %c0_1 = arith.constant 0 : index
    %3 = vector.load %arg7[%c0, %c0_1] : memref<8x128xf32, #tpu.memory_space<vmem>>, vector<8x128xf32>
    %c0_2 = arith.constant 0 : index
    %c0_3 = arith.constant 0 : index
    %4 = vector.load %arg3[%c0_2, %c0_3] : memref<8x640xbf16, #tpu.memory_space<vmem>>, vector<8x640xbf16>
    %c0_4 = arith.constant 0 : index
    %c0_5 = arith.constant 0 : index
    %5 = vector.load %arg4[%c0_4, %c0_5] : memref<640x128xbf16, #tpu.memory_space<vmem>>, vector<640x128xbf16>
    %cst = arith.constant dense<0.000000e+00> : vector<8x128xf32>
    %6 = tpu.matmul %4, %5, %cst {dimension_numbers = #tpu.dot_dimension_numbers<[1], [0], [0], [1], [0, 0, 1, 1], [], []>} : vector<8x640xbf16>, vector<640x128xbf16>, vector<8x128xf32> -> vector<8x128xf32>
    %7 = arith.addf %3, %6 : vector<8x128xf32>
    %c0_6 = arith.constant 0 : index
    %c0_7 = arith.constant 0 : index
    %8 = vector.load %arg7[%c0_6, %c0_7] : memref<8x128xf32, #tpu.memory_space<vmem>>, vector<8x128xf32>
    tpu.vector_store %arg7[%c0_6, %c0_7], %7 {strides = array<i32>} : memref<8x128xf32, #tpu.memory_space<vmem>>, vector<8x128xf32>,
    %c0_i32_8 = arith.constant 0 : i32
    %9 = arith.cmpi eq, %arg2, %c0_i32_8 : i32
    %10 = arith.extui %9 : i1 to i32
    %c0_i32_9 = arith.constant 0 : i32
    %11 = arith.cmpi ne, %10, %c0_i32_9 : i32
    scf.if %11 {
      %c0_10 = arith.constant 0 : index
      %c0_11 = arith.constant 0 : index
      %12 = vector.load %arg7[%c0_10, %c0_11] : memref<8x128xf32, #tpu.memory_space<vmem>>, vector<8x128xf32>
      %c0_12 = arith.constant 0 : index
      %c0_13 = arith.constant 0 : index
      %13 = vector.load %arg5[%c0_12, %c0_13] : memref<1x128xf32, #tpu.memory_space<vmem>>, vector<1x128xf32>
      %14 = vector.broadcast %13 : vector<1x128xf32> to vector<8x128xf32>
      %15 = arith.addf %12, %14 : vector<8x128xf32>
      %cst_14 = arith.constant 0.000000e+00 : f32
      %16 = vector.broadcast %cst_14 : f32 to vector<8x128xf32>
      %17 = arith.maximumf %15, %16 : vector<8x128xf32>
      %18 = arith.truncf %17 : vector<8x128xf32> to vector<8x128xbf16>
      %c0_15 = arith.constant 0 : index
      %c0_16 = arith.constant 0 : index
      %19 = vector.load %arg6[%c0_15, %c0_16] : memref<8x128xbf16, #tpu.memory_space<vmem>>, vector<8x128xbf16>
      tpu.vector_store %arg6[%c0_15, %c0_16], %18 {strides = array<i32>} : memref<8x128xbf16, #tpu.memory_space<vmem>>, vector<8x128xbf16>,
    } else {
    }
    return
  }
  func.func @transform_0(%arg0: i32, %arg1: i32, %arg2: i32) -> (i32, i32) {
    %c0_i32 = arith.constant 0 : i32
    return %arg0, %arg2 : i32, i32
  }
  func.func @transform_1(%arg0: i32, %arg1: i32, %arg2: i32) -> (i32, i32) {
    %c0_i32 = arith.constant 0 : i32
    return %arg2, %arg1 : i32, i32
  }
  func.func @transform_2(%arg0: i32, %arg1: i32, %arg2: i32) -> (i32, i32) {
    %c0_i32 = arith.constant 0 : i32
    %c0_i32_0 = arith.constant 0 : i32
    return %c0_i32, %arg1 : i32, i32
  }
  func.func @transform_3(%arg0: i32, %arg1: i32, %arg2: i32) -> (i32, i32) {
    %c0_i32 = arith.constant 0 : i32
    return %arg0, %arg1 : i32, i32
  }
}

module attributes {stable_mosaic.version = 11 : i64} {
  func.func @_fused_matmul_kernel(%arg0: i32, %arg1: i32, %arg2: i32, %arg3: memref<8x640xbf16, #tpu.memory_space<vmem>>, %arg4: memref<640x128xbf16, #tpu.memory_space<vmem>>, %arg5: memref<1x128xf32, #tpu.memory_space<vmem>>, %arg6: memref<8x128xbf16, #tpu.memory_space<vmem>>, %arg7: memref<8x128xf32, #tpu.memory_space<vmem>>) attributes {dimension_semantics = [#tpu.dimension_semantics<parallel>, #tpu.dimension_semantics<parallel>, #tpu.dimension_semantics<arbitrary>], iteration_bounds = array<i64: 1, 1, 2>, scalar_prefetch = 0 : i64, scratch_operands = 1 : i64, tpu.core_type = #tpu.core_type<tc>, window_params = [{transform_indices = @transform_0, window_bounds = array<i64: 8, 640>}, {transform_indices = @transform_1, window_bounds = array<i64: 640, 128>}, {transform_indices = @transform_2, window_bounds = array<i64: 1, 128>}, {transform_indices = @transform_3, window_bounds = array<i64: 8, 128>}]} {
    %c0_i32 = arith.constant 0 : i32
    %0 = arith.cmpi eq, %arg2, %c0_i32 : i32
    %1 = arith.extui %0 : i1 to i32
    %c0_i32_0 = arith.constant 0 : i32
    %2 = arith.cmpi ne, %1, %c0_i32_0 : i32
    scf.if %2 {
      %cst_9 = arith.constant 0.000000e+00 : f32
      %12 = vector.broadcast %cst_9 : f32 to vector<8x128xf32>
      %c0_10 = arith.constant 0 : index
      %c0_11 = arith.constant 0 : index
      %13 = vector.load %arg7[%c0_10, %c0_11] : memref<8x128xf32, #tpu.memory_space<vmem>>, vector<8x128xf32>
      tpu.vector_store %arg7[%c0_10, %c0_11], %12 {strides = array<i32>} : memref<8x128xf32, #tpu.memory_space<vmem>>, vector<8x128xf32>,
    } else {
    }
    %c0 = arith.constant 0 : index
    %c0_1 = arith.constant 0 : index
    %3 = vector.load %arg7[%c0, %c0_1] : memref<8x128xf32, #tpu.memory_space<vmem>>, vector<8x128xf32>
    %c0_2 = arith.constant 0 : index
    %c0_3 = arith.constant 0 : index
    %4 = vector.load %arg3[%c0_2, %c0_3] : memref<8x640xbf16, #tpu.memory_space<vmem>>, vector<8x640xbf16>
    %c0_4 = arith.constant 0 : index
    %c0_5 = arith.constant 0 : index
    %5 = vector.load %arg4[%c0_4, %c0_5] : memref<640x128xbf16, #tpu.memory_space<vmem>>, vector<640x128xbf16>
    %cst = arith.constant dense<0.000000e+00> : vector<8x128xf32>
    %6 = tpu.matmul %4, %5, %cst {dimension_numbers = #tpu.dot_dimension_numbers<[1], [0], [0], [1], [0, 0, 1, 1], [], []>} : vector<8x640xbf16>, vector<640x128xbf16>, vector<8x128xf32> -> vector<8x128xf32>
    %7 = arith.addf %3, %6 : vector<8x128xf32>
    %c0_6 = arith.constant 0 : index
    %c0_7 = arith.constant 0 : index
    %8 = vector.load %arg7[%c0_6, %c0_7] : memref<8x128xf32, #tpu.memory_space<vmem>>, vector<8x128xf32>
    tpu.vector_store %arg7[%c0_6, %c0_7], %7 {strides = array<i32>} : memref<8x128xf32, #tpu.memory_space<vmem>>, vector<8x128xf32>,
    %c1_i32 = arith.constant 1 : i32
    %9 = arith.cmpi eq, %arg2, %c1_i32 : i32
    %10 = arith.extui %9 : i1 to i32
    %c0_i32_8 = arith.constant 0 : i32
    %11 = arith.cmpi ne, %10, %c0_i32_8 : i32
    scf.if %11 {
      %c0_9 = arith.constant 0 : index
      %c0_10 = arith.constant 0 : index
      %12 = vector.load %arg7[%c0_9, %c0_10] : memref<8x128xf32, #tpu.memory_space<vmem>>, vector<8x128xf32>
      %c0_11 = arith.constant 0 : index
      %c0_12 = arith.constant 0 : index
      %13 = vector.load %arg5[%c0_11, %c0_12] : memref<1x128xf32, #tpu.memory_space<vmem>>, vector<1x128xf32>
      %14 = vector.broadcast %13 : vector<1x128xf32> to vector<8x128xf32>
      %15 = arith.addf %12, %14 : vector<8x128xf32>
      %cst_13 = arith.constant 0.000000e+00 : f32
      %16 = vector.broadcast %cst_13 : f32 to vector<8x128xf32>
      %17 = arith.maximumf %15, %16 : vector<8x128xf32>
      %18 = arith.truncf %17 : vector<8x128xf32> to vector<8x128xbf16>
      %c0_14 = arith.constant 0 : index
      %c0_15 = arith.constant 0 : index
      %19 = vector.load %arg6[%c0_14, %c0_15] : memref<8x128xbf16, #tpu.memory_space<vmem>>, vector<8x128xbf16>
      tpu.vector_store %arg6[%c0_14, %c0_15], %18 {strides = array<i32>} : memref<8x128xbf16, #tpu.memory_space<vmem>>, vector<8x128xbf16>,
    } else {
    }
    return
  }
  func.func @transform_0(%arg0: i32, %arg1: i32, %arg2: i32) -> (i32, i32) {
    %c0_i32 = arith.constant 0 : i32
    return %arg0, %arg2 : i32, i32
  }
  func.func @transform_1(%arg0: i32, %arg1: i32, %arg2: i32) -> (i32, i32) {
    %c0_i32 = arith.constant 0 : i32
    return %arg2, %arg1 : i32, i32
  }
  func.func @transform_2(%arg0: i32, %arg1: i32, %arg2: i32) -> (i32, i32) {
    %c0_i32 = arith.constant 0 : i32
    %c0_i32_0 = arith.constant 0 : i32
    return %c0_i32, %arg1 : i32, i32
  }
  func.func @transform_3(%arg0: i32, %arg1: i32, %arg2: i32) -> (i32, i32) {
    %c0_i32 = arith.constant 0 : i32
    return %arg0, %arg1 : i32, i32
  }
}

module attributes {stable_mosaic.version = 11 : i64} {
  func.func @_fused_matmul_kernel(%arg0: i32, %arg1: i32, %arg2: i32, %arg3: memref<8x640xbf16, #tpu.memory_space<vmem>>, %arg4: memref<640x128xbf16, #tpu.memory_space<vmem>>, %arg5: memref<1x128xf32, #tpu.memory_space<vmem>>, %arg6: memref<8x128xbf16, #tpu.memory_space<vmem>>, %arg7: memref<8x128xf32, #tpu.memory_space<vmem>>) attributes {dimension_semantics = [#tpu.dimension_semantics<parallel>, #tpu.dimension_semantics<parallel>, #tpu.dimension_semantics<arbitrary>], iteration_bounds = array<i64: 1, 2, 2>, scalar_prefetch = 0 : i64, scratch_operands = 1 : i64, tpu.core_type = #tpu.core_type<tc>, window_params = [{transform_indices = @transform_0, window_bounds = array<i64: 8, 640>}, {transform_indices = @transform_1, window_bounds = array<i64: 640, 128>}, {transform_indices = @transform_2, window_bounds = array<i64: 1, 128>}, {transform_indices = @transform_3, window_bounds = array<i64: 8, 128>}]} {
    %c0_i32 = arith.constant 0 : i32
    %0 = arith.cmpi eq, %arg2, %c0_i32 : i32
    %1 = arith.extui %0 : i1 to i32
    %c0_i32_0 = arith.constant 0 : i32
    %2 = arith.cmpi ne, %1, %c0_i32_0 : i32
    scf.if %2 {
      %cst_9 = arith.constant 0.000000e+00 : f32
      %12 = vector.broadcast %cst_9 : f32 to vector<8x128xf32>
      %c0_10 = arith.constant 0 : index
      %c0_11 = arith.constant 0 : index
      %13 = vector.load %arg7[%c0_10, %c0_11] : memref<8x128xf32, #tpu.memory_space<vmem>>, vector<8x128xf32>
      tpu.vector_store %arg7[%c0_10, %c0_11], %12 {strides = array<i32>} : memref<8x128xf32, #tpu.memory_space<vmem>>, vector<8x128xf32>,
    } else {
    }
    %c0 = arith.constant 0 : index
    %c0_1 = arith.constant 0 : index
    %3 = vector.load %arg7[%c0, %c0_1] : memref<8x128xf32, #tpu.memory_space<vmem>>, vector<8x128xf32>
    %c0_2 = arith.constant 0 : index
    %c0_3 = arith.constant 0 : index
    %4 = vector.load %arg3[%c0_2, %c0_3] : memref<8x640xbf16, #tpu.memory_space<vmem>>, vector<8x640xbf16>
    %c0_4 = arith.constant 0 : index
    %c0_5 = arith.constant 0 : index
    %5 = vector.load %arg4[%c0_4, %c0_5] : memref<640x128xbf16, #tpu.memory_space<vmem>>, vector<640x128xbf16>
    %cst = arith.constant dense<0.000000e+00> : vector<8x128xf32>
    %6 = tpu.matmul %4, %5, %cst {dimension_numbers = #tpu.dot_dimension_numbers<[1], [0], [0], [1], [0, 0, 1, 1], [], []>} : vector<8x640xbf16>, vector<640x128xbf16>, vector<8x128xf32> -> vector<8x128xf32>
    %7 = arith.addf %3, %6 : vector<8x128xf32>
    %c0_6 = arith.constant 0 : index
    %c0_7 = arith.constant 0 : index
    %8 = vector.load %arg7[%c0_6, %c0_7] : memref<8x128xf32, #tpu.memory_space<vmem>>, vector<8x128xf32>
    tpu.vector_store %arg7[%c0_6, %c0_7], %7 {strides = array<i32>} : memref<8x128xf32, #tpu.memory_space<vmem>>, vector<8x128xf32>,
    %c1_i32 = arith.constant 1 : i32
    %9 = arith.cmpi eq, %arg2, %c1_i32 : i32
    %10 = arith.extui %9 : i1 to i32
    %c0_i32_8 = arith.constant 0 : i32
    %11 = arith.cmpi ne, %10, %c0_i32_8 : i32
    scf.if %11 {
      %c0_9 = arith.constant 0 : index
      %c0_10 = arith.constant 0 : index
      %12 = vector.load %arg7[%c0_9, %c0_10] : memref<8x128xf32, #tpu.memory_space<vmem>>, vector<8x128xf32>
      %c0_11 = arith.constant 0 : index
      %c0_12 = arith.constant 0 : index
      %13 = vector.load %arg5[%c0_11, %c0_12] : memref<1x128xf32, #tpu.memory_space<vmem>>, vector<1x128xf32>
      %14 = vector.broadcast %13 : vector<1x128xf32> to vector<8x128xf32>
      %15 = arith.addf %12, %14 : vector<8x128xf32>
      %cst_13 = arith.constant 0.000000e+00 : f32
      %16 = vector.broadcast %cst_13 : f32 to vector<8x128xf32>
      %17 = arith.maximumf %15, %16 : vector<8x128xf32>
      %18 = arith.truncf %17 : vector<8x128xf32> to vector<8x128xbf16>
      %c0_14 = arith.constant 0 : index
      %c0_15 = arith.constant 0 : index
      %19 = vector.load %arg6[%c0_14, %c0_15] : memref<8x128xbf16, #tpu.memory_space<vmem>>, vector<8x128xbf16>
      tpu.vector_store %arg6[%c0_14, %c0_15], %18 {strides = array<i32>} : memref<8x128xbf16, #tpu.memory_space<vmem>>, vector<8x128xbf16>,
    } else {
    }
    return
  }
  func.func @transform_0(%arg0: i32, %arg1: i32, %arg2: i32) -> (i32, i32) {
    %c0_i32 = arith.constant 0 : i32
    return %arg0, %arg2 : i32, i32
  }
  func.func @transform_1(%arg0: i32, %arg1: i32, %arg2: i32) -> (i32, i32) {
    %c0_i32 = arith.constant 0 : i32
    return %arg2, %arg1 : i32, i32
  }
  func.func @transform_2(%arg0: i32, %arg1: i32, %arg2: i32) -> (i32, i32) {
    %c0_i32 = arith.constant 0 : i32
    %c0_i32_0 = arith.constant 0 : i32
    return %c0_i32, %arg1 : i32, i32
  }
  func.func @transform_3(%arg0: i32, %arg1: i32, %arg2: i32) -> (i32, i32) {
    %c0_i32 = arith.constant 0 : i32
    return %arg0, %arg1 : i32, i32
  }
}

module attributes {stable_mosaic.version = 11 : i64} {
  func.func @_fused_matmul_kernel(%arg0: i32, %arg1: i32, %arg2: i32, %arg3: memref<8x768xbf16, #tpu.memory_space<vmem>>, %arg4: memref<768x128xbf16, #tpu.memory_space<vmem>>, %arg5: memref<1x128xf32, #tpu.memory_space<vmem>>, %arg6: memref<8x128xbf16, #tpu.memory_space<vmem>>, %arg7: memref<8x128xf32, #tpu.memory_space<vmem>>) attributes {dimension_semantics = [#tpu.dimension_semantics<parallel>, #tpu.dimension_semantics<parallel>, #tpu.dimension_semantics<arbitrary>], iteration_bounds = array<i64: 1, 2, 3>, scalar_prefetch = 0 : i64, scratch_operands = 1 : i64, tpu.core_type = #tpu.core_type<tc>, window_params = [{transform_indices = @transform_0, window_bounds = array<i64: 8, 768>}, {transform_indices = @transform_1, window_bounds = array<i64: 768, 128>}, {transform_indices = @transform_2, window_bounds = array<i64: 1, 128>}, {transform_indices = @transform_3, window_bounds = array<i64: 8, 128>}]} {
    %c0_i32 = arith.constant 0 : i32
    %0 = arith.cmpi eq, %arg2, %c0_i32 : i32
    %1 = arith.extui %0 : i1 to i32
    %c0_i32_0 = arith.constant 0 : i32
    %2 = arith.cmpi ne, %1, %c0_i32_0 : i32
    scf.if %2 {
      %cst_9 = arith.constant 0.000000e+00 : f32
      %12 = vector.broadcast %cst_9 : f32 to vector<8x128xf32>
      %c0_10 = arith.constant 0 : index
      %c0_11 = arith.constant 0 : index
      %13 = vector.load %arg7[%c0_10, %c0_11] : memref<8x128xf32, #tpu.memory_space<vmem>>, vector<8x128xf32>
      tpu.vector_store %arg7[%c0_10, %c0_11], %12 {strides = array<i32>} : memref<8x128xf32, #tpu.memory_space<vmem>>, vector<8x128xf32>,
    } else {
    }
    %c0 = arith.constant 0 : index
    %c0_1 = arith.constant 0 : index
    %3 = vector.load %arg7[%c0, %c0_1] : memref<8x128xf32, #tpu.memory_space<vmem>>, vector<8x128xf32>
    %c0_2 = arith.constant 0 : index
    %c0_3 = arith.constant 0 : index
    %4 = vector.load %arg3[%c0_2, %c0_3] : memref<8x768xbf16, #tpu.memory_space<vmem>>, vector<8x768xbf16>
    %c0_4 = arith.constant 0 : index
    %c0_5 = arith.constant 0 : index
    %5 = vector.load %arg4[%c0_4, %c0_5] : memref<768x128xbf16, #tpu.memory_space<vmem>>, vector<768x128xbf16>
    %cst = arith.constant dense<0.000000e+00> : vector<8x128xf32>
    %6 = tpu.matmul %4, %5, %cst {dimension_numbers = #tpu.dot_dimension_numbers<[1], [0], [0], [1], [0, 0, 1, 1], [], []>} : vector<8x768xbf16>, vector<768x128xbf16>, vector<8x128xf32> -> vector<8x128xf32>
    %7 = arith.addf %3, %6 : vector<8x128xf32>
    %c0_6 = arith.constant 0 : index
    %c0_7 = arith.constant 0 : index
    %8 = vector.load %arg7[%c0_6, %c0_7] : memref<8x128xf32, #tpu.memory_space<vmem>>, vector<8x128xf32>
    tpu.vector_store %arg7[%c0_6, %c0_7], %7 {strides = array<i32>} : memref<8x128xf32, #tpu.memory_space<vmem>>, vector<8x128xf32>,
    %c2_i32 = arith.constant 2 : i32
    %9 = arith.cmpi eq, %arg2, %c2_i32 : i32
    %10 = arith.extui %9 : i1 to i32
    %c0_i32_8 = arith.constant 0 : i32
    %11 = arith.cmpi ne, %10, %c0_i32_8 : i32
    scf.if %11 {
      %c0_9 = arith.constant 0 : index
      %c0_10 = arith.constant 0 : index
      %12 = vector.load %arg7[%c0_9, %c0_10] : memref<8x128xf32, #tpu.memory_space<vmem>>, vector<8x128xf32>
      %c0_11 = arith.constant 0 : index
      %c0_12 = arith.constant 0 : index
      %13 = vector.load %arg5[%c0_11, %c0_12] : memref<1x128xf32, #tpu.memory_space<vmem>>, vector<1x128xf32>
      %14 = vector.broadcast %13 : vector<1x128xf32> to vector<8x128xf32>
      %15 = arith.addf %12, %14 : vector<8x128xf32>
      %cst_13 = arith.constant 0.000000e+00 : f32
      %16 = vector.broadcast %cst_13 : f32 to vector<8x128xf32>
      %17 = arith.maximumf %15, %16 : vector<8x128xf32>
      %18 = arith.truncf %17 : vector<8x128xf32> to vector<8x128xbf16>
      %c0_14 = arith.constant 0 : index
      %c0_15 = arith.constant 0 : index
      %19 = vector.load %arg6[%c0_14, %c0_15] : memref<8x128xbf16, #tpu.memory_space<vmem>>, vector<8x128xbf16>
      tpu.vector_store %arg6[%c0_14, %c0_15], %18 {strides = array<i32>} : memref<8x128xbf16, #tpu.memory_space<vmem>>, vector<8x128xbf16>,
    } else {
    }
    return
  }
  func.func @transform_0(%arg0: i32, %arg1: i32, %arg2: i32) -> (i32, i32) {
    %c0_i32 = arith.constant 0 : i32
    return %arg0, %arg2 : i32, i32
  }
  func.func @transform_1(%arg0: i32, %arg1: i32, %arg2: i32) -> (i32, i32) {
    %c0_i32 = arith.constant 0 : i32
    return %arg2, %arg1 : i32, i32
  }
  func.func @transform_2(%arg0: i32, %arg1: i32, %arg2: i32) -> (i32, i32) {
    %c0_i32 = arith.constant 0 : i32
    %c0_i32_0 = arith.constant 0 : i32
    return %c0_i32, %arg1 : i32, i32
  }
  func.func @transform_3(%arg0: i32, %arg1: i32, %arg2: i32) -> (i32, i32) {
    %c0_i32 = arith.constant 0 : i32
    return %arg0, %arg1 : i32, i32
  }
}

module attributes {stable_mosaic.version = 11 : i64} {
  func.func @_fused_matmul_kernel(%arg0: i32, %arg1: i32, %arg2: i32, %arg3: memref<8x1024xbf16, #tpu.memory_space<vmem>>, %arg4: memref<1024x128xbf16, #tpu.memory_space<vmem>>, %arg5: memref<1x128xf32, #tpu.memory_space<vmem>>, %arg6: memref<8x128xbf16, #tpu.memory_space<vmem>>, %arg7: memref<8x128xf32, #tpu.memory_space<vmem>>) attributes {dimension_semantics = [#tpu.dimension_semantics<parallel>, #tpu.dimension_semantics<parallel>, #tpu.dimension_semantics<arbitrary>], iteration_bounds = array<i64: 1, 4, 1>, scalar_prefetch = 0 : i64, scratch_operands = 1 : i64, tpu.core_type = #tpu.core_type<tc>, window_params = [{transform_indices = @transform_0, window_bounds = array<i64: 8, 1024>}, {transform_indices = @transform_1, window_bounds = array<i64: 1024, 128>}, {transform_indices = @transform_2, window_bounds = array<i64: 1, 128>}, {transform_indices = @transform_3, window_bounds = array<i64: 8, 128>}]} {
    %c0_i32 = arith.constant 0 : i32
    %0 = arith.cmpi eq, %arg2, %c0_i32 : i32
    %1 = arith.extui %0 : i1 to i32
    %c0_i32_0 = arith.constant 0 : i32
    %2 = arith.cmpi ne, %1, %c0_i32_0 : i32
    scf.if %2 {
      %cst_10 = arith.constant 0.000000e+00 : f32
      %12 = vector.broadcast %cst_10 : f32 to vector<8x128xf32>
      %c0_11 = arith.constant 0 : index
      %c0_12 = arith.constant 0 : index
      %13 = vector.load %arg7[%c0_11, %c0_12] : memref<8x128xf32, #tpu.memory_space<vmem>>, vector<8x128xf32>
      tpu.vector_store %arg7[%c0_11, %c0_12], %12 {strides = array<i32>} : memref<8x128xf32, #tpu.memory_space<vmem>>, vector<8x128xf32>,
    } else {
    }
    %c0 = arith.constant 0 : index
    %c0_1 = arith.constant 0 : index
    %3 = vector.load %arg7[%c0, %c0_1] : memref<8x128xf32, #tpu.memory_space<vmem>>, vector<8x128xf32>
    %c0_2 = arith.constant 0 : index
    %c0_3 = arith.constant 0 : index
    %4 = vector.load %arg3[%c0_2, %c0_3] : memref<8x1024xbf16, #tpu.memory_space<vmem>>, vector<8x1024xbf16>
    %c0_4 = arith.constant 0 : index
    %c0_5 = arith.constant 0 : index
    %5 = vector.load %arg4[%c0_4, %c0_5] : memref<1024x128xbf16, #tpu.memory_space<vmem>>, vector<1024x128xbf16>
    %cst = arith.constant dense<0.000000e+00> : vector<8x128xf32>
    %6 = tpu.matmul %4, %5, %cst {dimension_numbers = #tpu.dot_dimension_numbers<[1], [0], [0], [1], [0, 0, 1, 1], [], []>} : vector<8x1024xbf16>, vector<1024x128xbf16>, vector<8x128xf32> -> vector<8x128xf32>
    %7 = arith.addf %3, %6 : vector<8x128xf32>
    %c0_6 = arith.constant 0 : index
    %c0_7 = arith.constant 0 : index
    %8 = vector.load %arg7[%c0_6, %c0_7] : memref<8x128xf32, #tpu.memory_space<vmem>>, vector<8x128xf32>
    tpu.vector_store %arg7[%c0_6, %c0_7], %7 {strides = array<i32>} : memref<8x128xf32, #tpu.memory_space<vmem>>, vector<8x128xf32>,
    %c0_i32_8 = arith.constant 0 : i32
    %9 = arith.cmpi eq, %arg2, %c0_i32_8 : i32
    %10 = arith.extui %9 : i1 to i32
    %c0_i32_9 = arith.constant 0 : i32
    %11 = arith.cmpi ne, %10, %c0_i32_9 : i32
    scf.if %11 {
      %c0_10 = arith.constant 0 : index
      %c0_11 = arith.constant 0 : index
      %12 = vector.load %arg7[%c0_10, %c0_11] : memref<8x128xf32, #tpu.memory_space<vmem>>, vector<8x128xf32>
      %c0_12 = arith.constant 0 : index
      %c0_13 = arith.constant 0 : index
      %13 = vector.load %arg5[%c0_12, %c0_13] : memref<1x128xf32, #tpu.memory_space<vmem>>, vector<1x128xf32>
      %14 = vector.broadcast %13 : vector<1x128xf32> to vector<8x128xf32>
      %15 = arith.addf %12, %14 : vector<8x128xf32>
      %cst_14 = arith.constant 0.000000e+00 : f32
      %16 = vector.broadcast %cst_14 : f32 to vector<8x128xf32>
      %17 = arith.maximumf %15, %16 : vector<8x128xf32>
      %18 = arith.truncf %17 : vector<8x128xf32> to vector<8x128xbf16>
      %c0_15 = arith.constant 0 : index
      %c0_16 = arith.constant 0 : index
      %19 = vector.load %arg6[%c0_15, %c0_16] : memref<8x128xbf16, #tpu.memory_space<vmem>>, vector<8x128xbf16>
      tpu.vector_store %arg6[%c0_15, %c0_16], %18 {strides = array<i32>} : memref<8x128xbf16, #tpu.memory_space<vmem>>, vector<8x128xbf16>,
    } else {
    }
    return
  }
  func.func @transform_0(%arg0: i32, %arg1: i32, %arg2: i32) -> (i32, i32) {
    %c0_i32 = arith.constant 0 : i32
    return %arg0, %arg2 : i32, i32
  }
  func.func @transform_1(%arg0: i32, %arg1: i32, %arg2: i32) -> (i32, i32) {
    %c0_i32 = arith.constant 0 : i32
    return %arg2, %arg1 : i32, i32
  }
  func.func @transform_2(%arg0: i32, %arg1: i32, %arg2: i32) -> (i32, i32) {
    %c0_i32 = arith.constant 0 : i32
    %c0_i32_0 = arith.constant 0 : i32
    return %c0_i32, %arg1 : i32, i32
  }
  func.func @transform_3(%arg0: i32, %arg1: i32, %arg2: i32) -> (i32, i32) {
    %c0_i32 = arith.constant 0 : i32
    return %arg0, %arg1 : i32, i32
  }
}

module attributes {stable_mosaic.version = 11 : i64} {
  func.func @_fused_matmul_kernel(%arg0: i32, %arg1: i32, %arg2: i32, %arg3: memref<8x512xbf16, #tpu.memory_space<vmem>>, %arg4: memref<512x128xbf16, #tpu.memory_space<vmem>>, %arg5: memref<1x128xf32, #tpu.memory_space<vmem>>, %arg6: memref<8x128xbf16, #tpu.memory_space<vmem>>, %arg7: memref<8x128xf32, #tpu.memory_space<vmem>>) attributes {dimension_semantics = [#tpu.dimension_semantics<parallel>, #tpu.dimension_semantics<parallel>, #tpu.dimension_semantics<arbitrary>], iteration_bounds = array<i64: 1, 2, 1>, scalar_prefetch = 0 : i64, scratch_operands = 1 : i64, tpu.core_type = #tpu.core_type<tc>, window_params = [{transform_indices = @transform_0, window_bounds = array<i64: 8, 512>}, {transform_indices = @transform_1, window_bounds = array<i64: 512, 128>}, {transform_indices = @transform_2, window_bounds = array<i64: 1, 128>}, {transform_indices = @transform_3, window_bounds = array<i64: 8, 128>}]} {
    %c0_i32 = arith.constant 0 : i32
    %0 = arith.cmpi eq, %arg2, %c0_i32 : i32
    %1 = arith.extui %0 : i1 to i32
    %c0_i32_0 = arith.constant 0 : i32
    %2 = arith.cmpi ne, %1, %c0_i32_0 : i32
    scf.if %2 {
      %cst_10 = arith.constant 0.000000e+00 : f32
      %12 = vector.broadcast %cst_10 : f32 to vector<8x128xf32>
      %c0_11 = arith.constant 0 : index
      %c0_12 = arith.constant 0 : index
      %13 = vector.load %arg7[%c0_11, %c0_12] : memref<8x128xf32, #tpu.memory_space<vmem>>, vector<8x128xf32>
      tpu.vector_store %arg7[%c0_11, %c0_12], %12 {strides = array<i32>} : memref<8x128xf32, #tpu.memory_space<vmem>>, vector<8x128xf32>,
    } else {
    }
    %c0 = arith.constant 0 : index
    %c0_1 = arith.constant 0 : index
    %3 = vector.load %arg7[%c0, %c0_1] : memref<8x128xf32, #tpu.memory_space<vmem>>, vector<8x128xf32>
    %c0_2 = arith.constant 0 : index
    %c0_3 = arith.constant 0 : index
    %4 = vector.load %arg3[%c0_2, %c0_3] : memref<8x512xbf16, #tpu.memory_space<vmem>>, vector<8x512xbf16>
    %c0_4 = arith.constant 0 : index
    %c0_5 = arith.constant 0 : index
    %5 = vector.load %arg4[%c0_4, %c0_5] : memref<512x128xbf16, #tpu.memory_space<vmem>>, vector<512x128xbf16>
    %cst = arith.constant dense<0.000000e+00> : vector<8x128xf32>
    %6 = tpu.matmul %4, %5, %cst {dimension_numbers = #tpu.dot_dimension_numbers<[1], [0], [0], [1], [0, 0, 1, 1], [], []>} : vector<8x512xbf16>, vector<512x128xbf16>, vector<8x128xf32> -> vector<8x128xf32>
    %7 = arith.addf %3, %6 : vector<8x128xf32>
    %c0_6 = arith.constant 0 : index
    %c0_7 = arith.constant 0 : index
    %8 = vector.load %arg7[%c0_6, %c0_7] : memref<8x128xf32, #tpu.memory_space<vmem>>, vector<8x128xf32>
    tpu.vector_store %arg7[%c0_6, %c0_7], %7 {strides = array<i32>} : memref<8x128xf32, #tpu.memory_space<vmem>>, vector<8x128xf32>,
    %c0_i32_8 = arith.constant 0 : i32
    %9 = arith.cmpi eq, %arg2, %c0_i32_8 : i32
    %10 = arith.extui %9 : i1 to i32
    %c0_i32_9 = arith.constant 0 : i32
    %11 = arith.cmpi ne, %10, %c0_i32_9 : i32
    scf.if %11 {
      %c0_10 = arith.constant 0 : index
      %c0_11 = arith.constant 0 : index
      %12 = vector.load %arg7[%c0_10, %c0_11] : memref<8x128xf32, #tpu.memory_space<vmem>>, vector<8x128xf32>
      %c0_12 = arith.constant 0 : index
      %c0_13 = arith.constant 0 : index
      %13 = vector.load %arg5[%c0_12, %c0_13] : memref<1x128xf32, #tpu.memory_space<vmem>>, vector<1x128xf32>
      %14 = vector.broadcast %13 : vector<1x128xf32> to vector<8x128xf32>
      %15 = arith.addf %12, %14 : vector<8x128xf32>
      %16 = arith.truncf %15 : vector<8x128xf32> to vector<8x128xbf16>
      %c0_14 = arith.constant 0 : index
      %c0_15 = arith.constant 0 : index
      %17 = vector.load %arg6[%c0_14, %c0_15] : memref<8x128xbf16, #tpu.memory_space<vmem>>, vector<8x128xbf16>
      tpu.vector_store %arg6[%c0_14, %c0_15], %16 {strides = array<i32>} : memref<8x128xbf16, #tpu.memory_space<vmem>>, vector<8x128xbf16>,
    } else {
    }
    return
  }
  func.func @transform_0(%arg0: i32, %arg1: i32, %arg2: i32) -> (i32, i32) {
    %c0_i32 = arith.constant 0 : i32
    return %arg0, %arg2 : i32, i32
  }
  func.func @transform_1(%arg0: i32, %arg1: i32, %arg2: i32) -> (i32, i32) {
    %c0_i32 = arith.constant 0 : i32
    return %arg2, %arg1 : i32, i32
  }
  func.func @transform_2(%arg0: i32, %arg1: i32, %arg2: i32) -> (i32, i32) {
    %c0_i32 = arith.constant 0 : i32
    %c0_i32_0 = arith.constant 0 : i32
    return %c0_i32, %arg1 : i32, i32
  }
  func.func @transform_3(%arg0: i32, %arg1: i32, %arg2: i32) -> (i32, i32) {
    %c0_i32 = arith.constant 0 : i32
    return %arg0, %arg1 : i32, i32
  }
}

module attributes {stable_mosaic.version = 11 : i64} {
  func.func @_fused_matmul_kernel(%arg0: i32, %arg1: i32, %arg2: i32, %arg3: memref<32x640xbf16, #tpu.memory_space<vmem>>, %arg4: memref<640x128xbf16, #tpu.memory_space<vmem>>, %arg5: memref<1x128xf32, #tpu.memory_space<vmem>>, %arg6: memref<32x128xbf16, #tpu.memory_space<vmem>>, %arg7: memref<32x128xbf16, #tpu.memory_space<vmem>>, %arg8: memref<32x128xf32, #tpu.memory_space<vmem>>) attributes {dimension_semantics = [#tpu.dimension_semantics<parallel>, #tpu.dimension_semantics<parallel>, #tpu.dimension_semantics<arbitrary>], iteration_bounds = array<i64: 1, 1, 1>, scalar_prefetch = 0 : i64, scratch_operands = 1 : i64, tpu.core_type = #tpu.core_type<tc>, window_params = [{transform_indices = @transform_0, window_bounds = array<i64: 32, 640>}, {transform_indices = @transform_1, window_bounds = array<i64: 640, 128>}, {transform_indices = @transform_2, window_bounds = array<i64: 1, 128>}, {transform_indices = @transform_3, window_bounds = array<i64: 32, 128>}, {transform_indices = @transform_4, window_bounds = array<i64: 32, 128>}]} {
    %c0_i32 = arith.constant 0 : i32
    %0 = arith.cmpi eq, %arg2, %c0_i32 : i32
    %1 = arith.extui %0 : i1 to i32
    %c0_i32_0 = arith.constant 0 : i32
    %2 = arith.cmpi ne, %1, %c0_i32_0 : i32
    scf.if %2 {
      %cst_10 = arith.constant 0.000000e+00 : f32
      %12 = vector.broadcast %cst_10 : f32 to vector<32x128xf32>
      %c0_11 = arith.constant 0 : index
      %c0_12 = arith.constant 0 : index
      %13 = vector.load %arg8[%c0_11, %c0_12] : memref<32x128xf32, #tpu.memory_space<vmem>>, vector<32x128xf32>
      tpu.vector_store %arg8[%c0_11, %c0_12], %12 {strides = array<i32>} : memref<32x128xf32, #tpu.memory_space<vmem>>, vector<32x128xf32>,
    } else {
    }
    %c0 = arith.constant 0 : index
    %c0_1 = arith.constant 0 : index
    %3 = vector.load %arg8[%c0, %c0_1] : memref<32x128xf32, #tpu.memory_space<vmem>>, vector<32x128xf32>
    %c0_2 = arith.constant 0 : index
    %c0_3 = arith.constant 0 : index
    %4 = vector.load %arg3[%c0_2, %c0_3] : memref<32x640xbf16, #tpu.memory_space<vmem>>, vector<32x640xbf16>
    %c0_4 = arith.constant 0 : index
    %c0_5 = arith.constant 0 : index
    %5 = vector.load %arg4[%c0_4, %c0_5] : memref<640x128xbf16, #tpu.memory_space<vmem>>, vector<640x128xbf16>
    %cst = arith.constant dense<0.000000e+00> : vector<32x128xf32>
    %6 = tpu.matmul %4, %5, %cst {dimension_numbers = #tpu.dot_dimension_numbers<[1], [0], [0], [1], [0, 0, 1, 1], [], []>} : vector<32x640xbf16>, vector<640x128xbf16>, vector<32x128xf32> -> vector<32x128xf32>
    %7 = arith.addf %3, %6 : vector<32x128xf32>
    %c0_6 = arith.constant 0 : index
    %c0_7 = arith.constant 0 : index
    %8 = vector.load %arg8[%c0_6, %c0_7] : memref<32x128xf32, #tpu.memory_space<vmem>>, vector<32x128xf32>
    tpu.vector_store %arg8[%c0_6, %c0_7], %7 {strides = array<i32>} : memref<32x128xf32, #tpu.memory_space<vmem>>, vector<32x128xf32>,
    %c0_i32_8 = arith.constant 0 : i32
    %9 = arith.cmpi eq, %arg2, %c0_i32_8 : i32
    %10 = arith.extui %9 : i1 to i32
    %c0_i32_9 = arith.constant 0 : i32
    %11 = arith.cmpi ne, %10, %c0_i32_9 : i32
    scf.if %11 {
      %c0_10 = arith.constant 0 : index
      %c0_11 = arith.constant 0 : index
      %12 = vector.load %arg8[%c0_10, %c0_11] : memref<32x128xf32, #tpu.memory_space<vmem>>, vector<32x128xf32>
      %c0_12 = arith.constant 0 : index
      %c0_13 = arith.constant 0 : index
      %13 = vector.load %arg5[%c0_12, %c0_13] : memref<1x128xf32, #tpu.memory_space<vmem>>, vector<1x128xf32>
      %14 = vector.broadcast %13 : vector<1x128xf32> to vector<32x128xf32>
      %15 = arith.addf %12, %14 : vector<32x128xf32>
      %cst_14 = arith.constant 0.000000e+00 : f32
      %16 = vector.broadcast %cst_14 : f32 to vector<32x128xf32>
      %17 = arith.maximumf %15, %16 : vector<32x128xf32>
      %c0_15 = arith.constant 0 : index
      %c0_16 = arith.constant 0 : index
      %18 = vector.load %arg6[%c0_15, %c0_16] : memref<32x128xbf16, #tpu.memory_space<vmem>>, vector<32x128xbf16>
      %19 = arith.extf %18 : vector<32x128xbf16> to vector<32x128xf32>
      %20 = arith.addf %17, %19 : vector<32x128xf32>
      %21 = arith.truncf %20 : vector<32x128xf32> to vector<32x128xbf16>
      %c0_17 = arith.constant 0 : index
      %c0_18 = arith.constant 0 : index
      %22 = vector.load %arg7[%c0_17, %c0_18] : memref<32x128xbf16, #tpu.memory_space<vmem>>, vector<32x128xbf16>
      tpu.vector_store %arg7[%c0_17, %c0_18], %21 {strides = array<i32>} : memref<32x128xbf16, #tpu.memory_space<vmem>>, vector<32x128xbf16>,
    } else {
    }
    return
  }
  func.func @transform_0(%arg0: i32, %arg1: i32, %arg2: i32) -> (i32, i32) {
    %c0_i32 = arith.constant 0 : i32
    return %arg0, %arg2 : i32, i32
  }
  func.func @transform_1(%arg0: i32, %arg1: i32, %arg2: i32) -> (i32, i32) {
    %c0_i32 = arith.constant 0 : i32
    return %arg2, %arg1 : i32, i32
  }
  func.func @transform_2(%arg0: i32, %arg1: i32, %arg2: i32) -> (i32, i32) {
    %c0_i32 = arith.constant 0 : i32
    %c0_i32_0 = arith.constant 0 : i32
    return %c0_i32, %arg1 : i32, i32
  }
  func.func @transform_3(%arg0: i32, %arg1: i32, %arg2: i32) -> (i32, i32) {
    %c0_i32 = arith.constant 0 : i32
    return %arg0, %arg1 : i32, i32
  }
  func.func @transform_4(%arg0: i32, %arg1: i32, %arg2: i32) -> (i32, i32) {
    %c0_i32 = arith.constant 0 : i32
    return %arg0, %arg1 : i32, i32
  }
}

module attributes {stable_mosaic.version = 11 : i64} {
  func.func @_fused_matmul_kernel(%arg0: i32, %arg1: i32, %arg2: i32, %arg3: memref<32x256xbf16, #tpu.memory_space<vmem>>, %arg4: memref<256x128xbf16, #tpu.memory_space<vmem>>, %arg5: memref<1x128xf32, #tpu.memory_space<vmem>>, %arg6: memref<32x128xbf16, #tpu.memory_space<vmem>>, %arg7: memref<32x128xf32, #tpu.memory_space<vmem>>) attributes {dimension_semantics = [#tpu.dimension_semantics<parallel>, #tpu.dimension_semantics<parallel>, #tpu.dimension_semantics<arbitrary>], iteration_bounds = array<i64: 1, 1, 1>, scalar_prefetch = 0 : i64, scratch_operands = 1 : i64, tpu.core_type = #tpu.core_type<tc>, window_params = [{transform_indices = @transform_0, window_bounds = array<i64: 32, 256>}, {transform_indices = @transform_1, window_bounds = array<i64: 256, 128>}, {transform_indices = @transform_2, window_bounds = array<i64: 1, 128>}, {transform_indices = @transform_3, window_bounds = array<i64: 32, 128>}]} {
    %c0_i32 = arith.constant 0 : i32
    %0 = arith.cmpi eq, %arg2, %c0_i32 : i32
    %1 = arith.extui %0 : i1 to i32
    %c0_i32_0 = arith.constant 0 : i32
    %2 = arith.cmpi ne, %1, %c0_i32_0 : i32
    scf.if %2 {
      %cst_10 = arith.constant 0.000000e+00 : f32
      %12 = vector.broadcast %cst_10 : f32 to vector<32x128xf32>
      %c0_11 = arith.constant 0 : index
      %c0_12 = arith.constant 0 : index
      %13 = vector.load %arg7[%c0_11, %c0_12] : memref<32x128xf32, #tpu.memory_space<vmem>>, vector<32x128xf32>
      tpu.vector_store %arg7[%c0_11, %c0_12], %12 {strides = array<i32>} : memref<32x128xf32, #tpu.memory_space<vmem>>, vector<32x128xf32>,
    } else {
    }
    %c0 = arith.constant 0 : index
    %c0_1 = arith.constant 0 : index
    %3 = vector.load %arg7[%c0, %c0_1] : memref<32x128xf32, #tpu.memory_space<vmem>>, vector<32x128xf32>
    %c0_2 = arith.constant 0 : index
    %c0_3 = arith.constant 0 : index
    %4 = vector.load %arg3[%c0_2, %c0_3] : memref<32x256xbf16, #tpu.memory_space<vmem>>, vector<32x256xbf16>
    %c0_4 = arith.constant 0 : index
    %c0_5 = arith.constant 0 : index
    %5 = vector.load %arg4[%c0_4, %c0_5] : memref<256x128xbf16, #tpu.memory_space<vmem>>, vector<256x128xbf16>
    %cst = arith.constant dense<0.000000e+00> : vector<32x128xf32>
    %6 = tpu.matmul %4, %5, %cst {dimension_numbers = #tpu.dot_dimension_numbers<[1], [0], [0], [1], [0, 0, 1, 1], [], []>} : vector<32x256xbf16>, vector<256x128xbf16>, vector<32x128xf32> -> vector<32x128xf32>
    %7 = arith.addf %3, %6 : vector<32x128xf32>
    %c0_6 = arith.constant 0 : index
    %c0_7 = arith.constant 0 : index
    %8 = vector.load %arg7[%c0_6, %c0_7] : memref<32x128xf32, #tpu.memory_space<vmem>>, vector<32x128xf32>
    tpu.vector_store %arg7[%c0_6, %c0_7], %7 {strides = array<i32>} : memref<32x128xf32, #tpu.memory_space<vmem>>, vector<32x128xf32>,
    %c0_i32_8 = arith.constant 0 : i32
    %9 = arith.cmpi eq, %arg2, %c0_i32_8 : i32
    %10 = arith.extui %9 : i1 to i32
    %c0_i32_9 = arith.constant 0 : i32
    %11 = arith.cmpi ne, %10, %c0_i32_9 : i32
    scf.if %11 {
      %c0_10 = arith.constant 0 : index
      %c0_11 = arith.constant 0 : index
      %12 = vector.load %arg7[%c0_10, %c0_11] : memref<32x128xf32, #tpu.memory_space<vmem>>, vector<32x128xf32>
      %c0_12 = arith.constant 0 : index
      %c0_13 = arith.constant 0 : index
      %13 = vector.load %arg5[%c0_12, %c0_13] : memref<1x128xf32, #tpu.memory_space<vmem>>, vector<1x128xf32>
      %14 = vector.broadcast %13 : vector<1x128xf32> to vector<32x128xf32>
      %15 = arith.addf %12, %14 : vector<32x128xf32>
      %16 = arith.truncf %15 : vector<32x128xf32> to vector<32x128xbf16>
      %c0_14 = arith.constant 0 : index
      %c0_15 = arith.constant 0 : index
      %17 = vector.load %arg6[%c0_14, %c0_15] : memref<32x128xbf16, #tpu.memory_space<vmem>>, vector<32x128xbf16>
      tpu.vector_store %arg6[%c0_14, %c0_15], %16 {strides = array<i32>} : memref<32x128xbf16, #tpu.memory_space<vmem>>, vector<32x128xbf16>,
    } else {
    }
    return
  }
  func.func @transform_0(%arg0: i32, %arg1: i32, %arg2: i32) -> (i32, i32) {
    %c0_i32 = arith.constant 0 : i32
    return %arg0, %arg2 : i32, i32
  }
  func.func @transform_1(%arg0: i32, %arg1: i32, %arg2: i32) -> (i32, i32) {
    %c0_i32 = arith.constant 0 : i32
    return %arg2, %arg1 : i32, i32
  }
  func.func @transform_2(%arg0: i32, %arg1: i32, %arg2: i32) -> (i32, i32) {
    %c0_i32 = arith.constant 0 : i32
    %c0_i32_0 = arith.constant 0 : i32
    return %c0_i32, %arg1 : i32, i32
  }
  func.func @transform_3(%arg0: i32, %arg1: i32, %arg2: i32) -> (i32, i32) {
    %c0_i32 = arith.constant 0 : i32
    return %arg0, %arg1 : i32, i32
  }
}

module attributes {stable_mosaic.version = 11 : i64} {
  func.func @_fused_matmul_kernel(%arg0: i32, %arg1: i32, %arg2: i32, %arg3: memref<128x384xbf16, #tpu.memory_space<vmem>>, %arg4: memref<384x128xbf16, #tpu.memory_space<vmem>>, %arg5: memref<1x128xf32, #tpu.memory_space<vmem>>, %arg6: memref<128x128xbf16, #tpu.memory_space<vmem>>, %arg7: memref<128x128xbf16, #tpu.memory_space<vmem>>, %arg8: memref<128x128xf32, #tpu.memory_space<vmem>>) attributes {dimension_semantics = [#tpu.dimension_semantics<parallel>, #tpu.dimension_semantics<parallel>, #tpu.dimension_semantics<arbitrary>], iteration_bounds = array<i64: 1, 1, 1>, scalar_prefetch = 0 : i64, scratch_operands = 1 : i64, tpu.core_type = #tpu.core_type<tc>, window_params = [{transform_indices = @transform_0, window_bounds = array<i64: 128, 384>}, {transform_indices = @transform_1, window_bounds = array<i64: 384, 128>}, {transform_indices = @transform_2, window_bounds = array<i64: 1, 128>}, {transform_indices = @transform_3, window_bounds = array<i64: 128, 128>}, {transform_indices = @transform_4, window_bounds = array<i64: 128, 128>}]} {
    %c0_i32 = arith.constant 0 : i32
    %0 = arith.cmpi eq, %arg2, %c0_i32 : i32
    %1 = arith.extui %0 : i1 to i32
    %c0_i32_0 = arith.constant 0 : i32
    %2 = arith.cmpi ne, %1, %c0_i32_0 : i32
    scf.if %2 {
      %cst_10 = arith.constant 0.000000e+00 : f32
      %12 = vector.broadcast %cst_10 : f32 to vector<128x128xf32>
      %c0_11 = arith.constant 0 : index
      %c0_12 = arith.constant 0 : index
      %13 = vector.load %arg8[%c0_11, %c0_12] : memref<128x128xf32, #tpu.memory_space<vmem>>, vector<128x128xf32>
      tpu.vector_store %arg8[%c0_11, %c0_12], %12 {strides = array<i32>} : memref<128x128xf32, #tpu.memory_space<vmem>>, vector<128x128xf32>,
    } else {
    }
    %c0 = arith.constant 0 : index
    %c0_1 = arith.constant 0 : index
    %3 = vector.load %arg8[%c0, %c0_1] : memref<128x128xf32, #tpu.memory_space<vmem>>, vector<128x128xf32>
    %c0_2 = arith.constant 0 : index
    %c0_3 = arith.constant 0 : index
    %4 = vector.load %arg3[%c0_2, %c0_3] : memref<128x384xbf16, #tpu.memory_space<vmem>>, vector<128x384xbf16>
    %c0_4 = arith.constant 0 : index
    %c0_5 = arith.constant 0 : index
    %5 = vector.load %arg4[%c0_4, %c0_5] : memref<384x128xbf16, #tpu.memory_space<vmem>>, vector<384x128xbf16>
    %cst = arith.constant dense<0.000000e+00> : vector<128x128xf32>
    %6 = tpu.matmul %4, %5, %cst {dimension_numbers = #tpu.dot_dimension_numbers<[1], [0], [0], [1], [0, 0, 1, 1], [], []>} : vector<128x384xbf16>, vector<384x128xbf16>, vector<128x128xf32> -> vector<128x128xf32>
    %7 = arith.addf %3, %6 : vector<128x128xf32>
    %c0_6 = arith.constant 0 : index
    %c0_7 = arith.constant 0 : index
    %8 = vector.load %arg8[%c0_6, %c0_7] : memref<128x128xf32, #tpu.memory_space<vmem>>, vector<128x128xf32>
    tpu.vector_store %arg8[%c0_6, %c0_7], %7 {strides = array<i32>} : memref<128x128xf32, #tpu.memory_space<vmem>>, vector<128x128xf32>,
    %c0_i32_8 = arith.constant 0 : i32
    %9 = arith.cmpi eq, %arg2, %c0_i32_8 : i32
    %10 = arith.extui %9 : i1 to i32
    %c0_i32_9 = arith.constant 0 : i32
    %11 = arith.cmpi ne, %10, %c0_i32_9 : i32
    scf.if %11 {
      %c0_10 = arith.constant 0 : index
      %c0_11 = arith.constant 0 : index
      %12 = vector.load %arg8[%c0_10, %c0_11] : memref<128x128xf32, #tpu.memory_space<vmem>>, vector<128x128xf32>
      %c0_12 = arith.constant 0 : index
      %c0_13 = arith.constant 0 : index
      %13 = vector.load %arg5[%c0_12, %c0_13] : memref<1x128xf32, #tpu.memory_space<vmem>>, vector<1x128xf32>
      %14 = vector.broadcast %13 : vector<1x128xf32> to vector<128x128xf32>
      %15 = arith.addf %12, %14 : vector<128x128xf32>
      %cst_14 = arith.constant 0.000000e+00 : f32
      %16 = vector.broadcast %cst_14 : f32 to vector<128x128xf32>
      %17 = arith.maximumf %15, %16 : vector<128x128xf32>
      %c0_15 = arith.constant 0 : index
      %c0_16 = arith.constant 0 : index
      %18 = vector.load %arg6[%c0_15, %c0_16] : memref<128x128xbf16, #tpu.memory_space<vmem>>, vector<128x128xbf16>
      %19 = arith.extf %18 : vector<128x128xbf16> to vector<128x128xf32>
      %20 = arith.addf %17, %19 : vector<128x128xf32>
      %21 = arith.truncf %20 : vector<128x128xf32> to vector<128x128xbf16>
      %c0_17 = arith.constant 0 : index
      %c0_18 = arith.constant 0 : index
      %22 = vector.load %arg7[%c0_17, %c0_18] : memref<128x128xbf16, #tpu.memory_space<vmem>>, vector<128x128xbf16>
      tpu.vector_store %arg7[%c0_17, %c0_18], %21 {strides = array<i32>} : memref<128x128xbf16, #tpu.memory_space<vmem>>, vector<128x128xbf16>,
    } else {
    }
    return
  }
  func.func @transform_0(%arg0: i32, %arg1: i32, %arg2: i32) -> (i32, i32) {
    %c0_i32 = arith.constant 0 : i32
    return %arg0, %arg2 : i32, i32
  }
  func.func @transform_1(%arg0: i32, %arg1: i32, %arg2: i32) -> (i32, i32) {
    %c0_i32 = arith.constant 0 : i32
    return %arg2, %arg1 : i32, i32
  }
  func.func @transform_2(%arg0: i32, %arg1: i32, %arg2: i32) -> (i32, i32) {
    %c0_i32 = arith.constant 0 : i32
    %c0_i32_0 = arith.constant 0 : i32
    return %c0_i32, %arg1 : i32, i32
  }
  func.func @transform_3(%arg0: i32, %arg1: i32, %arg2: i32) -> (i32, i32) {
    %c0_i32 = arith.constant 0 : i32
    return %arg0, %arg1 : i32, i32
  }
  func.func @transform_4(%arg0: i32, %arg1: i32, %arg2: i32) -> (i32, i32) {
    %c0_i32 = arith.constant 0 : i32
    return %arg0, %arg1 : i32, i32
  }
}

module attributes {stable_mosaic.version = 11 : i64} {
  func.func @_fused_matmul_kernel(%arg0: i32, %arg1: i32, %arg2: i32, %arg3: memref<128x128xbf16, #tpu.memory_space<vmem>>, %arg4: memref<128x128xbf16, #tpu.memory_space<vmem>>, %arg5: memref<1x128xf32, #tpu.memory_space<vmem>>, %arg6: memref<128x128xbf16, #tpu.memory_space<vmem>>, %arg7: memref<128x128xf32, #tpu.memory_space<vmem>>) attributes {dimension_semantics = [#tpu.dimension_semantics<parallel>, #tpu.dimension_semantics<parallel>, #tpu.dimension_semantics<arbitrary>], iteration_bounds = array<i64: 1, 1, 1>, scalar_prefetch = 0 : i64, scratch_operands = 1 : i64, tpu.core_type = #tpu.core_type<tc>, window_params = [{transform_indices = @transform_0, window_bounds = array<i64: 128, 128>}, {transform_indices = @transform_1, window_bounds = array<i64: 128, 128>}, {transform_indices = @transform_2, window_bounds = array<i64: 1, 128>}, {transform_indices = @transform_3, window_bounds = array<i64: 128, 128>}]} {
    %c0_i32 = arith.constant 0 : i32
    %0 = arith.cmpi eq, %arg2, %c0_i32 : i32
    %1 = arith.extui %0 : i1 to i32
    %c0_i32_0 = arith.constant 0 : i32
    %2 = arith.cmpi ne, %1, %c0_i32_0 : i32
    scf.if %2 {
      %cst_10 = arith.constant 0.000000e+00 : f32
      %12 = vector.broadcast %cst_10 : f32 to vector<128x128xf32>
      %c0_11 = arith.constant 0 : index
      %c0_12 = arith.constant 0 : index
      %13 = vector.load %arg7[%c0_11, %c0_12] : memref<128x128xf32, #tpu.memory_space<vmem>>, vector<128x128xf32>
      tpu.vector_store %arg7[%c0_11, %c0_12], %12 {strides = array<i32>} : memref<128x128xf32, #tpu.memory_space<vmem>>, vector<128x128xf32>,
    } else {
    }
    %c0 = arith.constant 0 : index
    %c0_1 = arith.constant 0 : index
    %3 = vector.load %arg7[%c0, %c0_1] : memref<128x128xf32, #tpu.memory_space<vmem>>, vector<128x128xf32>
    %c0_2 = arith.constant 0 : index
    %c0_3 = arith.constant 0 : index
    %4 = vector.load %arg3[%c0_2, %c0_3] : memref<128x128xbf16, #tpu.memory_space<vmem>>, vector<128x128xbf16>
    %c0_4 = arith.constant 0 : index
    %c0_5 = arith.constant 0 : index
    %5 = vector.load %arg4[%c0_4, %c0_5] : memref<128x128xbf16, #tpu.memory_space<vmem>>, vector<128x128xbf16>
    %cst = arith.constant dense<0.000000e+00> : vector<128x128xf32>
    %6 = tpu.matmul %4, %5, %cst {dimension_numbers = #tpu.dot_dimension_numbers<[1], [0], [0], [1], [0, 0, 1, 1], [], []>} : vector<128x128xbf16>, vector<128x128xbf16>, vector<128x128xf32> -> vector<128x128xf32>
    %7 = arith.addf %3, %6 : vector<128x128xf32>
    %c0_6 = arith.constant 0 : index
    %c0_7 = arith.constant 0 : index
    %8 = vector.load %arg7[%c0_6, %c0_7] : memref<128x128xf32, #tpu.memory_space<vmem>>, vector<128x128xf32>
    tpu.vector_store %arg7[%c0_6, %c0_7], %7 {strides = array<i32>} : memref<128x128xf32, #tpu.memory_space<vmem>>, vector<128x128xf32>,
    %c0_i32_8 = arith.constant 0 : i32
    %9 = arith.cmpi eq, %arg2, %c0_i32_8 : i32
    %10 = arith.extui %9 : i1 to i32
    %c0_i32_9 = arith.constant 0 : i32
    %11 = arith.cmpi ne, %10, %c0_i32_9 : i32
    scf.if %11 {
      %c0_10 = arith.constant 0 : index
      %c0_11 = arith.constant 0 : index
      %12 = vector.load %arg7[%c0_10, %c0_11] : memref<128x128xf32, #tpu.memory_space<vmem>>, vector<128x128xf32>
      %c0_12 = arith.constant 0 : index
      %c0_13 = arith.constant 0 : index
      %13 = vector.load %arg5[%c0_12, %c0_13] : memref<1x128xf32, #tpu.memory_space<vmem>>, vector<1x128xf32>
      %14 = vector.broadcast %13 : vector<1x128xf32> to vector<128x128xf32>
      %15 = arith.addf %12, %14 : vector<128x128xf32>
      %16 = arith.truncf %15 : vector<128x128xf32> to vector<128x128xbf16>
      %c0_14 = arith.constant 0 : index
      %c0_15 = arith.constant 0 : index
      %17 = vector.load %arg6[%c0_14, %c0_15] : memref<128x128xbf16, #tpu.memory_space<vmem>>, vector<128x128xbf16>
      tpu.vector_store %arg6[%c0_14, %c0_15], %16 {strides = array<i32>} : memref<128x128xbf16, #tpu.memory_space<vmem>>, vector<128x128xbf16>,
    } else {
    }
    return
  }
  func.func @transform_0(%arg0: i32, %arg1: i32, %arg2: i32) -> (i32, i32) {
    %c0_i32 = arith.constant 0 : i32
    return %arg0, %arg2 : i32, i32
  }
  func.func @transform_1(%arg0: i32, %arg1: i32, %arg2: i32) -> (i32, i32) {
    %c0_i32 = arith.constant 0 : i32
    return %arg2, %arg1 : i32, i32
  }
  func.func @transform_2(%arg0: i32, %arg1: i32, %arg2: i32) -> (i32, i32) {
    %c0_i32 = arith.constant 0 : i32
    %c0_i32_0 = arith.constant 0 : i32
    return %c0_i32, %arg1 : i32, i32
  }
  func.func @transform_3(%arg0: i32, %arg1: i32, %arg2: i32) -> (i32, i32) {
    %c0_i32 = arith.constant 0 : i32
    return %arg0, %arg1 : i32, i32
  }
}

module attributes {stable_mosaic.version = 11 : i64} {
  func.func @_fused_matmul_kernel(%arg0: i32, %arg1: i32, %arg2: i32, %arg3: memref<512x256xbf16, #tpu.memory_space<vmem>>, %arg4: memref<256x128xbf16, #tpu.memory_space<vmem>>, %arg5: memref<1x128xf32, #tpu.memory_space<vmem>>, %arg6: memref<512x128xbf16, #tpu.memory_space<vmem>>, %arg7: memref<512x128xbf16, #tpu.memory_space<vmem>>, %arg8: memref<512x128xf32, #tpu.memory_space<vmem>>) attributes {dimension_semantics = [#tpu.dimension_semantics<parallel>, #tpu.dimension_semantics<parallel>, #tpu.dimension_semantics<arbitrary>], iteration_bounds = array<i64: 1, 1, 1>, scalar_prefetch = 0 : i64, scratch_operands = 1 : i64, tpu.core_type = #tpu.core_type<tc>, window_params = [{transform_indices = @transform_0, window_bounds = array<i64: 512, 256>}, {transform_indices = @transform_1, window_bounds = array<i64: 256, 128>}, {transform_indices = @transform_2, window_bounds = array<i64: 1, 128>}, {transform_indices = @transform_3, window_bounds = array<i64: 512, 128>}, {transform_indices = @transform_4, window_bounds = array<i64: 512, 128>}]} {
    %c0_i32 = arith.constant 0 : i32
    %0 = arith.cmpi eq, %arg2, %c0_i32 : i32
    %1 = arith.extui %0 : i1 to i32
    %c0_i32_0 = arith.constant 0 : i32
    %2 = arith.cmpi ne, %1, %c0_i32_0 : i32
    scf.if %2 {
      %cst_10 = arith.constant 0.000000e+00 : f32
      %12 = vector.broadcast %cst_10 : f32 to vector<512x128xf32>
      %c0_11 = arith.constant 0 : index
      %c0_12 = arith.constant 0 : index
      %13 = vector.load %arg8[%c0_11, %c0_12] : memref<512x128xf32, #tpu.memory_space<vmem>>, vector<512x128xf32>
      tpu.vector_store %arg8[%c0_11, %c0_12], %12 {strides = array<i32>} : memref<512x128xf32, #tpu.memory_space<vmem>>, vector<512x128xf32>,
    } else {
    }
    %c0 = arith.constant 0 : index
    %c0_1 = arith.constant 0 : index
    %3 = vector.load %arg8[%c0, %c0_1] : memref<512x128xf32, #tpu.memory_space<vmem>>, vector<512x128xf32>
    %c0_2 = arith.constant 0 : index
    %c0_3 = arith.constant 0 : index
    %4 = vector.load %arg3[%c0_2, %c0_3] : memref<512x256xbf16, #tpu.memory_space<vmem>>, vector<512x256xbf16>
    %c0_4 = arith.constant 0 : index
    %c0_5 = arith.constant 0 : index
    %5 = vector.load %arg4[%c0_4, %c0_5] : memref<256x128xbf16, #tpu.memory_space<vmem>>, vector<256x128xbf16>
    %cst = arith.constant dense<0.000000e+00> : vector<512x128xf32>
    %6 = tpu.matmul %4, %5, %cst {dimension_numbers = #tpu.dot_dimension_numbers<[1], [0], [0], [1], [0, 0, 1, 1], [], []>} : vector<512x256xbf16>, vector<256x128xbf16>, vector<512x128xf32> -> vector<512x128xf32>
    %7 = arith.addf %3, %6 : vector<512x128xf32>
    %c0_6 = arith.constant 0 : index
    %c0_7 = arith.constant 0 : index
    %8 = vector.load %arg8[%c0_6, %c0_7] : memref<512x128xf32, #tpu.memory_space<vmem>>, vector<512x128xf32>
    tpu.vector_store %arg8[%c0_6, %c0_7], %7 {strides = array<i32>} : memref<512x128xf32, #tpu.memory_space<vmem>>, vector<512x128xf32>,
    %c0_i32_8 = arith.constant 0 : i32
    %9 = arith.cmpi eq, %arg2, %c0_i32_8 : i32
    %10 = arith.extui %9 : i1 to i32
    %c0_i32_9 = arith.constant 0 : i32
    %11 = arith.cmpi ne, %10, %c0_i32_9 : i32
    scf.if %11 {
      %c0_10 = arith.constant 0 : index
      %c0_11 = arith.constant 0 : index
      %12 = vector.load %arg8[%c0_10, %c0_11] : memref<512x128xf32, #tpu.memory_space<vmem>>, vector<512x128xf32>
      %c0_12 = arith.constant 0 : index
      %c0_13 = arith.constant 0 : index
      %13 = vector.load %arg5[%c0_12, %c0_13] : memref<1x128xf32, #tpu.memory_space<vmem>>, vector<1x128xf32>
      %14 = vector.broadcast %13 : vector<1x128xf32> to vector<512x128xf32>
      %15 = arith.addf %12, %14 : vector<512x128xf32>
      %cst_14 = arith.constant 0.000000e+00 : f32
      %16 = vector.broadcast %cst_14 : f32 to vector<512x128xf32>
      %17 = arith.maximumf %15, %16 : vector<512x128xf32>
      %c0_15 = arith.constant 0 : index
      %c0_16 = arith.constant 0 : index
      %18 = vector.load %arg6[%c0_15, %c0_16] : memref<512x128xbf16, #tpu.memory_space<vmem>>, vector<512x128xbf16>
      %19 = arith.extf %18 : vector<512x128xbf16> to vector<512x128xf32>
      %20 = arith.addf %17, %19 : vector<512x128xf32>
      %21 = arith.truncf %20 : vector<512x128xf32> to vector<512x128xbf16>
      %c0_17 = arith.constant 0 : index
      %c0_18 = arith.constant 0 : index
      %22 = vector.load %arg7[%c0_17, %c0_18] : memref<512x128xbf16, #tpu.memory_space<vmem>>, vector<512x128xbf16>
      tpu.vector_store %arg7[%c0_17, %c0_18], %21 {strides = array<i32>} : memref<512x128xbf16, #tpu.memory_space<vmem>>, vector<512x128xbf16>,
    } else {
    }
    return
  }
  func.func @transform_0(%arg0: i32, %arg1: i32, %arg2: i32) -> (i32, i32) {
    %c0_i32 = arith.constant 0 : i32
    return %arg0, %arg2 : i32, i32
  }
  func.func @transform_1(%arg0: i32, %arg1: i32, %arg2: i32) -> (i32, i32) {
    %c0_i32 = arith.constant 0 : i32
    return %arg2, %arg1 : i32, i32
  }
  func.func @transform_2(%arg0: i32, %arg1: i32, %arg2: i32) -> (i32, i32) {
    %c0_i32 = arith.constant 0 : i32
    %c0_i32_0 = arith.constant 0 : i32
    return %c0_i32, %arg1 : i32, i32
  }
  func.func @transform_3(%arg0: i32, %arg1: i32, %arg2: i32) -> (i32, i32) {
    %c0_i32 = arith.constant 0 : i32
    return %arg0, %arg1 : i32, i32
  }
  func.func @transform_4(%arg0: i32, %arg1: i32, %arg2: i32) -> (i32, i32) {
    %c0_i32 = arith.constant 0 : i32
    return %arg0, %arg1 : i32, i32
  }
}

module attributes {stable_mosaic.version = 11 : i64} {
  func.func @_fused_matmul_kernel(%arg0: i32, %arg1: i32, %arg2: i32, %arg3: memref<512x128xbf16, #tpu.memory_space<vmem>>, %arg4: memref<128x128xbf16, #tpu.memory_space<vmem>>, %arg5: memref<1x128xf32, #tpu.memory_space<vmem>>, %arg6: memref<512x128xbf16, #tpu.memory_space<vmem>>, %arg7: memref<512x128xf32, #tpu.memory_space<vmem>>) attributes {dimension_semantics = [#tpu.dimension_semantics<parallel>, #tpu.dimension_semantics<parallel>, #tpu.dimension_semantics<arbitrary>], iteration_bounds = array<i64: 4, 1, 1>, scalar_prefetch = 0 : i64, scratch_operands = 1 : i64, tpu.core_type = #tpu.core_type<tc>, window_params = [{transform_indices = @transform_0, window_bounds = array<i64: 512, 128>}, {transform_indices = @transform_1, window_bounds = array<i64: 128, 128>}, {transform_indices = @transform_2, window_bounds = array<i64: 1, 128>}, {transform_indices = @transform_3, window_bounds = array<i64: 512, 128>}]} {
    %c0_i32 = arith.constant 0 : i32
    %0 = arith.cmpi eq, %arg2, %c0_i32 : i32
    %1 = arith.extui %0 : i1 to i32
    %c0_i32_0 = arith.constant 0 : i32
    %2 = arith.cmpi ne, %1, %c0_i32_0 : i32
    scf.if %2 {
      %cst_10 = arith.constant 0.000000e+00 : f32
      %12 = vector.broadcast %cst_10 : f32 to vector<512x128xf32>
      %c0_11 = arith.constant 0 : index
      %c0_12 = arith.constant 0 : index
      %13 = vector.load %arg7[%c0_11, %c0_12] : memref<512x128xf32, #tpu.memory_space<vmem>>, vector<512x128xf32>
      tpu.vector_store %arg7[%c0_11, %c0_12], %12 {strides = array<i32>} : memref<512x128xf32, #tpu.memory_space<vmem>>, vector<512x128xf32>,
    } else {
    }
    %c0 = arith.constant 0 : index
    %c0_1 = arith.constant 0 : index
    %3 = vector.load %arg7[%c0, %c0_1] : memref<512x128xf32, #tpu.memory_space<vmem>>, vector<512x128xf32>
    %c0_2 = arith.constant 0 : index
    %c0_3 = arith.constant 0 : index
    %4 = vector.load %arg3[%c0_2, %c0_3] : memref<512x128xbf16, #tpu.memory_space<vmem>>, vector<512x128xbf16>
    %c0_4 = arith.constant 0 : index
    %c0_5 = arith.constant 0 : index
    %5 = vector.load %arg4[%c0_4, %c0_5] : memref<128x128xbf16, #tpu.memory_space<vmem>>, vector<128x128xbf16>
    %cst = arith.constant dense<0.000000e+00> : vector<512x128xf32>
    %6 = tpu.matmul %4, %5, %cst {dimension_numbers = #tpu.dot_dimension_numbers<[1], [0], [0], [1], [0, 0, 1, 1], [], []>} : vector<512x128xbf16>, vector<128x128xbf16>, vector<512x128xf32> -> vector<512x128xf32>
    %7 = arith.addf %3, %6 : vector<512x128xf32>
    %c0_6 = arith.constant 0 : index
    %c0_7 = arith.constant 0 : index
    %8 = vector.load %arg7[%c0_6, %c0_7] : memref<512x128xf32, #tpu.memory_space<vmem>>, vector<512x128xf32>
    tpu.vector_store %arg7[%c0_6, %c0_7], %7 {strides = array<i32>} : memref<512x128xf32, #tpu.memory_space<vmem>>, vector<512x128xf32>,
    %c0_i32_8 = arith.constant 0 : i32
    %9 = arith.cmpi eq, %arg2, %c0_i32_8 : i32
    %10 = arith.extui %9 : i1 to i32
    %c0_i32_9 = arith.constant 0 : i32
    %11 = arith.cmpi ne, %10, %c0_i32_9 : i32
    scf.if %11 {
      %c0_10 = arith.constant 0 : index
      %c0_11 = arith.constant 0 : index
      %12 = vector.load %arg7[%c0_10, %c0_11] : memref<512x128xf32, #tpu.memory_space<vmem>>, vector<512x128xf32>
      %c0_12 = arith.constant 0 : index
      %c0_13 = arith.constant 0 : index
      %13 = vector.load %arg5[%c0_12, %c0_13] : memref<1x128xf32, #tpu.memory_space<vmem>>, vector<1x128xf32>
      %14 = vector.broadcast %13 : vector<1x128xf32> to vector<512x128xf32>
      %15 = arith.addf %12, %14 : vector<512x128xf32>
      %16 = arith.truncf %15 : vector<512x128xf32> to vector<512x128xbf16>
      %c0_14 = arith.constant 0 : index
      %c0_15 = arith.constant 0 : index
      %17 = vector.load %arg6[%c0_14, %c0_15] : memref<512x128xbf16, #tpu.memory_space<vmem>>, vector<512x128xbf16>
      tpu.vector_store %arg6[%c0_14, %c0_15], %16 {strides = array<i32>} : memref<512x128xbf16, #tpu.memory_space<vmem>>, vector<512x128xbf16>,
    } else {
    }
    return
  }
  func.func @transform_0(%arg0: i32, %arg1: i32, %arg2: i32) -> (i32, i32) {
    %c0_i32 = arith.constant 0 : i32
    return %arg0, %arg2 : i32, i32
  }
  func.func @transform_1(%arg0: i32, %arg1: i32, %arg2: i32) -> (i32, i32) {
    %c0_i32 = arith.constant 0 : i32
    return %arg2, %arg1 : i32, i32
  }
  func.func @transform_2(%arg0: i32, %arg1: i32, %arg2: i32) -> (i32, i32) {
    %c0_i32 = arith.constant 0 : i32
    %c0_i32_0 = arith.constant 0 : i32
    return %c0_i32, %arg1 : i32, i32
  }
  func.func @transform_3(%arg0: i32, %arg1: i32, %arg2: i32) -> (i32, i32) {
    %c0_i32 = arith.constant 0 : i32
    return %arg0, %arg1 : i32, i32
  }
}

</mosaic_0001>

<bundles_post_ra>
// kernel: unet_forward.22
= control target key start
LH: loop header
LB: loop body
LE: loop exit
PB: predicated region body
PF: predicated region fallthrough
CT: control target
= control target key end

     0   :  { %s2379_s12 = smov 0   ;;  %s2381_s13 = smov 0   ;;  %s2580_s0 = inlined_call_operand.vmem [shape: bf16[2048,128], index: 0, kind: input, shape index: {}]   ;;  %s2581_s1 = inlined_call_operand.vmem [shape: bf16[128,128], index: 1, kind: input, shape index: {}]   ;;  %s2582_s2 = inlined_call_operand.vmem [shape: f32[1,128], index: 2, kind: input, shape index: {}]   ;;  %s2583_s3 = inlined_call_operand.vmem [shape: bf16[2048,128], index: 3, kind: output, shape index: {}]  }
   0x1   :  { %s2383_s14 = smov 0  }
   0x2 LB: > { %s32_s15 = sadd.s32 1, %s2353_s13  ;;  %p1768_p0 = scmp.ge.s32.totalorder %s2357_s14, 1  ;;  %s2357_s14 = sphi %s2383_s14, %s13_s14   ;;  %s2353_s13 = sphi %s2381_s13, %s2585_s13   ;;  %s2349_s12 = sphi %s2379_s12, %s2584_s12  }
   0x3   : > { %p34_p1 = scmp.ge.s32.totalorder %s32_s15, 4  ;;  %p188_p2 = scmp.lt.s32.totalorder %s2357_s14, 5 }
   0x5   : > { %s2587_s15 = smov (%p34_p1, %s32_s15), 0  ;;  %p189_p3 = pnand %p1768_p0, %p188_p2 }
   0x6   : > { %v2295_v0 = vld [vmem:[%s2581_s1] sm:$0xff] (!%p189_p3)   ;;  %s1769_s18 = sshll.u32 (!%p189_p3), %s2349_s12, 6  ;;  %v2296_v1 = vld [vmem:[%s2581_s1 + $0x8] sm:$0xff] (!%p189_p3)   ;;  %v2297_v2 = vld [vmem:[%s2581_s1 + $0x10] sm:$0xff] (!%p189_p3)  }
   0x7   : > { %192 = sbr.rel (%p189_p3) target bundleno = 317 (0x13d), region = 32  ;;  %p230_p4 = scmp.lt.s32.totalorder (!%p189_p3), %s1769_s18, 255  ;;  %2175 = vmatprep.subr.bf16.mxu0 (!%p189_p3), %v2295_v0  ;;  %2255 = vmatprep.subr.bf16.mxu1 (!%p189_p3), %v2295_v0  ;;  %v2298_v3 = vld [vmem:[%s2581_s1 + $0x18] sm:$0xff] (!%p189_p3)   ;;  %v2299_v6 = vld [vmem:[%s2581_s1 + $0x20] sm:$0xff] (!%p189_p3)   ;;  %v2300_v7 = vld [vmem:[%s2581_s1 + $0x28] sm:$0xff] (!%p189_p3)  }
   0x8   : > { %2176 = vmatpush3.bf16.msra.mxu0 (!%p189_p3), %v2295_v0  ;;  %2263 = vmatpush3.bf16.msra.mxu1 (!%p189_p3), %v2295_v0  ;;  %v2301_v8 = vld [vmem:[%s2581_s1 + $0x30] sm:$0xff] (!%p189_p3)   ;;  %v2302_v9 = vld [vmem:[%s2581_s1 + $0x38] sm:$0xff] (!%p189_p3)   ;;  %v2466_v40 = vld [vmem:[%s2582_s2] ss:$0 sm:$0xff] (!%p189_p3) }
   0x9   : > { %2177 = vmatprep.subr.bf16.mxu0 (!%p189_p3), %v2296_v1  ;;  %2256 = vmatprep.subr.bf16.mxu1 (!%p189_p3), %v2296_v1 }
   0xc   : > { %2178 = vmatpush3.bf16.msra.mxu0 (!%p189_p3), %v2296_v1  ;;  %2264 = vmatpush3.bf16.msra.mxu1 (!%p189_p3), %v2296_v1 }
   0xd   : > { %2179 = vmatprep.subr.bf16.mxu0 (!%p189_p3), %v2297_v2  ;;  %2257 = vmatprep.subr.bf16.mxu1 (!%p189_p3), %v2297_v2 }
   0xe   : > { %s2589_s18 = smov (!%p230_p4, %s1769_s18), 255 }
   0xf   : > { %s1770_s23 = sshll.u32 %s2589_s18, 2 }
  0x10   : > { %s2414_s26 = scalar_lea.vmem %s2580_s0, %s1770_s23  ;;  %2180 = vmatpush3.bf16.msra.mxu0 %v2297_v2  ;;  %2265 = vmatpush3.bf16.msra.mxu1 %v2297_v2  ;;  %s2481_s17 = scalar_lea.vmem %s2583_s3, %s1770_s23 }
  0x11   : > { %v2303_v4 = vld [vmem:[%s2414_s26] sm:$0xff]   ;;  %2181 = vmatprep.subr.bf16.mxu0 %v2298_v3  ;;  %2258 = vmatprep.subr.bf16.mxu1 %v2298_v3  ;;  %v2305_v10 = vld [vmem:[%s2414_s26 + $0x8] sm:$0xff]   ;;  %v2307_v12 = vld [vmem:[%s2414_s26 + $0x10] sm:$0xff]  }
  0x12   : > { %v2304_v5 = vld [vmem:[%s2414_s26 + $0x80] sm:$0xff]   ;;  %2191 = vmatprep.mubr.bf16.mxu0 %v2303_v4  ;;  %v2306_v11 = vld [vmem:[%s2414_s26 + $0x88] sm:$0xff]   ;;  %v2308_v13 = vld [vmem:[%s2414_s26 + $0x90] sm:$0xff]  }
  0x13   : > { %2223 = vmatprep.mubr.bf16.mxu1 %v2304_v5  ;;  %v2309_v14 = vld [vmem:[%s2414_s26 + $0x18] sm:$0xff]   ;;  %v2311_v16 = vld [vmem:[%s2414_s26 + $0x20] sm:$0xff]   ;;  %v2313_v18 = vld [vmem:[%s2414_s26 + $0x28] sm:$0xff]  }
  0x14   : > { %2182 = vmatpush3.bf16.msra.mxu0 %v2298_v3  ;;  %2266 = vmatpush3.bf16.msra.mxu1 %v2298_v3  ;;  %v2310_v15 = vld [vmem:[%s2414_s26 + $0x98] sm:$0xff]   ;;  %v2312_v17 = vld [vmem:[%s2414_s26 + $0xa0] sm:$0xff]   ;;  %v2314_v19 = vld [vmem:[%s2414_s26 + $0xa8] sm:$0xff]  }
  0x15   : > { %2183 = vmatprep.subr.bf16.mxu0 %v2299_v6  ;;  %2259 = vmatprep.subr.bf16.mxu1 %v2299_v6  ;;  %v2315_v20 = vld [vmem:[%s2414_s26 + $0x30] sm:$0xff]   ;;  %v2317_v22 = vld [vmem:[%s2414_s26 + $0x38] sm:$0xff]   ;;  %v2319_v24 = vld [vmem:[%s2414_s26 + $0x40] sm:$0xff]  }
  0x16   : > { %v2316_v21 = vld [vmem:[%s2414_s26 + $0xb0] sm:$0xff]   ;;  %v2318_v23 = vld [vmem:[%s2414_s26 + $0xb8] sm:$0xff]   ;;  %v2320_v25 = vld [vmem:[%s2414_s26 + $0xc0] sm:$0xff]  }
  0x17   : > { %v2321_v26 = vld [vmem:[%s2414_s26 + $0x48] sm:$0xff]   ;;  %v2323_v28 = vld [vmem:[%s2414_s26 + $0x50] sm:$0xff]   ;;  %v2325_v30 = vld [vmem:[%s2414_s26 + $0x58] sm:$0xff]  }
  0x18   : > { %2184 = vmatpush3.bf16.msra.mxu0 %v2299_v6  ;;  %2267 = vmatpush3.bf16.msra.mxu1 %v2299_v6  ;;  %v2322_v27 = vld [vmem:[%s2414_s26 + $0xc8] sm:$0xff]   ;;  %v2324_v29 = vld [vmem:[%s2414_s26 + $0xd0] sm:$0xff]   ;;  %v2326_v31 = vld [vmem:[%s2414_s26 + $0xd8] sm:$0xff]  }
  0x19   : > { %2185 = vmatprep.subr.bf16.mxu0 %v2300_v7  ;;  %2260 = vmatprep.subr.bf16.mxu1 %v2300_v7  ;;  %v2327_v32 = vld [vmem:[%s2414_s26 + $0x60] sm:$0xff]   ;;  %v2329_v34 = vld [vmem:[%s2414_s26 + $0x68] sm:$0xff]   ;;  %v2331_v36 = vld [vmem:[%s2414_s26 + $0x70] sm:$0xff]  }
  0x1a   : > { %v2328_v33 = vld [vmem:[%s2414_s26 + $0xe0] sm:$0xff]   ;;  %v2330_v35 = vld [vmem:[%s2414_s26 + $0xe8] sm:$0xff]   ;;  %v2332_v37 = vld [vmem:[%s2414_s26 + $0xf0] sm:$0xff]  }
  0x1b   : > { %v2333_v38 = vld [vmem:[%s2414_s26 + $0x78] sm:$0xff]  }
  0x1c   : > { %2186 = vmatpush3.bf16.msra.mxu0 %v2300_v7  ;;  %2268 = vmatpush3.bf16.msra.mxu1 %v2300_v7  ;;  %v2334_v39 = vld [vmem:[%s2414_s26 + $0xf8] sm:$0xff]  }
  0x1d   : > { %2187 = vmatprep.subr.bf16.mxu0 %v2301_v8  ;;  %2261 = vmatprep.subr.bf16.mxu1 %v2301_v8 }
  0x20   : > { %2188 = vmatpush3.bf16.msra.mxu0 %v2301_v8  ;;  %2269 = vmatpush3.bf16.msra.mxu1 %v2301_v8 }
  0x21   : > { %2189 = vmatprep.subr.bf16.mxu0 %v2302_v9  ;;  %2262 = vmatprep.subr.bf16.mxu1 %v2302_v9 }
  0x24   : > { %2190 = vmatpush3.bf16.msra.mxu0 %v2302_v9  ;;  %2270 = vmatpush3.bf16.msra.mxu1 %v2302_v9 }
  0x27   : > { %2192 = vmatmul.mubr.bf16.vlgmr.msra.gmra.mrb[0].mxu0 %v2305_v10  ;;  %2224 = vmatmul.mubr.bf16.vlgmr.msra.gmra.mrb[0].mxu1 %v2306_v11 }
  0x28   : > { %2195 = vmatprep.mubr.bf16.mxu0 %v2307_v12  ;;  %2227 = vmatprep.mubr.bf16.mxu1 %v2308_v13 }
  0x2f   : > { %2196 = vmatmul.mubr.bf16.gmra.mrb[4].mxu0 %v2309_v14  ;;  %2228 = vmatmul.mubr.bf16.gmra.mrb[4].mxu1 %v2310_v15 }
  0x30   : > { %2199 = vmatprep.mubr.bf16.mxu0 %v2311_v16  ;;  %2231 = vmatprep.mubr.bf16.mxu1 %v2312_v17 }
  0x37   : > { %2200 = vmatmul.mubr.bf16.gmra.mrb[8].mxu0 %v2313_v18  ;;  %2232 = vmatmul.mubr.bf16.gmra.mrb[8].mxu1 %v2314_v19 }
  0x38   : > { %2203 = vmatprep.mubr.bf16.mxu0 %v2315_v20  ;;  %2235 = vmatprep.mubr.bf16.mxu1 %v2316_v21 }
  0x3f   : > { %2204 = vmatmul.mubr.bf16.gmra.mrb[12].mxu0 %v2317_v22  ;;  %2236 = vmatmul.mubr.bf16.gmra.mrb[12].mxu1 %v2318_v23 }
  0x40   : > { %2207 = vmatprep.mubr.bf16.mxu0 %v2319_v24  ;;  %2239 = vmatprep.mubr.bf16.mxu1 %v2320_v25 }
  0x47   : > { %2208 = vmatmul.mubr.bf16.gmra.mrb[16].mxu0 %v2321_v26  ;;  %2240 = vmatmul.mubr.bf16.gmra.mrb[16].mxu1 %v2322_v27 }
  0x48   : > { %2211 = vmatprep.mubr.bf16.mxu0 %v2323_v28  ;;  %2243 = vmatprep.mubr.bf16.mxu1 %v2324_v29 }
  0x4f   : > { %2212 = vmatmul.mubr.bf16.gmra.mrb[20].mxu0 %v2325_v30  ;;  %2244 = vmatmul.mubr.bf16.gmra.mrb[20].mxu1 %v2326_v31 }
  0x50   : > { %2215 = vmatprep.mubr.bf16.mxu0 %v2327_v32  ;;  %2247 = vmatprep.mubr.bf16.mxu1 %v2328_v33 }
  0x57   : > { %2216 = vmatmul.mubr.bf16.gmra.mrb[24].mxu0 %v2329_v34  ;;  %2248 = vmatmul.mubr.bf16.gmra.mrb[24].mxu1 %v2330_v35 }
  0x58   : > { %2219 = vmatprep.mubr.bf16.mxu0 %v2331_v36  ;;  %2251 = vmatprep.mubr.bf16.mxu1 %v2332_v37 }
  0x5f   : > { %2220 = vmatmul.mubr.bf16.gmra.mrb[28].mxu0 %v2333_v38  ;;  %2252 = vmatmul.mubr.bf16.gmra.mrb[28].mxu1 %v2334_v39 }
  0xfa   : > { %v2193_v41 = vpop.f32.mrb[0].mxu0  ;;  %v2225_v42 = vpop.f32.mrb[0].mxu1 }
  0xfb   : > { %v1205_v43 = vadd.f32 %v2193_v41, %v2466_v40  ;;  %v1237_v44 = vadd.f32 %v2225_v42, %v2466_v40  ;;  %v746_v45 = vpop.f32.mrb[1].mxu0  ;;  %v874_v46 = vpop.f32.mrb[1].mxu1 }
  0xfc   : > { %v1203_v47 = vadd.f32 %v2466_v40, %v746_v45  ;;  %v1235_v48 = vadd.f32 %v2466_v40, %v874_v46  ;;  %v2194_v49 = vpop.f32.mrb[2].mxu0  ;;  %v2226_v50 = vpop.f32.mrb[2].mxu1 }
  0xfd   : > { %v1206_v51 = vadd.f32 %v2194_v49, %v2466_v40  ;;  %v1238_v52 = vadd.f32 %v2226_v50, %v2466_v40  ;;  %v749_v53 = vpop.f32.mrb[3].mxu0  ;;  %v877_v54 = vpop.f32.mrb[3].mxu1  ;;  %v1269_v57 = vmax.f32 %v1205_v43, 0.0  ;;  %v1301_v58 = vmax.f32 %v1237_v44, 0.0 }
  0xfe   : > { %v1204_v55 = vadd.f32 %v2466_v40, %v749_v53  ;;  %v1236_v56 = vadd.f32 %v2466_v40, %v877_v54  ;;  %v1267_v61 = vmax.f32 %v1203_v47, 0.0  ;;  %v1299_v62 = vmax.f32 %v1235_v48, 0.0 }
  0xff   : > { %v1270_v59 = vmax.f32 %v1206_v51, 0.0  ;;  %v1302_v60 = vmax.f32 %v1238_v52, 0.0 }
 0x100   : > { %v1268_v63 = vmax.f32 %v1204_v55, 0.0  ;;  %v1300_v0 = vmax.f32 %v1236_v56, 0.0 }
 0x101   : > { %v1952_v1 = vpack.c.bf16 %v1270_v59, %v1269_v57  ;;  %v2032_v2 = vpack.c.bf16 %v1302_v60, %v1301_v58 }
 0x102   : > { %v1947_v3 = vpack.c.bf16 %v1268_v63, %v1267_v61  ;;  %v2027_v4 = vpack.c.bf16 %v1300_v0, %v1299_v62  ;;  %v2197_v5 = vpop.f32.mrb[4].mxu0  ;;  %v2229_v6 = vpop.f32.mrb[4].mxu1 }
 0x103   : > { %2104 = vst [vmem:[%s2481_s17 + $0x8] sm:$0xff] %v1952_v1   ;;  %2120 = vst [vmem:[%s2481_s17 + $0x88] sm:$0xff] %v2032_v2   ;;  %v1209_v7 = vadd.f32 %v2197_v5, %v2466_v40  ;;  %v1241_v8 = vadd.f32 %v2229_v6, %v2466_v40  ;;  %v762_v9 = vpop.f32.mrb[5].mxu0  ;;  %v890_v10 = vpop.f32.mrb[5].mxu1 }
 0x104   : > { %1948 = vst [vmem:[%s2481_s17] sm:$0xff] %v1947_v3   ;;  %2119 = vst [vmem:[%s2481_s17 + $0x80] sm:$0xff] %v2027_v4   ;;  %v1207_v11 = vadd.f32 %v2466_v40, %v762_v9  ;;  %v1239_v12 = vadd.f32 %v2466_v40, %v890_v10  ;;  %v2198_v13 = vpop.f32.mrb[6].mxu0  ;;  %v2230_v14 = vpop.f32.mrb[6].mxu1 }
 0x105   : > { %v1210_v15 = vadd.f32 %v2198_v13, %v2466_v40  ;;  %v1242_v16 = vadd.f32 %v2230_v14, %v2466_v40  ;;  %v765_v17 = vpop.f32.mrb[7].mxu0  ;;  %v893_v18 = vpop.f32.mrb[7].mxu1  ;;  %v1273_v21 = vmax.f32 %v1209_v7, 0.0  ;;  %v1305_v22 = vmax.f32 %v1241_v8, 0.0 }
 0x106   : > { %v1208_v19 = vadd.f32 %v2466_v40, %v765_v17  ;;  %v1240_v20 = vadd.f32 %v2466_v40, %v893_v18  ;;  %v1271_v25 = vmax.f32 %v1207_v11, 0.0  ;;  %v1303_v26 = vmax.f32 %v1239_v12, 0.0 }
 0x107   : > { %v1274_v23 = vmax.f32 %v1210_v15, 0.0  ;;  %v1306_v24 = vmax.f32 %v1242_v16, 0.0 }
 0x108   : > { %v1272_v27 = vmax.f32 %v1208_v19, 0.0  ;;  %v1304_v28 = vmax.f32 %v1240_v20, 0.0 }
 0x109   : > { %v1962_v29 = vpack.c.bf16 %v1274_v23, %v1273_v21  ;;  %v2042_v30 = vpack.c.bf16 %v1306_v24, %v1305_v22 }
 0x10a   : > { %v1957_v31 = vpack.c.bf16 %v1272_v27, %v1271_v25  ;;  %v2037_v32 = vpack.c.bf16 %v1304_v28, %v1303_v26  ;;  %v2201_v33 = vpop.f32.mrb[8].mxu0  ;;  %v2233_v34 = vpop.f32.mrb[8].mxu1 }
 0x10b   : > { %2106 = vst [vmem:[%s2481_s17 + $0x18] sm:$0xff] %v1962_v29   ;;  %2122 = vst [vmem:[%s2481_s17 + $0x98] sm:$0xff] %v2042_v30   ;;  %v1213_v35 = vadd.f32 %v2201_v33, %v2466_v40  ;;  %v1245_v36 = vadd.f32 %v2233_v34, %v2466_v40  ;;  %v778_v37 = vpop.f32.mrb[9].mxu0  ;;  %v906_v38 = vpop.f32.mrb[9].mxu1 }
 0x10c   : > { %2105 = vst [vmem:[%s2481_s17 + $0x10] sm:$0xff] %v1957_v31   ;;  %2121 = vst [vmem:[%s2481_s17 + $0x90] sm:$0xff] %v2037_v32   ;;  %v1211_v39 = vadd.f32 %v2466_v40, %v778_v37  ;;  %v1243_v41 = vadd.f32 %v2466_v40, %v906_v38  ;;  %v2202_v42 = vpop.f32.mrb[10].mxu0  ;;  %v2234_v43 = vpop.f32.mrb[10].mxu1 }
 0x10d   : > { %v1214_v44 = vadd.f32 %v2202_v42, %v2466_v40  ;;  %v1246_v45 = vadd.f32 %v2234_v43, %v2466_v40  ;;  %v781_v46 = vpop.f32.mrb[11].mxu0  ;;  %v909_v47 = vpop.f32.mrb[11].mxu1  ;;  %v1277_v50 = vmax.f32 %v1213_v35, 0.0  ;;  %v1309_v51 = vmax.f32 %v1245_v36, 0.0 }
 0x10e   : > { %v1212_v48 = vadd.f32 %v2466_v40, %v781_v46  ;;  %v1244_v49 = vadd.f32 %v2466_v40, %v909_v47  ;;  %v1275_v54 = vmax.f32 %v1211_v39, 0.0  ;;  %v1307_v55 = vmax.f32 %v1243_v41, 0.0 }
 0x10f   : > { %v1278_v52 = vmax.f32 %v1214_v44, 0.0  ;;  %v1310_v53 = vmax.f32 %v1246_v45, 0.0 }
 0x110   : > { %v1276_v56 = vmax.f32 %v1212_v48, 0.0  ;;  %v1308_v57 = vmax.f32 %v1244_v49, 0.0 }
 0x111   : > { %v1972_v58 = vpack.c.bf16 %v1278_v52, %v1277_v50  ;;  %v2052_v59 = vpack.c.bf16 %v1310_v53, %v1309_v51 }
 0x112   : > { %v1967_v60 = vpack.c.bf16 %v1276_v56, %v1275_v54  ;;  %v2047_v61 = vpack.c.bf16 %v1308_v57, %v1307_v55  ;;  %v2205_v62 = vpop.f32.mrb[12].mxu0  ;;  %v2237_v63 = vpop.f32.mrb[12].mxu1 }
 0x113   : > { %2108 = vst [vmem:[%s2481_s17 + $0x28] sm:$0xff] %v1972_v58   ;;  %2124 = vst [vmem:[%s2481_s17 + $0xa8] sm:$0xff] %v2052_v59   ;;  %v1217_v0 = vadd.f32 %v2205_v62, %v2466_v40  ;;  %v1249_v1 = vadd.f32 %v2237_v63, %v2466_v40  ;;  %v794_v2 = vpop.f32.mrb[13].mxu0  ;;  %v922_v3 = vpop.f32.mrb[13].mxu1 }
 0x114   : > { %2107 = vst [vmem:[%s2481_s17 + $0x20] sm:$0xff] %v1967_v60   ;;  %2123 = vst [vmem:[%s2481_s17 + $0xa0] sm:$0xff] %v2047_v61   ;;  %v1215_v4 = vadd.f32 %v2466_v40, %v794_v2  ;;  %v1247_v5 = vadd.f32 %v2466_v40, %v922_v3  ;;  %v2206_v6 = vpop.f32.mrb[14].mxu0  ;;  %v2238_v7 = vpop.f32.mrb[14].mxu1 }
 0x115   : > { %v1218_v8 = vadd.f32 %v2206_v6, %v2466_v40  ;;  %v1250_v9 = vadd.f32 %v2238_v7, %v2466_v40  ;;  %v797_v10 = vpop.f32.mrb[15].mxu0  ;;  %v925_v11 = vpop.f32.mrb[15].mxu1  ;;  %v1281_v14 = vmax.f32 %v1217_v0, 0.0  ;;  %v1313_v15 = vmax.f32 %v1249_v1, 0.0 }
 0x116   : > { %v1216_v12 = vadd.f32 %v2466_v40, %v797_v10  ;;  %v1248_v13 = vadd.f32 %v2466_v40, %v925_v11  ;;  %v1279_v18 = vmax.f32 %v1215_v4, 0.0  ;;  %v1311_v19 = vmax.f32 %v1247_v5, 0.0 }
 0x117   : > { %v1282_v16 = vmax.f32 %v1218_v8, 0.0  ;;  %v1314_v17 = vmax.f32 %v1250_v9, 0.0 }
 0x118   : > { %v1280_v20 = vmax.f32 %v1216_v12, 0.0  ;;  %v1312_v21 = vmax.f32 %v1248_v13, 0.0 }
 0x119   : > { %v1982_v22 = vpack.c.bf16 %v1282_v16, %v1281_v14  ;;  %v2062_v23 = vpack.c.bf16 %v1314_v17, %v1313_v15 }
 0x11a   : > { %v1977_v24 = vpack.c.bf16 %v1280_v20, %v1279_v18  ;;  %v2057_v25 = vpack.c.bf16 %v1312_v21, %v1311_v19  ;;  %v2209_v26 = vpop.f32.mrb[16].mxu0  ;;  %v2241_v27 = vpop.f32.mrb[16].mxu1 }
 0x11b   : > { %2110 = vst [vmem:[%s2481_s17 + $0x38] sm:$0xff] %v1982_v22   ;;  %2126 = vst [vmem:[%s2481_s17 + $0xb8] sm:$0xff] %v2062_v23   ;;  %v1221_v28 = vadd.f32 %v2209_v26, %v2466_v40  ;;  %v1253_v29 = vadd.f32 %v2241_v27, %v2466_v40  ;;  %v810_v30 = vpop.f32.mrb[17].mxu0  ;;  %v938_v31 = vpop.f32.mrb[17].mxu1 }
 0x11c   : > { %2109 = vst [vmem:[%s2481_s17 + $0x30] sm:$0xff] %v1977_v24   ;;  %2125 = vst [vmem:[%s2481_s17 + $0xb0] sm:$0xff] %v2057_v25   ;;  %v1219_v32 = vadd.f32 %v2466_v40, %v810_v30  ;;  %v1251_v33 = vadd.f32 %v2466_v40, %v938_v31  ;;  %v2210_v34 = vpop.f32.mrb[18].mxu0  ;;  %v2242_v35 = vpop.f32.mrb[18].mxu1 }
 0x11d   : > { %v1222_v36 = vadd.f32 %v2210_v34, %v2466_v40  ;;  %v1254_v37 = vadd.f32 %v2242_v35, %v2466_v40  ;;  %v813_v38 = vpop.f32.mrb[19].mxu0  ;;  %v941_v39 = vpop.f32.mrb[19].mxu1  ;;  %v1285_v43 = vmax.f32 %v1221_v28, 0.0  ;;  %v1317_v44 = vmax.f32 %v1253_v29, 0.0 }
 0x11e   : > { %v1220_v41 = vadd.f32 %v2466_v40, %v813_v38  ;;  %v1252_v42 = vadd.f32 %v2466_v40, %v941_v39  ;;  %v1283_v47 = vmax.f32 %v1219_v32, 0.0  ;;  %v1315_v48 = vmax.f32 %v1251_v33, 0.0 }
 0x11f   : > { %v1286_v45 = vmax.f32 %v1222_v36, 0.0  ;;  %v1318_v46 = vmax.f32 %v1254_v37, 0.0 }
 0x120   : > { %v1284_v49 = vmax.f32 %v1220_v41, 0.0  ;;  %v1316_v50 = vmax.f32 %v1252_v42, 0.0 }
 0x121   : > { %v1992_v51 = vpack.c.bf16 %v1286_v45, %v1285_v43  ;;  %v2072_v52 = vpack.c.bf16 %v1318_v46, %v1317_v44 }
 0x122   : > { %v1987_v53 = vpack.c.bf16 %v1284_v49, %v1283_v47  ;;  %v2067_v54 = vpack.c.bf16 %v1316_v50, %v1315_v48  ;;  %v2213_v55 = vpop.f32.mrb[20].mxu0  ;;  %v2245_v56 = vpop.f32.mrb[20].mxu1 }
 0x123   : > { %2112 = vst [vmem:[%s2481_s17 + $0x48] sm:$0xff] %v1992_v51   ;;  %2128 = vst [vmem:[%s2481_s17 + $0xc8] sm:$0xff] %v2072_v52   ;;  %v1225_v57 = vadd.f32 %v2213_v55, %v2466_v40  ;;  %v1257_v58 = vadd.f32 %v2245_v56, %v2466_v40  ;;  %v826_v59 = vpop.f32.mrb[21].mxu0  ;;  %v954_v60 = vpop.f32.mrb[21].mxu1 }
 0x124   : > { %2111 = vst [vmem:[%s2481_s17 + $0x40] sm:$0xff] %v1987_v53   ;;  %2127 = vst [vmem:[%s2481_s17 + $0xc0] sm:$0xff] %v2067_v54   ;;  %v1223_v61 = vadd.f32 %v2466_v40, %v826_v59  ;;  %v1255_v62 = vadd.f32 %v2466_v40, %v954_v60  ;;  %v2214_v63 = vpop.f32.mrb[22].mxu0  ;;  %v2246_v0 = vpop.f32.mrb[22].mxu1 }
 0x125   : > { %v1226_v1 = vadd.f32 %v2214_v63, %v2466_v40  ;;  %v1258_v2 = vadd.f32 %v2246_v0, %v2466_v40  ;;  %v829_v3 = vpop.f32.mrb[23].mxu0  ;;  %v957_v4 = vpop.f32.mrb[23].mxu1  ;;  %v1289_v7 = vmax.f32 %v1225_v57, 0.0  ;;  %v1321_v8 = vmax.f32 %v1257_v58, 0.0 }
 0x126   : > { %v1224_v5 = vadd.f32 %v2466_v40, %v829_v3  ;;  %v1256_v6 = vadd.f32 %v2466_v40, %v957_v4  ;;  %v1287_v11 = vmax.f32 %v1223_v61, 0.0  ;;  %v1319_v12 = vmax.f32 %v1255_v62, 0.0 }
 0x127   : > { %v1290_v9 = vmax.f32 %v1226_v1, 0.0  ;;  %v1322_v10 = vmax.f32 %v1258_v2, 0.0 }
 0x128   : > { %v1288_v13 = vmax.f32 %v1224_v5, 0.0  ;;  %v1320_v14 = vmax.f32 %v1256_v6, 0.0 }
 0x129   : > { %v2002_v15 = vpack.c.bf16 %v1290_v9, %v1289_v7  ;;  %v2082_v16 = vpack.c.bf16 %v1322_v10, %v1321_v8 }
 0x12a   : > { %v1997_v17 = vpack.c.bf16 %v1288_v13, %v1287_v11  ;;  %v2077_v18 = vpack.c.bf16 %v1320_v14, %v1319_v12  ;;  %v2217_v19 = vpop.f32.mrb[24].mxu0  ;;  %v2249_v20 = vpop.f32.mrb[24].mxu1 }
 0x12b   : > { %2114 = vst [vmem:[%s2481_s17 + $0x58] sm:$0xff] %v2002_v15   ;;  %2130 = vst [vmem:[%s2481_s17 + $0xd8] sm:$0xff] %v2082_v16   ;;  %v1229_v21 = vadd.f32 %v2217_v19, %v2466_v40  ;;  %v1261_v22 = vadd.f32 %v2249_v20, %v2466_v40  ;;  %v842_v23 = vpop.f32.mrb[25].mxu0  ;;  %v970_v24 = vpop.f32.mrb[25].mxu1 }
 0x12c   : > { %2113 = vst [vmem:[%s2481_s17 + $0x50] sm:$0xff] %v1997_v17   ;;  %2129 = vst [vmem:[%s2481_s17 + $0xd0] sm:$0xff] %v2077_v18   ;;  %v1227_v25 = vadd.f32 %v2466_v40, %v842_v23  ;;  %v1259_v26 = vadd.f32 %v2466_v40, %v970_v24  ;;  %v2218_v27 = vpop.f32.mrb[26].mxu0  ;;  %v2250_v28 = vpop.f32.mrb[26].mxu1 }
 0x12d   : > { %v1230_v29 = vadd.f32 %v2218_v27, %v2466_v40  ;;  %v1262_v30 = vadd.f32 %v2250_v28, %v2466_v40  ;;  %v845_v31 = vpop.f32.mrb[27].mxu0  ;;  %v973_v32 = vpop.f32.mrb[27].mxu1  ;;  %v1293_v35 = vmax.f32 %v1229_v21, 0.0  ;;  %v1325_v36 = vmax.f32 %v1261_v22, 0.0 }
 0x12e   : > { %v1228_v33 = vadd.f32 %v2466_v40, %v845_v31  ;;  %v1260_v34 = vadd.f32 %v2466_v40, %v973_v32  ;;  %v1291_v39 = vmax.f32 %v1227_v25, 0.0  ;;  %v1323_v41 = vmax.f32 %v1259_v26, 0.0 }
 0x12f   : > { %v1294_v37 = vmax.f32 %v1230_v29, 0.0  ;;  %v1326_v38 = vmax.f32 %v1262_v30, 0.0 }
 0x130   : > { %v1292_v42 = vmax.f32 %v1228_v33, 0.0  ;;  %v1324_v43 = vmax.f32 %v1260_v34, 0.0 }
 0x131   : > { %v2012_v44 = vpack.c.bf16 %v1294_v37, %v1293_v35  ;;  %v2092_v45 = vpack.c.bf16 %v1326_v38, %v1325_v36 }
 0x132   : > { %v2007_v46 = vpack.c.bf16 %v1292_v42, %v1291_v39  ;;  %v2087_v47 = vpack.c.bf16 %v1324_v43, %v1323_v41  ;;  %v2221_v48 = vpop.f32.mrb[28].mxu0  ;;  %v2253_v49 = vpop.f32.mrb[28].mxu1 }
 0x133   : > { %2116 = vst [vmem:[%s2481_s17 + $0x68] sm:$0xff] %v2012_v44   ;;  %2132 = vst [vmem:[%s2481_s17 + $0xe8] sm:$0xff] %v2092_v45   ;;  %v1233_v50 = vadd.f32 %v2221_v48, %v2466_v40  ;;  %v1265_v51 = vadd.f32 %v2253_v49, %v2466_v40  ;;  %v858_v52 = vpop.f32.mrb[29].mxu0  ;;  %v986_v53 = vpop.f32.mrb[29].mxu1 }
 0x134   : > { %2115 = vst [vmem:[%s2481_s17 + $0x60] sm:$0xff] %v2007_v46   ;;  %2131 = vst [vmem:[%s2481_s17 + $0xe0] sm:$0xff] %v2087_v47   ;;  %v1231_v54 = vadd.f32 %v2466_v40, %v858_v52  ;;  %v1263_v55 = vadd.f32 %v2466_v40, %v986_v53  ;;  %v2222_v56 = vpop.f32.mrb[30].mxu0  ;;  %v2254_v57 = vpop.f32.mrb[30].mxu1 }
 0x135   : > { %v1234_v58 = vadd.f32 %v2222_v56, %v2466_v40  ;;  %v1266_v59 = vadd.f32 %v2254_v57, %v2466_v40  ;;  %v861_v60 = vpop.f32.mrb[31].mxu0  ;;  %v989_v61 = vpop.f32.mrb[31].mxu1  ;;  %v1297_v0 = vmax.f32 %v1233_v50, 0.0  ;;  %v1329_v1 = vmax.f32 %v1265_v51, 0.0 }
 0x136   : > { %v1232_v62 = vadd.f32 %v2466_v40, %v861_v60  ;;  %v1264_v63 = vadd.f32 %v2466_v40, %v989_v61  ;;  %v1295_v4 = vmax.f32 %v1231_v54, 0.0  ;;  %v1327_v5 = vmax.f32 %v1263_v55, 0.0 }
 0x137   : > { %v1298_v2 = vmax.f32 %v1234_v58, 0.0  ;;  %v1330_v3 = vmax.f32 %v1266_v59, 0.0 }
 0x138   : > { %v1296_v6 = vmax.f32 %v1232_v62, 0.0  ;;  %v1328_v7 = vmax.f32 %v1264_v63, 0.0 }
 0x139   : > { %v2022_v8 = vpack.c.bf16 %v1298_v2, %v1297_v0  ;;  %v2102_v9 = vpack.c.bf16 %v1330_v3, %v1329_v1 }
 0x13a   : > { %v2017_v10 = vpack.c.bf16 %v1296_v6, %v1295_v4  ;;  %v2097_v11 = vpack.c.bf16 %v1328_v7, %v1327_v5 }
 0x13b   : > { %2118 = vst [vmem:[%s2481_s17 + $0x78] sm:$0xff] %v2022_v8   ;;  %2134 = vst [vmem:[%s2481_s17 + $0xf8] sm:$0xff] %v2102_v9  }
 0x13c   : > { %2117 = vst [vmem:[%s2481_s17 + $0x70] sm:$0xff] %v2017_v10   ;;  %2133 = vst [vmem:[%s2481_s17 + $0xf0] sm:$0xff] %v2097_v11  }
 0x13d PF: > { %s13_s14 = sadd.s32 1, %s2357_s14   ;;  %s2584_s12 = smov %s2353_s13 }
 0x13e   : > { %p10_p5 = scmp.ge.s32.totalorder %s13_s14, 6   ;;  %s2585_s13 = smov %s2587_s15 }
 0x140   :  { %12 = sbr.rel (!%p10_p5) target bundleno = 2 (0x2), region = 76 }

// kernel: unet_forward.23
= control target key start
LH: loop header
LB: loop body
LE: loop exit
PB: predicated region body
PF: predicated region fallthrough
CT: control target
= control target key end

     0   :  { %s2251_s1 = inlined_call_operand.vmem [shape: bf16[128,128], index: 1, kind: input, shape index: {}]   ;;  %s2252_s0 = inlined_call_operand.vmem [shape: bf16[512,128], index: 0, kind: input, shape index: {}]   ;;  %s2253_s2 = inlined_call_operand.vmem [shape: f32[1,128], index: 2, kind: input, shape index: {}]   ;;  %s2254_s3 = inlined_call_operand.vmem [shape: bf16[512,128], index: 3, kind: output, shape index: {}]  }
   0x1   :  { %v1906_v0 = vld [vmem:[%s2251_s1] sm:$0xff]   ;;  %v1907_v1 = vld [vmem:[%s2251_s1 + $0x8] sm:$0xff]   ;;  %v1908_v2 = vld [vmem:[%s2251_s1 + $0x10] sm:$0xff]  }
   0x2   :  { %1810 = vmatprep.subr.bf16.mxu0 %v1906_v0  ;;  %1890 = vmatprep.subr.bf16.mxu1 %v1906_v0  ;;  %v1909_v3 = vld [vmem:[%s2251_s1 + $0x18] sm:$0xff]   ;;  %v1914_v4 = vld [vmem:[%s2252_s0] sm:$0xff]   ;;  %v1911_v7 = vld [vmem:[%s2251_s1 + $0x28] sm:$0xff]  }
   0x3   :  { %1811 = vmatpush3.bf16.msra.mxu0 %v1906_v0  ;;  %1898 = vmatpush3.bf16.msra.mxu1 %v1906_v0  ;;  %v1915_v5 = vld [vmem:[%s2252_s0 + $0x80] sm:$0xff]   ;;  %v1912_v8 = vld [vmem:[%s2251_s1 + $0x30] sm:$0xff]   ;;  %v1913_v9 = vld [vmem:[%s2251_s1 + $0x38] sm:$0xff]  }
   0x4   :  { %1812 = vmatprep.subr.bf16.mxu0 %v1907_v1  ;;  %1891 = vmatprep.subr.bf16.mxu1 %v1907_v1  ;;  %v1910_v6 = vld [vmem:[%s2251_s1 + $0x20] sm:$0xff]   ;;  %v1916_v10 = vld [vmem:[%s2252_s0 + $0x8] sm:$0xff]   ;;  %v1918_v12 = vld [vmem:[%s2252_s0 + $0x10] sm:$0xff]  }
   0x5   :  { %1826 = vmatprep.mubr.bf16.mxu0 %v1914_v4  ;;  %1858 = vmatprep.mubr.bf16.mxu1 %v1915_v5  ;;  %v1917_v11 = vld [vmem:[%s2252_s0 + $0x88] sm:$0xff]   ;;  %v1919_v13 = vld [vmem:[%s2252_s0 + $0x90] sm:$0xff]   ;;  %v1920_v14 = vld [vmem:[%s2252_s0 + $0x18] sm:$0xff]  }
   0x6   :  { %v1921_v15 = vld [vmem:[%s2252_s0 + $0x98] sm:$0xff]   ;;  %v1922_v16 = vld [vmem:[%s2252_s0 + $0x20] sm:$0xff]   ;;  %v1924_v18 = vld [vmem:[%s2252_s0 + $0x28] sm:$0xff]  }
   0x7   :  { %1813 = vmatpush3.bf16.msra.mxu0 %v1907_v1  ;;  %1899 = vmatpush3.bf16.msra.mxu1 %v1907_v1  ;;  %v1923_v17 = vld [vmem:[%s2252_s0 + $0xa0] sm:$0xff]   ;;  %v1925_v19 = vld [vmem:[%s2252_s0 + $0xa8] sm:$0xff]   ;;  %v1926_v20 = vld [vmem:[%s2252_s0 + $0x30] sm:$0xff]  }
   0x8   :  { %1814 = vmatprep.subr.bf16.mxu0 %v1908_v2  ;;  %1892 = vmatprep.subr.bf16.mxu1 %v1908_v2  ;;  %v1927_v21 = vld [vmem:[%s2252_s0 + $0xb0] sm:$0xff]   ;;  %v1928_v22 = vld [vmem:[%s2252_s0 + $0x38] sm:$0xff]   ;;  %v1930_v24 = vld [vmem:[%s2252_s0 + $0x40] sm:$0xff]  }
   0x9   :  { %v1929_v23 = vld [vmem:[%s2252_s0 + $0xb8] sm:$0xff]   ;;  %v1931_v25 = vld [vmem:[%s2252_s0 + $0xc0] sm:$0xff]   ;;  %v1932_v26 = vld [vmem:[%s2252_s0 + $0x48] sm:$0xff]  }
   0xa   :  { %v1933_v27 = vld [vmem:[%s2252_s0 + $0xc8] sm:$0xff]   ;;  %v1934_v28 = vld [vmem:[%s2252_s0 + $0x50] sm:$0xff]   ;;  %v1936_v30 = vld [vmem:[%s2252_s0 + $0x58] sm:$0xff]  }
   0xb   :  { %1815 = vmatpush3.bf16.msra.mxu0 %v1908_v2  ;;  %1900 = vmatpush3.bf16.msra.mxu1 %v1908_v2  ;;  %v1935_v29 = vld [vmem:[%s2252_s0 + $0xd0] sm:$0xff]   ;;  %v1937_v31 = vld [vmem:[%s2252_s0 + $0xd8] sm:$0xff]   ;;  %v1938_v32 = vld [vmem:[%s2252_s0 + $0x60] sm:$0xff]  }
   0xc   :  { %1816 = vmatprep.subr.bf16.mxu0 %v1909_v3  ;;  %1893 = vmatprep.subr.bf16.mxu1 %v1909_v3  ;;  %v1939_v33 = vld [vmem:[%s2252_s0 + $0xe0] sm:$0xff]   ;;  %v1940_v34 = vld [vmem:[%s2252_s0 + $0x68] sm:$0xff]   ;;  %v1942_v36 = vld [vmem:[%s2252_s0 + $0x70] sm:$0xff]  }
   0xd   :  { %v1941_v35 = vld [vmem:[%s2252_s0 + $0xe8] sm:$0xff]   ;;  %v1943_v37 = vld [vmem:[%s2252_s0 + $0xf0] sm:$0xff]   ;;  %v1944_v38 = vld [vmem:[%s2252_s0 + $0x78] sm:$0xff]  }
   0xe   :  { %v1945_v39 = vld [vmem:[%s2252_s0 + $0xf8] sm:$0xff]   ;;  %v2089_v40 = vld [vmem:[%s2253_s2] ss:$0 sm:$0xff] }
   0xf   :  { %1817 = vmatpush3.bf16.msra.mxu0 %v1909_v3  ;;  %1901 = vmatpush3.bf16.msra.mxu1 %v1909_v3 }
  0x10   :  { %1818 = vmatprep.subr.bf16.mxu0 %v1910_v6  ;;  %1894 = vmatprep.subr.bf16.mxu1 %v1910_v6 }
  0x13   :  { %1819 = vmatpush3.bf16.msra.mxu0 %v1910_v6  ;;  %1902 = vmatpush3.bf16.msra.mxu1 %v1910_v6 }
  0x14   :  { %1820 = vmatprep.subr.bf16.mxu0 %v1911_v7  ;;  %1895 = vmatprep.subr.bf16.mxu1 %v1911_v7 }
  0x17   :  { %1821 = vmatpush3.bf16.msra.mxu0 %v1911_v7  ;;  %1903 = vmatpush3.bf16.msra.mxu1 %v1911_v7 }
  0x18   :  { %1822 = vmatprep.subr.bf16.mxu0 %v1912_v8  ;;  %1896 = vmatprep.subr.bf16.mxu1 %v1912_v8 }
  0x1b   :  { %1823 = vmatpush3.bf16.msra.mxu0 %v1912_v8  ;;  %1904 = vmatpush3.bf16.msra.mxu1 %v1912_v8 }
  0x1c   :  { %1824 = vmatprep.subr.bf16.mxu0 %v1913_v9  ;;  %1897 = vmatprep.subr.bf16.mxu1 %v1913_v9 }
  0x1f   :  { %1825 = vmatpush3.bf16.msra.mxu0 %v1913_v9  ;;  %1905 = vmatpush3.bf16.msra.mxu1 %v1913_v9 }
  0x22   :  { %1827 = vmatmul.mubr.bf16.vlgmr.msra.gmra.mrb[0].mxu0 %v1916_v10  ;;  %1859 = vmatmul.mubr.bf16.vlgmr.msra.gmra.mrb[0].mxu1 %v1917_v11 }
  0x23   :  { %1830 = vmatprep.mubr.bf16.mxu0 %v1918_v12  ;;  %1862 = vmatprep.mubr.bf16.mxu1 %v1919_v13 }
  0x2a   :  { %1831 = vmatmul.mubr.bf16.gmra.mrb[4].mxu0 %v1920_v14  ;;  %1863 = vmatmul.mubr.bf16.gmra.mrb[4].mxu1 %v1921_v15 }
  0x2b   :  { %1834 = vmatprep.mubr.bf16.mxu0 %v1922_v16  ;;  %1866 = vmatprep.mubr.bf16.mxu1 %v1923_v17 }
  0x32   :  { %1835 = vmatmul.mubr.bf16.gmra.mrb[8].mxu0 %v1924_v18  ;;  %1867 = vmatmul.mubr.bf16.gmra.mrb[8].mxu1 %v1925_v19 }
  0x33   :  { %1838 = vmatprep.mubr.bf16.mxu0 %v1926_v20  ;;  %1870 = vmatprep.mubr.bf16.mxu1 %v1927_v21 }
  0x3a   :  { %1839 = vmatmul.mubr.bf16.gmra.mrb[12].mxu0 %v1928_v22  ;;  %1871 = vmatmul.mubr.bf16.gmra.mrb[12].mxu1 %v1929_v23 }
  0x3b   :  { %1842 = vmatprep.mubr.bf16.mxu0 %v1930_v24  ;;  %1874 = vmatprep.mubr.bf16.mxu1 %v1931_v25 }
  0x42   :  { %1843 = vmatmul.mubr.bf16.gmra.mrb[16].mxu0 %v1932_v26  ;;  %1875 = vmatmul.mubr.bf16.gmra.mrb[16].mxu1 %v1933_v27 }
  0x43   :  { %1846 = vmatprep.mubr.bf16.mxu0 %v1934_v28  ;;  %1878 = vmatprep.mubr.bf16.mxu1 %v1935_v29 }
  0x4a   :  { %1847 = vmatmul.mubr.bf16.gmra.mrb[20].mxu0 %v1936_v30  ;;  %1879 = vmatmul.mubr.bf16.gmra.mrb[20].mxu1 %v1937_v31 }
  0x4b   :  { %1850 = vmatprep.mubr.bf16.mxu0 %v1938_v32  ;;  %1882 = vmatprep.mubr.bf16.mxu1 %v1939_v33 }
  0x52   :  { %1851 = vmatmul.mubr.bf16.gmra.mrb[24].mxu0 %v1940_v34  ;;  %1883 = vmatmul.mubr.bf16.gmra.mrb[24].mxu1 %v1941_v35 }
  0x53   :  { %1854 = vmatprep.mubr.bf16.mxu0 %v1942_v36  ;;  %1886 = vmatprep.mubr.bf16.mxu1 %v1943_v37 }
  0x5a   :  { %1855 = vmatmul.mubr.bf16.gmra.mrb[28].mxu0 %v1944_v38  ;;  %1887 = vmatmul.mubr.bf16.gmra.mrb[28].mxu1 %v1945_v39 }
  0xf5   :  { %v1828_v41 = vpop.f32.mrb[0].mxu0  ;;  %v1860_v42 = vpop.f32.mrb[0].mxu1 }
  0xf6   :  { %v960_v43 = vadd.f32 %v1828_v41, %v2089_v40  ;;  %v992_v44 = vadd.f32 %v1860_v42, %v2089_v40  ;;  %v501_v45 = vpop.f32.mrb[1].mxu0  ;;  %v629_v46 = vpop.f32.mrb[1].mxu1 }
  0xf7   :  { %v958_v47 = vadd.f32 %v2089_v40, %v501_v45  ;;  %v990_v48 = vadd.f32 %v2089_v40, %v629_v46  ;;  %v1829_v49 = vpop.f32.mrb[2].mxu0  ;;  %v1861_v50 = vpop.f32.mrb[2].mxu1 }
  0xf8   :  { %v961_v51 = vadd.f32 %v1829_v49, %v2089_v40  ;;  %v993_v52 = vadd.f32 %v1861_v50, %v2089_v40  ;;  %v504_v53 = vpop.f32.mrb[3].mxu0  ;;  %v632_v54 = vpop.f32.mrb[3].mxu1  ;;  %v1024_v57 = vmax.f32 %v960_v43, 0.0  ;;  %v1056_v58 = vmax.f32 %v992_v44, 0.0 }
  0xf9   :  { %v959_v55 = vadd.f32 %v2089_v40, %v504_v53  ;;  %v991_v56 = vadd.f32 %v2089_v40, %v632_v54  ;;  %v1022_v61 = vmax.f32 %v958_v47, 0.0  ;;  %v1054_v62 = vmax.f32 %v990_v48, 0.0 }
  0xfa   :  { %v1025_v59 = vmax.f32 %v961_v51, 0.0  ;;  %v1057_v60 = vmax.f32 %v993_v52, 0.0 }
  0xfb   :  { %v1023_v63 = vmax.f32 %v959_v55, 0.0  ;;  %v1055_v0 = vmax.f32 %v991_v56, 0.0 }
  0xfc   :  { %v1587_v1 = vpack.c.bf16 %v1025_v59, %v1024_v57  ;;  %v1667_v2 = vpack.c.bf16 %v1057_v60, %v1056_v58 }
  0xfd   :  { %v1582_v3 = vpack.c.bf16 %v1023_v63, %v1022_v61  ;;  %v1662_v4 = vpack.c.bf16 %v1055_v0, %v1054_v62  ;;  %v1832_v5 = vpop.f32.mrb[4].mxu0  ;;  %v1864_v6 = vpop.f32.mrb[4].mxu1 }
  0xfe   :  { %1739 = vst [vmem:[%s2254_s3 + $0x8] sm:$0xff] %v1587_v1   ;;  %1755 = vst [vmem:[%s2254_s3 + $0x88] sm:$0xff] %v1667_v2   ;;  %v964_v7 = vadd.f32 %v1832_v5, %v2089_v40  ;;  %v996_v8 = vadd.f32 %v1864_v6, %v2089_v40  ;;  %v517_v9 = vpop.f32.mrb[5].mxu0  ;;  %v645_v10 = vpop.f32.mrb[5].mxu1 }
  0xff   :  { %1583 = vst [vmem:[%s2254_s3] sm:$0xff] %v1582_v3   ;;  %1754 = vst [vmem:[%s2254_s3 + $0x80] sm:$0xff] %v1662_v4   ;;  %v962_v11 = vadd.f32 %v2089_v40, %v517_v9  ;;  %v994_v12 = vadd.f32 %v2089_v40, %v645_v10  ;;  %v1833_v13 = vpop.f32.mrb[6].mxu0  ;;  %v1865_v14 = vpop.f32.mrb[6].mxu1 }
 0x100   :  { %v965_v15 = vadd.f32 %v1833_v13, %v2089_v40  ;;  %v997_v16 = vadd.f32 %v1865_v14, %v2089_v40  ;;  %v520_v17 = vpop.f32.mrb[7].mxu0  ;;  %v648_v18 = vpop.f32.mrb[7].mxu1  ;;  %v1028_v21 = vmax.f32 %v964_v7, 0.0  ;;  %v1060_v22 = vmax.f32 %v996_v8, 0.0 }
 0x101   :  { %v963_v19 = vadd.f32 %v2089_v40, %v520_v17  ;;  %v995_v20 = vadd.f32 %v2089_v40, %v648_v18  ;;  %v1026_v25 = vmax.f32 %v962_v11, 0.0  ;;  %v1058_v26 = vmax.f32 %v994_v12, 0.0 }
 0x102   :  { %v1029_v23 = vmax.f32 %v965_v15, 0.0  ;;  %v1061_v24 = vmax.f32 %v997_v16, 0.0 }
 0x103   :  { %v1027_v27 = vmax.f32 %v963_v19, 0.0  ;;  %v1059_v28 = vmax.f32 %v995_v20, 0.0 }
 0x104   :  { %v1597_v29 = vpack.c.bf16 %v1029_v23, %v1028_v21  ;;  %v1677_v30 = vpack.c.bf16 %v1061_v24, %v1060_v22 }
 0x105   :  { %v1592_v31 = vpack.c.bf16 %v1027_v27, %v1026_v25  ;;  %v1672_v32 = vpack.c.bf16 %v1059_v28, %v1058_v26  ;;  %v1836_v33 = vpop.f32.mrb[8].mxu0  ;;  %v1868_v34 = vpop.f32.mrb[8].mxu1 }
 0x106   :  { %1741 = vst [vmem:[%s2254_s3 + $0x18] sm:$0xff] %v1597_v29   ;;  %1757 = vst [vmem:[%s2254_s3 + $0x98] sm:$0xff] %v1677_v30   ;;  %v968_v35 = vadd.f32 %v1836_v33, %v2089_v40  ;;  %v1000_v36 = vadd.f32 %v1868_v34, %v2089_v40  ;;  %v533_v37 = vpop.f32.mrb[9].mxu0  ;;  %v661_v38 = vpop.f32.mrb[9].mxu1 }
 0x107   :  { %1740 = vst [vmem:[%s2254_s3 + $0x10] sm:$0xff] %v1592_v31   ;;  %1756 = vst [vmem:[%s2254_s3 + $0x90] sm:$0xff] %v1672_v32   ;;  %v966_v39 = vadd.f32 %v2089_v40, %v533_v37  ;;  %v998_v41 = vadd.f32 %v2089_v40, %v661_v38  ;;  %v1837_v42 = vpop.f32.mrb[10].mxu0  ;;  %v1869_v43 = vpop.f32.mrb[10].mxu1 }
 0x108   :  { %v969_v44 = vadd.f32 %v1837_v42, %v2089_v40  ;;  %v1001_v45 = vadd.f32 %v1869_v43, %v2089_v40  ;;  %v536_v46 = vpop.f32.mrb[11].mxu0  ;;  %v664_v47 = vpop.f32.mrb[11].mxu1  ;;  %v1032_v50 = vmax.f32 %v968_v35, 0.0  ;;  %v1064_v51 = vmax.f32 %v1000_v36, 0.0 }
 0x109   :  { %v967_v48 = vadd.f32 %v2089_v40, %v536_v46  ;;  %v999_v49 = vadd.f32 %v2089_v40, %v664_v47  ;;  %v1030_v54 = vmax.f32 %v966_v39, 0.0  ;;  %v1062_v55 = vmax.f32 %v998_v41, 0.0 }
 0x10a   :  { %v1033_v52 = vmax.f32 %v969_v44, 0.0  ;;  %v1065_v53 = vmax.f32 %v1001_v45, 0.0 }
 0x10b   :  { %v1031_v56 = vmax.f32 %v967_v48, 0.0  ;;  %v1063_v57 = vmax.f32 %v999_v49, 0.0 }
 0x10c   :  { %v1607_v58 = vpack.c.bf16 %v1033_v52, %v1032_v50  ;;  %v1687_v59 = vpack.c.bf16 %v1065_v53, %v1064_v51 }
 0x10d   :  { %v1602_v60 = vpack.c.bf16 %v1031_v56, %v1030_v54  ;;  %v1682_v61 = vpack.c.bf16 %v1063_v57, %v1062_v55  ;;  %v1840_v62 = vpop.f32.mrb[12].mxu0  ;;  %v1872_v63 = vpop.f32.mrb[12].mxu1 }
 0x10e   :  { %1743 = vst [vmem:[%s2254_s3 + $0x28] sm:$0xff] %v1607_v58   ;;  %1759 = vst [vmem:[%s2254_s3 + $0xa8] sm:$0xff] %v1687_v59   ;;  %v972_v0 = vadd.f32 %v1840_v62, %v2089_v40  ;;  %v1004_v1 = vadd.f32 %v1872_v63, %v2089_v40  ;;  %v549_v2 = vpop.f32.mrb[13].mxu0  ;;  %v677_v3 = vpop.f32.mrb[13].mxu1 }
 0x10f   :  { %1742 = vst [vmem:[%s2254_s3 + $0x20] sm:$0xff] %v1602_v60   ;;  %1758 = vst [vmem:[%s2254_s3 + $0xa0] sm:$0xff] %v1682_v61   ;;  %v970_v4 = vadd.f32 %v2089_v40, %v549_v2  ;;  %v1002_v5 = vadd.f32 %v2089_v40, %v677_v3  ;;  %v1841_v6 = vpop.f32.mrb[14].mxu0  ;;  %v1873_v7 = vpop.f32.mrb[14].mxu1 }
 0x110   :  { %v973_v8 = vadd.f32 %v1841_v6, %v2089_v40  ;;  %v1005_v9 = vadd.f32 %v1873_v7, %v2089_v40  ;;  %v552_v10 = vpop.f32.mrb[15].mxu0  ;;  %v680_v11 = vpop.f32.mrb[15].mxu1  ;;  %v1036_v14 = vmax.f32 %v972_v0, 0.0  ;;  %v1068_v15 = vmax.f32 %v1004_v1, 0.0 }
 0x111   :  { %v971_v12 = vadd.f32 %v2089_v40, %v552_v10  ;;  %v1003_v13 = vadd.f32 %v2089_v40, %v680_v11  ;;  %v1034_v18 = vmax.f32 %v970_v4, 0.0  ;;  %v1066_v19 = vmax.f32 %v1002_v5, 0.0 }
 0x112   :  { %v1037_v16 = vmax.f32 %v973_v8, 0.0  ;;  %v1069_v17 = vmax.f32 %v1005_v9, 0.0 }
 0x113   :  { %v1035_v20 = vmax.f32 %v971_v12, 0.0  ;;  %v1067_v21 = vmax.f32 %v1003_v13, 0.0 }
 0x114   :  { %v1617_v22 = vpack.c.bf16 %v1037_v16, %v1036_v14  ;;  %v1697_v23 = vpack.c.bf16 %v1069_v17, %v1068_v15 }
 0x115   :  { %v1612_v24 = vpack.c.bf16 %v1035_v20, %v1034_v18  ;;  %v1692_v25 = vpack.c.bf16 %v1067_v21, %v1066_v19  ;;  %v1844_v26 = vpop.f32.mrb[16].mxu0  ;;  %v1876_v27 = vpop.f32.mrb[16].mxu1 }
 0x116   :  { %1745 = vst [vmem:[%s2254_s3 + $0x38] sm:$0xff] %v1617_v22   ;;  %1761 = vst [vmem:[%s2254_s3 + $0xb8] sm:$0xff] %v1697_v23   ;;  %v976_v28 = vadd.f32 %v1844_v26, %v2089_v40  ;;  %v1008_v29 = vadd.f32 %v1876_v27, %v2089_v40  ;;  %v565_v30 = vpop.f32.mrb[17].mxu0  ;;  %v693_v31 = vpop.f32.mrb[17].mxu1 }
 0x117   :  { %1744 = vst [vmem:[%s2254_s3 + $0x30] sm:$0xff] %v1612_v24   ;;  %1760 = vst [vmem:[%s2254_s3 + $0xb0] sm:$0xff] %v1692_v25   ;;  %v974_v32 = vadd.f32 %v2089_v40, %v565_v30  ;;  %v1006_v33 = vadd.f32 %v2089_v40, %v693_v31  ;;  %v1845_v34 = vpop.f32.mrb[18].mxu0  ;;  %v1877_v35 = vpop.f32.mrb[18].mxu1 }
 0x118   :  { %v977_v36 = vadd.f32 %v1845_v34, %v2089_v40  ;;  %v1009_v37 = vadd.f32 %v1877_v35, %v2089_v40  ;;  %v568_v38 = vpop.f32.mrb[19].mxu0  ;;  %v696_v39 = vpop.f32.mrb[19].mxu1  ;;  %v1040_v43 = vmax.f32 %v976_v28, 0.0  ;;  %v1072_v44 = vmax.f32 %v1008_v29, 0.0 }
 0x119   :  { %v975_v41 = vadd.f32 %v2089_v40, %v568_v38  ;;  %v1007_v42 = vadd.f32 %v2089_v40, %v696_v39  ;;  %v1038_v47 = vmax.f32 %v974_v32, 0.0  ;;  %v1070_v48 = vmax.f32 %v1006_v33, 0.0 }
 0x11a   :  { %v1041_v45 = vmax.f32 %v977_v36, 0.0  ;;  %v1073_v46 = vmax.f32 %v1009_v37, 0.0 }
 0x11b   :  { %v1039_v49 = vmax.f32 %v975_v41, 0.0  ;;  %v1071_v50 = vmax.f32 %v1007_v42, 0.0 }
 0x11c   :  { %v1627_v51 = vpack.c.bf16 %v1041_v45, %v1040_v43  ;;  %v1707_v52 = vpack.c.bf16 %v1073_v46, %v1072_v44 }
 0x11d   :  { %v1622_v53 = vpack.c.bf16 %v1039_v49, %v1038_v47  ;;  %v1702_v54 = vpack.c.bf16 %v1071_v50, %v1070_v48  ;;  %v1848_v55 = vpop.f32.mrb[20].mxu0  ;;  %v1880_v56 = vpop.f32.mrb[20].mxu1 }
 0x11e   :  { %1747 = vst [vmem:[%s2254_s3 + $0x48] sm:$0xff] %v1627_v51   ;;  %1763 = vst [vmem:[%s2254_s3 + $0xc8] sm:$0xff] %v1707_v52   ;;  %v980_v57 = vadd.f32 %v1848_v55, %v2089_v40  ;;  %v1012_v58 = vadd.f32 %v1880_v56, %v2089_v40  ;;  %v581_v59 = vpop.f32.mrb[21].mxu0  ;;  %v709_v60 = vpop.f32.mrb[21].mxu1 }
 0x11f   :  { %1746 = vst [vmem:[%s2254_s3 + $0x40] sm:$0xff] %v1622_v53   ;;  %1762 = vst [vmem:[%s2254_s3 + $0xc0] sm:$0xff] %v1702_v54   ;;  %v978_v61 = vadd.f32 %v2089_v40, %v581_v59  ;;  %v1010_v62 = vadd.f32 %v2089_v40, %v709_v60  ;;  %v1849_v63 = vpop.f32.mrb[22].mxu0  ;;  %v1881_v0 = vpop.f32.mrb[22].mxu1 }
 0x120   :  { %v981_v1 = vadd.f32 %v1849_v63, %v2089_v40  ;;  %v1013_v2 = vadd.f32 %v1881_v0, %v2089_v40  ;;  %v584_v3 = vpop.f32.mrb[23].mxu0  ;;  %v712_v4 = vpop.f32.mrb[23].mxu1  ;;  %v1044_v7 = vmax.f32 %v980_v57, 0.0  ;;  %v1076_v8 = vmax.f32 %v1012_v58, 0.0 }
 0x121   :  { %v979_v5 = vadd.f32 %v2089_v40, %v584_v3  ;;  %v1011_v6 = vadd.f32 %v2089_v40, %v712_v4  ;;  %v1042_v11 = vmax.f32 %v978_v61, 0.0  ;;  %v1074_v12 = vmax.f32 %v1010_v62, 0.0 }
 0x122   :  { %v1045_v9 = vmax.f32 %v981_v1, 0.0  ;;  %v1077_v10 = vmax.f32 %v1013_v2, 0.0 }
 0x123   :  { %v1043_v13 = vmax.f32 %v979_v5, 0.0  ;;  %v1075_v14 = vmax.f32 %v1011_v6, 0.0 }
 0x124   :  { %v1637_v15 = vpack.c.bf16 %v1045_v9, %v1044_v7  ;;  %v1717_v16 = vpack.c.bf16 %v1077_v10, %v1076_v8 }
 0x125   :  { %v1632_v17 = vpack.c.bf16 %v1043_v13, %v1042_v11  ;;  %v1712_v18 = vpack.c.bf16 %v1075_v14, %v1074_v12  ;;  %v1852_v19 = vpop.f32.mrb[24].mxu0  ;;  %v1884_v20 = vpop.f32.mrb[24].mxu1 }
 0x126   :  { %1749 = vst [vmem:[%s2254_s3 + $0x58] sm:$0xff] %v1637_v15   ;;  %1765 = vst [vmem:[%s2254_s3 + $0xd8] sm:$0xff] %v1717_v16   ;;  %v984_v21 = vadd.f32 %v1852_v19, %v2089_v40  ;;  %v1016_v22 = vadd.f32 %v1884_v20, %v2089_v40  ;;  %v597_v23 = vpop.f32.mrb[25].mxu0  ;;  %v725_v24 = vpop.f32.mrb[25].mxu1 }
 0x127   :  { %1748 = vst [vmem:[%s2254_s3 + $0x50] sm:$0xff] %v1632_v17   ;;  %1764 = vst [vmem:[%s2254_s3 + $0xd0] sm:$0xff] %v1712_v18   ;;  %v982_v25 = vadd.f32 %v2089_v40, %v597_v23  ;;  %v1014_v26 = vadd.f32 %v2089_v40, %v725_v24  ;;  %v1853_v27 = vpop.f32.mrb[26].mxu0  ;;  %v1885_v28 = vpop.f32.mrb[26].mxu1 }
 0x128   :  { %v985_v29 = vadd.f32 %v1853_v27, %v2089_v40  ;;  %v1017_v30 = vadd.f32 %v1885_v28, %v2089_v40  ;;  %v600_v31 = vpop.f32.mrb[27].mxu0  ;;  %v728_v32 = vpop.f32.mrb[27].mxu1  ;;  %v1048_v35 = vmax.f32 %v984_v21, 0.0  ;;  %v1080_v36 = vmax.f32 %v1016_v22, 0.0 }
 0x129   :  { %v983_v33 = vadd.f32 %v2089_v40, %v600_v31  ;;  %v1015_v34 = vadd.f32 %v2089_v40, %v728_v32  ;;  %v1046_v39 = vmax.f32 %v982_v25, 0.0  ;;  %v1078_v41 = vmax.f32 %v1014_v26, 0.0 }
 0x12a   :  { %v1049_v37 = vmax.f32 %v985_v29, 0.0  ;;  %v1081_v38 = vmax.f32 %v1017_v30, 0.0 }
 0x12b   :  { %v1047_v42 = vmax.f32 %v983_v33, 0.0  ;;  %v1079_v43 = vmax.f32 %v1015_v34, 0.0 }
 0x12c   :  { %v1647_v44 = vpack.c.bf16 %v1049_v37, %v1048_v35  ;;  %v1727_v45 = vpack.c.bf16 %v1081_v38, %v1080_v36 }
 0x12d   :  { %v1642_v46 = vpack.c.bf16 %v1047_v42, %v1046_v39  ;;  %v1722_v47 = vpack.c.bf16 %v1079_v43, %v1078_v41  ;;  %v1856_v48 = vpop.f32.mrb[28].mxu0  ;;  %v1888_v49 = vpop.f32.mrb[28].mxu1 }
 0x12e   :  { %1751 = vst [vmem:[%s2254_s3 + $0x68] sm:$0xff] %v1647_v44   ;;  %1767 = vst [vmem:[%s2254_s3 + $0xe8] sm:$0xff] %v1727_v45   ;;  %v988_v50 = vadd.f32 %v1856_v48, %v2089_v40  ;;  %v1020_v51 = vadd.f32 %v1888_v49, %v2089_v40  ;;  %v613_v52 = vpop.f32.mrb[29].mxu0  ;;  %v741_v53 = vpop.f32.mrb[29].mxu1 }
 0x12f   :  { %1750 = vst [vmem:[%s2254_s3 + $0x60] sm:$0xff] %v1642_v46   ;;  %1766 = vst [vmem:[%s2254_s3 + $0xe0] sm:$0xff] %v1722_v47   ;;  %v986_v54 = vadd.f32 %v2089_v40, %v613_v52  ;;  %v1018_v55 = vadd.f32 %v2089_v40, %v741_v53  ;;  %v1857_v56 = vpop.f32.mrb[30].mxu0  ;;  %v1889_v57 = vpop.f32.mrb[30].mxu1 }
 0x130   :  { %v989_v58 = vadd.f32 %v1857_v56, %v2089_v40  ;;  %v1021_v59 = vadd.f32 %v1889_v57, %v2089_v40  ;;  %v616_v60 = vpop.f32.mrb[31].mxu0  ;;  %v744_v61 = vpop.f32.mrb[31].mxu1  ;;  %v1052_v0 = vmax.f32 %v988_v50, 0.0  ;;  %v1084_v1 = vmax.f32 %v1020_v51, 0.0 }
 0x131   :  { %v987_v62 = vadd.f32 %v2089_v40, %v616_v60  ;;  %v1019_v63 = vadd.f32 %v2089_v40, %v744_v61  ;;  %v1050_v4 = vmax.f32 %v986_v54, 0.0  ;;  %v1082_v5 = vmax.f32 %v1018_v55, 0.0 }
 0x132   :  { %v1053_v2 = vmax.f32 %v989_v58, 0.0  ;;  %v1085_v3 = vmax.f32 %v1021_v59, 0.0 }
 0x133   :  { %v1051_v6 = vmax.f32 %v987_v62, 0.0  ;;  %v1083_v7 = vmax.f32 %v1019_v63, 0.0 }
 0x134   :  { %v1657_v8 = vpack.c.bf16 %v1053_v2, %v1052_v0  ;;  %v1737_v9 = vpack.c.bf16 %v1085_v3, %v1084_v1 }
 0x135   :  { %v1652_v10 = vpack.c.bf16 %v1051_v6, %v1050_v4  ;;  %v1732_v11 = vpack.c.bf16 %v1083_v7, %v1082_v5 }
 0x136   :  { %1753 = vst [vmem:[%s2254_s3 + $0x78] sm:$0xff] %v1657_v8   ;;  %1769 = vst [vmem:[%s2254_s3 + $0xf8] sm:$0xff] %v1737_v9  }
 0x137   :  { %1752 = vst [vmem:[%s2254_s3 + $0x70] sm:$0xff] %v1652_v10   ;;  %1768 = vst [vmem:[%s2254_s3 + $0xf0] sm:$0xff] %v1732_v11  }

// kernel: unet_forward.24
= control target key start
LH: loop header
LB: loop body
LE: loop exit
PB: predicated region body
PF: predicated region fallthrough
CT: control target
= control target key end

     0   :  { %v2147_v0 = vmov 0   ;;  %s2605_s1 = inlined_call_operand.vmem [shape: bf16[256,128], index: 1, kind: input, shape index: {}]   ;;  %s2606_s0 = inlined_call_operand.vmem [shape: bf16[512,256], index: 0, kind: input, shape index: {}]   ;;  %s2607_s2 = inlined_call_operand.vmem [shape: f32[1,128], index: 2, kind: input, shape index: {}]   ;;  %s2608_s3 = inlined_call_operand.vmem [shape: bf16[512,128], index: 3, kind: output, shape index: {}]  }
   0x1   :  { %659 = vmatprep.subr.bf16.mxu0 %v2147_v0  ;;  %2002 = vmatprep.subr.bf16.mxu1 %v2147_v0  ;;  %v2035_v1 = vld [vmem:[%s2605_s1] sm:$0xff]   ;;  %v2036_v2 = vld [vmem:[%s2605_s1 + $0x8] sm:$0xff]   ;;  %v2037_v3 = vld [vmem:[%s2605_s1 + $0x10] sm:$0xff]  }
   0x2   :  { %660 = vmatpush1.bf16.msra.mxu0 %v2035_v1  ;;  %2018 = vmatpush1.bf16.msra.mxu1 %v2035_v1  ;;  %v2038_v4 = vld [vmem:[%s2605_s1 + $0x18] sm:$0xff]   ;;  %v2039_v5 = vld [vmem:[%s2605_s1 + $0x20] sm:$0xff]   ;;  %v2040_v7 = vld [vmem:[%s2605_s1 + $0x28] sm:$0xff]  }
   0x3   :  { %661 = vmatprep.subr.bf16.mxu0 %v2147_v0  ;;  %2003 = vmatprep.subr.bf16.mxu1 %v2147_v0  ;;  %v2053_v6 = vld [vmem:[%s2606_s0 + $0x4] ss:$8 sps:$4 sm:$0xff]   ;;  %v2041_v9 = vld [vmem:[%s2605_s1 + $0x30] sm:$0xff]   ;;  %v2042_v10 = vld [vmem:[%s2605_s1 + $0x38] sm:$0xff]  }
   0x4   :  { %v2056_v8 = vld [vmem:[%s2606_s0 + $0x104] ss:$8 sps:$4 sm:$0xff]   ;;  %691 = vmatprep.mubr.bf16.mxu0 %v2053_v6  ;;  %v2045_v13 = vld [vmem:[%s2605_s1 + $0x50] sm:$0xff]   ;;  %v2046_v14 = vld [vmem:[%s2605_s1 + $0x58] sm:$0xff]  }
   0x5   :  { %819 = vmatprep.mubr.bf16.mxu1 %v2056_v8  ;;  %v2043_v11 = vld [vmem:[%s2605_s1 + $0x40] sm:$0xff]   ;;  %v2044_v12 = vld [vmem:[%s2605_s1 + $0x48] sm:$0xff]   ;;  %v2049_v17 = vld [vmem:[%s2605_s1 + $0x70] sm:$0xff]  }
   0x6   :  { %662 = vmatpush1.bf16.msra.mxu0 %v2036_v2  ;;  %2019 = vmatpush1.bf16.msra.mxu1 %v2036_v2  ;;  %v2047_v15 = vld [vmem:[%s2605_s1 + $0x60] sm:$0xff]   ;;  %v2048_v16 = vld [vmem:[%s2605_s1 + $0x68] sm:$0xff]   ;;  %v2050_v18 = vld [vmem:[%s2605_s1 + $0x78] sm:$0xff]  }
   0x7   :  { %663 = vmatprep.subr.bf16.mxu0 %v2147_v0  ;;  %2004 = vmatprep.subr.bf16.mxu1 %v2147_v0  ;;  %v2051_v19 = vld [vmem:[%s2606_s0] ss:$8 sps:$4 sm:$0xff]   ;;  %v2057_v21 = vld [vmem:[%s2606_s0 + $0x14] ss:$8 sps:$4 sm:$0xff]   ;;  %v2061_v23 = vld [vmem:[%s2606_s0 + $0x10] ss:$8 sps:$4 sm:$0xff]  }
   0x8   :  { %v2054_v20 = vld [vmem:[%s2606_s0 + $0x100] ss:$8 sps:$4 sm:$0xff]   ;;  %v2059_v22 = vld [vmem:[%s2606_s0 + $0x114] ss:$8 sps:$4 sm:$0xff]   ;;  %v2062_v24 = vld [vmem:[%s2606_s0 + $0x110] ss:$8 sps:$4 sm:$0xff]  }
   0x9   :  { %v2063_v25 = vld [vmem:[%s2606_s0 + $0x24] ss:$8 sps:$4 sm:$0xff]   ;;  %v2067_v27 = vld [vmem:[%s2606_s0 + $0x20] ss:$8 sps:$4 sm:$0xff]   ;;  %v2069_v29 = vld [vmem:[%s2606_s0 + $0x34] ss:$8 sps:$4 sm:$0xff]  }
   0xa   :  { %664 = vmatpush1.bf16.msra.mxu0 %v2037_v3  ;;  %2020 = vmatpush1.bf16.msra.mxu1 %v2037_v3  ;;  %v2065_v26 = vld [vmem:[%s2606_s0 + $0x124] ss:$8 sps:$4 sm:$0xff]   ;;  %v2068_v28 = vld [vmem:[%s2606_s0 + $0x120] ss:$8 sps:$4 sm:$0xff]   ;;  %v2071_v30 = vld [vmem:[%s2606_s0 + $0x134] ss:$8 sps:$4 sm:$0xff]  }
   0xb   :  { %665 = vmatprep.subr.bf16.mxu0 %v2147_v0  ;;  %2005 = vmatprep.subr.bf16.mxu1 %v2147_v0  ;;  %v2073_v31 = vld [vmem:[%s2606_s0 + $0x30] ss:$8 sps:$4 sm:$0xff]   ;;  %v2075_v33 = vld [vmem:[%s2606_s0 + $0x44] ss:$8 sps:$4 sm:$0xff]   ;;  %v2079_v35 = vld [vmem:[%s2606_s0 + $0x40] ss:$8 sps:$4 sm:$0xff]  }
   0xc   :  { %v2074_v32 = vld [vmem:[%s2606_s0 + $0x130] ss:$8 sps:$4 sm:$0xff]   ;;  %v2077_v34 = vld [vmem:[%s2606_s0 + $0x144] ss:$8 sps:$4 sm:$0xff]   ;;  %v2080_v36 = vld [vmem:[%s2606_s0 + $0x140] ss:$8 sps:$4 sm:$0xff]  }
   0xd   :  { %v2081_v37 = vld [vmem:[%s2606_s0 + $0x54] ss:$8 sps:$4 sm:$0xff]   ;;  %v2085_v39 = vld [vmem:[%s2606_s0 + $0x50] ss:$8 sps:$4 sm:$0xff]   ;;  %v2087_v41 = vld [vmem:[%s2606_s0 + $0x64] ss:$8 sps:$4 sm:$0xff]  }
   0xe   :  { %666 = vmatpush1.bf16.msra.mxu0 %v2038_v4  ;;  %2021 = vmatpush1.bf16.msra.mxu1 %v2038_v4  ;;  %v2083_v38 = vld [vmem:[%s2606_s0 + $0x154] ss:$8 sps:$4 sm:$0xff]   ;;  %v2086_v40 = vld [vmem:[%s2606_s0 + $0x150] ss:$8 sps:$4 sm:$0xff]   ;;  %v2089_v42 = vld [vmem:[%s2606_s0 + $0x164] ss:$8 sps:$4 sm:$0xff]  }
   0xf   :  { %667 = vmatprep.subr.bf16.mxu0 %v2147_v0  ;;  %2006 = vmatprep.subr.bf16.mxu1 %v2147_v0  ;;  %v2091_v43 = vld [vmem:[%s2606_s0 + $0x60] ss:$8 sps:$4 sm:$0xff]   ;;  %v2093_v45 = vld [vmem:[%s2606_s0 + $0x74] ss:$8 sps:$4 sm:$0xff]   ;;  %v2097_v47 = vld [vmem:[%s2606_s0 + $0x70] ss:$8 sps:$4 sm:$0xff]  }
  0x10   :  { %v2092_v44 = vld [vmem:[%s2606_s0 + $0x160] ss:$8 sps:$4 sm:$0xff]   ;;  %v2095_v46 = vld [vmem:[%s2606_s0 + $0x174] ss:$8 sps:$4 sm:$0xff]   ;;  %v2098_v48 = vld [vmem:[%s2606_s0 + $0x170] ss:$8 sps:$4 sm:$0xff]  }
  0x11   :  { %v2099_v49 = vld [vmem:[%s2606_s0 + $0x84] ss:$8 sps:$4 sm:$0xff]   ;;  %v2103_v51 = vld [vmem:[%s2606_s0 + $0x80] ss:$8 sps:$4 sm:$0xff]   ;;  %v2105_v53 = vld [vmem:[%s2606_s0 + $0x94] ss:$8 sps:$4 sm:$0xff]  }
  0x12   :  { %668 = vmatpush1.bf16.msra.mxu0 %v2039_v5  ;;  %2022 = vmatpush1.bf16.msra.mxu1 %v2039_v5  ;;  %v2101_v50 = vld [vmem:[%s2606_s0 + $0x184] ss:$8 sps:$4 sm:$0xff]   ;;  %v2104_v52 = vld [vmem:[%s2606_s0 + $0x180] ss:$8 sps:$4 sm:$0xff]   ;;  %v2107_v54 = vld [vmem:[%s2606_s0 + $0x194] ss:$8 sps:$4 sm:$0xff]  }
  0x13   :  { %669 = vmatprep.subr.bf16.mxu0 %v2147_v0  ;;  %2007 = vmatprep.subr.bf16.mxu1 %v2147_v0  ;;  %v2109_v55 = vld [vmem:[%s2606_s0 + $0x90] ss:$8 sps:$4 sm:$0xff]   ;;  %v2111_v57 = vld [vmem:[%s2606_s0 + $0xa4] ss:$8 sps:$4 sm:$0xff]   ;;  %v2115_v59 = vld [vmem:[%s2606_s0 + $0xa0] ss:$8 sps:$4 sm:$0xff]  }
  0x14   :  { %v2110_v56 = vld [vmem:[%s2606_s0 + $0x190] ss:$8 sps:$4 sm:$0xff]   ;;  %v2113_v58 = vld [vmem:[%s2606_s0 + $0x1a4] ss:$8 sps:$4 sm:$0xff]   ;;  %v2116_v60 = vld [vmem:[%s2606_s0 + $0x1a0] ss:$8 sps:$4 sm:$0xff]  }
  0x15   :  { %v2117_v61 = vld [vmem:[%s2606_s0 + $0xb4] ss:$8 sps:$4 sm:$0xff]   ;;  %v2121_v63 = vld [vmem:[%s2606_s0 + $0xb0] ss:$8 sps:$4 sm:$0xff]   ;;  %v2123_v1 = vld [vmem:[%s2606_s0 + $0xc4] ss:$8 sps:$4 sm:$0xff]  }
  0x16   :  { %670 = vmatpush1.bf16.msra.mxu0 %v2040_v7  ;;  %2023 = vmatpush1.bf16.msra.mxu1 %v2040_v7  ;;  %v2119_v62 = vld [vmem:[%s2606_s0 + $0x1b4] ss:$8 sps:$4 sm:$0xff]   ;;  %v2125_v2 = vld [vmem:[%s2606_s0 + $0x1c4] ss:$8 sps:$4 sm:$0xff]   ;;  %v2127_v3 = vld [vmem:[%s2606_s0 + $0xc0] ss:$8 sps:$4 sm:$0xff]  }
  0x17   :  { %671 = vmatprep.subr.bf16.mxu0 %v2147_v0  ;;  %2008 = vmatprep.subr.bf16.mxu1 %v2147_v0  ;;  %v2128_v4 = vld [vmem:[%s2606_s0 + $0x1c0] ss:$8 sps:$4 sm:$0xff]   ;;  %v2129_v5 = vld [vmem:[%s2606_s0 + $0xd4] ss:$8 sps:$4 sm:$0xff]   ;;  %v2133_v7 = vld [vmem:[%s2606_s0 + $0xd0] ss:$8 sps:$4 sm:$0xff]  }
  0x18   :  { %v2131_v6 = vld [vmem:[%s2606_s0 + $0x1d4] ss:$8 sps:$4 sm:$0xff]   ;;  %v2134_v8 = vld [vmem:[%s2606_s0 + $0x1d0] ss:$8 sps:$4 sm:$0xff]  }
  0x1a   :  { %672 = vmatpush1.bf16.msra.mxu0 %v2041_v9  ;;  %2024 = vmatpush1.bf16.msra.mxu1 %v2041_v9  ;;  %v2135_v9 = vld [vmem:[%s2606_s0 + $0xe4] ss:$8 sps:$4 sm:$0xff]  }
  0x1b   :  { %673 = vmatprep.subr.bf16.mxu0 %v2147_v0  ;;  %2009 = vmatprep.subr.bf16.mxu1 %v2147_v0 }
  0x1e   :  { %674 = vmatpush1.bf16.msra.mxu0 %v2042_v10  ;;  %2025 = vmatpush1.bf16.msra.mxu1 %v2042_v10  ;;  %v2137_v10 = vld [vmem:[%s2606_s0 + $0x1e4] ss:$8 sps:$4 sm:$0xff]  }
  0x1f   :  { %675 = vmatprep.subr.bf16.mxu0 %v2147_v0  ;;  %2010 = vmatprep.subr.bf16.mxu1 %v2147_v0 }
  0x22   :  { %676 = vmatpush1.bf16.msra.mxu0 %v2043_v11  ;;  %2026 = vmatpush1.bf16.msra.mxu1 %v2043_v11  ;;  %v2139_v11 = vld [vmem:[%s2606_s0 + $0xe0] ss:$8 sps:$4 sm:$0xff]  }
  0x23   :  { %677 = vmatprep.subr.bf16.mxu0 %v2147_v0  ;;  %2011 = vmatprep.subr.bf16.mxu1 %v2147_v0 }
  0x26   :  { %678 = vmatpush1.bf16.msra.mxu0 %v2044_v12  ;;  %2027 = vmatpush1.bf16.msra.mxu1 %v2044_v12  ;;  %v2140_v12 = vld [vmem:[%s2606_s0 + $0x1e0] ss:$8 sps:$4 sm:$0xff]  }
  0x27   :  { %679 = vmatprep.subr.bf16.mxu0 %v2147_v0  ;;  %2012 = vmatprep.subr.bf16.mxu1 %v2147_v0 }
  0x2a   :  { %680 = vmatpush1.bf16.msra.mxu0 %v2045_v13  ;;  %2028 = vmatpush1.bf16.msra.mxu1 %v2045_v13  ;;  %v2141_v13 = vld [vmem:[%s2606_s0 + $0xf4] ss:$8 sps:$4 sm:$0xff]  }
  0x2b   :  { %681 = vmatprep.subr.bf16.mxu0 %v2147_v0  ;;  %2013 = vmatprep.subr.bf16.mxu1 %v2147_v0 }
  0x2e   :  { %682 = vmatpush1.bf16.msra.mxu0 %v2046_v14  ;;  %2029 = vmatpush1.bf16.msra.mxu1 %v2046_v14  ;;  %v2143_v14 = vld [vmem:[%s2606_s0 + $0x1f4] ss:$8 sps:$4 sm:$0xff]  }
  0x2f   :  { %683 = vmatprep.subr.bf16.mxu0 %v2147_v0  ;;  %2014 = vmatprep.subr.bf16.mxu1 %v2147_v0 }
  0x32   :  { %684 = vmatpush1.bf16.msra.mxu0 %v2047_v15  ;;  %2030 = vmatpush1.bf16.msra.mxu1 %v2047_v15  ;;  %v2145_v15 = vld [vmem:[%s2606_s0 + $0xf0] ss:$8 sps:$4 sm:$0xff]  }
  0x33   :  { %685 = vmatprep.subr.bf16.mxu0 %v2147_v0  ;;  %2015 = vmatprep.subr.bf16.mxu1 %v2147_v0 }
  0x36   :  { %686 = vmatpush1.bf16.msra.mxu0 %v2048_v16  ;;  %2031 = vmatpush1.bf16.msra.mxu1 %v2048_v16  ;;  %v2146_v16 = vld [vmem:[%s2606_s0 + $0x1f0] ss:$8 sps:$4 sm:$0xff]  }
  0x37   :  { %687 = vmatprep.subr.bf16.mxu0 %v2147_v0  ;;  %2016 = vmatprep.subr.bf16.mxu1 %v2147_v0 }
  0x3a   :  { %688 = vmatpush1.bf16.msra.mxu0 %v2049_v17  ;;  %2032 = vmatpush1.bf16.msra.mxu1 %v2049_v17  ;;  %v2443_v17 = vld [vmem:[%s2607_s2] ss:$0 sm:$0xff] }
  0x3b   :  { %689 = vmatprep.subr.bf16.mxu0 %v2147_v0  ;;  %2017 = vmatprep.subr.bf16.mxu1 %v2147_v0  ;;  %v2122_v0 = vld [vmem:[%s2606_s0 + $0x1b0] ss:$8 sps:$4 sm:$0xff]  }
  0x3e   :  { %690 = vmatpush1.bf16.msra.mxu0 %v2050_v18  ;;  %2033 = vmatpush1.bf16.msra.mxu1 %v2050_v18 }
  0x41   :  { %692 = vmatmul.mubr.bf16.vlgmr.msra.gmra.mrb[0].mxu0 %v2051_v19  ;;  %820 = vmatmul.mubr.bf16.vlgmr.msra.gmra.mrb[0].mxu1 %v2054_v20 }
  0x42   :  { %699 = vmatprep.mubr.bf16.mxu0 %v2057_v21  ;;  %827 = vmatprep.mubr.bf16.mxu1 %v2059_v22 }
  0x49   :  { %700 = vmatmul.mubr.bf16.gmra.mrb[4].mxu0 %v2061_v23  ;;  %828 = vmatmul.mubr.bf16.gmra.mrb[4].mxu1 %v2062_v24 }
  0x4a   :  { %707 = vmatprep.mubr.bf16.mxu0 %v2063_v25  ;;  %835 = vmatprep.mubr.bf16.mxu1 %v2065_v26 }
  0x51   :  { %708 = vmatmul.mubr.bf16.gmra.mrb[8].mxu0 %v2067_v27  ;;  %836 = vmatmul.mubr.bf16.gmra.mrb[8].mxu1 %v2068_v28 }
  0x52   :  { %715 = vmatprep.mubr.bf16.mxu0 %v2069_v29  ;;  %843 = vmatprep.mubr.bf16.mxu1 %v2071_v30 }
  0x59   :  { %716 = vmatmul.mubr.bf16.gmra.mrb[12].mxu0 %v2073_v31  ;;  %844 = vmatmul.mubr.bf16.gmra.mrb[12].mxu1 %v2074_v32 }
  0x5a   :  { %723 = vmatprep.mubr.bf16.mxu0 %v2075_v33  ;;  %851 = vmatprep.mubr.bf16.mxu1 %v2077_v34 }
  0x61   :  { %724 = vmatmul.mubr.bf16.gmra.mrb[16].mxu0 %v2079_v35  ;;  %852 = vmatmul.mubr.bf16.gmra.mrb[16].mxu1 %v2080_v36 }
  0x62   :  { %731 = vmatprep.mubr.bf16.mxu0 %v2081_v37  ;;  %859 = vmatprep.mubr.bf16.mxu1 %v2083_v38 }
  0x69   :  { %732 = vmatmul.mubr.bf16.gmra.mrb[20].mxu0 %v2085_v39  ;;  %860 = vmatmul.mubr.bf16.gmra.mrb[20].mxu1 %v2086_v40 }
  0x6a   :  { %739 = vmatprep.mubr.bf16.mxu0 %v2087_v41  ;;  %867 = vmatprep.mubr.bf16.mxu1 %v2089_v42 }
  0x71   :  { %740 = vmatmul.mubr.bf16.gmra.mrb[24].mxu0 %v2091_v43  ;;  %868 = vmatmul.mubr.bf16.gmra.mrb[24].mxu1 %v2092_v44 }
  0x72   :  { %747 = vmatprep.mubr.bf16.mxu0 %v2093_v45  ;;  %875 = vmatprep.mubr.bf16.mxu1 %v2095_v46 }
  0x79   :  { %748 = vmatmul.mubr.bf16.gmra.mrb[28].mxu0 %v2097_v47  ;;  %876 = vmatmul.mubr.bf16.gmra.mrb[28].mxu1 %v2098_v48 }
  0x7a   :  { %755 = vmatprep.mubr.bf16.mxu0 %v2099_v49  ;;  %883 = vmatprep.mubr.bf16.mxu1 %v2101_v50 }
  0x81   :  { %756 = vmatmul.mubr.bf16.gmra.mrb[32].mxu0 %v2103_v51  ;;  %884 = vmatmul.mubr.bf16.gmra.mrb[32].mxu1 %v2104_v52 }
  0x82   :  { %763 = vmatprep.mubr.bf16.mxu0 %v2105_v53  ;;  %891 = vmatprep.mubr.bf16.mxu1 %v2107_v54 }
  0x89   :  { %764 = vmatmul.mubr.bf16.gmra.mrb[36].mxu0 %v2109_v55  ;;  %892 = vmatmul.mubr.bf16.gmra.mrb[36].mxu1 %v2110_v56 }
  0x8a   :  { %771 = vmatprep.mubr.bf16.mxu0 %v2111_v57  ;;  %899 = vmatprep.mubr.bf16.mxu1 %v2113_v58 }
  0x91   :  { %772 = vmatmul.mubr.bf16.gmra.mrb[40].mxu0 %v2115_v59  ;;  %900 = vmatmul.mubr.bf16.gmra.mrb[40].mxu1 %v2116_v60 }
  0x92   :  { %779 = vmatprep.mubr.bf16.mxu0 %v2117_v61  ;;  %907 = vmatprep.mubr.bf16.mxu1 %v2119_v62 }
  0x99   :  { %780 = vmatmul.mubr.bf16.gmra.mrb[44].mxu0 %v2121_v63  ;;  %908 = vmatmul.mubr.bf16.gmra.mrb[44].mxu1 %v2122_v0 }
  0x9a   :  { %787 = vmatprep.mubr.bf16.mxu0 %v2123_v1  ;;  %915 = vmatprep.mubr.bf16.mxu1 %v2125_v2 }
  0xa1   :  { %788 = vmatmul.mubr.bf16.gmra.mrb[48].mxu0 %v2127_v3  ;;  %916 = vmatmul.mubr.bf16.gmra.mrb[48].mxu1 %v2128_v4 }
  0xa2   :  { %795 = vmatprep.mubr.bf16.mxu0 %v2129_v5  ;;  %923 = vmatprep.mubr.bf16.mxu1 %v2131_v6 }
  0xa9   :  { %796 = vmatmul.mubr.bf16.gmra.mrb[52].mxu0 %v2133_v7  ;;  %924 = vmatmul.mubr.bf16.gmra.mrb[52].mxu1 %v2134_v8 }
  0xaa   :  { %803 = vmatprep.mubr.bf16.mxu0 %v2135_v9  ;;  %931 = vmatprep.mubr.bf16.mxu1 %v2137_v10 }
  0xb1   :  { %804 = vmatmul.mubr.bf16.gmra.mrb[56].mxu0 %v2139_v11  ;;  %932 = vmatmul.mubr.bf16.gmra.mrb[56].mxu1 %v2140_v12 }
  0xb2   :  { %811 = vmatprep.mubr.bf16.mxu0 %v2141_v13  ;;  %939 = vmatprep.mubr.bf16.mxu1 %v2143_v14 }
  0xb9   :  { %812 = vmatmul.mubr.bf16.gmra.mrb[60].mxu0 %v2145_v15  ;;  %940 = vmatmul.mubr.bf16.gmra.mrb[60].mxu1 %v2146_v16 }
 0x114   :  { %v693_v18 = vpop.f32.mrb[0].mxu0  ;;  %v821_v19 = vpop.f32.mrb[0].mxu1 }
 0x115   :  { %v1150_v20 = vadd.f32 %v2443_v17, %v693_v18  ;;  %v1182_v21 = vadd.f32 %v2443_v17, %v821_v19  ;;  %v695_v22 = vpop.f32.mrb[1].mxu0  ;;  %v823_v23 = vpop.f32.mrb[1].mxu1 }
 0x116   :  { %v696_v24 = vpop.f32.mrb[2].mxu0  ;;  %v824_v25 = vpop.f32.mrb[2].mxu1 }
 0x117   :  { %v1151_v26 = vadd.f32 %v2443_v17, %v696_v24  ;;  %v1183_v27 = vadd.f32 %v2443_v17, %v824_v25  ;;  %v698_v28 = vpop.f32.mrb[3].mxu0  ;;  %v826_v29 = vpop.f32.mrb[3].mxu1  ;;  %v1214_v30 = vmax.f32 %v1150_v20, 0.0  ;;  %v1246_v31 = vmax.f32 %v1182_v21, 0.0 }
 0x119   :  { %v1215_v32 = vmax.f32 %v1151_v26, 0.0  ;;  %v1247_v33 = vmax.f32 %v1183_v27, 0.0 }
 0x11b   :  { %v1814_v34 = vpack.c.bf16 %v1215_v32, %v1214_v30  ;;  %v1894_v35 = vpack.c.bf16 %v1247_v33, %v1246_v31 }
 0x11c   :  { %v701_v36 = vpop.f32.mrb[4].mxu0  ;;  %v829_v37 = vpop.f32.mrb[4].mxu1 }
 0x11d   :  { %1815 = vst [vmem:[%s2608_s3] sm:$0xff] %v1814_v34   ;;  %1986 = vst [vmem:[%s2608_s3 + $0x80] sm:$0xff] %v1894_v35   ;;  %v1152_v38 = vadd.f32 %v2443_v17, %v701_v36  ;;  %v1184_v39 = vadd.f32 %v2443_v17, %v829_v37  ;;  %v703_v40 = vpop.f32.mrb[5].mxu0  ;;  %v831_v41 = vpop.f32.mrb[5].mxu1 }
 0x11e   :  { %v704_v42 = vpop.f32.mrb[6].mxu0  ;;  %v832_v43 = vpop.f32.mrb[6].mxu1 }
 0x11f   :  { %v1153_v44 = vadd.f32 %v2443_v17, %v704_v42  ;;  %v1185_v45 = vadd.f32 %v2443_v17, %v832_v43  ;;  %v706_v46 = vpop.f32.mrb[7].mxu0  ;;  %v834_v47 = vpop.f32.mrb[7].mxu1  ;;  %v1216_v48 = vmax.f32 %v1152_v38, 0.0  ;;  %v1248_v49 = vmax.f32 %v1184_v39, 0.0 }
 0x121   :  { %v1217_v50 = vmax.f32 %v1153_v44, 0.0  ;;  %v1249_v51 = vmax.f32 %v1185_v45, 0.0 }
 0x123   :  { %v1819_v52 = vpack.c.bf16 %v1217_v50, %v1216_v48  ;;  %v1899_v53 = vpack.c.bf16 %v1249_v51, %v1248_v49 }
 0x124   :  { %v709_v54 = vpop.f32.mrb[8].mxu0  ;;  %v837_v55 = vpop.f32.mrb[8].mxu1 }
 0x125   :  { %1971 = vst [vmem:[%s2608_s3 + $0x8] sm:$0xff] %v1819_v52   ;;  %1987 = vst [vmem:[%s2608_s3 + $0x88] sm:$0xff] %v1899_v53   ;;  %v1154_v56 = vadd.f32 %v2443_v17, %v709_v54  ;;  %v1186_v57 = vadd.f32 %v2443_v17, %v837_v55  ;;  %v711_v58 = vpop.f32.mrb[9].mxu0  ;;  %v839_v59 = vpop.f32.mrb[9].mxu1 }
 0x126   :  { %v712_v60 = vpop.f32.mrb[10].mxu0  ;;  %v840_v61 = vpop.f32.mrb[10].mxu1 }
 0x127   :  { %v1155_v62 = vadd.f32 %v2443_v17, %v712_v60  ;;  %v1187_v63 = vadd.f32 %v2443_v17, %v840_v61  ;;  %v714_v0 = vpop.f32.mrb[11].mxu0  ;;  %v842_v1 = vpop.f32.mrb[11].mxu1  ;;  %v1218_v2 = vmax.f32 %v1154_v56, 0.0  ;;  %v1250_v3 = vmax.f32 %v1186_v57, 0.0 }
 0x129   :  { %v1219_v4 = vmax.f32 %v1155_v62, 0.0  ;;  %v1251_v5 = vmax.f32 %v1187_v63, 0.0 }
 0x12b   :  { %v1824_v6 = vpack.c.bf16 %v1219_v4, %v1218_v2  ;;  %v1904_v7 = vpack.c.bf16 %v1251_v5, %v1250_v3 }
 0x12c   :  { %v717_v8 = vpop.f32.mrb[12].mxu0  ;;  %v845_v9 = vpop.f32.mrb[12].mxu1 }
 0x12d   :  { %1972 = vst [vmem:[%s2608_s3 + $0x10] sm:$0xff] %v1824_v6   ;;  %1988 = vst [vmem:[%s2608_s3 + $0x90] sm:$0xff] %v1904_v7   ;;  %v1156_v10 = vadd.f32 %v2443_v17, %v717_v8  ;;  %v1188_v11 = vadd.f32 %v2443_v17, %v845_v9  ;;  %v719_v12 = vpop.f32.mrb[13].mxu0  ;;  %v847_v13 = vpop.f32.mrb[13].mxu1 }
 0x12e   :  { %v720_v14 = vpop.f32.mrb[14].mxu0  ;;  %v848_v15 = vpop.f32.mrb[14].mxu1 }
 0x12f   :  { %v1157_v16 = vadd.f32 %v2443_v17, %v720_v14  ;;  %v1189_v18 = vadd.f32 %v2443_v17, %v848_v15  ;;  %v722_v19 = vpop.f32.mrb[15].mxu0  ;;  %v850_v20 = vpop.f32.mrb[15].mxu1  ;;  %v1220_v21 = vmax.f32 %v1156_v10, 0.0  ;;  %v1252_v22 = vmax.f32 %v1188_v11, 0.0 }
 0x131   :  { %v1221_v23 = vmax.f32 %v1157_v16, 0.0  ;;  %v1253_v24 = vmax.f32 %v1189_v18, 0.0 }
 0x133   :  { %v1829_v25 = vpack.c.bf16 %v1221_v23, %v1220_v21  ;;  %v1909_v26 = vpack.c.bf16 %v1253_v24, %v1252_v22 }
 0x134   :  { %v725_v27 = vpop.f32.mrb[16].mxu0  ;;  %v853_v28 = vpop.f32.mrb[16].mxu1 }
 0x135   :  { %1973 = vst [vmem:[%s2608_s3 + $0x18] sm:$0xff] %v1829_v25   ;;  %1989 = vst [vmem:[%s2608_s3 + $0x98] sm:$0xff] %v1909_v26   ;;  %v1158_v29 = vadd.f32 %v2443_v17, %v725_v27  ;;  %v1190_v30 = vadd.f32 %v2443_v17, %v853_v28  ;;  %v727_v31 = vpop.f32.mrb[17].mxu0  ;;  %v855_v32 = vpop.f32.mrb[17].mxu1 }
 0x136   :  { %v728_v33 = vpop.f32.mrb[18].mxu0  ;;  %v856_v34 = vpop.f32.mrb[18].mxu1 }
 0x137   :  { %v1159_v35 = vadd.f32 %v2443_v17, %v728_v33  ;;  %v1191_v36 = vadd.f32 %v2443_v17, %v856_v34  ;;  %v730_v37 = vpop.f32.mrb[19].mxu0  ;;  %v858_v38 = vpop.f32.mrb[19].mxu1  ;;  %v1222_v39 = vmax.f32 %v1158_v29, 0.0  ;;  %v1254_v40 = vmax.f32 %v1190_v30, 0.0 }
 0x139   :  { %v1223_v41 = vmax.f32 %v1159_v35, 0.0  ;;  %v1255_v42 = vmax.f32 %v1191_v36, 0.0 }
 0x13b   :  { %v1834_v43 = vpack.c.bf16 %v1223_v41, %v1222_v39  ;;  %v1914_v44 = vpack.c.bf16 %v1255_v42, %v1254_v40 }
 0x13c   :  { %v733_v45 = vpop.f32.mrb[20].mxu0  ;;  %v861_v46 = vpop.f32.mrb[20].mxu1 }
 0x13d   :  { %1974 = vst [vmem:[%s2608_s3 + $0x20] sm:$0xff] %v1834_v43   ;;  %1990 = vst [vmem:[%s2608_s3 + $0xa0] sm:$0xff] %v1914_v44   ;;  %v1160_v47 = vadd.f32 %v2443_v17, %v733_v45  ;;  %v1192_v48 = vadd.f32 %v2443_v17, %v861_v46  ;;  %v735_v49 = vpop.f32.mrb[21].mxu0  ;;  %v863_v50 = vpop.f32.mrb[21].mxu1 }
 0x13e   :  { %v736_v51 = vpop.f32.mrb[22].mxu0  ;;  %v864_v52 = vpop.f32.mrb[22].mxu1 }
 0x13f   :  { %v1161_v53 = vadd.f32 %v2443_v17, %v736_v51  ;;  %v1193_v54 = vadd.f32 %v2443_v17, %v864_v52  ;;  %v738_v55 = vpop.f32.mrb[23].mxu0  ;;  %v866_v56 = vpop.f32.mrb[23].mxu1  ;;  %v1224_v57 = vmax.f32 %v1160_v47, 0.0  ;;  %v1256_v58 = vmax.f32 %v1192_v48, 0.0 }
 0x141   :  { %v1225_v59 = vmax.f32 %v1161_v53, 0.0  ;;  %v1257_v60 = vmax.f32 %v1193_v54, 0.0 }
 0x143   :  { %v1839_v61 = vpack.c.bf16 %v1225_v59, %v1224_v57  ;;  %v1919_v62 = vpack.c.bf16 %v1257_v60, %v1256_v58 }
 0x144   :  { %v741_v63 = vpop.f32.mrb[24].mxu0  ;;  %v869_v0 = vpop.f32.mrb[24].mxu1 }
 0x145   :  { %1975 = vst [vmem:[%s2608_s3 + $0x28] sm:$0xff] %v1839_v61   ;;  %1991 = vst [vmem:[%s2608_s3 + $0xa8] sm:$0xff] %v1919_v62   ;;  %v1162_v1 = vadd.f32 %v2443_v17, %v741_v63  ;;  %v1194_v2 = vadd.f32 %v2443_v17, %v869_v0  ;;  %v743_v3 = vpop.f32.mrb[25].mxu0  ;;  %v871_v4 = vpop.f32.mrb[25].mxu1 }
 0x146   :  { %v744_v5 = vpop.f32.mrb[26].mxu0  ;;  %v872_v6 = vpop.f32.mrb[26].mxu1 }
 0x147   :  { %v1163_v7 = vadd.f32 %v2443_v17, %v744_v5  ;;  %v1195_v8 = vadd.f32 %v2443_v17, %v872_v6  ;;  %v746_v9 = vpop.f32.mrb[27].mxu0  ;;  %v874_v10 = vpop.f32.mrb[27].mxu1  ;;  %v1226_v11 = vmax.f32 %v1162_v1, 0.0  ;;  %v1258_v12 = vmax.f32 %v1194_v2, 0.0 }
 0x149   :  { %v1227_v13 = vmax.f32 %v1163_v7, 0.0  ;;  %v1259_v14 = vmax.f32 %v1195_v8, 0.0 }
 0x14b   :  { %v1844_v15 = vpack.c.bf16 %v1227_v13, %v1226_v11  ;;  %v1924_v16 = vpack.c.bf16 %v1259_v14, %v1258_v12 }
 0x14c   :  { %v749_v18 = vpop.f32.mrb[28].mxu0  ;;  %v877_v19 = vpop.f32.mrb[28].mxu1 }
 0x14d   :  { %1976 = vst [vmem:[%s2608_s3 + $0x30] sm:$0xff] %v1844_v15   ;;  %1992 = vst [vmem:[%s2608_s3 + $0xb0] sm:$0xff] %v1924_v16   ;;  %v1164_v20 = vadd.f32 %v2443_v17, %v749_v18  ;;  %v1196_v21 = vadd.f32 %v2443_v17, %v877_v19  ;;  %v751_v22 = vpop.f32.mrb[29].mxu0  ;;  %v879_v23 = vpop.f32.mrb[29].mxu1 }
 0x14e   :  { %v752_v24 = vpop.f32.mrb[30].mxu0  ;;  %v880_v25 = vpop.f32.mrb[30].mxu1 }
 0x14f   :  { %v1165_v26 = vadd.f32 %v2443_v17, %v752_v24  ;;  %v1197_v27 = vadd.f32 %v2443_v17, %v880_v25  ;;  %v754_v28 = vpop.f32.mrb[31].mxu0  ;;  %v882_v29 = vpop.f32.mrb[31].mxu1  ;;  %v1228_v30 = vmax.f32 %v1164_v20, 0.0  ;;  %v1260_v31 = vmax.f32 %v1196_v21, 0.0 }
 0x151   :  { %v1229_v32 = vmax.f32 %v1165_v26, 0.0  ;;  %v1261_v33 = vmax.f32 %v1197_v27, 0.0 }
 0x153   :  { %v1849_v34 = vpack.c.bf16 %v1229_v32, %v1228_v30  ;;  %v1929_v35 = vpack.c.bf16 %v1261_v33, %v1260_v31 }
 0x154   :  { %v757_v36 = vpop.f32.mrb[32].mxu0  ;;  %v885_v37 = vpop.f32.mrb[32].mxu1 }
 0x155   :  { %1977 = vst [vmem:[%s2608_s3 + $0x38] sm:$0xff] %v1849_v34   ;;  %1993 = vst [vmem:[%s2608_s3 + $0xb8] sm:$0xff] %v1929_v35   ;;  %v1166_v38 = vadd.f32 %v2443_v17, %v757_v36  ;;  %v1198_v39 = vadd.f32 %v2443_v17, %v885_v37  ;;  %v759_v40 = vpop.f32.mrb[33].mxu0  ;;  %v887_v41 = vpop.f32.mrb[33].mxu1 }
 0x156   :  { %v760_v42 = vpop.f32.mrb[34].mxu0  ;;  %v888_v43 = vpop.f32.mrb[34].mxu1 }
 0x157   :  { %v1167_v44 = vadd.f32 %v2443_v17, %v760_v42  ;;  %v1199_v45 = vadd.f32 %v2443_v17, %v888_v43  ;;  %v762_v46 = vpop.f32.mrb[35].mxu0  ;;  %v890_v47 = vpop.f32.mrb[35].mxu1  ;;  %v1230_v48 = vmax.f32 %v1166_v38, 0.0  ;;  %v1262_v49 = vmax.f32 %v1198_v39, 0.0 }
 0x159   :  { %v1231_v50 = vmax.f32 %v1167_v44, 0.0  ;;  %v1263_v51 = vmax.f32 %v1199_v45, 0.0 }
 0x15b   :  { %v1854_v52 = vpack.c.bf16 %v1231_v50, %v1230_v48  ;;  %v1934_v53 = vpack.c.bf16 %v1263_v51, %v1262_v49 }
 0x15c   :  { %v765_v54 = vpop.f32.mrb[36].mxu0  ;;  %v893_v55 = vpop.f32.mrb[36].mxu1 }
 0x15d   :  { %1978 = vst [vmem:[%s2608_s3 + $0x40] sm:$0xff] %v1854_v52   ;;  %1994 = vst [vmem:[%s2608_s3 + $0xc0] sm:$0xff] %v1934_v53   ;;  %v1168_v56 = vadd.f32 %v2443_v17, %v765_v54  ;;  %v1200_v57 = vadd.f32 %v2443_v17, %v893_v55  ;;  %v767_v58 = vpop.f32.mrb[37].mxu0  ;;  %v895_v59 = vpop.f32.mrb[37].mxu1 }
 0x15e   :  { %v768_v60 = vpop.f32.mrb[38].mxu0  ;;  %v896_v61 = vpop.f32.mrb[38].mxu1 }
 0x15f   :  { %v1169_v62 = vadd.f32 %v2443_v17, %v768_v60  ;;  %v1201_v63 = vadd.f32 %v2443_v17, %v896_v61  ;;  %v770_v0 = vpop.f32.mrb[39].mxu0  ;;  %v898_v1 = vpop.f32.mrb[39].mxu1  ;;  %v1232_v2 = vmax.f32 %v1168_v56, 0.0  ;;  %v1264_v3 = vmax.f32 %v1200_v57, 0.0 }
 0x161   :  { %v1233_v4 = vmax.f32 %v1169_v62, 0.0  ;;  %v1265_v5 = vmax.f32 %v1201_v63, 0.0 }
 0x163   :  { %v1859_v6 = vpack.c.bf16 %v1233_v4, %v1232_v2  ;;  %v1939_v7 = vpack.c.bf16 %v1265_v5, %v1264_v3 }
 0x164   :  { %v773_v8 = vpop.f32.mrb[40].mxu0  ;;  %v901_v9 = vpop.f32.mrb[40].mxu1 }
 0x165   :  { %1979 = vst [vmem:[%s2608_s3 + $0x48] sm:$0xff] %v1859_v6   ;;  %1995 = vst [vmem:[%s2608_s3 + $0xc8] sm:$0xff] %v1939_v7   ;;  %v1170_v10 = vadd.f32 %v2443_v17, %v773_v8  ;;  %v1202_v11 = vadd.f32 %v2443_v17, %v901_v9  ;;  %v775_v12 = vpop.f32.mrb[41].mxu0  ;;  %v903_v13 = vpop.f32.mrb[41].mxu1 }
 0x166   :  { %v776_v14 = vpop.f32.mrb[42].mxu0  ;;  %v904_v15 = vpop.f32.mrb[42].mxu1 }
 0x167   :  { %v1171_v16 = vadd.f32 %v2443_v17, %v776_v14  ;;  %v1203_v18 = vadd.f32 %v2443_v17, %v904_v15  ;;  %v778_v19 = vpop.f32.mrb[43].mxu0  ;;  %v906_v20 = vpop.f32.mrb[43].mxu1  ;;  %v1234_v21 = vmax.f32 %v1170_v10, 0.0  ;;  %v1266_v22 = vmax.f32 %v1202_v11, 0.0 }
 0x169   :  { %v1235_v23 = vmax.f32 %v1171_v16, 0.0  ;;  %v1267_v24 = vmax.f32 %v1203_v18, 0.0 }
 0x16b   :  { %v1864_v25 = vpack.c.bf16 %v1235_v23, %v1234_v21  ;;  %v1944_v26 = vpack.c.bf16 %v1267_v24, %v1266_v22 }
 0x16c   :  { %v781_v27 = vpop.f32.mrb[44].mxu0  ;;  %v909_v28 = vpop.f32.mrb[44].mxu1 }
 0x16d   :  { %1980 = vst [vmem:[%s2608_s3 + $0x50] sm:$0xff] %v1864_v25   ;;  %1996 = vst [vmem:[%s2608_s3 + $0xd0] sm:$0xff] %v1944_v26   ;;  %v1172_v29 = vadd.f32 %v2443_v17, %v781_v27  ;;  %v1204_v30 = vadd.f32 %v2443_v17, %v909_v28  ;;  %v783_v31 = vpop.f32.mrb[45].mxu0  ;;  %v911_v32 = vpop.f32.mrb[45].mxu1 }
 0x16e   :  { %v784_v33 = vpop.f32.mrb[46].mxu0  ;;  %v912_v34 = vpop.f32.mrb[46].mxu1 }
 0x16f   :  { %v1173_v35 = vadd.f32 %v2443_v17, %v784_v33  ;;  %v1205_v36 = vadd.f32 %v2443_v17, %v912_v34  ;;  %v786_v37 = vpop.f32.mrb[47].mxu0  ;;  %v914_v38 = vpop.f32.mrb[47].mxu1  ;;  %v1236_v39 = vmax.f32 %v1172_v29, 0.0  ;;  %v1268_v40 = vmax.f32 %v1204_v30, 0.0 }
 0x171   :  { %v1237_v41 = vmax.f32 %v1173_v35, 0.0  ;;  %v1269_v42 = vmax.f32 %v1205_v36, 0.0 }
 0x173   :  { %v1869_v43 = vpack.c.bf16 %v1237_v41, %v1236_v39  ;;  %v1949_v44 = vpack.c.bf16 %v1269_v42, %v1268_v40 }
 0x174   :  { %v789_v45 = vpop.f32.mrb[48].mxu0  ;;  %v917_v46 = vpop.f32.mrb[48].mxu1 }
 0x175   :  { %1981 = vst [vmem:[%s2608_s3 + $0x58] sm:$0xff] %v1869_v43   ;;  %1997 = vst [vmem:[%s2608_s3 + $0xd8] sm:$0xff] %v1949_v44   ;;  %v1174_v47 = vadd.f32 %v2443_v17, %v789_v45  ;;  %v1206_v48 = vadd.f32 %v2443_v17, %v917_v46  ;;  %v791_v49 = vpop.f32.mrb[49].mxu0  ;;  %v919_v50 = vpop.f32.mrb[49].mxu1 }
 0x176   :  { %v792_v51 = vpop.f32.mrb[50].mxu0  ;;  %v920_v52 = vpop.f32.mrb[50].mxu1 }
 0x177   :  { %v1175_v53 = vadd.f32 %v2443_v17, %v792_v51  ;;  %v1207_v54 = vadd.f32 %v2443_v17, %v920_v52  ;;  %v794_v55 = vpop.f32.mrb[51].mxu0  ;;  %v922_v56 = vpop.f32.mrb[51].mxu1  ;;  %v1238_v57 = vmax.f32 %v1174_v47, 0.0  ;;  %v1270_v58 = vmax.f32 %v1206_v48, 0.0 }
 0x179   :  { %v1239_v59 = vmax.f32 %v1175_v53, 0.0  ;;  %v1271_v60 = vmax.f32 %v1207_v54, 0.0 }
 0x17b   :  { %v1874_v61 = vpack.c.bf16 %v1239_v59, %v1238_v57  ;;  %v1954_v62 = vpack.c.bf16 %v1271_v60, %v1270_v58 }
 0x17c   :  { %v797_v63 = vpop.f32.mrb[52].mxu0  ;;  %v925_v0 = vpop.f32.mrb[52].mxu1 }
 0x17d   :  { %1982 = vst [vmem:[%s2608_s3 + $0x60] sm:$0xff] %v1874_v61   ;;  %1998 = vst [vmem:[%s2608_s3 + $0xe0] sm:$0xff] %v1954_v62   ;;  %v1176_v1 = vadd.f32 %v2443_v17, %v797_v63  ;;  %v1208_v2 = vadd.f32 %v2443_v17, %v925_v0  ;;  %v799_v3 = vpop.f32.mrb[53].mxu0  ;;  %v927_v4 = vpop.f32.mrb[53].mxu1 }
 0x17e   :  { %v800_v5 = vpop.f32.mrb[54].mxu0  ;;  %v928_v6 = vpop.f32.mrb[54].mxu1 }
 0x17f   :  { %v1177_v7 = vadd.f32 %v2443_v17, %v800_v5  ;;  %v1209_v8 = vadd.f32 %v2443_v17, %v928_v6  ;;  %v802_v9 = vpop.f32.mrb[55].mxu0  ;;  %v930_v10 = vpop.f32.mrb[55].mxu1  ;;  %v1240_v11 = vmax.f32 %v1176_v1, 0.0  ;;  %v1272_v12 = vmax.f32 %v1208_v2, 0.0 }
 0x181   :  { %v1241_v13 = vmax.f32 %v1177_v7, 0.0  ;;  %v1273_v14 = vmax.f32 %v1209_v8, 0.0 }
 0x183   :  { %v1879_v15 = vpack.c.bf16 %v1241_v13, %v1240_v11  ;;  %v1959_v16 = vpack.c.bf16 %v1273_v14, %v1272_v12 }
 0x184   :  { %v805_v18 = vpop.f32.mrb[56].mxu0  ;;  %v933_v19 = vpop.f32.mrb[56].mxu1 }
 0x185   :  { %1983 = vst [vmem:[%s2608_s3 + $0x68] sm:$0xff] %v1879_v15   ;;  %1999 = vst [vmem:[%s2608_s3 + $0xe8] sm:$0xff] %v1959_v16   ;;  %v1178_v20 = vadd.f32 %v2443_v17, %v805_v18  ;;  %v1210_v21 = vadd.f32 %v2443_v17, %v933_v19  ;;  %v807_v22 = vpop.f32.mrb[57].mxu0  ;;  %v935_v23 = vpop.f32.mrb[57].mxu1 }
 0x186   :  { %v808_v24 = vpop.f32.mrb[58].mxu0  ;;  %v936_v25 = vpop.f32.mrb[58].mxu1 }
 0x187   :  { %v1179_v26 = vadd.f32 %v2443_v17, %v808_v24  ;;  %v1211_v27 = vadd.f32 %v2443_v17, %v936_v25  ;;  %v810_v28 = vpop.f32.mrb[59].mxu0  ;;  %v938_v29 = vpop.f32.mrb[59].mxu1  ;;  %v1242_v30 = vmax.f32 %v1178_v20, 0.0  ;;  %v1274_v31 = vmax.f32 %v1210_v21, 0.0 }
 0x189   :  { %v1243_v32 = vmax.f32 %v1179_v26, 0.0  ;;  %v1275_v33 = vmax.f32 %v1211_v27, 0.0 }
 0x18b   :  { %v1884_v34 = vpack.c.bf16 %v1243_v32, %v1242_v30  ;;  %v1964_v35 = vpack.c.bf16 %v1275_v33, %v1274_v31 }
 0x18c   :  { %v813_v36 = vpop.f32.mrb[60].mxu0  ;;  %v941_v37 = vpop.f32.mrb[60].mxu1 }
 0x18d   :  { %1984 = vst [vmem:[%s2608_s3 + $0x70] sm:$0xff] %v1884_v34   ;;  %2000 = vst [vmem:[%s2608_s3 + $0xf0] sm:$0xff] %v1964_v35   ;;  %v1180_v38 = vadd.f32 %v2443_v17, %v813_v36  ;;  %v1212_v39 = vadd.f32 %v2443_v17, %v941_v37  ;;  %v815_v40 = vpop.f32.mrb[61].mxu0  ;;  %v943_v41 = vpop.f32.mrb[61].mxu1 }
 0x18e   :  { %v816_v42 = vpop.f32.mrb[62].mxu0  ;;  %v944_v43 = vpop.f32.mrb[62].mxu1 }
 0x18f   :  { %v1181_v44 = vadd.f32 %v2443_v17, %v816_v42  ;;  %v1213_v45 = vadd.f32 %v2443_v17, %v944_v43  ;;  %v818_v46 = vpop.f32.mrb[63].mxu0  ;;  %v946_v47 = vpop.f32.mrb[63].mxu1  ;;  %v1244_v48 = vmax.f32 %v1180_v38, 0.0  ;;  %v1276_v49 = vmax.f32 %v1212_v39, 0.0 }
 0x191   :  { %v1245_v50 = vmax.f32 %v1181_v44, 0.0  ;;  %v1277_v51 = vmax.f32 %v1213_v45, 0.0 }
 0x193   :  { %v1889_v52 = vpack.c.bf16 %v1245_v50, %v1244_v48  ;;  %v1969_v53 = vpack.c.bf16 %v1277_v51, %v1276_v49 }
 0x195   :  { %1985 = vst [vmem:[%s2608_s3 + $0x78] sm:$0xff] %v1889_v52   ;;  %2001 = vst [vmem:[%s2608_s3 + $0xf8] sm:$0xff] %v1969_v53  }

// kernel: unet_forward.25
= control target key start
LH: loop header
LB: loop body
LE: loop exit
PB: predicated region body
PF: predicated region fallthrough
CT: control target
= control target key end

     0   :  { %s939_s1 = inlined_call_operand.vmem [shape: bf16[256,128], index: 1, kind: input, shape index: {}]   ;;  %s940_s0 = inlined_call_operand.vmem [shape: bf16[128,256], index: 0, kind: input, shape index: {}]   ;;  %s941_s2 = inlined_call_operand.vmem [shape: f32[1,128], index: 2, kind: input, shape index: {}]   ;;  %s942_s3 = inlined_call_operand.vmem [shape: bf16[128,128], index: 3, kind: output, shape index: {}]  }
   0x1   :  { %v738_v0 = vld [vmem:[%s939_s1 + $0x40] sm:$0xff]   ;;  %v740_v2 = vld [vmem:[%s939_s1 + $0x48] sm:$0xff]   ;;  %v742_v4 = vld [vmem:[%s939_s1 + $0x50] sm:$0xff]  }
   0x2   :  { %v739_v1 = vld [vmem:[%s939_s1] sm:$0xff]   ;;  %658 = vmatprep.subr.bf16.mxu0 %v738_v0  ;;  %722 = vmatprep.subr.bf16.mxu1 %v738_v0  ;;  %v741_v3 = vld [vmem:[%s939_s1 + $0x8] sm:$0xff]   ;;  %v743_v5 = vld [vmem:[%s939_s1 + $0x10] sm:$0xff]  }
   0x3   :  { %659 = vmatpush3.bf16.msra.mxu0 %v739_v1  ;;  %730 = vmatpush3.bf16.msra.mxu1 %v739_v1  ;;  %v744_v6 = vld [vmem:[%s939_s1 + $0x58] sm:$0xff]   ;;  %v746_v8 = vld [vmem:[%s939_s1 + $0x60] sm:$0xff]   ;;  %v748_v10 = vld [vmem:[%s939_s1 + $0x68] sm:$0xff]  }
   0x4   :  { %660 = vmatprep.subr.bf16.mxu0 %v740_v2  ;;  %723 = vmatprep.subr.bf16.mxu1 %v740_v2  ;;  %v745_v7 = vld [vmem:[%s939_s1 + $0x18] sm:$0xff]   ;;  %v747_v9 = vld [vmem:[%s939_s1 + $0x20] sm:$0xff]   ;;  %v749_v13 = vld [vmem:[%s939_s1 + $0x28] sm:$0xff]  }
   0x5   :  { %v756_v11 = vld [vmem:[%s940_s0 + $0x4] ss:$8 sps:$4 sm:$0xff]   ;;  %v750_v14 = vld [vmem:[%s939_s1 + $0x70] sm:$0xff]   ;;  %v752_v16 = vld [vmem:[%s939_s1 + $0x78] sm:$0xff]  }
   0x6   :  { %v759_v12 = vld [vmem:[%s940_s0 + $0x44] ss:$8 sps:$4 sm:$0xff]   ;;  %307 = vmatprep.mubr.bf16.mxu0 %v756_v11  ;;  %v751_v15 = vld [vmem:[%s939_s1 + $0x30] sm:$0xff]   ;;  %v753_v17 = vld [vmem:[%s939_s1 + $0x38] sm:$0xff]  }
   0x7   :  { %661 = vmatpush3.bf16.msra.mxu0 %v741_v3  ;;  %731 = vmatpush3.bf16.msra.mxu1 %v741_v3  ;;  %v754_v18 = vld [vmem:[%s940_s0] ss:$8 sps:$4 sm:$0xff]   ;;  %v760_v20 = vld [vmem:[%s940_s0 + $0x14] ss:$8 sps:$4 sm:$0xff]   ;;  %v764_v22 = vld [vmem:[%s940_s0 + $0x10] ss:$8 sps:$4 sm:$0xff]  }
   0x8   :  { %662 = vmatprep.subr.bf16.mxu0 %v742_v4  ;;  %724 = vmatprep.subr.bf16.mxu1 %v742_v4  ;;  %v757_v19 = vld [vmem:[%s940_s0 + $0x40] ss:$8 sps:$4 sm:$0xff]   ;;  %v762_v21 = vld [vmem:[%s940_s0 + $0x54] ss:$8 sps:$4 sm:$0xff]   ;;  %v765_v23 = vld [vmem:[%s940_s0 + $0x50] ss:$8 sps:$4 sm:$0xff]  }
   0x9   :  { %339 = vmatprep.mubr.bf16.mxu1 %v759_v12  ;;  %v766_v24 = vld [vmem:[%s940_s0 + $0x24] ss:$8 sps:$4 sm:$0xff]   ;;  %v770_v26 = vld [vmem:[%s940_s0 + $0x20] ss:$8 sps:$4 sm:$0xff]   ;;  %v772_v28 = vld [vmem:[%s940_s0 + $0x34] ss:$8 sps:$4 sm:$0xff]  }
   0xa   :  { %v768_v25 = vld [vmem:[%s940_s0 + $0x64] ss:$8 sps:$4 sm:$0xff]   ;;  %v771_v27 = vld [vmem:[%s940_s0 + $0x60] ss:$8 sps:$4 sm:$0xff]   ;;  %v774_v29 = vld [vmem:[%s940_s0 + $0x74] ss:$8 sps:$4 sm:$0xff]  }
   0xb   :  { %663 = vmatpush3.bf16.msra.mxu0 %v743_v5  ;;  %732 = vmatpush3.bf16.msra.mxu1 %v743_v5  ;;  %v776_v30 = vld [vmem:[%s940_s0 + $0x30] ss:$8 sps:$4 sm:$0xff]   ;;  %v897_v35 = vld [vmem:[%s941_s2] ss:$0 sm:$0xff] }
   0xc   :  { %664 = vmatprep.subr.bf16.mxu0 %v744_v6  ;;  %725 = vmatprep.subr.bf16.mxu1 %v744_v6  ;;  %v777_v31 = vld [vmem:[%s940_s0 + $0x70] ss:$8 sps:$4 sm:$0xff]  }
   0xf   :  { %665 = vmatpush3.bf16.msra.mxu0 %v745_v7  ;;  %733 = vmatpush3.bf16.msra.mxu1 %v745_v7 }
  0x10   :  { %666 = vmatprep.subr.bf16.mxu0 %v746_v8  ;;  %726 = vmatprep.subr.bf16.mxu1 %v746_v8 }
  0x13   :  { %667 = vmatpush3.bf16.msra.mxu0 %v747_v9  ;;  %734 = vmatpush3.bf16.msra.mxu1 %v747_v9 }
  0x14   :  { %668 = vmatprep.subr.bf16.mxu0 %v748_v10  ;;  %727 = vmatprep.subr.bf16.mxu1 %v748_v10 }
  0x17   :  { %669 = vmatpush3.bf16.msra.mxu0 %v749_v13  ;;  %735 = vmatpush3.bf16.msra.mxu1 %v749_v13 }
  0x18   :  { %670 = vmatprep.subr.bf16.mxu0 %v750_v14  ;;  %728 = vmatprep.subr.bf16.mxu1 %v750_v14 }
  0x1b   :  { %671 = vmatpush3.bf16.msra.mxu0 %v751_v15  ;;  %736 = vmatpush3.bf16.msra.mxu1 %v751_v15 }
  0x1c   :  { %672 = vmatprep.subr.bf16.mxu0 %v752_v16  ;;  %729 = vmatprep.subr.bf16.mxu1 %v752_v16 }
  0x1f   :  { %673 = vmatpush3.bf16.msra.mxu0 %v753_v17  ;;  %737 = vmatpush3.bf16.msra.mxu1 %v753_v17 }
  0x22   :  { %308 = vmatmul.mubr.bf16.vlgmr.msra.gmra.mrb[0].mxu0 %v754_v18  ;;  %340 = vmatmul.mubr.bf16.vlgmr.msra.gmra.mrb[0].mxu1 %v757_v19 }
  0x23   :  { %315 = vmatprep.mubr.bf16.mxu0 %v760_v20  ;;  %347 = vmatprep.mubr.bf16.mxu1 %v762_v21 }
  0x2a   :  { %316 = vmatmul.mubr.bf16.gmra.mrb[4].mxu0 %v764_v22  ;;  %348 = vmatmul.mubr.bf16.gmra.mrb[4].mxu1 %v765_v23 }
  0x2b   :  { %323 = vmatprep.mubr.bf16.mxu0 %v766_v24  ;;  %355 = vmatprep.mubr.bf16.mxu1 %v768_v25 }
  0x32   :  { %324 = vmatmul.mubr.bf16.gmra.mrb[8].mxu0 %v770_v26  ;;  %356 = vmatmul.mubr.bf16.gmra.mrb[8].mxu1 %v771_v27 }
  0x33   :  { %331 = vmatprep.mubr.bf16.mxu0 %v772_v28  ;;  %363 = vmatprep.mubr.bf16.mxu1 %v774_v29 }
  0x3a   :  { %332 = vmatmul.mubr.bf16.gmra.mrb[12].mxu0 %v776_v30  ;;  %364 = vmatmul.mubr.bf16.gmra.mrb[12].mxu1 %v777_v31 }
  0xf5   :  { %v674_v32 = vpop.f32.mrb[0].mxu0  ;;  %v698_v33 = vpop.f32.mrb[0].mxu1 }
  0xf6   :  { %v675_v34 = vpop.f32.mrb[1].mxu0  ;;  %v699_v36 = vpop.f32.mrb[1].mxu1 }
  0xf7   :  { %v676_v37 = vadd.f32 %v675_v34, %v674_v32  ;;  %v700_v38 = vadd.f32 %v699_v36, %v698_v33  ;;  %v677_v39 = vpop.f32.mrb[2].mxu0  ;;  %v701_v40 = vpop.f32.mrb[2].mxu1 }
  0xf8   :  { %v678_v41 = vpop.f32.mrb[3].mxu0  ;;  %v702_v42 = vpop.f32.mrb[3].mxu1 }
  0xf9   :  { %v430_v43 = vadd.f32 %v676_v37, %v897_v35  ;;  %v438_v44 = vadd.f32 %v700_v38, %v897_v35  ;;  %v679_v45 = vadd.f32 %v678_v41, %v677_v39  ;;  %v703_v46 = vadd.f32 %v702_v42, %v701_v40 }
  0xfb   :  { %v431_v47 = vadd.f32 %v679_v45, %v897_v35  ;;  %v439_v48 = vadd.f32 %v703_v46, %v897_v35  ;;  %v446_v49 = vmax.f32 %v430_v43, 0.0  ;;  %v454_v50 = vmax.f32 %v438_v44, 0.0 }
  0xfd   :  { %v447_v51 = vmax.f32 %v431_v47, 0.0  ;;  %v455_v52 = vmax.f32 %v439_v48, 0.0  ;;  %v680_v53 = vpop.f32.mrb[4].mxu0  ;;  %v704_v54 = vpop.f32.mrb[4].mxu1 }
  0xfe   :  { %v681_v55 = vpop.f32.mrb[5].mxu0  ;;  %v705_v56 = vpop.f32.mrb[5].mxu1 }
  0xff   :  { %v614_v57 = vpack.c.bf16 %v447_v51, %v446_v49  ;;  %v634_v58 = vpack.c.bf16 %v455_v52, %v454_v50  ;;  %v682_v59 = vadd.f32 %v681_v55, %v680_v53  ;;  %v706_v60 = vadd.f32 %v705_v56, %v704_v54  ;;  %v683_v61 = vpop.f32.mrb[6].mxu0  ;;  %v707_v62 = vpop.f32.mrb[6].mxu1 }
 0x100   :  { %v684_v63 = vpop.f32.mrb[7].mxu0  ;;  %v708_v0 = vpop.f32.mrb[7].mxu1 }
 0x101   :  { %615 = vst [vmem:[%s942_s3] sm:$0xff] %v614_v57   ;;  %654 = vst [vmem:[%s942_s3 + $0x20] sm:$0xff] %v634_v58   ;;  %v432_v1 = vadd.f32 %v682_v59, %v897_v35  ;;  %v440_v2 = vadd.f32 %v706_v60, %v897_v35  ;;  %v685_v3 = vadd.f32 %v684_v63, %v683_v61 }
 0x102   :  { %v709_v4 = vadd.f32 %v708_v0, %v707_v62 }
 0x103   :  { %v433_v5 = vadd.f32 %v685_v3, %v897_v35  ;;  %v448_v7 = vmax.f32 %v432_v1, 0.0  ;;  %v456_v8 = vmax.f32 %v440_v2, 0.0 }
 0x104   :  { %v441_v6 = vadd.f32 %v709_v4, %v897_v35 }
 0x105   :  { %v449_v9 = vmax.f32 %v433_v5, 0.0  ;;  %v686_v11 = vpop.f32.mrb[8].mxu0  ;;  %v710_v12 = vpop.f32.mrb[8].mxu1 }
 0x106   :  { %v457_v10 = vmax.f32 %v441_v6, 0.0  ;;  %v687_v13 = vpop.f32.mrb[9].mxu0  ;;  %v711_v14 = vpop.f32.mrb[9].mxu1 }
 0x107   :  { %v619_v15 = vpack.c.bf16 %v449_v9, %v448_v7  ;;  %v688_v17 = vadd.f32 %v687_v13, %v686_v11  ;;  %v712_v18 = vadd.f32 %v711_v14, %v710_v12  ;;  %v689_v19 = vpop.f32.mrb[10].mxu0  ;;  %v713_v20 = vpop.f32.mrb[10].mxu1 }
 0x108   :  { %v639_v16 = vpack.c.bf16 %v457_v10, %v456_v8  ;;  %v690_v21 = vpop.f32.mrb[11].mxu0  ;;  %v714_v22 = vpop.f32.mrb[11].mxu1 }
 0x109   :  { %651 = vst [vmem:[%s942_s3 + $0x8] sm:$0xff] %v619_v15   ;;  %v434_v23 = vadd.f32 %v688_v17, %v897_v35  ;;  %v442_v24 = vadd.f32 %v712_v18, %v897_v35  ;;  %v691_v25 = vadd.f32 %v690_v21, %v689_v19  ;;  %v715_v26 = vadd.f32 %v714_v22, %v713_v20 }
 0x10a   :  { %655 = vst [vmem:[%s942_s3 + $0x28] sm:$0xff] %v639_v16  }
 0x10b   :  { %v435_v27 = vadd.f32 %v691_v25, %v897_v35  ;;  %v443_v28 = vadd.f32 %v715_v26, %v897_v35  ;;  %v450_v29 = vmax.f32 %v434_v23, 0.0  ;;  %v458_v30 = vmax.f32 %v442_v24, 0.0 }
 0x10d   :  { %v451_v31 = vmax.f32 %v435_v27, 0.0  ;;  %v459_v32 = vmax.f32 %v443_v28, 0.0  ;;  %v692_v33 = vpop.f32.mrb[12].mxu0  ;;  %v716_v34 = vpop.f32.mrb[12].mxu1 }
 0x10e   :  { %v693_v36 = vpop.f32.mrb[13].mxu0  ;;  %v717_v37 = vpop.f32.mrb[13].mxu1 }
 0x10f   :  { %v624_v38 = vpack.c.bf16 %v451_v31, %v450_v29  ;;  %v644_v39 = vpack.c.bf16 %v459_v32, %v458_v30  ;;  %v694_v40 = vadd.f32 %v693_v36, %v692_v33  ;;  %v718_v41 = vadd.f32 %v717_v37, %v716_v34  ;;  %v695_v42 = vpop.f32.mrb[14].mxu0  ;;  %v719_v43 = vpop.f32.mrb[14].mxu1 }
 0x110   :  { %v696_v44 = vpop.f32.mrb[15].mxu0  ;;  %v720_v45 = vpop.f32.mrb[15].mxu1 }
 0x111   :  { %652 = vst [vmem:[%s942_s3 + $0x10] sm:$0xff] %v624_v38   ;;  %656 = vst [vmem:[%s942_s3 + $0x30] sm:$0xff] %v644_v39   ;;  %v436_v46 = vadd.f32 %v694_v40, %v897_v35  ;;  %v444_v47 = vadd.f32 %v718_v41, %v897_v35  ;;  %v697_v48 = vadd.f32 %v696_v44, %v695_v42 }
 0x112   :  { %v721_v49 = vadd.f32 %v720_v45, %v719_v43 }
 0x113   :  { %v437_v50 = vadd.f32 %v697_v48, %v897_v35  ;;  %v452_v52 = vmax.f32 %v436_v46, 0.0  ;;  %v460_v53 = vmax.f32 %v444_v47, 0.0 }
 0x114   :  { %v445_v51 = vadd.f32 %v721_v49, %v897_v35 }
 0x115   :  { %v453_v54 = vmax.f32 %v437_v50, 0.0 }
 0x116   :  { %v461_v55 = vmax.f32 %v445_v51, 0.0 }
 0x117   :  { %v629_v56 = vpack.c.bf16 %v453_v54, %v452_v52 }
 0x118   :  { %v649_v57 = vpack.c.bf16 %v461_v55, %v460_v53 }
 0x119   :  { %653 = vst [vmem:[%s942_s3 + $0x18] sm:$0xff] %v629_v56  }
 0x11a   :  { %657 = vst [vmem:[%s942_s3 + $0x38] sm:$0xff] %v649_v57  }

// kernel: unet_forward.26
= control target key start
LH: loop header
LB: loop body
LE: loop exit
PB: predicated region body
PF: predicated region fallthrough
CT: control target
= control target key end

     0   :  { %s1276_s1 = inlined_call_operand.vmem [shape: bf16[384,128], index: 1, kind: input, shape index: {}]   ;;  %s1277_s0 = inlined_call_operand.vmem [shape: bf16[128,384], index: 0, kind: input, shape index: {}]   ;;  %s1278_s2 = inlined_call_operand.vmem [shape: f32[1,128], index: 2, kind: input, shape index: {}]   ;;  %s1279_s3 = inlined_call_operand.vmem [shape: bf16[128,128], index: 3, kind: output, shape index: {}]  }
   0x1   :  { %v1011_v0 = vld [vmem:[%s1276_s1 + $0x40] sm:$0xff]   ;;  %v1014_v3 = vld [vmem:[%s1276_s1 + $0x48] sm:$0xff]   ;;  %v1017_v6 = vld [vmem:[%s1276_s1 + $0x50] sm:$0xff]  }
   0x2   :  { %v1012_v1 = vld [vmem:[%s1276_s1] sm:$0xff]   ;;  %899 = vmatprep.subr.bf16.mxu0 %v1011_v0  ;;  %v1015_v4 = vld [vmem:[%s1276_s1 + $0x8] sm:$0xff]   ;;  %v1018_v7 = vld [vmem:[%s1276_s1 + $0x10] sm:$0xff]  }
   0x3   :  { %v1013_v2 = vld [vmem:[%s1276_s1 + $0x80] sm:$0xff]   ;;  %900 = vmatpush3.bf16.msra.mxu0 %v1012_v1  ;;  %v1016_v5 = vld [vmem:[%s1276_s1 + $0x88] sm:$0xff]   ;;  %v1019_v8 = vld [vmem:[%s1276_s1 + $0x90] sm:$0xff]  }
   0x4   :  { %979 = vmatprep.subr.bf16.mxu1 %v1013_v2  ;;  %901 = vmatprep.subr.bf16.mxu0 %v1014_v3  ;;  %v1020_v9 = vld [vmem:[%s1276_s1 + $0x58] sm:$0xff]   ;;  %v1023_v12 = vld [vmem:[%s1276_s1 + $0x60] sm:$0xff]   ;;  %v1026_v15 = vld [vmem:[%s1276_s1 + $0x68] sm:$0xff]  }
   0x5   :  { %980 = vmatpush3.bf16.msra.mxu1 %v1013_v2  ;;  %v1021_v10 = vld [vmem:[%s1276_s1 + $0x18] sm:$0xff]   ;;  %v1025_v13 = vld [vmem:[%s1276_s1 + $0xa0] sm:$0xff]   ;;  %v1028_v16 = vld [vmem:[%s1276_s1 + $0xa8] sm:$0xff]  }
   0x6   :  { %981 = vmatprep.subr.bf16.mxu1 %v1016_v5  ;;  %v1022_v11 = vld [vmem:[%s1276_s1 + $0x98] sm:$0xff]   ;;  %v1024_v14 = vld [vmem:[%s1276_s1 + $0x20] sm:$0xff]   ;;  %v1027_v17 = vld [vmem:[%s1276_s1 + $0x28] sm:$0xff]  }
   0x7   :  { %902 = vmatpush3.bf16.msra.mxu0 %v1015_v4  ;;  %v1029_v18 = vld [vmem:[%s1276_s1 + $0x70] sm:$0xff]   ;;  %v1032_v21 = vld [vmem:[%s1276_s1 + $0x78] sm:$0xff]   ;;  %v1035_v26 = vld [vmem:[%s1277_s0] ss:$12 sps:$4 sm:$0xff]  }
   0x8   :  { %903 = vmatprep.subr.bf16.mxu0 %v1017_v6  ;;  %v1030_v19 = vld [vmem:[%s1276_s1 + $0x30] sm:$0xff]   ;;  %v1034_v22 = vld [vmem:[%s1276_s1 + $0xb8] sm:$0xff]   ;;  %v1039_v28 = vld [vmem:[%s1277_s0 + $0x20] ss:$12 sps:$4 sm:$0xff]  }
   0x9   :  { %982 = vmatpush3.bf16.msra.mxu1 %v1016_v5  ;;  %v1031_v20 = vld [vmem:[%s1276_s1 + $0xb0] sm:$0xff]   ;;  %v1033_v25 = vld [vmem:[%s1276_s1 + $0x38] sm:$0xff]   ;;  %v1055_v36 = vld [vmem:[%s1277_s0 + $0x80] ss:$12 sps:$4 sm:$0xff]  }
   0xa   :  { %983 = vmatprep.subr.bf16.mxu1 %v1019_v8  ;;  %v1037_v23 = vld [vmem:[%s1277_s0 + $0x4] ss:$12 sps:$4 sm:$0xff]   ;;  %v1038_v24 = vld [vmem:[%s1277_s0 + $0x8] ss:$12 sps:$4 sm:$0xff]   ;;  %v1048_v35 = vld [vmem:[%s1277_s0 + $0x4c] ss:$12 sps:$4 sm:$0xff]  }
   0xb   :  { %904 = vmatpush3.bf16.msra.mxu0 %v1018_v7  ;;  %435 = vmatprep.mubr.bf16.mxu0 %v1037_v23  ;;  %v1040_v27 = vld [vmem:[%s1277_s0 + $0x1c] ss:$12 sps:$4 sm:$0xff]   ;;  %v1046_v29 = vld [vmem:[%s1277_s0 + $0x38] ss:$12 sps:$4 sm:$0xff]   ;;  %v1043_v31 = vld [vmem:[%s1277_s0 + $0x34] ss:$12 sps:$4 sm:$0xff]  }
   0xc   :  { %905 = vmatprep.subr.bf16.mxu0 %v1020_v9  ;;  %995 = vmatprep.mubr.bf16.mxu1 %v1038_v24  ;;  %v1042_v30 = vld [vmem:[%s1277_s0 + $0x18] ss:$12 sps:$4 sm:$0xff]   ;;  %v1047_v32 = vld [vmem:[%s1277_s0 + $0x50] ss:$12 sps:$4 sm:$0xff]   ;;  %v1054_v33 = vld [vmem:[%s1277_s0 + $0x68] ss:$12 sps:$4 sm:$0xff]  }
   0xd   :  { %984 = vmatpush3.bf16.msra.mxu1 %v1019_v8  ;;  %v1045_v34 = vld [vmem:[%s1277_s0 + $0x30] ss:$12 sps:$4 sm:$0xff]   ;;  %v1062_v37 = vld [vmem:[%s1277_s0 + $0x98] ss:$12 sps:$4 sm:$0xff]   ;;  %v1050_v38 = vld [vmem:[%s1277_s0 + $0x48] ss:$12 sps:$4 sm:$0xff]  }
   0xe   :  { %985 = vmatprep.subr.bf16.mxu1 %v1022_v11  ;;  %v1051_v39 = vld [vmem:[%s1277_s0 + $0x64] ss:$12 sps:$4 sm:$0xff]   ;;  %v1053_v41 = vld [vmem:[%s1277_s0 + $0x60] ss:$12 sps:$4 sm:$0xff]   ;;  %v1056_v42 = vld [vmem:[%s1277_s0 + $0x7c] ss:$12 sps:$4 sm:$0xff]  }
   0xf   :  { %906 = vmatpush3.bf16.msra.mxu0 %v1021_v10  ;;  %v1063_v40 = vld [vmem:[%s1277_s0 + $0xb0] ss:$12 sps:$4 sm:$0xff]   ;;  %v1058_v43 = vld [vmem:[%s1277_s0 + $0x78] ss:$12 sps:$4 sm:$0xff]   ;;  %v1059_v44 = vld [vmem:[%s1277_s0 + $0x94] ss:$12 sps:$4 sm:$0xff]  }
  0x10   :  { %907 = vmatprep.subr.bf16.mxu0 %v1023_v12  ;;  %v1061_v45 = vld [vmem:[%s1277_s0 + $0x90] ss:$12 sps:$4 sm:$0xff]   ;;  %v1064_v46 = vld [vmem:[%s1277_s0 + $0xac] ss:$12 sps:$4 sm:$0xff]   ;;  %v1066_v47 = vld [vmem:[%s1277_s0 + $0xa8] ss:$12 sps:$4 sm:$0xff]  }
  0x11   :  { %986 = vmatpush3.bf16.msra.mxu1 %v1022_v11  ;;  %v1234_v55 = vld [vmem:[%s1278_s2] ss:$0 sm:$0xff] }
  0x12   :  { %987 = vmatprep.subr.bf16.mxu1 %v1025_v13 }
  0x13   :  { %908 = vmatpush3.bf16.msra.mxu0 %v1024_v14 }
  0x14   :  { %909 = vmatprep.subr.bf16.mxu0 %v1026_v15 }
  0x15   :  { %988 = vmatpush3.bf16.msra.mxu1 %v1025_v13 }
  0x16   :  { %989 = vmatprep.subr.bf16.mxu1 %v1028_v16 }
  0x17   :  { %910 = vmatpush3.bf16.msra.mxu0 %v1027_v17 }
  0x18   :  { %911 = vmatprep.subr.bf16.mxu0 %v1029_v18 }
  0x19   :  { %990 = vmatpush3.bf16.msra.mxu1 %v1028_v16 }
  0x1a   :  { %991 = vmatprep.subr.bf16.mxu1 %v1031_v20 }
  0x1b   :  { %912 = vmatpush3.bf16.msra.mxu0 %v1030_v19 }
  0x1c   :  { %913 = vmatprep.subr.bf16.mxu0 %v1032_v21 }
  0x1d   :  { %992 = vmatpush3.bf16.msra.mxu1 %v1031_v20 }
  0x1e   :  { %993 = vmatprep.subr.bf16.mxu1 %v1034_v22 }
  0x1f   :  { %914 = vmatpush3.bf16.msra.mxu0 %v1033_v25 }
  0x21   :  { %994 = vmatpush3.bf16.msra.mxu1 %v1034_v22 }
  0x22   :  { %436 = vmatmul.mubr.bf16.vlgmr.msra.gmra.mrb[0].mxu0 %v1035_v26 }
  0x23   :  { %443 = vmatprep.mubr.bf16.mxu0 %v1040_v27 }
  0x24   :  { %996 = vmatmul.mubr.bf16.vlgmr.msra.gmra.mrb[0].mxu1 %v1039_v28 }
  0x25   :  { %999 = vmatprep.mubr.bf16.mxu1 %v1046_v29 }
  0x2a   :  { %444 = vmatmul.mubr.bf16.gmra.mrb[4].mxu0 %v1042_v30 }
  0x2b   :  { %451 = vmatprep.mubr.bf16.mxu0 %v1043_v31 }
  0x2c   :  { %1000 = vmatmul.mubr.bf16.gmra.mrb[4].mxu1 %v1047_v32 }
  0x2d   :  { %1003 = vmatprep.mubr.bf16.mxu1 %v1054_v33 }
  0x32   :  { %452 = vmatmul.mubr.bf16.gmra.mrb[8].mxu0 %v1045_v34 }
  0x33   :  { %459 = vmatprep.mubr.bf16.mxu0 %v1048_v35 }
  0x34   :  { %1004 = vmatmul.mubr.bf16.gmra.mrb[8].mxu1 %v1055_v36 }
  0x35   :  { %1007 = vmatprep.mubr.bf16.mxu1 %v1062_v37 }
  0x3a   :  { %460 = vmatmul.mubr.bf16.gmra.mrb[12].mxu0 %v1050_v38 }
  0x3b   :  { %467 = vmatprep.mubr.bf16.mxu0 %v1051_v39 }
  0x3c   :  { %1008 = vmatmul.mubr.bf16.gmra.mrb[12].mxu1 %v1063_v40 }
  0x42   :  { %468 = vmatmul.mubr.bf16.gmra.mrb[16].mxu0 %v1053_v41 }
  0x43   :  { %475 = vmatprep.mubr.bf16.mxu0 %v1056_v42 }
  0x4a   :  { %476 = vmatmul.mubr.bf16.gmra.mrb[20].mxu0 %v1058_v43 }
  0x4b   :  { %483 = vmatprep.mubr.bf16.mxu0 %v1059_v44 }
  0x52   :  { %484 = vmatmul.mubr.bf16.gmra.mrb[24].mxu0 %v1061_v45 }
  0x53   :  { %491 = vmatprep.mubr.bf16.mxu0 %v1064_v46 }
  0x5a   :  { %492 = vmatmul.mubr.bf16.gmra.mrb[28].mxu0 %v1066_v47 }
  0xf5   :  { %v915_v48 = vpop.f32.mrb[0].mxu0 }
  0xf6   :  { %v916_v49 = vpop.f32.mrb[1].mxu0 }
  0xf7   :  { %v917_v50 = vadd.f32 %v916_v49, %v915_v48  ;;  %v918_v51 = vpop.f32.mrb[2].mxu0  ;;  %v997_v52 = vpop.f32.mrb[0].mxu1 }
  0xf8   :  { %v919_v53 = vpop.f32.mrb[3].mxu0  ;;  %v534_v54 = vpop.f32.mrb[1].mxu1 }
  0xf9   :  { %v920_v56 = vadd.f32 %v919_v53, %v918_v51  ;;  %v535_v57 = vadd.f32 %v917_v50, %v534_v54  ;;  %v998_v58 = vpop.f32.mrb[2].mxu1 }
  0xfa   :  { %v537_v59 = vpop.f32.mrb[3].mxu1 }
  0xfb   :  { %v655_v60 = vadd.f32 %v1234_v55, %v535_v57  ;;  %v538_v61 = vadd.f32 %v920_v56, %v537_v59 }
  0xfd   :  { %v656_v62 = vadd.f32 %v1234_v55, %v538_v61  ;;  %v921_v63 = vpop.f32.mrb[4].mxu0  ;;  %v671_v1 = vmax.f32 %v655_v60, 0.0 }
  0xfe   :  { %v922_v0 = vpop.f32.mrb[5].mxu0 }
  0xff   :  { %v672_v2 = vmax.f32 %v656_v62, 0.0  ;;  %v923_v3 = vadd.f32 %v922_v0, %v921_v63  ;;  %v924_v4 = vpop.f32.mrb[6].mxu0  ;;  %v1001_v5 = vpop.f32.mrb[4].mxu1 }
 0x100   :  { %v925_v6 = vpop.f32.mrb[7].mxu0  ;;  %v550_v7 = vpop.f32.mrb[5].mxu1 }
 0x101   :  { %v855_v8 = vpack.c.bf16 %v672_v2, %v671_v1  ;;  %v543_v9 = vadd.f32 %v997_v52, %v923_v3  ;;  %v926_v10 = vadd.f32 %v925_v6, %v924_v4  ;;  %v1002_v11 = vpop.f32.mrb[6].mxu1 }
 0x102   :  { %v553_v12 = vpop.f32.mrb[7].mxu1 }
 0x103   :  { %856 = vst [vmem:[%s1279_s3] sm:$0xff] %v855_v8   ;;  %v657_v13 = vadd.f32 %v1234_v55, %v543_v9  ;;  %v546_v14 = vadd.f32 %v998_v58, %v926_v10 }
 0x105   :  { %v658_v15 = vadd.f32 %v1234_v55, %v546_v14  ;;  %v927_v16 = vpop.f32.mrb[8].mxu0  ;;  %v673_v18 = vmax.f32 %v657_v13, 0.0 }
 0x106   :  { %v928_v17 = vpop.f32.mrb[9].mxu0 }
 0x107   :  { %v674_v19 = vmax.f32 %v658_v15, 0.0  ;;  %v929_v20 = vadd.f32 %v928_v17, %v927_v16  ;;  %v930_v21 = vpop.f32.mrb[10].mxu0  ;;  %v1005_v22 = vpop.f32.mrb[8].mxu1 }
 0x108   :  { %v931_v23 = vpop.f32.mrb[11].mxu0  ;;  %v566_v24 = vpop.f32.mrb[9].mxu1 }
 0x109   :  { %v860_v25 = vpack.c.bf16 %v674_v19, %v673_v18  ;;  %v932_v26 = vadd.f32 %v931_v23, %v930_v21  ;;  %v551_v27 = vadd.f32 %v929_v20, %v550_v7  ;;  %v1006_v28 = vpop.f32.mrb[10].mxu1 }
 0x10a   :  { %v569_v29 = vpop.f32.mrb[11].mxu1 }
 0x10b   :  { %892 = vst [vmem:[%s1279_s3 + $0x8] sm:$0xff] %v860_v25   ;;  %v659_v30 = vadd.f32 %v1234_v55, %v551_v27  ;;  %v554_v31 = vadd.f32 %v932_v26, %v553_v12 }
 0x10d   :  { %v660_v32 = vadd.f32 %v1234_v55, %v554_v31  ;;  %v933_v33 = vpop.f32.mrb[12].mxu0  ;;  %v675_v35 = vmax.f32 %v659_v30, 0.0 }
 0x10e   :  { %v934_v34 = vpop.f32.mrb[13].mxu0 }
 0x10f   :  { %v676_v36 = vmax.f32 %v660_v32, 0.0  ;;  %v935_v37 = vadd.f32 %v934_v34, %v933_v33  ;;  %v936_v38 = vpop.f32.mrb[14].mxu0  ;;  %v1009_v39 = vpop.f32.mrb[12].mxu1 }
 0x110   :  { %v937_v40 = vpop.f32.mrb[15].mxu0  ;;  %v582_v41 = vpop.f32.mrb[13].mxu1 }
 0x111   :  { %v865_v42 = vpack.c.bf16 %v676_v36, %v675_v35  ;;  %v559_v43 = vadd.f32 %v1001_v5, %v935_v37  ;;  %v938_v44 = vadd.f32 %v937_v40, %v936_v38  ;;  %v1010_v45 = vpop.f32.mrb[14].mxu1 }
 0x112   :  { %v585_v46 = vpop.f32.mrb[15].mxu1 }
 0x113   :  { %893 = vst [vmem:[%s1279_s3 + $0x10] sm:$0xff] %v865_v42   ;;  %v661_v47 = vadd.f32 %v1234_v55, %v559_v43  ;;  %v562_v48 = vadd.f32 %v1002_v11, %v938_v44 }
 0x115   :  { %v662_v49 = vadd.f32 %v1234_v55, %v562_v48  ;;  %v939_v50 = vpop.f32.mrb[16].mxu0  ;;  %v677_v52 = vmax.f32 %v661_v47, 0.0 }
 0x116   :  { %v940_v51 = vpop.f32.mrb[17].mxu0 }
 0x117   :  { %v678_v53 = vmax.f32 %v662_v49, 0.0  ;;  %v941_v54 = vadd.f32 %v940_v51, %v939_v50  ;;  %v942_v56 = vpop.f32.mrb[18].mxu0 }
 0x118   :  { %v943_v57 = vpop.f32.mrb[19].mxu0 }
 0x119   :  { %v870_v58 = vpack.c.bf16 %v678_v53, %v677_v52  ;;  %v944_v59 = vadd.f32 %v943_v57, %v942_v56  ;;  %v567_v60 = vadd.f32 %v941_v54, %v566_v24 }
 0x11b   :  { %894 = vst [vmem:[%s1279_s3 + $0x18] sm:$0xff] %v870_v58   ;;  %v663_v61 = vadd.f32 %v1234_v55, %v567_v60  ;;  %v570_v62 = vadd.f32 %v944_v59, %v569_v29 }
 0x11d   :  { %v664_v63 = vadd.f32 %v1234_v55, %v570_v62  ;;  %v945_v0 = vpop.f32.mrb[20].mxu0  ;;  %v679_v2 = vmax.f32 %v663_v61, 0.0 }
 0x11e   :  { %v946_v1 = vpop.f32.mrb[21].mxu0 }
 0x11f   :  { %v680_v3 = vmax.f32 %v664_v63, 0.0  ;;  %v947_v4 = vadd.f32 %v946_v1, %v945_v0  ;;  %v948_v5 = vpop.f32.mrb[22].mxu0 }
 0x120   :  { %v949_v6 = vpop.f32.mrb[23].mxu0 }
 0x121   :  { %v875_v7 = vpack.c.bf16 %v680_v3, %v679_v2  ;;  %v575_v8 = vadd.f32 %v1005_v22, %v947_v4  ;;  %v950_v9 = vadd.f32 %v949_v6, %v948_v5 }
 0x123   :  { %895 = vst [vmem:[%s1279_s3 + $0x20] sm:$0xff] %v875_v7   ;;  %v665_v10 = vadd.f32 %v1234_v55, %v575_v8  ;;  %v578_v11 = vadd.f32 %v1006_v28, %v950_v9 }
 0x125   :  { %v666_v12 = vadd.f32 %v1234_v55, %v578_v11  ;;  %v951_v13 = vpop.f32.mrb[24].mxu0  ;;  %v681_v15 = vmax.f32 %v665_v10, 0.0 }
 0x126   :  { %v952_v14 = vpop.f32.mrb[25].mxu0 }
 0x127   :  { %v682_v16 = vmax.f32 %v666_v12, 0.0  ;;  %v953_v17 = vadd.f32 %v952_v14, %v951_v13  ;;  %v954_v18 = vpop.f32.mrb[26].mxu0 }
 0x128   :  { %v955_v19 = vpop.f32.mrb[27].mxu0 }
 0x129   :  { %v880_v20 = vpack.c.bf16 %v682_v16, %v681_v15  ;;  %v956_v21 = vadd.f32 %v955_v19, %v954_v18  ;;  %v583_v22 = vadd.f32 %v953_v17, %v582_v41 }
 0x12b   :  { %896 = vst [vmem:[%s1279_s3 + $0x28] sm:$0xff] %v880_v20   ;;  %v667_v23 = vadd.f32 %v1234_v55, %v583_v22  ;;  %v586_v24 = vadd.f32 %v956_v21, %v585_v46 }
 0x12d   :  { %v668_v25 = vadd.f32 %v1234_v55, %v586_v24  ;;  %v957_v26 = vpop.f32.mrb[28].mxu0  ;;  %v683_v28 = vmax.f32 %v667_v23, 0.0 }
 0x12e   :  { %v958_v27 = vpop.f32.mrb[29].mxu0 }
 0x12f   :  { %v684_v29 = vmax.f32 %v668_v25, 0.0  ;;  %v959_v30 = vadd.f32 %v958_v27, %v957_v26  ;;  %v960_v31 = vpop.f32.mrb[30].mxu0 }
 0x130   :  { %v961_v32 = vpop.f32.mrb[31].mxu0 }
 0x131   :  { %v885_v33 = vpack.c.bf16 %v684_v29, %v683_v28  ;;  %v591_v34 = vadd.f32 %v1009_v39, %v959_v30  ;;  %v962_v35 = vadd.f32 %v961_v32, %v960_v31 }
 0x133   :  { %897 = vst [vmem:[%s1279_s3 + $0x30] sm:$0xff] %v885_v33   ;;  %v669_v36 = vadd.f32 %v1234_v55, %v591_v34  ;;  %v594_v37 = vadd.f32 %v1010_v45, %v962_v35 }
 0x135   :  { %v670_v38 = vadd.f32 %v1234_v55, %v594_v37  ;;  %v685_v40 = vmax.f32 %v669_v36, 0.0 }
 0x137   :  { %v686_v41 = vmax.f32 %v670_v38, 0.0 }
 0x139   :  { %v890_v42 = vpack.c.bf16 %v686_v41, %v685_v40 }
 0x13b   :  { %898 = vst [vmem:[%s1279_s3 + $0x38] sm:$0xff] %v890_v42  }

// kernel: unet_forward.27
= control target key start
LH: loop header
LB: loop body
LE: loop exit
PB: predicated region body
PF: predicated region fallthrough
CT: control target
= control target key end

     0   :  { %s670_s1 = inlined_call_operand.vmem [shape: bf16[384,128], index: 1, kind: input, shape index: {}]   ;;  %s671_s0 = inlined_call_operand.vmem [shape: bf16[32,384], index: 0, kind: input, shape index: {}]   ;;  %s672_s2 = inlined_call_operand.vmem [shape: f32[1,128], index: 2, kind: input, shape index: {}]   ;;  %s673_s3 = inlined_call_operand.vmem [shape: bf16[32,128], index: 3, kind: output, shape index: {}]  }
   0x1   :  { %v519_v0 = vld [vmem:[%s670_s1 + $0x40] sm:$0xff]   ;;  %v522_v3 = vld [vmem:[%s670_s1 + $0x48] sm:$0xff]   ;;  %v525_v6 = vld [vmem:[%s670_s1 + $0x50] sm:$0xff]  }
   0x2   :  { %v520_v1 = vld [vmem:[%s670_s1] sm:$0xff]   ;;  %461 = vmatprep.subr.bf16.mxu0 %v519_v0  ;;  %v523_v4 = vld [vmem:[%s670_s1 + $0x8] sm:$0xff]   ;;  %v526_v7 = vld [vmem:[%s670_s1 + $0x10] sm:$0xff]  }
   0x3   :  { %v521_v2 = vld [vmem:[%s670_s1 + $0x80] sm:$0xff]   ;;  %462 = vmatpush3.bf16.msra.mxu0 %v520_v1  ;;  %v524_v5 = vld [vmem:[%s670_s1 + $0x88] sm:$0xff]   ;;  %v527_v8 = vld [vmem:[%s670_s1 + $0x90] sm:$0xff]  }
   0x4   :  { %499 = vmatprep.subr.bf16.mxu1 %v521_v2  ;;  %463 = vmatprep.subr.bf16.mxu0 %v522_v3  ;;  %v528_v9 = vld [vmem:[%s670_s1 + $0x58] sm:$0xff]   ;;  %v531_v12 = vld [vmem:[%s670_s1 + $0x60] sm:$0xff]   ;;  %v534_v15 = vld [vmem:[%s670_s1 + $0x68] sm:$0xff]  }
   0x5   :  { %500 = vmatpush3.bf16.msra.mxu1 %v521_v2  ;;  %v529_v10 = vld [vmem:[%s670_s1 + $0x18] sm:$0xff]   ;;  %v533_v13 = vld [vmem:[%s670_s1 + $0xa0] sm:$0xff]   ;;  %v536_v16 = vld [vmem:[%s670_s1 + $0xa8] sm:$0xff]  }
   0x6   :  { %501 = vmatprep.subr.bf16.mxu1 %v524_v5  ;;  %v530_v11 = vld [vmem:[%s670_s1 + $0x98] sm:$0xff]   ;;  %v532_v14 = vld [vmem:[%s670_s1 + $0x20] sm:$0xff]   ;;  %v535_v17 = vld [vmem:[%s670_s1 + $0x28] sm:$0xff]  }
   0x7   :  { %464 = vmatpush3.bf16.msra.mxu0 %v523_v4  ;;  %v537_v18 = vld [vmem:[%s670_s1 + $0x70] sm:$0xff]   ;;  %v540_v21 = vld [vmem:[%s670_s1 + $0x78] sm:$0xff]   ;;  %v543_v26 = vld [vmem:[%s671_s0] ss:$12 sps:$4 sm:$0xff]  }
   0x8   :  { %465 = vmatprep.subr.bf16.mxu0 %v525_v6  ;;  %v538_v19 = vld [vmem:[%s670_s1 + $0x30] sm:$0xff]   ;;  %v542_v22 = vld [vmem:[%s670_s1 + $0xb8] sm:$0xff]   ;;  %v547_v28 = vld [vmem:[%s671_s0 + $0x20] ss:$12 sps:$4 sm:$0xff]  }
   0x9   :  { %502 = vmatpush3.bf16.msra.mxu1 %v524_v5  ;;  %v539_v20 = vld [vmem:[%s670_s1 + $0xb0] sm:$0xff]   ;;  %v541_v25 = vld [vmem:[%s670_s1 + $0x38] sm:$0xff]   ;;  %v441_v37 = vld [vmem:[%s672_s2] ss:$0 sm:$0xff] }
   0xa   :  { %503 = vmatprep.subr.bf16.mxu1 %v527_v8  ;;  %v545_v23 = vld [vmem:[%s671_s0 + $0x4] ss:$12 sps:$4 sm:$0xff]   ;;  %v546_v24 = vld [vmem:[%s671_s0 + $0x8] ss:$12 sps:$4 sm:$0xff]  }
   0xb   :  { %466 = vmatpush3.bf16.msra.mxu0 %v526_v7  ;;  %291 = vmatprep.mubr.bf16.mxu0 %v545_v23  ;;  %v548_v27 = vld [vmem:[%s671_s0 + $0x1c] ss:$12 sps:$4 sm:$0xff]   ;;  %v550_v29 = vld [vmem:[%s671_s0 + $0x18] ss:$12 sps:$4 sm:$0xff]  }
   0xc   :  { %467 = vmatprep.subr.bf16.mxu0 %v528_v9  ;;  %515 = vmatprep.mubr.bf16.mxu1 %v546_v24 }
   0xd   :  { %504 = vmatpush3.bf16.msra.mxu1 %v527_v8 }
   0xe   :  { %505 = vmatprep.subr.bf16.mxu1 %v530_v11 }
   0xf   :  { %468 = vmatpush3.bf16.msra.mxu0 %v529_v10 }
  0x10   :  { %469 = vmatprep.subr.bf16.mxu0 %v531_v12 }
  0x11   :  { %506 = vmatpush3.bf16.msra.mxu1 %v530_v11 }
  0x12   :  { %507 = vmatprep.subr.bf16.mxu1 %v533_v13 }
  0x13   :  { %470 = vmatpush3.bf16.msra.mxu0 %v532_v14 }
  0x14   :  { %471 = vmatprep.subr.bf16.mxu0 %v534_v15 }
  0x15   :  { %508 = vmatpush3.bf16.msra.mxu1 %v533_v13 }
  0x16   :  { %509 = vmatprep.subr.bf16.mxu1 %v536_v16 }
  0x17   :  { %472 = vmatpush3.bf16.msra.mxu0 %v535_v17 }
  0x18   :  { %473 = vmatprep.subr.bf16.mxu0 %v537_v18 }
  0x19   :  { %510 = vmatpush3.bf16.msra.mxu1 %v536_v16 }
  0x1a   :  { %511 = vmatprep.subr.bf16.mxu1 %v539_v20 }
  0x1b   :  { %474 = vmatpush3.bf16.msra.mxu0 %v538_v19 }
  0x1c   :  { %475 = vmatprep.subr.bf16.mxu0 %v540_v21 }
  0x1d   :  { %512 = vmatpush3.bf16.msra.mxu1 %v539_v20 }
  0x1e   :  { %513 = vmatprep.subr.bf16.mxu1 %v542_v22 }
  0x1f   :  { %476 = vmatpush3.bf16.msra.mxu0 %v541_v25 }
  0x21   :  { %514 = vmatpush3.bf16.msra.mxu1 %v542_v22 }
  0x22   :  { %292 = vmatmul.mubr.bf16.vlgmr.msra.gmra.mrb[0].mxu0 %v543_v26 }
  0x23   :  { %299 = vmatprep.mubr.bf16.mxu0 %v548_v27 }
  0x24   :  { %516 = vmatmul.mubr.bf16.vlgmr.msra.gmra.mrb[0].mxu1 %v547_v28 }
  0x2a   :  { %300 = vmatmul.mubr.bf16.gmra.mrb[4].mxu0 %v550_v29 }
  0xf5   :  { %v477_v30 = vpop.f32.mrb[0].mxu0 }
  0xf6   :  { %v478_v31 = vpop.f32.mrb[1].mxu0 }
  0xf7   :  { %v479_v32 = vadd.f32 %v478_v31, %v477_v30  ;;  %v480_v33 = vpop.f32.mrb[2].mxu0  ;;  %v517_v34 = vpop.f32.mrb[0].mxu1 }
  0xf8   :  { %v481_v35 = vpop.f32.mrb[3].mxu0  ;;  %v342_v36 = vpop.f32.mrb[1].mxu1 }
  0xf9   :  { %v482_v38 = vadd.f32 %v481_v35, %v480_v33  ;;  %v343_v39 = vadd.f32 %v479_v32, %v342_v36  ;;  %v518_v40 = vpop.f32.mrb[2].mxu1 }
  0xfa   :  { %v345_v41 = vpop.f32.mrb[3].mxu1 }
  0xfb   :  { %v379_v42 = vadd.f32 %v441_v37, %v343_v39  ;;  %v346_v43 = vadd.f32 %v482_v38, %v345_v41 }
  0xfd   :  { %v380_v44 = vadd.f32 %v441_v37, %v346_v43  ;;  %v483_v45 = vpop.f32.mrb[4].mxu0  ;;  %v383_v47 = vmax.f32 %v379_v42, 0.0 }
  0xfe   :  { %v484_v46 = vpop.f32.mrb[5].mxu0 }
  0xff   :  { %v384_v48 = vmax.f32 %v380_v44, 0.0  ;;  %v485_v49 = vadd.f32 %v484_v46, %v483_v45  ;;  %v486_v50 = vpop.f32.mrb[6].mxu0 }
 0x100   :  { %v487_v51 = vpop.f32.mrb[7].mxu0 }
 0x101   :  { %v453_v52 = vpack.c.bf16 %v384_v48, %v383_v47  ;;  %v351_v53 = vadd.f32 %v517_v34, %v485_v49  ;;  %v488_v54 = vadd.f32 %v487_v51, %v486_v50 }
 0x103   :  { %454 = vst [vmem:[%s673_s3] sm:$0xff] %v453_v52   ;;  %v381_v55 = vadd.f32 %v441_v37, %v351_v53  ;;  %v354_v56 = vadd.f32 %v518_v40, %v488_v54 }
 0x105   :  { %v382_v57 = vadd.f32 %v441_v37, %v354_v56  ;;  %v385_v58 = vmax.f32 %v381_v55, 0.0 }
 0x107   :  { %v386_v59 = vmax.f32 %v382_v57, 0.0 }
 0x109   :  { %v458_v60 = vpack.c.bf16 %v386_v59, %v385_v58 }
 0x10b   :  { %460 = vst [vmem:[%s673_s3 + $0x8] sm:$0xff] %v458_v60  }

// kernel: unet_forward.28
= control target key start
LH: loop header
LB: loop body
LE: loop exit
PB: predicated region body
PF: predicated region fallthrough
CT: control target
= control target key end

     0   :  { %s1001_s1 = inlined_call_operand.vmem [shape: bf16[640,128], index: 1, kind: input, shape index: {}]   ;;  %s1002_s0 = inlined_call_operand.vmem [shape: bf16[32,640], index: 0, kind: input, shape index: {}]   ;;  %s1003_s2 = inlined_call_operand.vmem [shape: f32[1,128], index: 2, kind: input, shape index: {}]   ;;  %s1004_s3 = inlined_call_operand.vmem [shape: bf16[32,128], index: 3, kind: output, shape index: {}]  }
   0x1   :  { %v768_v0 = vld [vmem:[%s1001_s1 + $0x40] sm:$0xff]   ;;  %v772_v4 = vld [vmem:[%s1001_s1 + $0x48] sm:$0xff]   ;;  %v776_v8 = vld [vmem:[%s1001_s1 + $0x50] sm:$0xff]  }
   0x2   :  { %v769_v1 = vld [vmem:[%s1001_s1 + $0xc0] sm:$0xff]   ;;  %682 = vmatprep.subr.bf16.mxu0 %v768_v0  ;;  %v773_v5 = vld [vmem:[%s1001_s1 + $0xc8] sm:$0xff]   ;;  %v777_v9 = vld [vmem:[%s1001_s1 + $0xd0] sm:$0xff]  }
   0x3   :  { %v770_v2 = vld [vmem:[%s1001_s1] sm:$0xff]   ;;  %710 = vmatprep.subr.bf16.mxu1 %v769_v1  ;;  %v774_v6 = vld [vmem:[%s1001_s1 + $0x8] sm:$0xff]   ;;  %v778_v10 = vld [vmem:[%s1001_s1 + $0x10] sm:$0xff]  }
   0x4   :  { %v771_v3 = vld [vmem:[%s1001_s1 + $0x80] sm:$0xff]   ;;  %683 = vmatpush3.bf16.msra.mxu0 %v770_v2  ;;  %v775_v7 = vld [vmem:[%s1001_s1 + $0x88] sm:$0xff]   ;;  %v779_v11 = vld [vmem:[%s1001_s1 + $0x90] sm:$0xff]  }
   0x5   :  { %711 = vmatpush3.bf16.msra.mxu1 %v771_v3  ;;  %684 = vmatprep.subr.bf16.mxu0 %v772_v4  ;;  %v780_v12 = vld [vmem:[%s1001_s1 + $0x58] sm:$0xff]   ;;  %v784_v16 = vld [vmem:[%s1001_s1 + $0x60] sm:$0xff]   ;;  %v788_v20 = vld [vmem:[%s1001_s1 + $0x68] sm:$0xff]  }
   0x6   :  { %712 = vmatprep.subr.bf16.mxu1 %v773_v5  ;;  %v781_v13 = vld [vmem:[%s1001_s1 + $0xd8] sm:$0xff]   ;;  %v785_v17 = vld [vmem:[%s1001_s1 + $0xe0] sm:$0xff]   ;;  %v789_v21 = vld [vmem:[%s1001_s1 + $0xe8] sm:$0xff]  }
   0x7   :  { %v782_v14 = vld [vmem:[%s1001_s1 + $0x18] sm:$0xff]   ;;  %v786_v18 = vld [vmem:[%s1001_s1 + $0x20] sm:$0xff]   ;;  %v790_v22 = vld [vmem:[%s1001_s1 + $0x28] sm:$0xff]  }
   0x8   :  { %685 = vmatpush3.bf16.msra.mxu0 %v774_v6  ;;  %v783_v15 = vld [vmem:[%s1001_s1 + $0x98] sm:$0xff]   ;;  %v787_v19 = vld [vmem:[%s1001_s1 + $0xa0] sm:$0xff]   ;;  %v791_v23 = vld [vmem:[%s1001_s1 + $0xa8] sm:$0xff]  }
   0x9   :  { %713 = vmatpush3.bf16.msra.mxu1 %v775_v7  ;;  %686 = vmatprep.subr.bf16.mxu0 %v776_v8  ;;  %v792_v24 = vld [vmem:[%s1001_s1 + $0x70] sm:$0xff]   ;;  %v796_v28 = vld [vmem:[%s1001_s1 + $0x78] sm:$0xff]   ;;  %v805_v35 = vld [vmem:[%s1002_s0 + $0xc] ss:$20 sps:$4 sm:$0xff]  }
   0xa   :  { %714 = vmatprep.subr.bf16.mxu1 %v777_v9  ;;  %v793_v25 = vld [vmem:[%s1001_s1 + $0xf0] sm:$0xff]   ;;  %v797_v29 = vld [vmem:[%s1001_s1 + $0xf8] sm:$0xff]   ;;  %v806_v36 = vld [vmem:[%s1001_s1 + $0x100] sm:$0xff]   ;;  %492 = vmatprep.mubr.bf16.mxu1 %v805_v35 }
   0xb   :  { %v794_v26 = vld [vmem:[%s1001_s1 + $0x30] sm:$0xff]   ;;  %v798_v30 = vld [vmem:[%s1001_s1 + $0x38] sm:$0xff]   ;;  %v807_v37 = vld [vmem:[%s1001_s1 + $0x108] sm:$0xff]  }
   0xc   :  { %687 = vmatpush3.bf16.msra.mxu0 %v778_v10  ;;  %v795_v27 = vld [vmem:[%s1001_s1 + $0xb0] sm:$0xff]   ;;  %v799_v31 = vld [vmem:[%s1001_s1 + $0xb8] sm:$0xff]   ;;  %v811_v39 = vld [vmem:[%s1002_s0 + $0x2c] ss:$20 sps:$4 sm:$0xff]  }
   0xd   :  { %715 = vmatpush3.bf16.msra.mxu1 %v779_v11  ;;  %688 = vmatprep.subr.bf16.mxu0 %v780_v12  ;;  %v800_v32 = vld [vmem:[%s1002_s0] ss:$20 sps:$4 sm:$0xff]   ;;  %v802_v33 = vld [vmem:[%s1002_s0 + $0x4] ss:$20 sps:$4 sm:$0xff]   ;;  %v803_v34 = vld [vmem:[%s1002_s0 + $0x8] ss:$20 sps:$4 sm:$0xff]  }
   0xe   :  { %716 = vmatprep.subr.bf16.mxu1 %v781_v13  ;;  %443 = vmatprep.mubr.bf16.mxu0 %v802_v33  ;;  %v808_v38 = vld [vmem:[%s1001_s1 + $0x110] sm:$0xff]   ;;  %v809_v41 = vld [vmem:[%s1001_s1 + $0x118] sm:$0xff]   ;;  %v810_v45 = vld [vmem:[%s1001_s1 + $0x120] sm:$0xff]  }
   0xf   :  { %v813_v40 = vld [vmem:[%s1002_s0 + $0x34] ss:$20 sps:$4 sm:$0xff]   ;;  %v817_v43 = vld [vmem:[%s1002_s0 + $0x30] ss:$20 sps:$4 sm:$0xff]   ;;  %v819_v48 = vld [vmem:[%s1001_s1 + $0x138] sm:$0xff]  }
  0x10   :  { %689 = vmatpush3.bf16.msra.mxu0 %v782_v14  ;;  %v816_v42 = vld [vmem:[%s1002_s0 + $0x28] ss:$20 sps:$4 sm:$0xff]   ;;  %v820_v44 = vld [vmem:[%s1002_s0 + $0x10] ss:$20 sps:$4 sm:$0xff]   ;;  %v821_v49 = vld [vmem:[%s1002_s0 + $0x38] ss:$20 sps:$4 sm:$0xff]  }
  0x11   :  { %717 = vmatpush3.bf16.msra.mxu1 %v783_v15  ;;  %690 = vmatprep.subr.bf16.mxu0 %v784_v16  ;;  %v815_v46 = vld [vmem:[%s1001_s1 + $0x128] sm:$0xff]   ;;  %v818_v47 = vld [vmem:[%s1001_s1 + $0x130] sm:$0xff]   ;;  %v662_v15 = vld [vmem:[%s1003_s2] ss:$0 sm:$0xff] }
  0x12   :  { %718 = vmatprep.subr.bf16.mxu1 %v785_v17 }
  0x14   :  { %691 = vmatpush3.bf16.msra.mxu0 %v786_v18 }
  0x15   :  { %719 = vmatpush3.bf16.msra.mxu1 %v787_v19  ;;  %692 = vmatprep.subr.bf16.mxu0 %v788_v20 }
  0x16   :  { %720 = vmatprep.subr.bf16.mxu1 %v789_v21 }
  0x18   :  { %693 = vmatpush3.bf16.msra.mxu0 %v790_v22 }
  0x19   :  { %721 = vmatpush3.bf16.msra.mxu1 %v791_v23  ;;  %694 = vmatprep.subr.bf16.mxu0 %v792_v24 }
  0x1a   :  { %722 = vmatprep.subr.bf16.mxu1 %v793_v25 }
  0x1c   :  { %695 = vmatpush3.bf16.msra.mxu0 %v794_v26 }
  0x1d   :  { %723 = vmatpush3.bf16.msra.mxu1 %v795_v27  ;;  %696 = vmatprep.subr.bf16.mxu0 %v796_v28 }
  0x1e   :  { %724 = vmatprep.subr.bf16.mxu1 %v797_v29 }
  0x20   :  { %697 = vmatpush3.bf16.msra.mxu0 %v798_v30 }
  0x21   :  { %725 = vmatpush3.bf16.msra.mxu1 %v799_v31  ;;  %748 = vmatprep.subr.bf16.mxu0 %v806_v36 }
  0x23   :  { %444 = vmatmul.mubr.bf16.vlgmr.msra.gmra.mrb[0].mxu0 %v800_v32 }
  0x24   :  { %493 = vmatmul.mubr.bf16.vlgmr.msra.gmra.mrb[0].mxu1 %v803_v34  ;;  %749 = vmatpush3.bf16.msra.mxu0 %v806_v36 }
  0x25   :  { %750 = vmatprep.subr.bf16.mxu0 %v807_v37  ;;  %451 = vmatprep.mubr.bf16.mxu0 %v811_v39 }
  0x26   :  { %500 = vmatprep.mubr.bf16.mxu1 %v813_v40 }
  0x28   :  { %751 = vmatpush3.bf16.msra.mxu0 %v807_v37 }
  0x29   :  { %752 = vmatprep.subr.bf16.mxu0 %v808_v38 }
  0x2b   :  { %452 = vmatmul.mubr.bf16.gmra.mrb[4].mxu0 %v816_v42 }
  0x2c   :  { %501 = vmatmul.mubr.bf16.gmra.mrb[4].mxu1 %v817_v43  ;;  %753 = vmatpush3.bf16.msra.mxu0 %v808_v38 }
  0x2d   :  { %754 = vmatprep.subr.bf16.mxu0 %v809_v41  ;;  %764 = vmatprep.mubr.bf16.mxu0 %v820_v44 }
  0x30   :  { %755 = vmatpush3.bf16.msra.mxu0 %v809_v41 }
  0x31   :  { %756 = vmatprep.subr.bf16.mxu0 %v810_v45 }
  0x34   :  { %757 = vmatpush3.bf16.msra.mxu0 %v810_v45 }
  0x35   :  { %758 = vmatprep.subr.bf16.mxu0 %v815_v46 }
  0x38   :  { %759 = vmatpush3.bf16.msra.mxu0 %v815_v46 }
  0x39   :  { %760 = vmatprep.subr.bf16.mxu0 %v818_v47 }
  0x3c   :  { %761 = vmatpush3.bf16.msra.mxu0 %v818_v47 }
  0x3d   :  { %762 = vmatprep.subr.bf16.mxu0 %v819_v48 }
  0x40   :  { %763 = vmatpush3.bf16.msra.mxu0 %v819_v48 }
  0x43   :  { %765 = vmatmul.mubr.bf16.vlgmr.msra.gmra.mrb[8].mxu0 %v821_v49 }
  0xf6   :  { %v698_v50 = vpop.f32.mrb[0].mxu0 }
  0xf7   :  { %v726_v51 = vpop.f32.mrb[0].mxu1  ;;  %v699_v52 = vpop.f32.mrb[1].mxu0 }
  0xf8   :  { %v700_v53 = vadd.f32 %v699_v52, %v698_v50  ;;  %v727_v54 = vpop.f32.mrb[1].mxu1  ;;  %v701_v55 = vpop.f32.mrb[2].mxu0 }
  0xf9   :  { %v728_v56 = vadd.f32 %v727_v54, %v726_v51  ;;  %v729_v57 = vpop.f32.mrb[2].mxu1  ;;  %v702_v58 = vpop.f32.mrb[3].mxu0 }
  0xfa   :  { %v703_v59 = vadd.f32 %v702_v58, %v701_v55  ;;  %v730_v60 = vpop.f32.mrb[3].mxu1 }
  0xfb   :  { %v731_v61 = vadd.f32 %v730_v60, %v729_v57  ;;  %v495_v62 = vadd.f32 %v728_v56, %v700_v53 }
  0xfd   :  { %v498_v63 = vadd.f32 %v731_v61, %v703_v59 }
  0xfe   :  { %v704_v0 = vpop.f32.mrb[4].mxu0 }
  0xff   :  { %v732_v1 = vpop.f32.mrb[4].mxu1  ;;  %v705_v2 = vpop.f32.mrb[5].mxu0 }
 0x100   :  { %v706_v3 = vadd.f32 %v705_v2, %v704_v0  ;;  %v733_v4 = vpop.f32.mrb[5].mxu1  ;;  %v707_v5 = vpop.f32.mrb[6].mxu0 }
 0x101   :  { %v734_v6 = vadd.f32 %v733_v4, %v732_v1  ;;  %v735_v7 = vpop.f32.mrb[6].mxu1  ;;  %v708_v8 = vpop.f32.mrb[7].mxu0 }
 0x102   :  { %v709_v9 = vadd.f32 %v708_v8, %v707_v5  ;;  %v736_v10 = vpop.f32.mrb[7].mxu1 }
 0x103   :  { %v737_v11 = vadd.f32 %v736_v10, %v735_v7  ;;  %v503_v12 = vadd.f32 %v734_v6, %v706_v3 }
 0x105   :  { %v506_v13 = vadd.f32 %v737_v11, %v709_v9 }
 0x116   :  { %v766_v14 = vpop.f32.mrb[8].mxu0 }
 0x117   :  { %v552_v16 = vadd.f32 %v766_v14, %v503_v12  ;;  %v543_v17 = vpop.f32.mrb[9].mxu0 }
 0x118   :  { %v544_v18 = vadd.f32 %v543_v17, %v495_v62  ;;  %v767_v19 = vpop.f32.mrb[10].mxu0 }
 0x119   :  { %v582_v20 = vadd.f32 %v662_v15, %v552_v16  ;;  %v555_v21 = vadd.f32 %v767_v19, %v506_v13  ;;  %v546_v22 = vpop.f32.mrb[11].mxu0 }
 0x11a   :  { %v580_v23 = vadd.f32 %v662_v15, %v544_v18  ;;  %v547_v24 = vadd.f32 %v546_v22, %v498_v63 }
 0x11b   :  { %v583_v25 = vadd.f32 %v662_v15, %v555_v21  ;;  %v586_v27 = vmax.f32 %v582_v20, 0.0 }
 0x11c   :  { %v581_v26 = vadd.f32 %v662_v15, %v547_v24  ;;  %v584_v29 = vmax.f32 %v580_v23, 0.0 }
 0x11d   :  { %v587_v28 = vmax.f32 %v583_v25, 0.0 }
 0x11e   :  { %v585_v30 = vmax.f32 %v581_v26, 0.0 }
 0x11f   :  { %v679_v31 = vpack.c.bf16 %v587_v28, %v586_v27 }
 0x120   :  { %v674_v32 = vpack.c.bf16 %v585_v30, %v584_v29 }
 0x121   :  { %681 = vst [vmem:[%s1004_s3 + $0x8] sm:$0xff] %v679_v31  }
 0x122   :  { %675 = vst [vmem:[%s1004_s3] sm:$0xff] %v674_v32  }

// kernel: unet_forward.29
= control target key start
LH: loop header
LB: loop body
LE: loop exit
PB: predicated region body
PF: predicated region fallthrough
CT: control target
= control target key end

     0   :  { %v669_v36 = vmov 0.0   ;;  %vm670_vm0 = vmmov 0   ;;  %s826_s1 = inlined_call_operand.vmem [shape: bf16[640,128], index: 1, kind: input, shape index: {}]   ;;  %s827_s0 = inlined_call_operand.vmem [shape: bf16[8,640], index: 0, kind: input, shape index: {}]   ;;  %s828_s2 = inlined_call_operand.vmem [shape: f32[1,128], index: 2, kind: input, shape index: {}]   ;;  %s829_s3 = inlined_call_operand.vmem [shape: bf16[8,128], index: 3, kind: output, shape index: {}]  }
   0x1   :  { %v624_v0 = vld [vmem:[%s826_s1 + $0x40] sm:$0xff]   ;;  %v628_v4 = vld [vmem:[%s826_s1 + $0x48] sm:$0xff]   ;;  %v632_v8 = vld [vmem:[%s826_s1 + $0x50] sm:$0xff]  }
   0x2   :  { %v625_v1 = vld [vmem:[%s826_s1 + $0xc0] sm:$0xff]   ;;  %549 = vmatprep.subr.bf16.mxu0 %v624_v0  ;;  %v629_v5 = vld [vmem:[%s826_s1 + $0xc8] sm:$0xff]   ;;  %v633_v9 = vld [vmem:[%s826_s1 + $0xd0] sm:$0xff]  }
   0x3   :  { %v626_v2 = vld [vmem:[%s826_s1] sm:$0xff]   ;;  %571 = vmatprep.subr.bf16.mxu1 %v625_v1  ;;  %v630_v6 = vld [vmem:[%s826_s1 + $0x8] sm:$0xff]   ;;  %v634_v10 = vld [vmem:[%s826_s1 + $0x10] sm:$0xff]  }
   0x4   :  { %v627_v3 = vld [vmem:[%s826_s1 + $0x80] sm:$0xff]   ;;  %550 = vmatpush3.bf16.msra.mxu0 %v626_v2  ;;  %v631_v7 = vld [vmem:[%s826_s1 + $0x88] sm:$0xff]   ;;  %v635_v11 = vld [vmem:[%s826_s1 + $0x90] sm:$0xff]  }
   0x5   :  { %572 = vmatpush3.bf16.msra.mxu1 %v627_v3  ;;  %551 = vmatprep.subr.bf16.mxu0 %v628_v4  ;;  %v636_v12 = vld [vmem:[%s826_s1 + $0x58] sm:$0xff]   ;;  %v640_v16 = vld [vmem:[%s826_s1 + $0x60] sm:$0xff]   ;;  %v644_v20 = vld [vmem:[%s826_s1 + $0x68] sm:$0xff]  }
   0x6   :  { %573 = vmatprep.subr.bf16.mxu1 %v629_v5  ;;  %v637_v13 = vld [vmem:[%s826_s1 + $0xd8] sm:$0xff]   ;;  %v641_v17 = vld [vmem:[%s826_s1 + $0xe0] sm:$0xff]   ;;  %v645_v21 = vld [vmem:[%s826_s1 + $0xe8] sm:$0xff]  }
   0x7   :  { %v638_v14 = vld [vmem:[%s826_s1 + $0x18] sm:$0xff]   ;;  %v642_v18 = vld [vmem:[%s826_s1 + $0x20] sm:$0xff]   ;;  %v646_v22 = vld [vmem:[%s826_s1 + $0x28] sm:$0xff]  }
   0x8   :  { %552 = vmatpush3.bf16.msra.mxu0 %v630_v6  ;;  %v639_v15 = vld [vmem:[%s826_s1 + $0x98] sm:$0xff]   ;;  %v643_v19 = vld [vmem:[%s826_s1 + $0xa0] sm:$0xff]   ;;  %v647_v23 = vld [vmem:[%s826_s1 + $0xa8] sm:$0xff]  }
   0x9   :  { %574 = vmatpush3.bf16.msra.mxu1 %v631_v7  ;;  %553 = vmatprep.subr.bf16.mxu0 %v632_v8  ;;  %v648_v24 = vld [vmem:[%s826_s1 + $0x70] sm:$0xff]   ;;  %v652_v28 = vld [vmem:[%s826_s1 + $0x78] sm:$0xff]   ;;  %v21_v32 = vld [vmem:[%s827_s0] sm:$0xff] }
   0xa   :  { %575 = vmatprep.subr.bf16.mxu1 %v633_v9  ;;  %v649_v25 = vld [vmem:[%s826_s1 + $0xf0] sm:$0xff]   ;;  %v653_v29 = vld [vmem:[%s826_s1 + $0xf8] sm:$0xff]   ;;  %v503_v33 = vcombine.low %v21_v32, %v21_v32  ;;  %v504_v34 = vcombine.high %v21_v32, %v21_v32  ;;  %v22_v35 = vld [vmem:[%s827_s0 + $0x8] sm:$0xff] }
   0xb   :  { %v650_v26 = vld [vmem:[%s826_s1 + $0x30] sm:$0xff]   ;;  %v654_v30 = vld [vmem:[%s826_s1 + $0x38] sm:$0xff]   ;;  %v505_v37 = vcombine.low %v22_v35, %v22_v35  ;;  %v506_v38 = vcombine.high %v22_v35, %v22_v35  ;;  %v661_v39 = vld [vmem:[%s826_s1 + $0x100] sm:$0xff]  }
   0xc   :  { %554 = vmatpush3.bf16.msra.mxu0 %v634_v10  ;;  %v651_v27 = vld [vmem:[%s826_s1 + $0xb0] sm:$0xff]   ;;  %v655_v31 = vld [vmem:[%s826_s1 + $0xb8] sm:$0xff]   ;;  %394 = vmatprep.mubr.bf16.mxu0 %v504_v34  ;;  %v662_v40 = vld [vmem:[%s826_s1 + $0x108] sm:$0xff]  }
   0xd   :  { %576 = vmatpush3.bf16.msra.mxu1 %v635_v11  ;;  %555 = vmatprep.subr.bf16.mxu0 %v636_v12  ;;  %v663_v41 = vld [vmem:[%s826_s1 + $0x110] sm:$0xff]   ;;  %v664_v42 = vld [vmem:[%s826_s1 + $0x118] sm:$0xff]   ;;  %v665_v43 = vld [vmem:[%s826_s1 + $0x120] sm:$0xff]  }
   0xe   :  { %577 = vmatprep.subr.bf16.mxu1 %v637_v13  ;;  %434 = vmatprep.mubr.bf16.mxu1 %v506_v38  ;;  %v666_v44 = vld [vmem:[%s826_s1 + $0x128] sm:$0xff]   ;;  %v667_v45 = vld [vmem:[%s826_s1 + $0x130] sm:$0xff]   ;;  %v668_v46 = vld [vmem:[%s826_s1 + $0x138] sm:$0xff]  }
   0xf   :  { %v658_v47 = vld [vmem:[%s827_s0 + $0x10] ss:$0 sps:$4 sm:$0xff]   ;;  %v548_v60 = vld [vmem:[%s828_s2] ss:$0 sm:$0xff] }
  0x10   :  { %556 = vmatpush3.bf16.msra.mxu0 %v638_v14 }
  0x11   :  { %578 = vmatpush3.bf16.msra.mxu1 %v639_v15  ;;  %557 = vmatprep.subr.bf16.mxu0 %v640_v16 }
  0x12   :  { %579 = vmatprep.subr.bf16.mxu1 %v641_v17 }
  0x14   :  { %558 = vmatpush3.bf16.msra.mxu0 %v642_v18 }
  0x15   :  { %580 = vmatpush3.bf16.msra.mxu1 %v643_v19  ;;  %559 = vmatprep.subr.bf16.mxu0 %v644_v20 }
  0x16   :  { %581 = vmatprep.subr.bf16.mxu1 %v645_v21 }
  0x18   :  { %560 = vmatpush3.bf16.msra.mxu0 %v646_v22 }
  0x19   :  { %582 = vmatpush3.bf16.msra.mxu1 %v647_v23  ;;  %561 = vmatprep.subr.bf16.mxu0 %v648_v24 }
  0x1a   :  { %583 = vmatprep.subr.bf16.mxu1 %v649_v25 }
  0x1c   :  { %562 = vmatpush3.bf16.msra.mxu0 %v650_v26 }
  0x1d   :  { %584 = vmatpush3.bf16.msra.mxu1 %v651_v27  ;;  %563 = vmatprep.subr.bf16.mxu0 %v652_v28 }
  0x1e   :  { %585 = vmatprep.subr.bf16.mxu1 %v653_v29 }
  0x20   :  { %564 = vmatpush3.bf16.msra.mxu0 %v654_v30 }
  0x21   :  { %586 = vmatpush3.bf16.msra.mxu1 %v655_v31  ;;  %602 = vmatprep.subr.bf16.mxu0 %v669_v36 }
  0x23   :  { %395 = vmatmul.mubr.bf16.vlgmr.msra.gmra.mrb[0].mxu0 %v503_v33 }
  0x24   :  { %435 = vmatmul.mubr.bf16.vlgmr.msra.gmra.mrb[0].mxu1 %v505_v37  ;;  %603 = vmatpush3.bf16.msra.mxu0 %v661_v39 }
  0x25   :  { %604 = vmatprep.subr.bf16.mxu0 %v669_v36  ;;  %618 = vmatprep.mubr.msk.bf16.mxu0 %vm670_vm0, %v669_v36 }
  0x28   :  { %605 = vmatpush3.bf16.msra.mxu0 %v662_v40 }
  0x29   :  { %606 = vmatprep.subr.bf16.mxu0 %v669_v36 }
  0x2c   :  { %607 = vmatpush3.bf16.msra.mxu0 %v663_v41 }
  0x2d   :  { %608 = vmatprep.subr.bf16.mxu0 %v669_v36 }
  0x30   :  { %609 = vmatpush3.bf16.msra.mxu0 %v664_v42 }
  0x31   :  { %610 = vmatprep.subr.bf16.mxu0 %v669_v36 }
  0x34   :  { %611 = vmatpush3.bf16.msra.mxu0 %v665_v43 }
  0x35   :  { %612 = vmatprep.subr.bf16.mxu0 %v669_v36 }
  0x38   :  { %613 = vmatpush3.bf16.msra.mxu0 %v666_v44 }
  0x39   :  { %614 = vmatprep.subr.bf16.mxu0 %v669_v36 }
  0x3c   :  { %615 = vmatpush3.bf16.msra.mxu0 %v667_v45 }
  0x3d   :  { %616 = vmatprep.subr.bf16.mxu0 %v669_v36 }
  0x40   :  { %617 = vmatpush3.bf16.msra.mxu0 %v668_v46 }
  0x43   :  { %619 = vmatmul.mubr.bf16.vlgmr.msra.gmra.mrb[4].mxu0 %v658_v47 }
  0xf6   :  { %v565_v48 = vpop.f32.mrb[0].mxu0 }
  0xf7   :  { %v587_v49 = vpop.f32.mrb[0].mxu1  ;;  %v566_v50 = vpop.f32.mrb[1].mxu0 }
  0xf8   :  { %v567_v51 = vadd.f32 %v566_v50, %v565_v48  ;;  %v588_v52 = vpop.f32.mrb[1].mxu1  ;;  %v568_v53 = vpop.f32.mrb[2].mxu0 }
  0xf9   :  { %v589_v54 = vadd.f32 %v588_v52, %v587_v49  ;;  %v569_v55 = vpop.f32.mrb[3].mxu0  ;;  %v590_v56 = vpop.f32.mrb[2].mxu1 }
  0xfa   :  { %v591_v57 = vpop.f32.mrb[3].mxu1 }
  0xfb   :  { %v437_v58 = vadd.f32 %v589_v54, %v567_v51 }
 0x116   :  { %v476_v59 = vpop.f32.mrb[4].mxu0 }
 0x117   :  { %v477_v61 = vadd.f32 %v476_v59, %v437_v58  ;;  %v620_v62 = vpop.f32.mrb[5].mxu0 }
 0x118   :  { %v479_v63 = vpop.f32.mrb[6].mxu0 }
 0x119   :  { %v495_v0 = vadd.f32 %v548_v60, %v477_v61  ;;  %v621_v1 = vpop.f32.mrb[7].mxu0 }
 0x11b   :  { %v496_v2 = vmax.f32 %v495_v0, 0.0 }
 0x11d   :  { %v497_v3 = vpack.c.bf16 %v496_v2, %v496_v2 }
 0x11f   :  { %498 = vst [vmem:[%s829_s3] sm:$0xf] %v497_v3 }

// kernel: unet_forward.30
= control target key start
LH: loop header
LB: loop body
LE: loop exit
PB: predicated region body
PF: predicated region fallthrough
CT: control target
= control target key end

     0   :  { %s1100_s12 = smov 0   ;;  %s1102_s13 = smov 0   ;;  %s1192_s0 = inlined_call_operand.vmem [shape: bf16[8,1280], index: 0, kind: input, shape index: {}]   ;;  %s1193_s1 = inlined_call_operand.vmem [shape: bf16[1280,128], index: 1, kind: input, shape index: {}]   ;;  %s1194_s2 = inlined_call_operand.vmem [shape: f32[1,128], index: 2, kind: input, shape index: {}]   ;;  %s1195_s3 = inlined_call_operand.vmem [shape: bf16[8,128], index: 3, kind: output, shape index: {}]  }
   0x1   :  { %s1104_s14 = smov 0  }
   0x2 LB: > { %s25_s15 = sadd.s32 1, %s1071_s13  ;;  %p854_p0 = scmp.ge.s32.totalorder %s1075_s14, 1  ;;  %s1075_s14 = sphi %s1104_s14, %s13_s14   ;;  %s1071_s13 = sphi %s1102_s13, %s1197_s13   ;;  %s1067_s12 = sphi %s1100_s12, %s1196_s12  }
   0x3   : > { %p26_p1 = scmp.ge.s32.totalorder %s25_s15, 2  ;;  %p189_p2 = scmp.lt.s32.totalorder %s1075_s14, 3 }
   0x5   : > { %s1199_s15 = smov (%p26_p1, %s25_s15), 0  ;;  %p190_p3 = pnand %p854_p0, %p189_p2 }
   0x6   : > { %s230_s16 = smul.u32 (!%p190_p3), 5, %s1067_s12  ;;  %p857_p6 = scmp.ne.s32.totalorder (!%p190_p3), %s1067_s12, 0 }
   0x7   : > { %193 = sbr.rel (%p190_p3) target bundleno = 321 (0x141), region = 32 }
   0x8   : > { %s240_s17 = smul.u32 (!%p190_p3), 80, %s1067_s12  ;;  %p233_p4 = scmp.lt.s32.totalorder (!%p190_p3), %s230_s16, 9 }
   0xa   : > { %p241_p5 = scmp.lt.s32.totalorder (!%p190_p3), %s240_s17, 159 }
   0xe   : > { %s1201_s16 = smov (!%p233_p4, %s230_s16), 9  ;;  %s1203_s17 = smov (!%p241_p5, %s240_s17), 159 }
   0xf   : > { %s855_s18 = sshll.u32 %s1201_s16, 2  ;;  %s856_s22 = sshll.u32 %s1203_s17, 2  ;;  %v1077_v0 = vmov (!%p857_p6), 0.0  }
  0x10   : > { %s1125_s21 = scalar_lea.vmem %s1192_s0, %s855_s18  ;;  %s1130_s25 = scalar_lea.vmem %s1193_s1, %s856_s22  ;;  %264 = vst [vmem:[#allocation2] sm:$0xff] (!%p857_p6), %v1077_v0 }
  0x11   : > { %263 = sbr.rel (%p857_p6) target bundleno = 24 (0x18), region = 36 }
  0x18 PF: > { %v1008_v1 = vld [vmem:[%s1130_s25 + $0x40] sm:$0xff]   ;;  %v1012_v5 = vld [vmem:[%s1130_s25 + $0x48] sm:$0xff]   ;;  %v1016_v9 = vld [vmem:[%s1130_s25 + $0x50] sm:$0xff]   ;;  %v1078_v40 = vmov 0.0   ;;  %vm1079_vm0 = vmmov 0   ;;  %p903_p7 = scmp.ne.s32.totalorder %s1067_s12, 1 }
  0x19   : > { %v1009_v2 = vld [vmem:[%s1130_s25 + $0xc0] sm:$0xff]   ;;  %908 = vmatprep.subr.bf16.mxu0 %v1008_v1  ;;  %v1013_v6 = vld [vmem:[%s1130_s25 + $0xc8] sm:$0xff]   ;;  %v1017_v10 = vld [vmem:[%s1130_s25 + $0xd0] sm:$0xff]  }
  0x1a   : > { %v1010_v3 = vld [vmem:[%s1130_s25] sm:$0xff]   ;;  %930 = vmatprep.subr.bf16.mxu1 %v1009_v2  ;;  %v1014_v7 = vld [vmem:[%s1130_s25 + $0x8] sm:$0xff]   ;;  %v1018_v11 = vld [vmem:[%s1130_s25 + $0x10] sm:$0xff]  }
  0x1b   : > { %v1011_v4 = vld [vmem:[%s1130_s25 + $0x80] sm:$0xff]   ;;  %909 = vmatpush3.bf16.msra.mxu0 %v1010_v3  ;;  %v1015_v8 = vld [vmem:[%s1130_s25 + $0x88] sm:$0xff]   ;;  %v1019_v12 = vld [vmem:[%s1130_s25 + $0x90] sm:$0xff]  }
  0x1c   : > { %931 = vmatpush3.bf16.msra.mxu1 %v1011_v4  ;;  %910 = vmatprep.subr.bf16.mxu0 %v1012_v5  ;;  %v1020_v13 = vld [vmem:[%s1130_s25 + $0x58] sm:$0xff]   ;;  %v1024_v17 = vld [vmem:[%s1130_s25 + $0x60] sm:$0xff]   ;;  %v1028_v21 = vld [vmem:[%s1130_s25 + $0x68] sm:$0xff]  }
  0x1d   : > { %932 = vmatprep.subr.bf16.mxu1 %v1013_v6  ;;  %v1021_v14 = vld [vmem:[%s1130_s25 + $0xd8] sm:$0xff]   ;;  %v1025_v18 = vld [vmem:[%s1130_s25 + $0xe0] sm:$0xff]   ;;  %v1029_v22 = vld [vmem:[%s1130_s25 + $0xe8] sm:$0xff]  }
  0x1e   : > { %v1022_v15 = vld [vmem:[%s1130_s25 + $0x18] sm:$0xff]   ;;  %v1026_v19 = vld [vmem:[%s1130_s25 + $0x20] sm:$0xff]   ;;  %v1030_v23 = vld [vmem:[%s1130_s25 + $0x28] sm:$0xff]  }
  0x1f   : > { %911 = vmatpush3.bf16.msra.mxu0 %v1014_v7  ;;  %v1023_v16 = vld [vmem:[%s1130_s25 + $0x98] sm:$0xff]   ;;  %v1027_v20 = vld [vmem:[%s1130_s25 + $0xa0] sm:$0xff]   ;;  %v1031_v24 = vld [vmem:[%s1130_s25 + $0xa8] sm:$0xff]  }
  0x20   : > { %933 = vmatpush3.bf16.msra.mxu1 %v1015_v8  ;;  %912 = vmatprep.subr.bf16.mxu0 %v1016_v9  ;;  %v1032_v25 = vld [vmem:[%s1130_s25 + $0x70] sm:$0xff]   ;;  %v1036_v29 = vld [vmem:[%s1130_s25 + $0x78] sm:$0xff]   ;;  %v266_v33 = vld [vmem:[%s1125_s21] sm:$0xff] }
  0x21   : > { %934 = vmatprep.subr.bf16.mxu1 %v1017_v10  ;;  %v1033_v26 = vld [vmem:[%s1130_s25 + $0xf0] sm:$0xff]   ;;  %v1037_v30 = vld [vmem:[%s1130_s25 + $0xf8] sm:$0xff]   ;;  %v267_v34 = vld [vmem:[%s1125_s21 + $0x8] sm:$0xff]  ;;  %v858_v35 = vcombine.low %v266_v33, %v266_v33  ;;  %v859_v36 = vcombine.high %v266_v33, %v266_v33 }
  0x22   : > { %v1034_v27 = vld [vmem:[%s1130_s25 + $0x30] sm:$0xff]   ;;  %v1038_v31 = vld [vmem:[%s1130_s25 + $0x38] sm:$0xff]   ;;  %v860_v37 = vcombine.low %v267_v34, %v267_v34  ;;  %v861_v38 = vcombine.high %v267_v34, %v267_v34  ;;  %v1044_v39 = vld [vmem:[%s1130_s25 + $0x100] sm:$0xff]  }
  0x23   : > { %913 = vmatpush3.bf16.msra.mxu0 %v1018_v11  ;;  %v1035_v28 = vld [vmem:[%s1130_s25 + $0xb0] sm:$0xff]   ;;  %v1039_v32 = vld [vmem:[%s1130_s25 + $0xb8] sm:$0xff]   ;;  %639 = vmatprep.mubr.bf16.mxu0 %v859_v36  ;;  %v1045_v41 = vld [vmem:[%s1130_s25 + $0x108] sm:$0xff]  }
  0x24   : > { %935 = vmatpush3.bf16.msra.mxu1 %v1019_v12  ;;  %914 = vmatprep.subr.bf16.mxu0 %v1020_v13  ;;  %v1046_v42 = vld [vmem:[%s1130_s25 + $0x110] sm:$0xff]   ;;  %v1047_v43 = vld [vmem:[%s1130_s25 + $0x118] sm:$0xff]   ;;  %v1048_v44 = vld [vmem:[%s1130_s25 + $0x120] sm:$0xff]  }
  0x25   : > { %936 = vmatprep.subr.bf16.mxu1 %v1021_v14  ;;  %679 = vmatprep.mubr.bf16.mxu1 %v861_v38  ;;  %v1049_v45 = vld [vmem:[%s1130_s25 + $0x128] sm:$0xff]   ;;  %v1050_v46 = vld [vmem:[%s1130_s25 + $0x130] sm:$0xff]   ;;  %v1051_v47 = vld [vmem:[%s1130_s25 + $0x138] sm:$0xff]  }
  0x26   : > { %v1052_v48 = vld [vmem:[%s1125_s21 + $0x10] ss:$0 sps:$4 sm:$0xff]   ;;  %v265_v60 = vld [vmem:[#allocation2] sm:$0xff] }
  0x27   : > { %915 = vmatpush3.bf16.msra.mxu0 %v1022_v15  ;;  %v904_v4 = vld [vmem:[%s1194_s2] ss:$0 sm:$0xff] (!%p903_p7) }
  0x28   : > { %937 = vmatpush3.bf16.msra.mxu1 %v1023_v16  ;;  %916 = vmatprep.subr.bf16.mxu0 %v1024_v17 }
  0x29   : > { %938 = vmatprep.subr.bf16.mxu1 %v1025_v18 }
  0x2b   : > { %917 = vmatpush3.bf16.msra.mxu0 %v1026_v19 }
  0x2c   : > { %939 = vmatpush3.bf16.msra.mxu1 %v1027_v20  ;;  %918 = vmatprep.subr.bf16.mxu0 %v1028_v21 }
  0x2d   : > { %940 = vmatprep.subr.bf16.mxu1 %v1029_v22 }
  0x2f   : > { %919 = vmatpush3.bf16.msra.mxu0 %v1030_v23 }
  0x30   : > { %941 = vmatpush3.bf16.msra.mxu1 %v1031_v24  ;;  %920 = vmatprep.subr.bf16.mxu0 %v1032_v25 }
  0x31   : > { %942 = vmatprep.subr.bf16.mxu1 %v1033_v26 }
  0x33   : > { %921 = vmatpush3.bf16.msra.mxu0 %v1034_v27 }
  0x34   : > { %943 = vmatpush3.bf16.msra.mxu1 %v1035_v28  ;;  %922 = vmatprep.subr.bf16.mxu0 %v1036_v29 }
  0x35   : > { %944 = vmatprep.subr.bf16.mxu1 %v1037_v30 }
  0x37   : > { %923 = vmatpush3.bf16.msra.mxu0 %v1038_v31 }
  0x38   : > { %945 = vmatpush3.bf16.msra.mxu1 %v1039_v32  ;;  %961 = vmatprep.subr.bf16.mxu0 %v1078_v40 }
  0x3a   : > { %640 = vmatmul.mubr.bf16.vlgmr.msra.gmra.mrb[0].mxu0 %v858_v35 }
  0x3b   : > { %680 = vmatmul.mubr.bf16.vlgmr.msra.gmra.mrb[0].mxu1 %v860_v37  ;;  %962 = vmatpush3.bf16.msra.mxu0 %v1044_v39 }
  0x3c   : > { %977 = vmatprep.mubr.msk.bf16.mxu0 %vm1079_vm0, %v1078_v40  ;;  %963 = vmatprep.subr.bf16.mxu0 %v1078_v40 }
  0x3f   : > { %964 = vmatpush3.bf16.msra.mxu0 %v1045_v41 }
  0x40   : > { %965 = vmatprep.subr.bf16.mxu0 %v1078_v40 }
  0x43   : > { %966 = vmatpush3.bf16.msra.mxu0 %v1046_v42 }
  0x44   : > { %967 = vmatprep.subr.bf16.mxu0 %v1078_v40 }
  0x47   : > { %968 = vmatpush3.bf16.msra.mxu0 %v1047_v43 }
  0x48   : > { %969 = vmatprep.subr.bf16.mxu0 %v1078_v40 }
  0x4b   : > { %970 = vmatpush3.bf16.msra.mxu0 %v1048_v44 }
  0x4c   : > { %971 = vmatprep.subr.bf16.mxu0 %v1078_v40 }
  0x4f   : > { %972 = vmatpush3.bf16.msra.mxu0 %v1049_v45 }
  0x50   : > { %973 = vmatprep.subr.bf16.mxu0 %v1078_v40 }
  0x53   : > { %974 = vmatpush3.bf16.msra.mxu0 %v1050_v46 }
  0x54   : > { %975 = vmatprep.subr.bf16.mxu0 %v1078_v40 }
  0x57   : > { %976 = vmatpush3.bf16.msra.mxu0 %v1051_v47 }
  0x5a   : > { %978 = vmatmul.mubr.bf16.vlgmr.msra.gmra.mrb[4].mxu0 %v1052_v48 }
 0x10d   : > { %v924_v49 = vpop.f32.mrb[0].mxu0 }
 0x10e   : > { %v946_v50 = vpop.f32.mrb[0].mxu1  ;;  %v925_v51 = vpop.f32.mrb[1].mxu0 }
 0x10f   : > { %v947_v52 = vpop.f32.mrb[1].mxu1  ;;  %v926_v53 = vadd.f32 %v925_v51, %v924_v49  ;;  %v927_v55 = vpop.f32.mrb[2].mxu0 }
 0x110   : > { %v948_v54 = vadd.f32 %v947_v52, %v946_v50  ;;  %v949_v56 = vpop.f32.mrb[2].mxu1  ;;  %v928_v57 = vpop.f32.mrb[3].mxu0 }
 0x111   : > { %v950_v58 = vpop.f32.mrb[3].mxu1 }
 0x112   : > { %v682_v59 = vadd.f32 %v948_v54, %v926_v53 }
 0x12c   : > { %732 = sbr.rel (%p903_p7) target bundleno = 321 (0x141), region = 40 }
 0x12d   : > { %v721_v61 = vpop.f32.mrb[4].mxu0 }
 0x12e   : > { %v722_v62 = vadd.f32 %v721_v61, %v682_v59  ;;  %v979_v63 = vpop.f32.mrb[5].mxu0 }
 0x12f   : > { %v724_v0 = vpop.f32.mrb[6].mxu0 }
 0x130   : > { %v727_v1 = vadd.f32 %v722_v62, %v265_v60  ;;  %v980_v2 = vpop.f32.mrb[7].mxu0 }
 0x132   : > { %728 = vst [vmem:[#allocation2] sm:$0xff] %v727_v1 }
 0x139   : > { %v733_v3 = vld [vmem:[#allocation2] sm:$0xff] }
 0x13a   : > { %v741_v5 = vadd.f32 %v904_v4, %v733_v3 }
 0x13c   : > { %v742_v6 = vmax.f32 %v741_v5, 0.0 }
 0x13e   : > { %v743_v7 = vpack.c.bf16 %v742_v6, %v742_v6 }
 0x140   : > { %744 = vst [vmem:[%s1195_s3] sm:$0xf] %v743_v7 }
 0x141 PF: > { %s13_s14 = sadd.s32 1, %s1075_s14   ;;  %s1196_s12 = smov %s1071_s13 }
 0x142   : > { %p10_p8 = scmp.ge.s32.totalorder %s13_s14, 4   ;;  %s1197_s13 = smov %s1199_s15 }
 0x144   :  { %12 = sbr.rel (!%p10_p8) target bundleno = 2 (0x2), region = 76 }

// kernel: unet_forward.31
= control target key start
LH: loop header
LB: loop body
LE: loop exit
PB: predicated region body
PF: predicated region fallthrough
CT: control target
= control target key end

     0   :  { %s1533_s12 = smov 0   ;;  %s1535_s13 = smov 0   ;;  %s1854_s0 = inlined_call_operand.vmem [shape: bf16[8,1280], index: 0, kind: input, shape index: {}]   ;;  %s1855_s1 = inlined_call_operand.vmem [shape: bf16[1280,256], index: 1, kind: input, shape index: {}]   ;;  %s1856_s2 = inlined_call_operand.vmem [shape: f32[1,256], index: 2, kind: input, shape index: {}]   ;;  %s1857_s3 = inlined_call_operand.vmem [shape: bf16[8,256], index: 3, kind: output, shape index: {}]  }
   0x1   :  { %s1537_s14 = smov 0   ;;  %s1539_s15 = smov 0  }
   0x2   :  { %s1541_s16 = smov 0   ;;  %s1543_s17 = smov 0  }
   0x3   :  { %s1545_s18 = smov 0  }
   0x4 LB: > { %s25_s19 = sadd.s32 1, %s1500_s16  ;;  %s28_s20 = sadd.s32 1, %s1504_s17  ;;  %s1508_s18 = sphi %s1545_s18, %s13_s18   ;;  %s1504_s17 = sphi %s1543_s17, %s1863_s17   ;;  %s1500_s16 = sphi %s1541_s16, %s1862_s16   ;;  %s1496_s15 = sphi %s1539_s15, %s1861_s15   ;;  %s1492_s14 = sphi %s1537_s14, %s1860_s14   ;;  %s1488_s13 = sphi %s1535_s13, %s1859_s13   ;;  %s1484_s12 = sphi %s1533_s12, %s1858_s12  }
   0x5   : > { %p26_p0 = scmp.ge.s32.totalorder %s25_s19, 2  ;;  %p76_p1 = scmp.ne.s32.totalorder %s1488_s13, %s1484_s12 }
   0x6   : > { %p77_p2 = scmp.eq.s32.totalorder %s1508_s18, 0  ;;  %s69_s24 = sadd.s32 1, %s1488_s13 }
   0x7   : > { %s1865_s19 = smov (%p26_p0, %s25_s19), 0  ;;  %s1867_s20 = smov (!%p26_p0, %s28_s20), %s1504_s17 }
   0x8   : > { %p78_p3 = por %p77_p2, %p76_p1  ;;  %p30_p4 = scmp.ge.s32.totalorder %s1867_s20, 2 }
   0x9   : > { %s64_s21 = ssub.s32 %s1500_s16, %s1865_s19  ;;  %p1218_p6 = scmp.ge.s32.totalorder %s1508_s18, 4 }
   0xa   : > { %s1869_s20 = smov (%p30_p4, %s1867_s20), 0 }
   0xb   : > { %s65_s22 = ssub.s32 %s1504_s17, %s1869_s20  ;;  %156 = sbr.rel (%p1218_p6) target bundleno = 78 (0x4e), region = 16 }
   0xc   : > { %s66_s23 = sor.u32 %s65_s22, %s64_s21 }
   0xd   : > { %p67_p5 = scmp.eq.s32.totalorder %s66_s23, 0 }
   0xf   : > { %s1584_s25 = scalar_select %p67_p5, %s1488_s13, %s69_s24  }
  0x12   : > { %172 = sbr.rel (!%p78_p3) target bundleno = 78 (0x4e), region = 24  ;;  %s174_s26 = sand.u32 (%p78_p3), 1, %s1488_s13  }
  0x13   : > { %s1274_s27 = smul.u32 (%p78_p3), 160, %s1500_s16 }
  0x14   : > { %s1348_s28 = smul.u32 (%p78_p3), 320, %s174_s26 }
  0x15   : > { %s179_s29 = sadd.s32 (%p78_p3), %s1504_s17, %s1274_s27 }
  0x16   : > { %s1220_s30 = sshll.u32 (%p78_p3), %s179_s29, 2  ;;  %s1598_s7 = scalar_lea.vmem (%p78_p3), [#allocation3], %s1348_s28 }
  0x17   : > { %s1593_s6 = scalar_lea.vmem (%p78_p3), %s1855_s1, %s1220_s30 }
  0x18   : > { %v197_v0 = vld [vmem:[%s1593_s6] sm:$0xf] (%p78_p3)  ;;  %v199_v1 = vld [vmem:[%s1593_s6 + $0x8] sm:$0xf] (%p78_p3)  ;;  %v201_v2 = vld [vmem:[%s1593_s6 + $0x10] sm:$0xf] (%p78_p3) }
  0x19   : > { %198 = vst [vmem:[%s1598_s7] sm:$0xf] %v197_v0  ;;  %200 = vst [vmem:[%s1598_s7 + $0x4] sm:$0xf] %v199_v1  ;;  %v203_v3 = vld [vmem:[%s1593_s6 + $0x18] sm:$0xf] }
  0x1a   : > { %202 = vst [vmem:[%s1598_s7 + $0x8] sm:$0xf] %v201_v2  ;;  %v205_v4 = vld [vmem:[%s1593_s6 + $0x20] sm:$0xf]  ;;  %v207_v5 = vld [vmem:[%s1593_s6 + $0x28] sm:$0xf] }
  0x1b   : > { %204 = vst [vmem:[%s1598_s7 + $0xc] sm:$0xf] %v203_v3  ;;  %206 = vst [vmem:[%s1598_s7 + $0x10] sm:$0xf] %v205_v4  ;;  %v209_v6 = vld [vmem:[%s1593_s6 + $0x30] sm:$0xf] }
  0x1c   : > { %208 = vst [vmem:[%s1598_s7 + $0x14] sm:$0xf] %v207_v5  ;;  %v211_v7 = vld [vmem:[%s1593_s6 + $0x38] sm:$0xf]  ;;  %v213_v8 = vld [vmem:[%s1593_s6 + $0x40] sm:$0xf] }
  0x1d   : > { %210 = vst [vmem:[%s1598_s7 + $0x18] sm:$0xf] %v209_v6  ;;  %212 = vst [vmem:[%s1598_s7 + $0x1c] sm:$0xf] %v211_v7  ;;  %v215_v9 = vld [vmem:[%s1593_s6 + $0x48] sm:$0xf] }
  0x1e   : > { %214 = vst [vmem:[%s1598_s7 + $0x20] sm:$0xf] %v213_v8  ;;  %v217_v10 = vld [vmem:[%s1593_s6 + $0x50] sm:$0xf]  ;;  %v219_v11 = vld [vmem:[%s1593_s6 + $0x58] sm:$0xf] }
  0x1f   : > { %216 = vst [vmem:[%s1598_s7 + $0x24] sm:$0xf] %v215_v9  ;;  %218 = vst [vmem:[%s1598_s7 + $0x28] sm:$0xf] %v217_v10  ;;  %v221_v12 = vld [vmem:[%s1593_s6 + $0x60] sm:$0xf] }
  0x20   : > { %220 = vst [vmem:[%s1598_s7 + $0x2c] sm:$0xf] %v219_v11  ;;  %v223_v13 = vld [vmem:[%s1593_s6 + $0x68] sm:$0xf]  ;;  %v225_v14 = vld [vmem:[%s1593_s6 + $0x70] sm:$0xf] }
  0x21   : > { %222 = vst [vmem:[%s1598_s7 + $0x30] sm:$0xf] %v221_v12  ;;  %224 = vst [vmem:[%s1598_s7 + $0x34] sm:$0xf] %v223_v13  ;;  %v227_v15 = vld [vmem:[%s1593_s6 + $0x78] sm:$0xf] }
  0x22   : > { %226 = vst [vmem:[%s1598_s7 + $0x38] sm:$0xf] %v225_v14  ;;  %v229_v16 = vld [vmem:[%s1593_s6 + $0x80] sm:$0xf]  ;;  %v231_v17 = vld [vmem:[%s1593_s6 + $0x88] sm:$0xf] }
  0x23   : > { %228 = vst [vmem:[%s1598_s7 + $0x3c] sm:$0xf] %v227_v15  ;;  %230 = vst [vmem:[%s1598_s7 + $0x40] sm:$0xf] %v229_v16  ;;  %v233_v18 = vld [vmem:[%s1593_s6 + $0x90] sm:$0xf] }
  0x24   : > { %232 = vst [vmem:[%s1598_s7 + $0x44] sm:$0xf] %v231_v17  ;;  %v235_v19 = vld [vmem:[%s1593_s6 + $0x98] sm:$0xf]  ;;  %v237_v20 = vld [vmem:[%s1593_s6 + $0xa0] sm:$0xf] }
  0x25   : > { %234 = vst [vmem:[%s1598_s7 + $0x48] sm:$0xf] %v233_v18  ;;  %236 = vst [vmem:[%s1598_s7 + $0x4c] sm:$0xf] %v235_v19  ;;  %v239_v21 = vld [vmem:[%s1593_s6 + $0xa8] sm:$0xf] }
  0x26   : > { %238 = vst [vmem:[%s1598_s7 + $0x50] sm:$0xf] %v237_v20  ;;  %v241_v22 = vld [vmem:[%s1593_s6 + $0xb0] sm:$0xf]  ;;  %v243_v23 = vld [vmem:[%s1593_s6 + $0xb8] sm:$0xf] }
  0x27   : > { %240 = vst [vmem:[%s1598_s7 + $0x54] sm:$0xf] %v239_v21  ;;  %242 = vst [vmem:[%s1598_s7 + $0x58] sm:$0xf] %v241_v22  ;;  %v245_v24 = vld [vmem:[%s1593_s6 + $0xc0] sm:$0xf] }
  0x28   : > { %244 = vst [vmem:[%s1598_s7 + $0x5c] sm:$0xf] %v243_v23  ;;  %v247_v25 = vld [vmem:[%s1593_s6 + $0xc8] sm:$0xf]  ;;  %v249_v26 = vld [vmem:[%s1593_s6 + $0xd0] sm:$0xf] }
  0x29   : > { %246 = vst [vmem:[%s1598_s7 + $0x60] sm:$0xf] %v245_v24  ;;  %248 = vst [vmem:[%s1598_s7 + $0x64] sm:$0xf] %v247_v25  ;;  %v251_v27 = vld [vmem:[%s1593_s6 + $0xd8] sm:$0xf] }
  0x2a   : > { %250 = vst [vmem:[%s1598_s7 + $0x68] sm:$0xf] %v249_v26  ;;  %v253_v28 = vld [vmem:[%s1593_s6 + $0xe0] sm:$0xf]  ;;  %v255_v29 = vld [vmem:[%s1593_s6 + $0xe8] sm:$0xf] }
  0x2b   : > { %252 = vst [vmem:[%s1598_s7 + $0x6c] sm:$0xf] %v251_v27  ;;  %254 = vst [vmem:[%s1598_s7 + $0x70] sm:$0xf] %v253_v28  ;;  %v257_v30 = vld [vmem:[%s1593_s6 + $0xf0] sm:$0xf] }
  0x2c   : > { %256 = vst [vmem:[%s1598_s7 + $0x74] sm:$0xf] %v255_v29  ;;  %v259_v31 = vld [vmem:[%s1593_s6 + $0xf8] sm:$0xf]  ;;  %v261_v32 = vld [vmem:[%s1593_s6 + $0x100] sm:$0xf] }
  0x2d   : > { %258 = vst [vmem:[%s1598_s7 + $0x78] sm:$0xf] %v257_v30  ;;  %260 = vst [vmem:[%s1598_s7 + $0x7c] sm:$0xf] %v259_v31  ;;  %v263_v33 = vld [vmem:[%s1593_s6 + $0x108] sm:$0xf] }
  0x2e   : > { %262 = vst [vmem:[%s1598_s7 + $0x80] sm:$0xf] %v261_v32  ;;  %v265_v34 = vld [vmem:[%s1593_s6 + $0x110] sm:$0xf]  ;;  %v267_v35 = vld [vmem:[%s1593_s6 + $0x118] sm:$0xf] }
  0x2f   : > { %264 = vst [vmem:[%s1598_s7 + $0x84] sm:$0xf] %v263_v33  ;;  %266 = vst [vmem:[%s1598_s7 + $0x88] sm:$0xf] %v265_v34  ;;  %v269_v36 = vld [vmem:[%s1593_s6 + $0x120] sm:$0xf] }
  0x30   : > { %268 = vst [vmem:[%s1598_s7 + $0x8c] sm:$0xf] %v267_v35  ;;  %v271_v37 = vld [vmem:[%s1593_s6 + $0x128] sm:$0xf]  ;;  %v273_v38 = vld [vmem:[%s1593_s6 + $0x130] sm:$0xf] }
  0x31   : > { %270 = vst [vmem:[%s1598_s7 + $0x90] sm:$0xf] %v269_v36  ;;  %272 = vst [vmem:[%s1598_s7 + $0x94] sm:$0xf] %v271_v37  ;;  %v275_v39 = vld [vmem:[%s1593_s6 + $0x138] sm:$0xf] }
  0x32   : > { %274 = vst [vmem:[%s1598_s7 + $0x98] sm:$0xf] %v273_v38  ;;  %v277_v40 = vld [vmem:[%s1593_s6 + $0x140] sm:$0xf]  ;;  %v279_v41 = vld [vmem:[%s1593_s6 + $0x148] sm:$0xf] }
  0x33   : > { %276 = vst [vmem:[%s1598_s7 + $0x9c] sm:$0xf] %v275_v39  ;;  %278 = vst [vmem:[%s1598_s7 + $0xa0] sm:$0xf] %v277_v40  ;;  %v281_v42 = vld [vmem:[%s1593_s6 + $0x150] sm:$0xf] }
  0x34   : > { %280 = vst [vmem:[%s1598_s7 + $0xa4] sm:$0xf] %v279_v41  ;;  %v283_v43 = vld [vmem:[%s1593_s6 + $0x158] sm:$0xf]  ;;  %v285_v44 = vld [vmem:[%s1593_s6 + $0x160] sm:$0xf] }
  0x35   : > { %282 = vst [vmem:[%s1598_s7 + $0xa8] sm:$0xf] %v281_v42  ;;  %284 = vst [vmem:[%s1598_s7 + $0xac] sm:$0xf] %v283_v43  ;;  %v287_v45 = vld [vmem:[%s1593_s6 + $0x168] sm:$0xf] }
  0x36   : > { %286 = vst [vmem:[%s1598_s7 + $0xb0] sm:$0xf] %v285_v44  ;;  %v289_v46 = vld [vmem:[%s1593_s6 + $0x170] sm:$0xf]  ;;  %v291_v47 = vld [vmem:[%s1593_s6 + $0x178] sm:$0xf] }
  0x37   : > { %288 = vst [vmem:[%s1598_s7 + $0xb4] sm:$0xf] %v287_v45  ;;  %290 = vst [vmem:[%s1598_s7 + $0xb8] sm:$0xf] %v289_v46  ;;  %v293_v48 = vld [vmem:[%s1593_s6 + $0x180] sm:$0xf] }
  0x38   : > { %292 = vst [vmem:[%s1598_s7 + $0xbc] sm:$0xf] %v291_v47  ;;  %v295_v49 = vld [vmem:[%s1593_s6 + $0x188] sm:$0xf]  ;;  %v297_v50 = vld [vmem:[%s1593_s6 + $0x190] sm:$0xf] }
  0x39   : > { %294 = vst [vmem:[%s1598_s7 + $0xc0] sm:$0xf] %v293_v48  ;;  %296 = vst [vmem:[%s1598_s7 + $0xc4] sm:$0xf] %v295_v49  ;;  %v299_v51 = vld [vmem:[%s1593_s6 + $0x198] sm:$0xf] }
  0x3a   : > { %298 = vst [vmem:[%s1598_s7 + $0xc8] sm:$0xf] %v297_v50  ;;  %v301_v52 = vld [vmem:[%s1593_s6 + $0x1a0] sm:$0xf]  ;;  %v303_v53 = vld [vmem:[%s1593_s6 + $0x1a8] sm:$0xf] }
  0x3b   : > { %300 = vst [vmem:[%s1598_s7 + $0xcc] sm:$0xf] %v299_v51  ;;  %302 = vst [vmem:[%s1598_s7 + $0xd0] sm:$0xf] %v301_v52  ;;  %v305_v54 = vld [vmem:[%s1593_s6 + $0x1b0] sm:$0xf] }
  0x3c   : > { %304 = vst [vmem:[%s1598_s7 + $0xd4] sm:$0xf] %v303_v53  ;;  %v307_v55 = vld [vmem:[%s1593_s6 + $0x1b8] sm:$0xf]  ;;  %v309_v56 = vld [vmem:[%s1593_s6 + $0x1c0] sm:$0xf] }
  0x3d   : > { %306 = vst [vmem:[%s1598_s7 + $0xd8] sm:$0xf] %v305_v54  ;;  %308 = vst [vmem:[%s1598_s7 + $0xdc] sm:$0xf] %v307_v55  ;;  %v311_v57 = vld [vmem:[%s1593_s6 + $0x1c8] sm:$0xf] }
  0x3e   : > { %310 = vst [vmem:[%s1598_s7 + $0xe0] sm:$0xf] %v309_v56  ;;  %v313_v58 = vld [vmem:[%s1593_s6 + $0x1d0] sm:$0xf]  ;;  %v315_v59 = vld [vmem:[%s1593_s6 + $0x1d8] sm:$0xf] }
  0x3f   : > { %312 = vst [vmem:[%s1598_s7 + $0xe4] sm:$0xf] %v311_v57  ;;  %314 = vst [vmem:[%s1598_s7 + $0xe8] sm:$0xf] %v313_v58  ;;  %v317_v60 = vld [vmem:[%s1593_s6 + $0x1e0] sm:$0xf] }
  0x40   : > { %316 = vst [vmem:[%s1598_s7 + $0xec] sm:$0xf] %v315_v59  ;;  %v319_v61 = vld [vmem:[%s1593_s6 + $0x1e8] sm:$0xf]  ;;  %v321_v62 = vld [vmem:[%s1593_s6 + $0x1f0] sm:$0xf] }
  0x41   : > { %318 = vst [vmem:[%s1598_s7 + $0xf0] sm:$0xf] %v317_v60  ;;  %320 = vst [vmem:[%s1598_s7 + $0xf4] sm:$0xf] %v319_v61  ;;  %v323_v63 = vld [vmem:[%s1593_s6 + $0x1f8] sm:$0xf] }
  0x42   : > { %322 = vst [vmem:[%s1598_s7 + $0xf8] sm:$0xf] %v321_v62  ;;  %v325_v0 = vld [vmem:[%s1593_s6 + $0x200] sm:$0xf]  ;;  %v327_v1 = vld [vmem:[%s1593_s6 + $0x208] sm:$0xf] }
  0x43   : > { %324 = vst [vmem:[%s1598_s7 + $0xfc] sm:$0xf] %v323_v63  ;;  %326 = vst [vmem:[%s1598_s7 + $0x100] sm:$0xf] %v325_v0  ;;  %v329_v2 = vld [vmem:[%s1593_s6 + $0x210] sm:$0xf] }
  0x44   : > { %328 = vst [vmem:[%s1598_s7 + $0x104] sm:$0xf] %v327_v1  ;;  %v331_v3 = vld [vmem:[%s1593_s6 + $0x218] sm:$0xf]  ;;  %v333_v4 = vld [vmem:[%s1593_s6 + $0x220] sm:$0xf] }
  0x45   : > { %330 = vst [vmem:[%s1598_s7 + $0x108] sm:$0xf] %v329_v2  ;;  %332 = vst [vmem:[%s1598_s7 + $0x10c] sm:$0xf] %v331_v3  ;;  %v335_v5 = vld [vmem:[%s1593_s6 + $0x228] sm:$0xf] }
  0x46   : > { %334 = vst [vmem:[%s1598_s7 + $0x110] sm:$0xf] %v333_v4  ;;  %v337_v6 = vld [vmem:[%s1593_s6 + $0x230] sm:$0xf]  ;;  %v339_v7 = vld [vmem:[%s1593_s6 + $0x238] sm:$0xf] }
  0x47   : > { %336 = vst [vmem:[%s1598_s7 + $0x114] sm:$0xf] %v335_v5  ;;  %338 = vst [vmem:[%s1598_s7 + $0x118] sm:$0xf] %v337_v6  ;;  %v341_v8 = vld [vmem:[%s1593_s6 + $0x240] sm:$0xf] }
  0x48   : > { %340 = vst [vmem:[%s1598_s7 + $0x11c] sm:$0xf] %v339_v7  ;;  %v343_v9 = vld [vmem:[%s1593_s6 + $0x248] sm:$0xf]  ;;  %v345_v10 = vld [vmem:[%s1593_s6 + $0x250] sm:$0xf] }
  0x49   : > { %342 = vst [vmem:[%s1598_s7 + $0x120] sm:$0xf] %v341_v8  ;;  %344 = vst [vmem:[%s1598_s7 + $0x124] sm:$0xf] %v343_v9  ;;  %v347_v11 = vld [vmem:[%s1593_s6 + $0x258] sm:$0xf] }
  0x4a   : > { %346 = vst [vmem:[%s1598_s7 + $0x128] sm:$0xf] %v345_v10  ;;  %v349_v12 = vld [vmem:[%s1593_s6 + $0x260] sm:$0xf]  ;;  %v351_v13 = vld [vmem:[%s1593_s6 + $0x268] sm:$0xf] }
  0x4b   : > { %348 = vst [vmem:[%s1598_s7 + $0x12c] sm:$0xf] %v347_v11  ;;  %350 = vst [vmem:[%s1598_s7 + $0x130] sm:$0xf] %v349_v12  ;;  %v353_v14 = vld [vmem:[%s1593_s6 + $0x270] sm:$0xf] }
  0x4c   : > { %352 = vst [vmem:[%s1598_s7 + $0x134] sm:$0xf] %v351_v13  ;;  %v355_v15 = vld [vmem:[%s1593_s6 + $0x278] sm:$0xf]  ;;  %354 = vst [vmem:[%s1598_s7 + $0x138] sm:$0xf] %v353_v14 }
  0x4d   : > { %356 = vst [vmem:[%s1598_s7 + $0x13c] sm:$0xf] %v355_v15 }
  0x4e PF: > { %p1221_p7 = scmp.ge.s32.totalorder %s1508_s18, 1  ;;  %p544_p8 = scmp.lt.s32.totalorder %s1508_s18, 5 }
  0x50   : > { %p545_p9 = pnand %p1221_p7, %p544_p8 }
  0x51   : > { %s551_s8 = sand.u32 (!%p545_p9), 1, %s1484_s12   ;;  %s589_s9 = smul.u32 (!%p545_p9), 5, %s1492_s14 }
  0x52   : > { %548 = sbr.rel (%p545_p9) target bundleno = 396 (0x18c), region = 69  ;;  %p600_p10 = scmp.lt.s32.totalorder (!%p545_p9), %s1496_s15, 1 }
  0x53   : > { %s1349_s10 = smul.u32 (!%p545_p9), 320, %s551_s8  ;;  %p592_p11 = scmp.lt.s32.totalorder (!%p545_p9), %s589_s9, 9 }
  0x54   : > { %p1224_p12 = scmp.ne.s32.totalorder (!%p545_p9), %s1492_s14, 0 }
  0x55   : > { %s1780_s4 = scalar_lea.vmem (!%p545_p9), [#allocation3], %s1349_s10 }
  0x59   : > { %s1871_s9 = smov (!%p592_p11, %s589_s9), 9  ;;  %s1873_s15 = smov (!%p600_p10, %s1496_s15), 1 }
  0x5a   : > { %s1222_s11 = sshll.u32 %s1871_s9, 2  ;;  %s602_s27 = scalar_lea.vmem %s1856_s2, %s1873_s15  ;;  %v1510_v16 = vmov (!%p1224_p12), 0.0  }
  0x5b   : > { %s1768_s23 = scalar_lea.vmem %s1854_s0, %s1222_s11  ;;  %s1223_s12 = sshll.u32 %s1873_s15, 2  ;;  %616 = vst [vmem:[#allocation2] sm:$0xff] (!%p1224_p12), %v1510_v16 }
  0x5c   : > { %s1778_s30 = scalar_lea.vmem %s1857_s3, %s1223_s12  ;;  %615 = sbr.rel (%p1224_p12) target bundleno = 99 (0x63), region = 77 }
  0x63 PF: > { %v1409_v17 = vld [vmem:[%s1780_s4 + $0x40] sm:$0xff]   ;;  %v1413_v21 = vld [vmem:[%s1780_s4 + $0x48] sm:$0xff]   ;;  %v1417_v25 = vld [vmem:[%s1780_s4 + $0x50] sm:$0xff]   ;;  %v1511_v56 = vmov 0.0   ;;  %vm1512_vm0 = vmmov 0   ;;  %p1270_p13 = scmp.ne.s32.totalorder %s1492_s14, 1 }
  0x64   : > { %v1410_v18 = vld [vmem:[%s1780_s4 + $0xc0] sm:$0xff]   ;;  %1275 = vmatprep.subr.bf16.mxu0 %v1409_v17  ;;  %v1414_v22 = vld [vmem:[%s1780_s4 + $0xc8] sm:$0xff]   ;;  %v1418_v26 = vld [vmem:[%s1780_s4 + $0xd0] sm:$0xff]  }
  0x65   : > { %v1411_v19 = vld [vmem:[%s1780_s4] sm:$0xff]   ;;  %1297 = vmatprep.subr.bf16.mxu1 %v1410_v18  ;;  %v1415_v23 = vld [vmem:[%s1780_s4 + $0x8] sm:$0xff]   ;;  %v1419_v27 = vld [vmem:[%s1780_s4 + $0x10] sm:$0xff]  }
  0x66   : > { %v1412_v20 = vld [vmem:[%s1780_s4 + $0x80] sm:$0xff]   ;;  %1276 = vmatpush3.bf16.msra.mxu0 %v1411_v19  ;;  %v1416_v24 = vld [vmem:[%s1780_s4 + $0x88] sm:$0xff]   ;;  %v1420_v28 = vld [vmem:[%s1780_s4 + $0x90] sm:$0xff]  }
  0x67   : > { %1298 = vmatpush3.bf16.msra.mxu1 %v1412_v20  ;;  %1277 = vmatprep.subr.bf16.mxu0 %v1413_v21  ;;  %v1421_v29 = vld [vmem:[%s1780_s4 + $0x58] sm:$0xff]   ;;  %v1425_v33 = vld [vmem:[%s1780_s4 + $0x60] sm:$0xff]   ;;  %v1429_v37 = vld [vmem:[%s1780_s4 + $0x68] sm:$0xff]  }
  0x68   : > { %1299 = vmatprep.subr.bf16.mxu1 %v1414_v22  ;;  %v1422_v30 = vld [vmem:[%s1780_s4 + $0xd8] sm:$0xff]   ;;  %v1426_v34 = vld [vmem:[%s1780_s4 + $0xe0] sm:$0xff]   ;;  %v1430_v38 = vld [vmem:[%s1780_s4 + $0xe8] sm:$0xff]  }
  0x69   : > { %v1423_v31 = vld [vmem:[%s1780_s4 + $0x18] sm:$0xff]   ;;  %v1427_v35 = vld [vmem:[%s1780_s4 + $0x20] sm:$0xff]   ;;  %v1431_v39 = vld [vmem:[%s1780_s4 + $0x28] sm:$0xff]  }
  0x6a   : > { %1278 = vmatpush3.bf16.msra.mxu0 %v1415_v23  ;;  %v1424_v32 = vld [vmem:[%s1780_s4 + $0x98] sm:$0xff]   ;;  %v1428_v36 = vld [vmem:[%s1780_s4 + $0xa0] sm:$0xff]   ;;  %v1432_v40 = vld [vmem:[%s1780_s4 + $0xa8] sm:$0xff]  }
  0x6b   : > { %1300 = vmatpush3.bf16.msra.mxu1 %v1416_v24  ;;  %1279 = vmatprep.subr.bf16.mxu0 %v1417_v25  ;;  %v1433_v41 = vld [vmem:[%s1780_s4 + $0x70] sm:$0xff]   ;;  %v1437_v45 = vld [vmem:[%s1780_s4 + $0x78] sm:$0xff]   ;;  %v619_v50 = vld [vmem:[%s1768_s23 + $0x8] sm:$0xff] }
  0x6c   : > { %1301 = vmatprep.subr.bf16.mxu1 %v1418_v26  ;;  %v1434_v42 = vld [vmem:[%s1780_s4 + $0xf0] sm:$0xff]   ;;  %v1438_v46 = vld [vmem:[%s1780_s4 + $0xf8] sm:$0xff]   ;;  %v1227_v53 = vcombine.low %v619_v50, %v619_v50  ;;  %v1228_v54 = vcombine.high %v619_v50, %v619_v50  ;;  %v1445_v55 = vld [vmem:[%s1780_s4 + $0x100] sm:$0xff]  }
  0x6d   : > { %v1435_v43 = vld [vmem:[%s1780_s4 + $0x30] sm:$0xff]   ;;  %v1439_v47 = vld [vmem:[%s1780_s4 + $0x38] sm:$0xff]   ;;  %v1446_v57 = vld [vmem:[%s1780_s4 + $0x108] sm:$0xff]  }
  0x6e   : > { %1280 = vmatpush3.bf16.msra.mxu0 %v1419_v27  ;;  %v1436_v44 = vld [vmem:[%s1780_s4 + $0xb0] sm:$0xff]   ;;  %v1440_v48 = vld [vmem:[%s1780_s4 + $0xb8] sm:$0xff]   ;;  %1031 = vmatprep.mubr.bf16.mxu1 %v1228_v54  ;;  %v1449_v60 = vld [vmem:[%s1780_s4 + $0x120] sm:$0xff]  }
  0x6f   : > { %1302 = vmatpush3.bf16.msra.mxu1 %v1420_v28  ;;  %1281 = vmatprep.subr.bf16.mxu0 %v1421_v29  ;;  %v618_v49 = vld [vmem:[%s1768_s23] sm:$0xff]  ;;  %v1447_v58 = vld [vmem:[%s1780_s4 + $0x110] sm:$0xff]   ;;  %v1450_v61 = vld [vmem:[%s1780_s4 + $0x128] sm:$0xff]  }
  0x70   : > { %1303 = vmatprep.subr.bf16.mxu1 %v1422_v30  ;;  %v1225_v51 = vcombine.low %v618_v49, %v618_v49  ;;  %v1226_v52 = vcombine.high %v618_v49, %v618_v49  ;;  %v1448_v59 = vld [vmem:[%s1780_s4 + $0x118] sm:$0xff]   ;;  %v1451_v62 = vld [vmem:[%s1780_s4 + $0x130] sm:$0xff]   ;;  %v1453_v0 = vld [vmem:[%s1768_s23 + $0x10] ss:$0 sps:$4 sm:$0xff]  }
  0x71   : > { %v1452_v63 = vld [vmem:[%s1780_s4 + $0x138] sm:$0xff]  }
  0x72   : > { %1282 = vmatpush3.bf16.msra.mxu0 %v1423_v31  ;;  %991 = vmatprep.mubr.bf16.mxu0 %v1226_v52  ;;  %v617_v12 = vld [vmem:[#allocation2] sm:$0xff] }
  0x73   : > { %1304 = vmatpush3.bf16.msra.mxu1 %v1424_v32  ;;  %1283 = vmatprep.subr.bf16.mxu0 %v1425_v33  ;;  %v1271_v20 = vld [vmem:[%s602_s27] ss:$0 sm:$0xff] (!%p1270_p13) }
  0x74   : > { %1305 = vmatprep.subr.bf16.mxu1 %v1426_v34 }
  0x76   : > { %1284 = vmatpush3.bf16.msra.mxu0 %v1427_v35 }
  0x77   : > { %1306 = vmatpush3.bf16.msra.mxu1 %v1428_v36  ;;  %1285 = vmatprep.subr.bf16.mxu0 %v1429_v37 }
  0x78   : > { %1307 = vmatprep.subr.bf16.mxu1 %v1430_v38 }
  0x7a   : > { %1286 = vmatpush3.bf16.msra.mxu0 %v1431_v39 }
  0x7b   : > { %1308 = vmatpush3.bf16.msra.mxu1 %v1432_v40  ;;  %1287 = vmatprep.subr.bf16.mxu0 %v1433_v41 }
  0x7c   : > { %1309 = vmatprep.subr.bf16.mxu1 %v1434_v42 }
  0x7e   : > { %1288 = vmatpush3.bf16.msra.mxu0 %v1435_v43 }
  0x7f   : > { %1310 = vmatpush3.bf16.msra.mxu1 %v1436_v44  ;;  %1289 = vmatprep.subr.bf16.mxu0 %v1437_v45 }
  0x80   : > { %1311 = vmatprep.subr.bf16.mxu1 %v1438_v46 }
  0x82   : > { %1290 = vmatpush3.bf16.msra.mxu0 %v1439_v47 }
  0x83   : > { %1312 = vmatpush3.bf16.msra.mxu1 %v1440_v48  ;;  %1328 = vmatprep.subr.bf16.mxu0 %v1511_v56 }
  0x85   : > { %992 = vmatmul.mubr.bf16.vlgmr.msra.gmra.mrb[0].mxu0 %v1225_v51 }
  0x86   : > { %1032 = vmatmul.mubr.bf16.vlgmr.msra.gmra.mrb[0].mxu1 %v1227_v53  ;;  %1329 = vmatpush3.bf16.msra.mxu0 %v1445_v55 }
  0x87   : > { %1344 = vmatprep.mubr.msk.bf16.mxu0 %vm1512_vm0, %v1511_v56  ;;  %1330 = vmatprep.subr.bf16.mxu0 %v1511_v56 }
  0x8a   : > { %1331 = vmatpush3.bf16.msra.mxu0 %v1446_v57 }
  0x8b   : > { %1332 = vmatprep.subr.bf16.mxu0 %v1511_v56 }
  0x8e   : > { %1333 = vmatpush3.bf16.msra.mxu0 %v1447_v58 }
  0x8f   : > { %1334 = vmatprep.subr.bf16.mxu0 %v1511_v56 }
  0x92   : > { %1335 = vmatpush3.bf16.msra.mxu0 %v1448_v59 }
  0x93   : > { %1336 = vmatprep.subr.bf16.mxu0 %v1511_v56 }
  0x96   : > { %1337 = vmatpush3.bf16.msra.mxu0 %v1449_v60 }
  0x97   : > { %1338 = vmatprep.subr.bf16.mxu0 %v1511_v56 }
  0x9a   : > { %1339 = vmatpush3.bf16.msra.mxu0 %v1450_v61 }
  0x9b   : > { %1340 = vmatprep.subr.bf16.mxu0 %v1511_v56 }
  0x9e   : > { %1341 = vmatpush3.bf16.msra.mxu0 %v1451_v62 }
  0x9f   : > { %1342 = vmatprep.subr.bf16.mxu0 %v1511_v56 }
  0xa2   : > { %1343 = vmatpush3.bf16.msra.mxu0 %v1452_v63 }
  0xa5   : > { %1345 = vmatmul.mubr.bf16.vlgmr.msra.gmra.mrb[4].mxu0 %v1453_v0 }
 0x158   : > { %v1291_v1 = vpop.f32.mrb[0].mxu0 }
 0x159   : > { %v1313_v2 = vpop.f32.mrb[0].mxu1  ;;  %v1292_v3 = vpop.f32.mrb[1].mxu0 }
 0x15a   : > { %v1314_v4 = vpop.f32.mrb[1].mxu1  ;;  %v1293_v5 = vadd.f32 %v1292_v3, %v1291_v1  ;;  %v1294_v7 = vpop.f32.mrb[2].mxu0 }
 0x15b   : > { %v1315_v6 = vadd.f32 %v1314_v4, %v1313_v2  ;;  %v1316_v8 = vpop.f32.mrb[2].mxu1  ;;  %v1295_v9 = vpop.f32.mrb[3].mxu0 }
 0x15c   : > { %v1317_v10 = vpop.f32.mrb[3].mxu1 }
 0x15d   : > { %v1034_v11 = vadd.f32 %v1315_v6, %v1293_v5 }
 0x177   : > { %1084 = sbr.rel (%p1270_p13) target bundleno = 396 (0x18c), region = 81 }
 0x178   : > { %v1073_v13 = vpop.f32.mrb[4].mxu0 }
 0x179   : > { %v1074_v14 = vadd.f32 %v1073_v13, %v1034_v11  ;;  %v1346_v15 = vpop.f32.mrb[5].mxu0 }
 0x17a   : > { %v1076_v16 = vpop.f32.mrb[6].mxu0 }
 0x17b   : > { %v1079_v17 = vadd.f32 %v1074_v14, %v617_v12  ;;  %v1347_v18 = vpop.f32.mrb[7].mxu0 }
 0x17d   : > { %1080 = vst [vmem:[#allocation2] sm:$0xff] %v1079_v17 }
 0x184   : > { %v1085_v19 = vld [vmem:[#allocation2] sm:$0xff] }
 0x185   : > { %v1093_v21 = vadd.f32 %v1271_v20, %v1085_v19 }
 0x187   : > { %v1094_v22 = vmax.f32 %v1093_v21, 0.0 }
 0x189   : > { %v1095_v23 = vpack.c.bf16 %v1094_v22, %v1094_v22 }
 0x18b   : > { %1096 = vst [vmem:[%s1778_s30] sm:$0xf] %v1095_v23 }
 0x18c PF: > { %s13_s18 = sadd.s32 1, %s1508_s18   ;;  %s1858_s12 = smov %s1488_s13 }
 0x18d   : > { %p10_p0 = scmp.ge.s32.totalorder %s13_s18, 6   ;;  %s1859_s13 = smov %s1584_s25 }
 0x18e   : > { %s1860_s14 = smov %s1500_s16  ;;  %s1861_s15 = smov %s1504_s17 }
 0x18f   : > { %s1862_s16 = smov %s1865_s19  ;;  %s1863_s17 = smov %s1869_s20 }
 0x190   :  { %12 = sbr.rel (!%p10_p0) target bundleno = 4 (0x4), region = 122 }

// kernel: unet_forward.32
= control target key start
LH: loop header
LB: loop body
LE: loop exit
PB: predicated region body
PF: predicated region fallthrough
CT: control target
= control target key end

     0   :  { %s1671_s12 = smov 0   ;;  %s1673_s13 = smov 0   ;;  %s2032_s0 = inlined_call_operand.vmem [shape: bf16[8,2304], index: 0, kind: input, shape index: {}]   ;;  %s2033_s1 = inlined_call_operand.vmem [shape: bf16[2304,256], index: 1, kind: input, shape index: {}]   ;;  %s2034_s2 = inlined_call_operand.vmem [shape: f32[1,256], index: 2, kind: input, shape index: {}]   ;;  %s2035_s3 = inlined_call_operand.vmem [shape: bf16[8,256], index: 3, kind: output, shape index: {}]  }
   0x1   :  { %s1675_s14 = smov 0   ;;  %s1677_s15 = smov 0  }
   0x2   :  { %s1679_s16 = smov 0   ;;  %s1681_s17 = smov 0  }
   0x3   :  { %s1683_s18 = smov 0  }
   0x4 LB: > { %s25_s19 = sadd.s32 1, %s1640_s16  ;;  %s28_s20 = sadd.s32 1, %s1644_s17  ;;  %s1648_s18 = sphi %s1683_s18, %s13_s18   ;;  %s1644_s17 = sphi %s1681_s17, %s2041_s17   ;;  %s1640_s16 = sphi %s1679_s16, %s2040_s16   ;;  %s1636_s15 = sphi %s1677_s15, %s2039_s15   ;;  %s1632_s14 = sphi %s1675_s14, %s2038_s14   ;;  %s1628_s13 = sphi %s1673_s13, %s2037_s13   ;;  %s1624_s12 = sphi %s1671_s12, %s2036_s12  }
   0x5   : > { %p26_p0 = scmp.ge.s32.totalorder %s25_s19, 3  ;;  %p76_p1 = scmp.ne.s32.totalorder %s1628_s13, %s1624_s12 }
   0x6   : > { %p77_p2 = scmp.eq.s32.totalorder %s1648_s18, 0  ;;  %s69_s24 = sadd.s32 1, %s1628_s13 }
   0x7   : > { %s2043_s19 = smov (%p26_p0, %s25_s19), 0  ;;  %s2045_s20 = smov (!%p26_p0, %s28_s20), %s1644_s17 }
   0x8   : > { %p78_p3 = por %p77_p2, %p76_p1  ;;  %p30_p4 = scmp.ge.s32.totalorder %s2045_s20, 2 }
   0x9   : > { %s64_s21 = ssub.s32 %s1640_s16, %s2043_s19  ;;  %p1349_p6 = scmp.ge.s32.totalorder %s1648_s18, 6 }
   0xa   : > { %s2047_s20 = smov (%p30_p4, %s2045_s20), 0 }
   0xb   : > { %s65_s22 = ssub.s32 %s1644_s17, %s2047_s20  ;;  %156 = sbr.rel (%p1349_p6) target bundleno = 89 (0x59), region = 16 }
   0xc   : > { %s66_s23 = sor.u32 %s65_s22, %s64_s21 }
   0xd   : > { %p67_p5 = scmp.eq.s32.totalorder %s66_s23, 0 }
   0xf   : > { %s1722_s25 = scalar_select %p67_p5, %s1628_s13, %s69_s24  }
  0x12   : > { %172 = sbr.rel (!%p78_p3) target bundleno = 89 (0x59), region = 24  ;;  %s174_s26 = sand.u32 (%p78_p3), 1, %s1628_s13  }
  0x13   : > { %s1414_s27 = smul.u32 (%p78_p3), 192, %s1640_s16 }
  0x14   : > { %s1481_s28 = smul.u32 (%p78_p3), 384, %s174_s26 }
  0x15   : > { %s179_s29 = sadd.s32 (%p78_p3), %s1644_s17, %s1414_s27 }
  0x16   : > { %s1351_s30 = sshll.u32 (%p78_p3), %s179_s29, 2  ;;  %s1736_s7 = scalar_lea.vmem (%p78_p3), [#allocation3], %s1481_s28 }
  0x17   : > { %s1731_s6 = scalar_lea.vmem (%p78_p3), %s2033_s1, %s1351_s30 }
  0x18   : > { %v197_v0 = vld [vmem:[%s1731_s6] sm:$0xf] (%p78_p3)  ;;  %v199_v1 = vld [vmem:[%s1731_s6 + $0x8] sm:$0xf] (%p78_p3)  ;;  %v201_v2 = vld [vmem:[%s1731_s6 + $0x10] sm:$0xf] (%p78_p3) }
  0x19   : > { %198 = vst [vmem:[%s1736_s7] sm:$0xf] %v197_v0  ;;  %200 = vst [vmem:[%s1736_s7 + $0x4] sm:$0xf] %v199_v1  ;;  %v203_v3 = vld [vmem:[%s1731_s6 + $0x18] sm:$0xf] }
  0x1a   : > { %202 = vst [vmem:[%s1736_s7 + $0x8] sm:$0xf] %v201_v2  ;;  %v205_v4 = vld [vmem:[%s1731_s6 + $0x20] sm:$0xf]  ;;  %v207_v5 = vld [vmem:[%s1731_s6 + $0x28] sm:$0xf] }
  0x1b   : > { %204 = vst [vmem:[%s1736_s7 + $0xc] sm:$0xf] %v203_v3  ;;  %206 = vst [vmem:[%s1736_s7 + $0x10] sm:$0xf] %v205_v4  ;;  %v209_v6 = vld [vmem:[%s1731_s6 + $0x30] sm:$0xf] }
  0x1c   : > { %208 = vst [vmem:[%s1736_s7 + $0x14] sm:$0xf] %v207_v5  ;;  %v211_v7 = vld [vmem:[%s1731_s6 + $0x38] sm:$0xf]  ;;  %v213_v8 = vld [vmem:[%s1731_s6 + $0x40] sm:$0xf] }
  0x1d   : > { %210 = vst [vmem:[%s1736_s7 + $0x18] sm:$0xf] %v209_v6  ;;  %212 = vst [vmem:[%s1736_s7 + $0x1c] sm:$0xf] %v211_v7  ;;  %v215_v9 = vld [vmem:[%s1731_s6 + $0x48] sm:$0xf] }
  0x1e   : > { %214 = vst [vmem:[%s1736_s7 + $0x20] sm:$0xf] %v213_v8  ;;  %v217_v10 = vld [vmem:[%s1731_s6 + $0x50] sm:$0xf]  ;;  %v219_v11 = vld [vmem:[%s1731_s6 + $0x58] sm:$0xf] }
  0x1f   : > { %216 = vst [vmem:[%s1736_s7 + $0x24] sm:$0xf] %v215_v9  ;;  %218 = vst [vmem:[%s1736_s7 + $0x28] sm:$0xf] %v217_v10  ;;  %v221_v12 = vld [vmem:[%s1731_s6 + $0x60] sm:$0xf] }
  0x20   : > { %220 = vst [vmem:[%s1736_s7 + $0x2c] sm:$0xf] %v219_v11  ;;  %v223_v13 = vld [vmem:[%s1731_s6 + $0x68] sm:$0xf]  ;;  %v225_v14 = vld [vmem:[%s1731_s6 + $0x70] sm:$0xf] }
  0x21   : > { %222 = vst [vmem:[%s1736_s7 + $0x30] sm:$0xf] %v221_v12  ;;  %224 = vst [vmem:[%s1736_s7 + $0x34] sm:$0xf] %v223_v13  ;;  %v227_v15 = vld [vmem:[%s1731_s6 + $0x78] sm:$0xf] }
  0x22   : > { %226 = vst [vmem:[%s1736_s7 + $0x38] sm:$0xf] %v225_v14  ;;  %v229_v16 = vld [vmem:[%s1731_s6 + $0x80] sm:$0xf]  ;;  %v231_v17 = vld [vmem:[%s1731_s6 + $0x88] sm:$0xf] }
  0x23   : > { %228 = vst [vmem:[%s1736_s7 + $0x3c] sm:$0xf] %v227_v15  ;;  %230 = vst [vmem:[%s1736_s7 + $0x40] sm:$0xf] %v229_v16  ;;  %v233_v18 = vld [vmem:[%s1731_s6 + $0x90] sm:$0xf] }
  0x24   : > { %232 = vst [vmem:[%s1736_s7 + $0x44] sm:$0xf] %v231_v17  ;;  %v235_v19 = vld [vmem:[%s1731_s6 + $0x98] sm:$0xf]  ;;  %v237_v20 = vld [vmem:[%s1731_s6 + $0xa0] sm:$0xf] }
  0x25   : > { %234 = vst [vmem:[%s1736_s7 + $0x48] sm:$0xf] %v233_v18  ;;  %236 = vst [vmem:[%s1736_s7 + $0x4c] sm:$0xf] %v235_v19  ;;  %v239_v21 = vld [vmem:[%s1731_s6 + $0xa8] sm:$0xf] }
  0x26   : > { %238 = vst [vmem:[%s1736_s7 + $0x50] sm:$0xf] %v237_v20  ;;  %v241_v22 = vld [vmem:[%s1731_s6 + $0xb0] sm:$0xf]  ;;  %v243_v23 = vld [vmem:[%s1731_s6 + $0xb8] sm:$0xf] }
  0x27   : > { %240 = vst [vmem:[%s1736_s7 + $0x54] sm:$0xf] %v239_v21  ;;  %242 = vst [vmem:[%s1736_s7 + $0x58] sm:$0xf] %v241_v22  ;;  %v245_v24 = vld [vmem:[%s1731_s6 + $0xc0] sm:$0xf] }
  0x28   : > { %244 = vst [vmem:[%s1736_s7 + $0x5c] sm:$0xf] %v243_v23  ;;  %v247_v25 = vld [vmem:[%s1731_s6 + $0xc8] sm:$0xf]  ;;  %v249_v26 = vld [vmem:[%s1731_s6 + $0xd0] sm:$0xf] }
  0x29   : > { %246 = vst [vmem:[%s1736_s7 + $0x60] sm:$0xf] %v245_v24  ;;  %248 = vst [vmem:[%s1736_s7 + $0x64] sm:$0xf] %v247_v25  ;;  %v251_v27 = vld [vmem:[%s1731_s6 + $0xd8] sm:$0xf] }
  0x2a   : > { %250 = vst [vmem:[%s1736_s7 + $0x68] sm:$0xf] %v249_v26  ;;  %v253_v28 = vld [vmem:[%s1731_s6 + $0xe0] sm:$0xf]  ;;  %v255_v29 = vld [vmem:[%s1731_s6 + $0xe8] sm:$0xf] }
  0x2b   : > { %252 = vst [vmem:[%s1736_s7 + $0x6c] sm:$0xf] %v251_v27  ;;  %254 = vst [vmem:[%s1736_s7 + $0x70] sm:$0xf] %v253_v28  ;;  %v257_v30 = vld [vmem:[%s1731_s6 + $0xf0] sm:$0xf] }
  0x2c   : > { %256 = vst [vmem:[%s1736_s7 + $0x74] sm:$0xf] %v255_v29  ;;  %v259_v31 = vld [vmem:[%s1731_s6 + $0xf8] sm:$0xf]  ;;  %v261_v32 = vld [vmem:[%s1731_s6 + $0x100] sm:$0xf] }
  0x2d   : > { %258 = vst [vmem:[%s1736_s7 + $0x78] sm:$0xf] %v257_v30  ;;  %260 = vst [vmem:[%s1736_s7 + $0x7c] sm:$0xf] %v259_v31  ;;  %v263_v33 = vld [vmem:[%s1731_s6 + $0x108] sm:$0xf] }
  0x2e   : > { %262 = vst [vmem:[%s1736_s7 + $0x80] sm:$0xf] %v261_v32  ;;  %v265_v34 = vld [vmem:[%s1731_s6 + $0x110] sm:$0xf]  ;;  %v267_v35 = vld [vmem:[%s1731_s6 + $0x118] sm:$0xf] }
  0x2f   : > { %264 = vst [vmem:[%s1736_s7 + $0x84] sm:$0xf] %v263_v33  ;;  %266 = vst [vmem:[%s1736_s7 + $0x88] sm:$0xf] %v265_v34  ;;  %v269_v36 = vld [vmem:[%s1731_s6 + $0x120] sm:$0xf] }
  0x30   : > { %268 = vst [vmem:[%s1736_s7 + $0x8c] sm:$0xf] %v267_v35  ;;  %v271_v37 = vld [vmem:[%s1731_s6 + $0x128] sm:$0xf]  ;;  %v273_v38 = vld [vmem:[%s1731_s6 + $0x130] sm:$0xf] }
  0x31   : > { %270 = vst [vmem:[%s1736_s7 + $0x90] sm:$0xf] %v269_v36  ;;  %272 = vst [vmem:[%s1736_s7 + $0x94] sm:$0xf] %v271_v37  ;;  %v275_v39 = vld [vmem:[%s1731_s6 + $0x138] sm:$0xf] }
  0x32   : > { %274 = vst [vmem:[%s1736_s7 + $0x98] sm:$0xf] %v273_v38  ;;  %v277_v40 = vld [vmem:[%s1731_s6 + $0x140] sm:$0xf]  ;;  %v279_v41 = vld [vmem:[%s1731_s6 + $0x148] sm:$0xf] }
  0x33   : > { %276 = vst [vmem:[%s1736_s7 + $0x9c] sm:$0xf] %v275_v39  ;;  %278 = vst [vmem:[%s1736_s7 + $0xa0] sm:$0xf] %v277_v40  ;;  %v281_v42 = vld [vmem:[%s1731_s6 + $0x150] sm:$0xf] }
  0x34   : > { %280 = vst [vmem:[%s1736_s7 + $0xa4] sm:$0xf] %v279_v41  ;;  %v283_v43 = vld [vmem:[%s1731_s6 + $0x158] sm:$0xf]  ;;  %v285_v44 = vld [vmem:[%s1731_s6 + $0x160] sm:$0xf] }
  0x35   : > { %282 = vst [vmem:[%s1736_s7 + $0xa8] sm:$0xf] %v281_v42  ;;  %284 = vst [vmem:[%s1736_s7 + $0xac] sm:$0xf] %v283_v43  ;;  %v287_v45 = vld [vmem:[%s1731_s6 + $0x168] sm:$0xf] }
  0x36   : > { %286 = vst [vmem:[%s1736_s7 + $0xb0] sm:$0xf] %v285_v44  ;;  %v289_v46 = vld [vmem:[%s1731_s6 + $0x170] sm:$0xf]  ;;  %v291_v47 = vld [vmem:[%s1731_s6 + $0x178] sm:$0xf] }
  0x37   : > { %288 = vst [vmem:[%s1736_s7 + $0xb4] sm:$0xf] %v287_v45  ;;  %290 = vst [vmem:[%s1736_s7 + $0xb8] sm:$0xf] %v289_v46  ;;  %v293_v48 = vld [vmem:[%s1731_s6 + $0x180] sm:$0xf] }
  0x38   : > { %292 = vst [vmem:[%s1736_s7 + $0xbc] sm:$0xf] %v291_v47  ;;  %v295_v49 = vld [vmem:[%s1731_s6 + $0x188] sm:$0xf]  ;;  %v297_v50 = vld [vmem:[%s1731_s6 + $0x190] sm:$0xf] }
  0x39   : > { %294 = vst [vmem:[%s1736_s7 + $0xc0] sm:$0xf] %v293_v48  ;;  %296 = vst [vmem:[%s1736_s7 + $0xc4] sm:$0xf] %v295_v49  ;;  %v299_v51 = vld [vmem:[%s1731_s6 + $0x198] sm:$0xf] }
  0x3a   : > { %298 = vst [vmem:[%s1736_s7 + $0xc8] sm:$0xf] %v297_v50  ;;  %v301_v52 = vld [vmem:[%s1731_s6 + $0x1a0] sm:$0xf]  ;;  %v303_v53 = vld [vmem:[%s1731_s6 + $0x1a8] sm:$0xf] }
  0x3b   : > { %300 = vst [vmem:[%s1736_s7 + $0xcc] sm:$0xf] %v299_v51  ;;  %302 = vst [vmem:[%s1736_s7 + $0xd0] sm:$0xf] %v301_v52  ;;  %v305_v54 = vld [vmem:[%s1731_s6 + $0x1b0] sm:$0xf] }
  0x3c   : > { %304 = vst [vmem:[%s1736_s7 + $0xd4] sm:$0xf] %v303_v53  ;;  %v307_v55 = vld [vmem:[%s1731_s6 + $0x1b8] sm:$0xf]  ;;  %v309_v56 = vld [vmem:[%s1731_s6 + $0x1c0] sm:$0xf] }
  0x3d   : > { %306 = vst [vmem:[%s1736_s7 + $0xd8] sm:$0xf] %v305_v54  ;;  %308 = vst [vmem:[%s1736_s7 + $0xdc] sm:$0xf] %v307_v55  ;;  %v311_v57 = vld [vmem:[%s1731_s6 + $0x1c8] sm:$0xf] }
  0x3e   : > { %310 = vst [vmem:[%s1736_s7 + $0xe0] sm:$0xf] %v309_v56  ;;  %v313_v58 = vld [vmem:[%s1731_s6 + $0x1d0] sm:$0xf]  ;;  %v315_v59 = vld [vmem:[%s1731_s6 + $0x1d8] sm:$0xf] }
  0x3f   : > { %312 = vst [vmem:[%s1736_s7 + $0xe4] sm:$0xf] %v311_v57  ;;  %314 = vst [vmem:[%s1736_s7 + $0xe8] sm:$0xf] %v313_v58  ;;  %v317_v60 = vld [vmem:[%s1731_s6 + $0x1e0] sm:$0xf] }
  0x40   : > { %316 = vst [vmem:[%s1736_s7 + $0xec] sm:$0xf] %v315_v59  ;;  %v319_v61 = vld [vmem:[%s1731_s6 + $0x1e8] sm:$0xf]  ;;  %v321_v62 = vld [vmem:[%s1731_s6 + $0x1f0] sm:$0xf] }
  0x41   : > { %318 = vst [vmem:[%s1736_s7 + $0xf0] sm:$0xf] %v317_v60  ;;  %320 = vst [vmem:[%s1736_s7 + $0xf4] sm:$0xf] %v319_v61  ;;  %v323_v63 = vld [vmem:[%s1731_s6 + $0x1f8] sm:$0xf] }
  0x42   : > { %322 = vst [vmem:[%s1736_s7 + $0xf8] sm:$0xf] %v321_v62  ;;  %v325_v0 = vld [vmem:[%s1731_s6 + $0x200] sm:$0xf]  ;;  %v327_v1 = vld [vmem:[%s1731_s6 + $0x208] sm:$0xf] }
  0x43   : > { %324 = vst [vmem:[%s1736_s7 + $0xfc] sm:$0xf] %v323_v63  ;;  %326 = vst [vmem:[%s1736_s7 + $0x100] sm:$0xf] %v325_v0  ;;  %v329_v2 = vld [vmem:[%s1731_s6 + $0x210] sm:$0xf] }
  0x44   : > { %328 = vst [vmem:[%s1736_s7 + $0x104] sm:$0xf] %v327_v1  ;;  %v331_v3 = vld [vmem:[%s1731_s6 + $0x218] sm:$0xf]  ;;  %v333_v4 = vld [vmem:[%s1731_s6 + $0x220] sm:$0xf] }
  0x45   : > { %330 = vst [vmem:[%s1736_s7 + $0x108] sm:$0xf] %v329_v2  ;;  %332 = vst [vmem:[%s1736_s7 + $0x10c] sm:$0xf] %v331_v3  ;;  %v335_v5 = vld [vmem:[%s1731_s6 + $0x228] sm:$0xf] }
  0x46   : > { %334 = vst [vmem:[%s1736_s7 + $0x110] sm:$0xf] %v333_v4  ;;  %v337_v6 = vld [vmem:[%s1731_s6 + $0x230] sm:$0xf]  ;;  %v339_v7 = vld [vmem:[%s1731_s6 + $0x238] sm:$0xf] }
  0x47   : > { %336 = vst [vmem:[%s1736_s7 + $0x114] sm:$0xf] %v335_v5  ;;  %338 = vst [vmem:[%s1736_s7 + $0x118] sm:$0xf] %v337_v6  ;;  %v341_v8 = vld [vmem:[%s1731_s6 + $0x240] sm:$0xf] }
  0x48   : > { %340 = vst [vmem:[%s1736_s7 + $0x11c] sm:$0xf] %v339_v7  ;;  %v343_v9 = vld [vmem:[%s1731_s6 + $0x248] sm:$0xf]  ;;  %v345_v10 = vld [vmem:[%s1731_s6 + $0x250] sm:$0xf] }
  0x49   : > { %342 = vst [vmem:[%s1736_s7 + $0x120] sm:$0xf] %v341_v8  ;;  %344 = vst [vmem:[%s1736_s7 + $0x124] sm:$0xf] %v343_v9  ;;  %v347_v11 = vld [vmem:[%s1731_s6 + $0x258] sm:$0xf] }
  0x4a   : > { %346 = vst [vmem:[%s1736_s7 + $0x128] sm:$0xf] %v345_v10  ;;  %v349_v12 = vld [vmem:[%s1731_s6 + $0x260] sm:$0xf]  ;;  %v351_v13 = vld [vmem:[%s1731_s6 + $0x268] sm:$0xf] }
  0x4b   : > { %348 = vst [vmem:[%s1736_s7 + $0x12c] sm:$0xf] %v347_v11  ;;  %350 = vst [vmem:[%s1736_s7 + $0x130] sm:$0xf] %v349_v12  ;;  %v353_v14 = vld [vmem:[%s1731_s6 + $0x270] sm:$0xf] }
  0x4c   : > { %352 = vst [vmem:[%s1736_s7 + $0x134] sm:$0xf] %v351_v13  ;;  %v355_v15 = vld [vmem:[%s1731_s6 + $0x278] sm:$0xf]  ;;  %v357_v16 = vld [vmem:[%s1731_s6 + $0x280] sm:$0xf] }
  0x4d   : > { %354 = vst [vmem:[%s1736_s7 + $0x138] sm:$0xf] %v353_v14  ;;  %356 = vst [vmem:[%s1736_s7 + $0x13c] sm:$0xf] %v355_v15  ;;  %v359_v17 = vld [vmem:[%s1731_s6 + $0x288] sm:$0xf] }
  0x4e   : > { %358 = vst [vmem:[%s1736_s7 + $0x140] sm:$0xf] %v357_v16  ;;  %v361_v18 = vld [vmem:[%s1731_s6 + $0x290] sm:$0xf]  ;;  %v363_v19 = vld [vmem:[%s1731_s6 + $0x298] sm:$0xf] }
  0x4f   : > { %360 = vst [vmem:[%s1736_s7 + $0x144] sm:$0xf] %v359_v17  ;;  %362 = vst [vmem:[%s1736_s7 + $0x148] sm:$0xf] %v361_v18  ;;  %v365_v20 = vld [vmem:[%s1731_s6 + $0x2a0] sm:$0xf] }
  0x50   : > { %364 = vst [vmem:[%s1736_s7 + $0x14c] sm:$0xf] %v363_v19  ;;  %v367_v21 = vld [vmem:[%s1731_s6 + $0x2a8] sm:$0xf]  ;;  %v369_v22 = vld [vmem:[%s1731_s6 + $0x2b0] sm:$0xf] }
  0x51   : > { %366 = vst [vmem:[%s1736_s7 + $0x150] sm:$0xf] %v365_v20  ;;  %368 = vst [vmem:[%s1736_s7 + $0x154] sm:$0xf] %v367_v21  ;;  %v371_v23 = vld [vmem:[%s1731_s6 + $0x2b8] sm:$0xf] }
  0x52   : > { %370 = vst [vmem:[%s1736_s7 + $0x158] sm:$0xf] %v369_v22  ;;  %v373_v24 = vld [vmem:[%s1731_s6 + $0x2c0] sm:$0xf]  ;;  %v375_v25 = vld [vmem:[%s1731_s6 + $0x2c8] sm:$0xf] }
  0x53   : > { %372 = vst [vmem:[%s1736_s7 + $0x15c] sm:$0xf] %v371_v23  ;;  %374 = vst [vmem:[%s1736_s7 + $0x160] sm:$0xf] %v373_v24  ;;  %v377_v26 = vld [vmem:[%s1731_s6 + $0x2d0] sm:$0xf] }
  0x54   : > { %376 = vst [vmem:[%s1736_s7 + $0x164] sm:$0xf] %v375_v25  ;;  %v379_v27 = vld [vmem:[%s1731_s6 + $0x2d8] sm:$0xf]  ;;  %v381_v28 = vld [vmem:[%s1731_s6 + $0x2e0] sm:$0xf] }
  0x55   : > { %378 = vst [vmem:[%s1736_s7 + $0x168] sm:$0xf] %v377_v26  ;;  %380 = vst [vmem:[%s1736_s7 + $0x16c] sm:$0xf] %v379_v27  ;;  %v383_v29 = vld [vmem:[%s1731_s6 + $0x2e8] sm:$0xf] }
  0x56   : > { %382 = vst [vmem:[%s1736_s7 + $0x170] sm:$0xf] %v381_v28  ;;  %v385_v30 = vld [vmem:[%s1731_s6 + $0x2f0] sm:$0xf]  ;;  %v387_v31 = vld [vmem:[%s1731_s6 + $0x2f8] sm:$0xf] }
  0x57   : > { %384 = vst [vmem:[%s1736_s7 + $0x174] sm:$0xf] %v383_v29  ;;  %386 = vst [vmem:[%s1736_s7 + $0x178] sm:$0xf] %v385_v30 }
  0x58   : > { %388 = vst [vmem:[%s1736_s7 + $0x17c] sm:$0xf] %v387_v31 }
  0x59 PF: > { %p1352_p7 = scmp.ge.s32.totalorder %s1648_s18, 1  ;;  %p608_p8 = scmp.lt.s32.totalorder %s1648_s18, 7 }
  0x5b   : > { %p609_p9 = pnand %p1352_p7, %p608_p8 }
  0x5c   : > { %s615_s8 = sand.u32 (!%p609_p9), 1, %s1624_s12   ;;  %s653_s9 = smul.u32 (!%p609_p9), 6, %s1632_s14 }
  0x5d   : > { %612 = sbr.rel (%p609_p9) target bundleno = 410 (0x19a), region = 69  ;;  %p664_p10 = scmp.lt.s32.totalorder (!%p609_p9), %s1636_s15, 1 }
  0x5e   : > { %s1482_s10 = smul.u32 (!%p609_p9), 384, %s615_s8  ;;  %p656_p11 = scmp.lt.s32.totalorder (!%p609_p9), %s653_s9, 17 }
  0x5f   : > { %p1355_p12 = scmp.ne.s32.totalorder (!%p609_p9), %s1632_s14, 0 }
  0x60   : > { %s1950_s4 = scalar_lea.vmem (!%p609_p9), [#allocation3], %s1482_s10 }
  0x64   : > { %s2049_s9 = smov (!%p656_p11, %s653_s9), 17  ;;  %s2051_s15 = smov (!%p664_p10, %s1636_s15), 1 }
  0x65   : > { %s1353_s11 = sshll.u32 %s2049_s9, 2  ;;  %s666_s27 = scalar_lea.vmem %s2034_s2, %s2051_s15  ;;  %v1650_v32 = vmov (!%p1355_p12), 0.0  }
  0x66   : > { %s1938_s23 = scalar_lea.vmem %s2032_s0, %s1353_s11  ;;  %s1354_s12 = sshll.u32 %s2051_s15, 2  ;;  %680 = vst [vmem:[#allocation2] sm:$0xff] (!%p1355_p12), %v1650_v32 }
  0x67   : > { %s1948_s30 = scalar_lea.vmem %s2035_s3, %s1354_s12  ;;  %679 = sbr.rel (%p1355_p12) target bundleno = 110 (0x6e), region = 77 }
  0x6e PF: > { %v1540_v33 = vld [vmem:[%s1950_s4 + $0x40] sm:$0xff]   ;;  %v1544_v37 = vld [vmem:[%s1950_s4 + $0x48] sm:$0xff]   ;;  %v1548_v41 = vld [vmem:[%s1950_s4 + $0x50] sm:$0xff]   ;;  %p1410_p13 = scmp.ne.s32.totalorder %s1632_s14, 2 }
  0x6f   : > { %v1541_v34 = vld [vmem:[%s1950_s4 + $0xc0] sm:$0xff]   ;;  %1415 = vmatprep.subr.bf16.mxu0 %v1540_v33  ;;  %v1545_v38 = vld [vmem:[%s1950_s4 + $0xc8] sm:$0xff]   ;;  %v1549_v42 = vld [vmem:[%s1950_s4 + $0xd0] sm:$0xff]  }
  0x70   : > { %v1542_v35 = vld [vmem:[%s1950_s4] sm:$0xff]   ;;  %1437 = vmatprep.subr.bf16.mxu1 %v1541_v34  ;;  %v1546_v39 = vld [vmem:[%s1950_s4 + $0x8] sm:$0xff]   ;;  %v1550_v43 = vld [vmem:[%s1950_s4 + $0x10] sm:$0xff]  }
  0x71   : > { %v1543_v36 = vld [vmem:[%s1950_s4 + $0x80] sm:$0xff]   ;;  %1416 = vmatpush3.bf16.msra.mxu0 %v1542_v35  ;;  %v1547_v40 = vld [vmem:[%s1950_s4 + $0x88] sm:$0xff]   ;;  %v1551_v44 = vld [vmem:[%s1950_s4 + $0x90] sm:$0xff]  }
  0x72   : > { %1438 = vmatpush3.bf16.msra.mxu1 %v1543_v36  ;;  %1417 = vmatprep.subr.bf16.mxu0 %v1544_v37  ;;  %v1552_v45 = vld [vmem:[%s1950_s4 + $0x58] sm:$0xff]   ;;  %v1556_v49 = vld [vmem:[%s1950_s4 + $0x60] sm:$0xff]   ;;  %v1560_v53 = vld [vmem:[%s1950_s4 + $0x68] sm:$0xff]  }
  0x73   : > { %1439 = vmatprep.subr.bf16.mxu1 %v1545_v38  ;;  %v1553_v46 = vld [vmem:[%s1950_s4 + $0xd8] sm:$0xff]   ;;  %v1557_v50 = vld [vmem:[%s1950_s4 + $0xe0] sm:$0xff]   ;;  %v1561_v54 = vld [vmem:[%s1950_s4 + $0xe8] sm:$0xff]  }
  0x74   : > { %v1554_v47 = vld [vmem:[%s1950_s4 + $0x18] sm:$0xff]   ;;  %v1558_v51 = vld [vmem:[%s1950_s4 + $0x20] sm:$0xff]   ;;  %v1562_v55 = vld [vmem:[%s1950_s4 + $0x28] sm:$0xff]  }
  0x75   : > { %1418 = vmatpush3.bf16.msra.mxu0 %v1546_v39  ;;  %v1555_v48 = vld [vmem:[%s1950_s4 + $0x98] sm:$0xff]   ;;  %v1559_v52 = vld [vmem:[%s1950_s4 + $0xa0] sm:$0xff]   ;;  %v1563_v56 = vld [vmem:[%s1950_s4 + $0xa8] sm:$0xff]  }
  0x76   : > { %1440 = vmatpush3.bf16.msra.mxu1 %v1547_v40  ;;  %1419 = vmatprep.subr.bf16.mxu0 %v1548_v41  ;;  %v1564_v57 = vld [vmem:[%s1950_s4 + $0x70] sm:$0xff]   ;;  %v1568_v61 = vld [vmem:[%s1950_s4 + $0x78] sm:$0xff]   ;;  %v683_v2 = vld [vmem:[%s1938_s23 + $0x8] sm:$0xff] }
  0x77   : > { %1441 = vmatprep.subr.bf16.mxu1 %v1549_v42  ;;  %v1565_v58 = vld [vmem:[%s1950_s4 + $0xf0] sm:$0xff]   ;;  %v1569_v62 = vld [vmem:[%s1950_s4 + $0xf8] sm:$0xff]   ;;  %v1358_v5 = vcombine.low %v683_v2, %v683_v2  ;;  %v1359_v6 = vcombine.high %v683_v2, %v683_v2  ;;  %v1576_v7 = vld [vmem:[%s1950_s4 + $0x140] sm:$0xff]  }
  0x78   : > { %v1566_v59 = vld [vmem:[%s1950_s4 + $0x30] sm:$0xff]   ;;  %v1570_v63 = vld [vmem:[%s1950_s4 + $0x38] sm:$0xff]   ;;  %v1577_v8 = vld [vmem:[%s1950_s4 + $0x100] sm:$0xff]  }
  0x79   : > { %1420 = vmatpush3.bf16.msra.mxu0 %v1550_v43  ;;  %v1567_v60 = vld [vmem:[%s1950_s4 + $0xb0] sm:$0xff]   ;;  %v1571_v0 = vld [vmem:[%s1950_s4 + $0xb8] sm:$0xff]   ;;  %1162 = vmatprep.mubr.bf16.mxu1 %v1359_v6  ;;  %v1578_v9 = vld [vmem:[%s1950_s4 + $0x148] sm:$0xff]  }
  0x7a   : > { %1442 = vmatpush3.bf16.msra.mxu1 %v1551_v44  ;;  %1421 = vmatprep.subr.bf16.mxu0 %v1552_v45  ;;  %v682_v1 = vld [vmem:[%s1938_s23] sm:$0xff]  ;;  %v1579_v10 = vld [vmem:[%s1950_s4 + $0x108] sm:$0xff]   ;;  %v1580_v11 = vld [vmem:[%s1950_s4 + $0x150] sm:$0xff]  }
  0x7b   : > { %1443 = vmatprep.subr.bf16.mxu1 %v1553_v46  ;;  %v1356_v3 = vcombine.low %v682_v1, %v682_v1  ;;  %v1357_v4 = vcombine.high %v682_v1, %v682_v1  ;;  %v1581_v12 = vld [vmem:[%s1950_s4 + $0x110] sm:$0xff]   ;;  %v1582_v13 = vld [vmem:[%s1950_s4 + $0x158] sm:$0xff]   ;;  %v1584_v15 = vld [vmem:[%s1950_s4 + $0x160] sm:$0xff]  }
  0x7c   : > { %v1583_v14 = vld [vmem:[%s1950_s4 + $0x118] sm:$0xff]   ;;  %v684_v16 = vld [vmem:[%s1938_s23 + $0x10] sm:$0xff]  ;;  %v1585_v18 = vld [vmem:[%s1950_s4 + $0x120] sm:$0xff]  }
  0x7d   : > { %1422 = vmatpush3.bf16.msra.mxu0 %v1554_v47  ;;  %1122 = vmatprep.mubr.bf16.mxu0 %v1357_v4  ;;  %v1361_v17 = vcombine.high %v684_v16, %v684_v16  ;;  %v1586_v19 = vld [vmem:[%s1950_s4 + $0x168] sm:$0xff]   ;;  %v1588_v21 = vld [vmem:[%s1950_s4 + $0x170] sm:$0xff]   ;;  %v1590_v23 = vld [vmem:[%s1950_s4 + $0x178] sm:$0xff]   ;;  %v1360_v25 = vcombine.low %v684_v16, %v684_v16 }
  0x7e   : > { %1444 = vmatpush3.bf16.msra.mxu1 %v1555_v48  ;;  %1423 = vmatprep.subr.bf16.mxu0 %v1556_v49  ;;  %v1587_v20 = vld [vmem:[%s1950_s4 + $0x128] sm:$0xff]   ;;  %v1589_v22 = vld [vmem:[%s1950_s4 + $0x130] sm:$0xff]   ;;  %v1591_v24 = vld [vmem:[%s1950_s4 + $0x138] sm:$0xff]  }
  0x7f   : > { %1445 = vmatprep.subr.bf16.mxu1 %v1557_v50  ;;  %v681_v41 = vld [vmem:[#allocation2] sm:$0xff] }
  0x80   : > { %v1411_v46 = vld [vmem:[%s666_s27] ss:$0 sm:$0xff] (!%p1410_p13) }
  0x81   : > { %1424 = vmatpush3.bf16.msra.mxu0 %v1558_v51 }
  0x82   : > { %1446 = vmatpush3.bf16.msra.mxu1 %v1559_v52  ;;  %1425 = vmatprep.subr.bf16.mxu0 %v1560_v53 }
  0x83   : > { %1447 = vmatprep.subr.bf16.mxu1 %v1561_v54 }
  0x85   : > { %1426 = vmatpush3.bf16.msra.mxu0 %v1562_v55 }
  0x86   : > { %1448 = vmatpush3.bf16.msra.mxu1 %v1563_v56  ;;  %1427 = vmatprep.subr.bf16.mxu0 %v1564_v57 }
  0x87   : > { %1449 = vmatprep.subr.bf16.mxu1 %v1565_v58 }
  0x89   : > { %1428 = vmatpush3.bf16.msra.mxu0 %v1566_v59 }
  0x8a   : > { %1450 = vmatpush3.bf16.msra.mxu1 %v1567_v60  ;;  %1429 = vmatprep.subr.bf16.mxu0 %v1568_v61 }
  0x8b   : > { %1451 = vmatprep.subr.bf16.mxu1 %v1569_v62 }
  0x8d   : > { %1430 = vmatpush3.bf16.msra.mxu0 %v1570_v63 }
  0x8e   : > { %1452 = vmatpush3.bf16.msra.mxu1 %v1571_v0  ;;  %1459 = vmatprep.subr.bf16.mxu0 %v1576_v7 }
  0x90   : > { %1123 = vmatmul.mubr.bf16.vlgmr.msra.gmra.mrb[0].mxu0 %v1356_v3 }
  0x91   : > { %1163 = vmatmul.mubr.bf16.vlgmr.msra.gmra.mrb[0].mxu1 %v1358_v5  ;;  %1460 = vmatpush3.bf16.msra.mxu0 %v1577_v8 }
  0x92   : > { %1461 = vmatprep.subr.bf16.mxu0 %v1578_v9  ;;  %1202 = vmatprep.mubr.bf16.mxu0 %v1361_v17 }
  0x95   : > { %1462 = vmatpush3.bf16.msra.mxu0 %v1579_v10 }
  0x96   : > { %1463 = vmatprep.subr.bf16.mxu0 %v1580_v11 }
  0x99   : > { %1464 = vmatpush3.bf16.msra.mxu0 %v1581_v12 }
  0x9a   : > { %1465 = vmatprep.subr.bf16.mxu0 %v1582_v13 }
  0x9d   : > { %1466 = vmatpush3.bf16.msra.mxu0 %v1583_v14 }
  0x9e   : > { %1467 = vmatprep.subr.bf16.mxu0 %v1584_v15 }
  0xa1   : > { %1468 = vmatpush3.bf16.msra.mxu0 %v1585_v18 }
  0xa2   : > { %1469 = vmatprep.subr.bf16.mxu0 %v1586_v19 }
  0xa5   : > { %1470 = vmatpush3.bf16.msra.mxu0 %v1587_v20 }
  0xa6   : > { %1471 = vmatprep.subr.bf16.mxu0 %v1588_v21 }
  0xa9   : > { %1472 = vmatpush3.bf16.msra.mxu0 %v1589_v22 }
  0xaa   : > { %1473 = vmatprep.subr.bf16.mxu0 %v1590_v23 }
  0xad   : > { %1474 = vmatpush3.bf16.msra.mxu0 %v1591_v24 }
  0xb0   : > { %1203 = vmatmul.mubr.bf16.vlgmr.msra.gmra.mrb[4].mxu0 %v1360_v25 }
 0x163   : > { %v1431_v26 = vpop.f32.mrb[0].mxu0 }
 0x164   : > { %v1453_v27 = vpop.f32.mrb[0].mxu1  ;;  %v1432_v28 = vpop.f32.mrb[1].mxu0 }
 0x165   : > { %v1454_v29 = vpop.f32.mrb[1].mxu1  ;;  %v1433_v30 = vadd.f32 %v1432_v28, %v1431_v26  ;;  %v1434_v32 = vpop.f32.mrb[2].mxu0 }
 0x166   : > { %v1455_v31 = vadd.f32 %v1454_v29, %v1453_v27  ;;  %v1456_v33 = vpop.f32.mrb[2].mxu1  ;;  %v1435_v34 = vpop.f32.mrb[3].mxu0 }
 0x167   : > { %v1457_v35 = vpop.f32.mrb[3].mxu1 }
 0x168   : > { %v1165_v36 = vadd.f32 %v1455_v31, %v1433_v30 }
 0x183   : > { %v1475_v37 = vpop.f32.mrb[4].mxu0 }
 0x184   : > { %v1476_v38 = vpop.f32.mrb[5].mxu0 }
 0x185   : > { %v1477_v39 = vadd.f32 %v1476_v38, %v1475_v37  ;;  %v1478_v40 = vpop.f32.mrb[6].mxu0  ;;  %1215 = sbr.rel (%p1410_p13) target bundleno = 410 (0x19a), region = 81 }
 0x186   : > { %v1479_v42 = vpop.f32.mrb[7].mxu0 }
 0x187   : > { %v1205_v43 = vadd.f32 %v1477_v39, %v1165_v36 }
 0x189   : > { %v1210_v44 = vadd.f32 %v1205_v43, %v681_v41 }
 0x18b   : > { %1211 = vst [vmem:[#allocation2] sm:$0xff] %v1210_v44 }
 0x192   : > { %v1216_v45 = vld [vmem:[#allocation2] sm:$0xff] }
 0x193   : > { %v1224_v47 = vadd.f32 %v1411_v46, %v1216_v45 }
 0x195   : > { %v1225_v48 = vmax.f32 %v1224_v47, 0.0 }
 0x197   : > { %v1226_v49 = vpack.c.bf16 %v1225_v48, %v1225_v48 }
 0x199   : > { %1227 = vst [vmem:[%s1948_s30] sm:$0xf] %v1226_v49 }
 0x19a PF: > { %s13_s18 = sadd.s32 1, %s1648_s18   ;;  %s2036_s12 = smov %s1628_s13 }
 0x19b   : > { %p10_p0 = scmp.ge.s32.totalorder %s13_s18, 8   ;;  %s2037_s13 = smov %s1722_s25 }
 0x19c   : > { %s2038_s14 = smov %s1640_s16  ;;  %s2039_s15 = smov %s1644_s17 }
 0x19d   : > { %s2040_s16 = smov %s2043_s19  ;;  %s2041_s17 = smov %s2047_s20 }
 0x19e   :  { %12 = sbr.rel (!%p10_p0) target bundleno = 4 (0x4), region = 122 }

// kernel: unet_forward.34
= control target key start
LH: loop header
LB: loop body
LE: loop exit
PB: predicated region body
PF: predicated region fallthrough
CT: control target
= control target key end

     0   :  { %s1995_s12 = smov 0   ;;  %s1997_s13 = smov 0   ;;  %s2426_s0 = inlined_call_operand.vmem [shape: bf16[8,1024], index: 0, kind: input, shape index: {}]   ;;  %s2427_s1 = inlined_call_operand.vmem [shape: bf16[1024,512], index: 1, kind: input, shape index: {}]   ;;  %s2428_s2 = inlined_call_operand.vmem [shape: f32[1,512], index: 2, kind: input, shape index: {}]   ;;  %s2429_s3 = inlined_call_operand.vmem [shape: bf16[8,512], index: 3, kind: output, shape index: {}]  }
   0x1   :  { %s1999_s14 = smov 0   ;;  %s2001_s15 = smov 0  }
   0x2   :  { %s2003_s16 = smov 0  }
   0x3 LB: > { %s28_s17 = sadd.s32 1, %s1969_s15  ;;  %p76_p1 = scmp.ne.s32.totalorder %s1961_s13, %s1957_s12  ;;  %s1973_s16 = sphi %s2003_s16, %s13_s16   ;;  %s1969_s15 = sphi %s2001_s15, %s2433_s15   ;;  %s1965_s14 = sphi %s1999_s14, %s2432_s14   ;;  %s1961_s13 = sphi %s1997_s13, %s2431_s13   ;;  %s1957_s12 = sphi %s1995_s12, %s2430_s12  }
   0x4   : > { %p30_p0 = scmp.ge.s32.totalorder %s28_s17, 4  ;;  %p77_p2 = scmp.eq.s32.totalorder %s1973_s16, 0 }
   0x5   : > { %s69_s19 = sadd.s32 1, %s1961_s13  ;;  %p1654_p5 = scmp.ge.s32.totalorder %s1973_s16, 4 }
   0x6   : > { %s2435_s17 = smov (%p30_p0, %s28_s17), 0  ;;  %p78_p3 = por %p77_p2, %p76_p1 }
   0x7   : > { %s65_s18 = ssub.s32 %s1969_s15, %s2435_s17  ;;  %169 = sbr.rel (%p1654_p5) target bundleno = 103 (0x67), region = 20 }
   0x8   : > { %p67_p4 = scmp.eq.s32.totalorder %s65_s18, 0 }
   0xa   : > { %s2030_s20 = scalar_select %p67_p4, %s1961_s13, %s69_s19  }
   0xe   : > { %172 = sbr.rel (!%p78_p3) target bundleno = 103 (0x67), region = 24  ;;  %s174_s21 = sand.u32 (%p78_p3), 1, %s1961_s13  }
   0xf   : > { %s1656_s22 = sshll.u32 (%p78_p3), %s1969_s15, 2  ;;  %s1655_s23 = sshll.u32 (%p78_p3), %s174_s21, 9 }
  0x10   : > { %s2038_s26 = scalar_lea.vmem (%p78_p3), %s2427_s1, %s1656_s22  ;;  %s2042_s27 = scalar_lea.vmem (%p78_p3), [#allocation3], %s1655_s23 }
  0x11   : > { %v197_v0 = vld [vmem:[%s2038_s26] sm:$0xf] (%p78_p3)  ;;  %v199_v1 = vld [vmem:[%s2038_s26 + $0x10] sm:$0xf] (%p78_p3) }
  0x12   : > { %198 = vst [vmem:[%s2042_s27] sm:$0xf] (%p78_p3), %v197_v0  ;;  %200 = vst [vmem:[%s2042_s27 + $0x4] sm:$0xf] (%p78_p3), %v199_v1  ;;  %v201_v2 = vld [vmem:[%s2038_s26 + $0x20] sm:$0xf] (%p78_p3) }
  0x13   : > { %v203_v3 = vld [vmem:[%s2038_s26 + $0x30] sm:$0xf] (%p78_p3)  ;;  %v205_v4 = vld [vmem:[%s2038_s26 + $0x40] sm:$0xf] (%p78_p3)  ;;  %202 = vst [vmem:[%s2042_s27 + $0x8] sm:$0xf] (%p78_p3), %v201_v2 }
  0x14   : > { %204 = vst [vmem:[%s2042_s27 + $0xc] sm:$0xf] (%p78_p3), %v203_v3  ;;  %206 = vst [vmem:[%s2042_s27 + $0x10] sm:$0xf] (%p78_p3), %v205_v4  ;;  %v207_v5 = vld [vmem:[%s2038_s26 + $0x50] sm:$0xf] (%p78_p3) }
  0x15   : > { %v209_v6 = vld [vmem:[%s2038_s26 + $0x60] sm:$0xf]  ;;  %v211_v7 = vld [vmem:[%s2038_s26 + $0x70] sm:$0xf]  ;;  %208 = vst [vmem:[%s2042_s27 + $0x14] sm:$0xf] %v207_v5 }
  0x16   : > { %210 = vst [vmem:[%s2042_s27 + $0x18] sm:$0xf] %v209_v6  ;;  %212 = vst [vmem:[%s2042_s27 + $0x1c] sm:$0xf] %v211_v7  ;;  %v213_v8 = vld [vmem:[%s2038_s26 + $0x80] sm:$0xf] }
  0x17   : > { %v215_v9 = vld [vmem:[%s2038_s26 + $0x90] sm:$0xf]  ;;  %v217_v10 = vld [vmem:[%s2038_s26 + $0xa0] sm:$0xf]  ;;  %214 = vst [vmem:[%s2042_s27 + $0x20] sm:$0xf] %v213_v8 }
  0x18   : > { %216 = vst [vmem:[%s2042_s27 + $0x24] sm:$0xf] %v215_v9  ;;  %218 = vst [vmem:[%s2042_s27 + $0x28] sm:$0xf] %v217_v10  ;;  %v219_v11 = vld [vmem:[%s2038_s26 + $0xb0] sm:$0xf] }
  0x19   : > { %v221_v12 = vld [vmem:[%s2038_s26 + $0xc0] sm:$0xf]  ;;  %v223_v13 = vld [vmem:[%s2038_s26 + $0xd0] sm:$0xf]  ;;  %220 = vst [vmem:[%s2042_s27 + $0x2c] sm:$0xf] %v219_v11 }
  0x1a   : > { %222 = vst [vmem:[%s2042_s27 + $0x30] sm:$0xf] %v221_v12  ;;  %224 = vst [vmem:[%s2042_s27 + $0x34] sm:$0xf] %v223_v13  ;;  %v225_v14 = vld [vmem:[%s2038_s26 + $0xe0] sm:$0xf] }
  0x1b   : > { %v227_v15 = vld [vmem:[%s2038_s26 + $0xf0] sm:$0xf]  ;;  %v229_v16 = vld [vmem:[%s2038_s26 + $0x100] sm:$0xf]  ;;  %226 = vst [vmem:[%s2042_s27 + $0x38] sm:$0xf] %v225_v14 }
  0x1c   : > { %228 = vst [vmem:[%s2042_s27 + $0x3c] sm:$0xf] %v227_v15  ;;  %230 = vst [vmem:[%s2042_s27 + $0x40] sm:$0xf] %v229_v16  ;;  %v231_v17 = vld [vmem:[%s2038_s26 + $0x110] sm:$0xf] }
  0x1d   : > { %v233_v18 = vld [vmem:[%s2038_s26 + $0x120] sm:$0xf]  ;;  %v235_v19 = vld [vmem:[%s2038_s26 + $0x130] sm:$0xf]  ;;  %232 = vst [vmem:[%s2042_s27 + $0x44] sm:$0xf] %v231_v17 }
  0x1e   : > { %234 = vst [vmem:[%s2042_s27 + $0x48] sm:$0xf] %v233_v18  ;;  %236 = vst [vmem:[%s2042_s27 + $0x4c] sm:$0xf] %v235_v19  ;;  %v237_v20 = vld [vmem:[%s2038_s26 + $0x140] sm:$0xf] }
  0x1f   : > { %v239_v21 = vld [vmem:[%s2038_s26 + $0x150] sm:$0xf]  ;;  %v241_v22 = vld [vmem:[%s2038_s26 + $0x160] sm:$0xf]  ;;  %238 = vst [vmem:[%s2042_s27 + $0x50] sm:$0xf] %v237_v20 }
  0x20   : > { %240 = vst [vmem:[%s2042_s27 + $0x54] sm:$0xf] %v239_v21  ;;  %242 = vst [vmem:[%s2042_s27 + $0x58] sm:$0xf] %v241_v22  ;;  %v243_v23 = vld [vmem:[%s2038_s26 + $0x170] sm:$0xf] }
  0x21   : > { %v245_v24 = vld [vmem:[%s2038_s26 + $0x180] sm:$0xf]  ;;  %v247_v25 = vld [vmem:[%s2038_s26 + $0x190] sm:$0xf]  ;;  %244 = vst [vmem:[%s2042_s27 + $0x5c] sm:$0xf] %v243_v23 }
  0x22   : > { %246 = vst [vmem:[%s2042_s27 + $0x60] sm:$0xf] %v245_v24  ;;  %248 = vst [vmem:[%s2042_s27 + $0x64] sm:$0xf] %v247_v25  ;;  %v249_v26 = vld [vmem:[%s2038_s26 + $0x1a0] sm:$0xf] }
  0x23   : > { %v251_v27 = vld [vmem:[%s2038_s26 + $0x1b0] sm:$0xf]  ;;  %v253_v28 = vld [vmem:[%s2038_s26 + $0x1c0] sm:$0xf]  ;;  %250 = vst [vmem:[%s2042_s27 + $0x68] sm:$0xf] %v249_v26 }
  0x24   : > { %252 = vst [vmem:[%s2042_s27 + $0x6c] sm:$0xf] %v251_v27  ;;  %254 = vst [vmem:[%s2042_s27 + $0x70] sm:$0xf] %v253_v28  ;;  %v255_v29 = vld [vmem:[%s2038_s26 + $0x1d0] sm:$0xf] }
  0x25   : > { %v257_v30 = vld [vmem:[%s2038_s26 + $0x1e0] sm:$0xf]  ;;  %v259_v31 = vld [vmem:[%s2038_s26 + $0x1f0] sm:$0xf]  ;;  %256 = vst [vmem:[%s2042_s27 + $0x74] sm:$0xf] %v255_v29 }
  0x26   : > { %258 = vst [vmem:[%s2042_s27 + $0x78] sm:$0xf] %v257_v30  ;;  %260 = vst [vmem:[%s2042_s27 + $0x7c] sm:$0xf] %v259_v31  ;;  %v261_v32 = vld [vmem:[%s2038_s26 + $0x200] sm:$0xf] }
  0x27   : > { %v263_v33 = vld [vmem:[%s2038_s26 + $0x210] sm:$0xf]  ;;  %v265_v34 = vld [vmem:[%s2038_s26 + $0x220] sm:$0xf]  ;;  %262 = vst [vmem:[%s2042_s27 + $0x80] sm:$0xf] %v261_v32 }
  0x28   : > { %264 = vst [vmem:[%s2042_s27 + $0x84] sm:$0xf] %v263_v33  ;;  %266 = vst [vmem:[%s2042_s27 + $0x88] sm:$0xf] %v265_v34  ;;  %v267_v35 = vld [vmem:[%s2038_s26 + $0x230] sm:$0xf] }
  0x29   : > { %v269_v36 = vld [vmem:[%s2038_s26 + $0x240] sm:$0xf]  ;;  %v271_v37 = vld [vmem:[%s2038_s26 + $0x250] sm:$0xf]  ;;  %268 = vst [vmem:[%s2042_s27 + $0x8c] sm:$0xf] %v267_v35 }
  0x2a   : > { %270 = vst [vmem:[%s2042_s27 + $0x90] sm:$0xf] %v269_v36  ;;  %272 = vst [vmem:[%s2042_s27 + $0x94] sm:$0xf] %v271_v37  ;;  %v273_v38 = vld [vmem:[%s2038_s26 + $0x260] sm:$0xf] }
  0x2b   : > { %v275_v39 = vld [vmem:[%s2038_s26 + $0x270] sm:$0xf]  ;;  %v277_v40 = vld [vmem:[%s2038_s26 + $0x280] sm:$0xf]  ;;  %274 = vst [vmem:[%s2042_s27 + $0x98] sm:$0xf] %v273_v38 }
  0x2c   : > { %276 = vst [vmem:[%s2042_s27 + $0x9c] sm:$0xf] %v275_v39  ;;  %278 = vst [vmem:[%s2042_s27 + $0xa0] sm:$0xf] %v277_v40  ;;  %v279_v41 = vld [vmem:[%s2038_s26 + $0x290] sm:$0xf] }
  0x2d   : > { %v281_v42 = vld [vmem:[%s2038_s26 + $0x2a0] sm:$0xf]  ;;  %v283_v43 = vld [vmem:[%s2038_s26 + $0x2b0] sm:$0xf]  ;;  %280 = vst [vmem:[%s2042_s27 + $0xa4] sm:$0xf] %v279_v41 }
  0x2e   : > { %282 = vst [vmem:[%s2042_s27 + $0xa8] sm:$0xf] %v281_v42  ;;  %284 = vst [vmem:[%s2042_s27 + $0xac] sm:$0xf] %v283_v43  ;;  %v285_v44 = vld [vmem:[%s2038_s26 + $0x2c0] sm:$0xf] }
  0x2f   : > { %v287_v45 = vld [vmem:[%s2038_s26 + $0x2d0] sm:$0xf]  ;;  %v289_v46 = vld [vmem:[%s2038_s26 + $0x2e0] sm:$0xf]  ;;  %286 = vst [vmem:[%s2042_s27 + $0xb0] sm:$0xf] %v285_v44 }
  0x30   : > { %288 = vst [vmem:[%s2042_s27 + $0xb4] sm:$0xf] %v287_v45  ;;  %290 = vst [vmem:[%s2042_s27 + $0xb8] sm:$0xf] %v289_v46  ;;  %v291_v47 = vld [vmem:[%s2038_s26 + $0x2f0] sm:$0xf] }
  0x31   : > { %v293_v48 = vld [vmem:[%s2038_s26 + $0x300] sm:$0xf]  ;;  %v295_v49 = vld [vmem:[%s2038_s26 + $0x310] sm:$0xf]  ;;  %292 = vst [vmem:[%s2042_s27 + $0xbc] sm:$0xf] %v291_v47 }
  0x32   : > { %294 = vst [vmem:[%s2042_s27 + $0xc0] sm:$0xf] %v293_v48  ;;  %296 = vst [vmem:[%s2042_s27 + $0xc4] sm:$0xf] %v295_v49  ;;  %v297_v50 = vld [vmem:[%s2038_s26 + $0x320] sm:$0xf] }
  0x33   : > { %v299_v51 = vld [vmem:[%s2038_s26 + $0x330] sm:$0xf]  ;;  %v301_v52 = vld [vmem:[%s2038_s26 + $0x340] sm:$0xf]  ;;  %298 = vst [vmem:[%s2042_s27 + $0xc8] sm:$0xf] %v297_v50 }
  0x34   : > { %300 = vst [vmem:[%s2042_s27 + $0xcc] sm:$0xf] %v299_v51  ;;  %302 = vst [vmem:[%s2042_s27 + $0xd0] sm:$0xf] %v301_v52  ;;  %v303_v53 = vld [vmem:[%s2038_s26 + $0x350] sm:$0xf] }
  0x35   : > { %v305_v54 = vld [vmem:[%s2038_s26 + $0x360] sm:$0xf]  ;;  %v307_v55 = vld [vmem:[%s2038_s26 + $0x370] sm:$0xf]  ;;  %304 = vst [vmem:[%s2042_s27 + $0xd4] sm:$0xf] %v303_v53 }
  0x36   : > { %306 = vst [vmem:[%s2042_s27 + $0xd8] sm:$0xf] %v305_v54  ;;  %308 = vst [vmem:[%s2042_s27 + $0xdc] sm:$0xf] %v307_v55  ;;  %v309_v56 = vld [vmem:[%s2038_s26 + $0x380] sm:$0xf] }
  0x37   : > { %v311_v57 = vld [vmem:[%s2038_s26 + $0x390] sm:$0xf]  ;;  %v313_v58 = vld [vmem:[%s2038_s26 + $0x3a0] sm:$0xf]  ;;  %310 = vst [vmem:[%s2042_s27 + $0xe0] sm:$0xf] %v309_v56 }
  0x38   : > { %312 = vst [vmem:[%s2042_s27 + $0xe4] sm:$0xf] %v311_v57  ;;  %314 = vst [vmem:[%s2042_s27 + $0xe8] sm:$0xf] %v313_v58  ;;  %v315_v59 = vld [vmem:[%s2038_s26 + $0x3b0] sm:$0xf] }
  0x39   : > { %v317_v60 = vld [vmem:[%s2038_s26 + $0x3c0] sm:$0xf]  ;;  %v319_v61 = vld [vmem:[%s2038_s26 + $0x3d0] sm:$0xf]  ;;  %316 = vst [vmem:[%s2042_s27 + $0xec] sm:$0xf] %v315_v59 }
  0x3a   : > { %318 = vst [vmem:[%s2042_s27 + $0xf0] sm:$0xf] %v317_v60  ;;  %320 = vst [vmem:[%s2042_s27 + $0xf4] sm:$0xf] %v319_v61  ;;  %v321_v62 = vld [vmem:[%s2038_s26 + $0x3e0] sm:$0xf] }
  0x3b   : > { %v323_v63 = vld [vmem:[%s2038_s26 + $0x3f0] sm:$0xf]  ;;  %v325_v0 = vld [vmem:[%s2038_s26 + $0x400] sm:$0xf]  ;;  %322 = vst [vmem:[%s2042_s27 + $0xf8] sm:$0xf] %v321_v62 }
  0x3c   : > { %324 = vst [vmem:[%s2042_s27 + $0xfc] sm:$0xf] %v323_v63  ;;  %326 = vst [vmem:[%s2042_s27 + $0x100] sm:$0xf] %v325_v0  ;;  %v327_v1 = vld [vmem:[%s2038_s26 + $0x410] sm:$0xf] }
  0x3d   : > { %v329_v2 = vld [vmem:[%s2038_s26 + $0x420] sm:$0xf]  ;;  %v331_v3 = vld [vmem:[%s2038_s26 + $0x430] sm:$0xf]  ;;  %328 = vst [vmem:[%s2042_s27 + $0x104] sm:$0xf] %v327_v1 }
  0x3e   : > { %330 = vst [vmem:[%s2042_s27 + $0x108] sm:$0xf] %v329_v2  ;;  %332 = vst [vmem:[%s2042_s27 + $0x10c] sm:$0xf] %v331_v3  ;;  %v333_v4 = vld [vmem:[%s2038_s26 + $0x440] sm:$0xf] }
  0x3f   : > { %v335_v5 = vld [vmem:[%s2038_s26 + $0x450] sm:$0xf]  ;;  %v337_v6 = vld [vmem:[%s2038_s26 + $0x460] sm:$0xf]  ;;  %334 = vst [vmem:[%s2042_s27 + $0x110] sm:$0xf] %v333_v4 }
  0x40   : > { %336 = vst [vmem:[%s2042_s27 + $0x114] sm:$0xf] %v335_v5  ;;  %338 = vst [vmem:[%s2042_s27 + $0x118] sm:$0xf] %v337_v6  ;;  %v339_v7 = vld [vmem:[%s2038_s26 + $0x470] sm:$0xf] }
  0x41   : > { %v341_v8 = vld [vmem:[%s2038_s26 + $0x480] sm:$0xf]  ;;  %v343_v9 = vld [vmem:[%s2038_s26 + $0x490] sm:$0xf]  ;;  %340 = vst [vmem:[%s2042_s27 + $0x11c] sm:$0xf] %v339_v7 }
  0x42   : > { %342 = vst [vmem:[%s2042_s27 + $0x120] sm:$0xf] %v341_v8  ;;  %344 = vst [vmem:[%s2042_s27 + $0x124] sm:$0xf] %v343_v9  ;;  %v345_v10 = vld [vmem:[%s2038_s26 + $0x4a0] sm:$0xf] }
  0x43   : > { %v347_v11 = vld [vmem:[%s2038_s26 + $0x4b0] sm:$0xf]  ;;  %v349_v12 = vld [vmem:[%s2038_s26 + $0x4c0] sm:$0xf]  ;;  %346 = vst [vmem:[%s2042_s27 + $0x128] sm:$0xf] %v345_v10 }
  0x44   : > { %348 = vst [vmem:[%s2042_s27 + $0x12c] sm:$0xf] %v347_v11  ;;  %350 = vst [vmem:[%s2042_s27 + $0x130] sm:$0xf] %v349_v12  ;;  %v351_v13 = vld [vmem:[%s2038_s26 + $0x4d0] sm:$0xf] }
  0x45   : > { %v353_v14 = vld [vmem:[%s2038_s26 + $0x4e0] sm:$0xf]  ;;  %v355_v15 = vld [vmem:[%s2038_s26 + $0x4f0] sm:$0xf]  ;;  %352 = vst [vmem:[%s2042_s27 + $0x134] sm:$0xf] %v351_v13 }
  0x46   : > { %354 = vst [vmem:[%s2042_s27 + $0x138] sm:$0xf] %v353_v14  ;;  %356 = vst [vmem:[%s2042_s27 + $0x13c] sm:$0xf] %v355_v15  ;;  %v357_v16 = vld [vmem:[%s2038_s26 + $0x500] sm:$0xf] }
  0x47   : > { %v359_v17 = vld [vmem:[%s2038_s26 + $0x510] sm:$0xf]  ;;  %v361_v18 = vld [vmem:[%s2038_s26 + $0x520] sm:$0xf]  ;;  %358 = vst [vmem:[%s2042_s27 + $0x140] sm:$0xf] %v357_v16 }
  0x48   : > { %360 = vst [vmem:[%s2042_s27 + $0x144] sm:$0xf] %v359_v17  ;;  %362 = vst [vmem:[%s2042_s27 + $0x148] sm:$0xf] %v361_v18  ;;  %v363_v19 = vld [vmem:[%s2038_s26 + $0x530] sm:$0xf] }
  0x49   : > { %v365_v20 = vld [vmem:[%s2038_s26 + $0x540] sm:$0xf]  ;;  %v367_v21 = vld [vmem:[%s2038_s26 + $0x550] sm:$0xf]  ;;  %364 = vst [vmem:[%s2042_s27 + $0x14c] sm:$0xf] %v363_v19 }
  0x4a   : > { %366 = vst [vmem:[%s2042_s27 + $0x150] sm:$0xf] %v365_v20  ;;  %368 = vst [vmem:[%s2042_s27 + $0x154] sm:$0xf] %v367_v21  ;;  %v369_v22 = vld [vmem:[%s2038_s26 + $0x560] sm:$0xf] }
  0x4b   : > { %v371_v23 = vld [vmem:[%s2038_s26 + $0x570] sm:$0xf]  ;;  %v373_v24 = vld [vmem:[%s2038_s26 + $0x580] sm:$0xf]  ;;  %370 = vst [vmem:[%s2042_s27 + $0x158] sm:$0xf] %v369_v22 }
  0x4c   : > { %372 = vst [vmem:[%s2042_s27 + $0x15c] sm:$0xf] %v371_v23  ;;  %374 = vst [vmem:[%s2042_s27 + $0x160] sm:$0xf] %v373_v24  ;;  %v375_v25 = vld [vmem:[%s2038_s26 + $0x590] sm:$0xf] }
  0x4d   : > { %v377_v26 = vld [vmem:[%s2038_s26 + $0x5a0] sm:$0xf]  ;;  %v379_v27 = vld [vmem:[%s2038_s26 + $0x5b0] sm:$0xf]  ;;  %376 = vst [vmem:[%s2042_s27 + $0x164] sm:$0xf] %v375_v25 }
  0x4e   : > { %378 = vst [vmem:[%s2042_s27 + $0x168] sm:$0xf] %v377_v26  ;;  %380 = vst [vmem:[%s2042_s27 + $0x16c] sm:$0xf] %v379_v27  ;;  %v381_v28 = vld [vmem:[%s2038_s26 + $0x5c0] sm:$0xf] }
  0x4f   : > { %v383_v29 = vld [vmem:[%s2038_s26 + $0x5d0] sm:$0xf]  ;;  %v385_v30 = vld [vmem:[%s2038_s26 + $0x5e0] sm:$0xf]  ;;  %382 = vst [vmem:[%s2042_s27 + $0x170] sm:$0xf] %v381_v28 }
  0x50   : > { %384 = vst [vmem:[%s2042_s27 + $0x174] sm:$0xf] %v383_v29  ;;  %386 = vst [vmem:[%s2042_s27 + $0x178] sm:$0xf] %v385_v30  ;;  %v387_v31 = vld [vmem:[%s2038_s26 + $0x5f0] sm:$0xf] }
  0x51   : > { %v389_v32 = vld [vmem:[%s2038_s26 + $0x600] sm:$0xf]  ;;  %v391_v33 = vld [vmem:[%s2038_s26 + $0x610] sm:$0xf]  ;;  %388 = vst [vmem:[%s2042_s27 + $0x17c] sm:$0xf] %v387_v31 }
  0x52   : > { %390 = vst [vmem:[%s2042_s27 + $0x180] sm:$0xf] %v389_v32  ;;  %392 = vst [vmem:[%s2042_s27 + $0x184] sm:$0xf] %v391_v33  ;;  %v393_v34 = vld [vmem:[%s2038_s26 + $0x620] sm:$0xf] }
  0x53   : > { %v395_v35 = vld [vmem:[%s2038_s26 + $0x630] sm:$0xf]  ;;  %v397_v36 = vld [vmem:[%s2038_s26 + $0x640] sm:$0xf]  ;;  %394 = vst [vmem:[%s2042_s27 + $0x188] sm:$0xf] %v393_v34 }
  0x54   : > { %396 = vst [vmem:[%s2042_s27 + $0x18c] sm:$0xf] %v395_v35  ;;  %398 = vst [vmem:[%s2042_s27 + $0x190] sm:$0xf] %v397_v36  ;;  %v399_v37 = vld [vmem:[%s2038_s26 + $0x650] sm:$0xf] }
  0x55   : > { %v401_v38 = vld [vmem:[%s2038_s26 + $0x660] sm:$0xf]  ;;  %v403_v39 = vld [vmem:[%s2038_s26 + $0x670] sm:$0xf]  ;;  %400 = vst [vmem:[%s2042_s27 + $0x194] sm:$0xf] %v399_v37 }
  0x56   : > { %402 = vst [vmem:[%s2042_s27 + $0x198] sm:$0xf] %v401_v38  ;;  %404 = vst [vmem:[%s2042_s27 + $0x19c] sm:$0xf] %v403_v39  ;;  %v405_v40 = vld [vmem:[%s2038_s26 + $0x680] sm:$0xf] }
  0x57   : > { %v407_v41 = vld [vmem:[%s2038_s26 + $0x690] sm:$0xf]  ;;  %v409_v42 = vld [vmem:[%s2038_s26 + $0x6a0] sm:$0xf]  ;;  %406 = vst [vmem:[%s2042_s27 + $0x1a0] sm:$0xf] %v405_v40 }
  0x58   : > { %408 = vst [vmem:[%s2042_s27 + $0x1a4] sm:$0xf] %v407_v41  ;;  %410 = vst [vmem:[%s2042_s27 + $0x1a8] sm:$0xf] %v409_v42  ;;  %v411_v43 = vld [vmem:[%s2038_s26 + $0x6b0] sm:$0xf] }
  0x59   : > { %v413_v44 = vld [vmem:[%s2038_s26 + $0x6c0] sm:$0xf]  ;;  %v415_v45 = vld [vmem:[%s2038_s26 + $0x6d0] sm:$0xf]  ;;  %412 = vst [vmem:[%s2042_s27 + $0x1ac] sm:$0xf] %v411_v43 }
  0x5a   : > { %414 = vst [vmem:[%s2042_s27 + $0x1b0] sm:$0xf] %v413_v44  ;;  %416 = vst [vmem:[%s2042_s27 + $0x1b4] sm:$0xf] %v415_v45  ;;  %v417_v46 = vld [vmem:[%s2038_s26 + $0x6e0] sm:$0xf] }
  0x5b   : > { %v419_v47 = vld [vmem:[%s2038_s26 + $0x6f0] sm:$0xf]  ;;  %v421_v48 = vld [vmem:[%s2038_s26 + $0x700] sm:$0xf]  ;;  %418 = vst [vmem:[%s2042_s27 + $0x1b8] sm:$0xf] %v417_v46 }
  0x5c   : > { %420 = vst [vmem:[%s2042_s27 + $0x1bc] sm:$0xf] %v419_v47  ;;  %422 = vst [vmem:[%s2042_s27 + $0x1c0] sm:$0xf] %v421_v48  ;;  %v423_v49 = vld [vmem:[%s2038_s26 + $0x710] sm:$0xf] }
  0x5d   : > { %v425_v50 = vld [vmem:[%s2038_s26 + $0x720] sm:$0xf]  ;;  %v427_v51 = vld [vmem:[%s2038_s26 + $0x730] sm:$0xf]  ;;  %424 = vst [vmem:[%s2042_s27 + $0x1c4] sm:$0xf] %v423_v49 }
  0x5e   : > { %426 = vst [vmem:[%s2042_s27 + $0x1c8] sm:$0xf] %v425_v50  ;;  %428 = vst [vmem:[%s2042_s27 + $0x1cc] sm:$0xf] %v427_v51  ;;  %v429_v52 = vld [vmem:[%s2038_s26 + $0x740] sm:$0xf] }
  0x5f   : > { %v431_v53 = vld [vmem:[%s2038_s26 + $0x750] sm:$0xf]  ;;  %v433_v54 = vld [vmem:[%s2038_s26 + $0x760] sm:$0xf]  ;;  %430 = vst [vmem:[%s2042_s27 + $0x1d0] sm:$0xf] %v429_v52 }
  0x60   : > { %432 = vst [vmem:[%s2042_s27 + $0x1d4] sm:$0xf] %v431_v53  ;;  %434 = vst [vmem:[%s2042_s27 + $0x1d8] sm:$0xf] %v433_v54  ;;  %v435_v55 = vld [vmem:[%s2038_s26 + $0x770] sm:$0xf] }
  0x61   : > { %v437_v56 = vld [vmem:[%s2038_s26 + $0x780] sm:$0xf]  ;;  %v439_v57 = vld [vmem:[%s2038_s26 + $0x790] sm:$0xf]  ;;  %436 = vst [vmem:[%s2042_s27 + $0x1dc] sm:$0xf] %v435_v55 }
  0x62   : > { %438 = vst [vmem:[%s2042_s27 + $0x1e0] sm:$0xf] %v437_v56  ;;  %440 = vst [vmem:[%s2042_s27 + $0x1e4] sm:$0xf] %v439_v57  ;;  %v441_v58 = vld [vmem:[%s2038_s26 + $0x7a0] sm:$0xf] }
  0x63   : > { %v443_v59 = vld [vmem:[%s2038_s26 + $0x7b0] sm:$0xf]  ;;  %v445_v60 = vld [vmem:[%s2038_s26 + $0x7c0] sm:$0xf]  ;;  %442 = vst [vmem:[%s2042_s27 + $0x1e8] sm:$0xf] %v441_v58 }
  0x64   : > { %444 = vst [vmem:[%s2042_s27 + $0x1ec] sm:$0xf] %v443_v59  ;;  %446 = vst [vmem:[%s2042_s27 + $0x1f0] sm:$0xf] %v445_v60  ;;  %v447_v61 = vld [vmem:[%s2038_s26 + $0x7d0] sm:$0xf] }
  0x65   : > { %v449_v62 = vld [vmem:[%s2038_s26 + $0x7e0] sm:$0xf]  ;;  %v451_v63 = vld [vmem:[%s2038_s26 + $0x7f0] sm:$0xf]  ;;  %448 = vst [vmem:[%s2042_s27 + $0x1f4] sm:$0xf] %v447_v61 }
  0x66   : > { %450 = vst [vmem:[%s2042_s27 + $0x1f8] sm:$0xf] %v449_v62  ;;  %452 = vst [vmem:[%s2042_s27 + $0x1fc] sm:$0xf] %v451_v63 }
  0x67 PF: > { %p1657_p6 = scmp.ge.s32.totalorder %s1973_s16, 1  ;;  %p736_p7 = scmp.lt.s32.totalorder %s1973_s16, 5 }
  0x69   : > { %p737_p8 = pnand %p1657_p6, %p736_p7 }
  0x6a   : > { %s743_s28 = sand.u32 (!%p737_p8), 1, %s1957_s12   ;;  %v2304_v0 = vld [vmem:[%s2426_s0] sm:$0xff] (!%p737_p8)  ;;  %v2309_v1 = vld [vmem:[%s2426_s0 + $0x8] sm:$0xff] (!%p737_p8)  ;;  %v2349_v33 = vld [vmem:[%s2426_s0 + $0x10] sm:$0xff] (!%p737_p8)  ;;  %p792_p9 = scmp.lt.s32.totalorder (!%p737_p8), %s1965_s14, 3 }
  0x6b   : > { %740 = sbr.rel (%p737_p8) target bundleno = 401 (0x191), region = 69  ;;  %s1658_s6 = sshll.u32 (!%p737_p8), %s743_s28, 9  ;;  %v1661_v2 = vcombine.high (!%p737_p8), %v2304_v0, %v2304_v0  ;;  %v1663_v3 = vcombine.high (!%p737_p8), %v2309_v1, %v2309_v1  ;;  %v2355_v35 = vld [vmem:[%s2426_s0 + $0x18] sm:$0xff] (!%p737_p8)  ;;  %v1660_v38 = vcombine.low (!%p737_p8), %v2304_v0, %v2304_v0  ;;  %v1662_v39 = vcombine.low (!%p737_p8), %v2309_v1, %v2309_v1 }
  0x6c   : > { %s2315_s7 = scalar_lea.vmem (!%p737_p8), [#allocation3], %s1658_s6  ;;  %v1665_v42 = vcombine.high (!%p737_p8), %v2349_v33, %v2349_v33  ;;  %v1667_v44 = vcombine.high (!%p737_p8), %v2355_v35, %v2355_v35 }
  0x6d   : > { %v1863_v4 = vld [vmem:[%s2315_s7 + $0x40] sm:$0xff] (!%p737_p8)   ;;  %1386 = vmatprep.mubr.bf16.mxu0 (!%p737_p8), %v1661_v2  ;;  %1426 = vmatprep.mubr.bf16.mxu1 (!%p737_p8), %v1663_v3  ;;  %v1867_v8 = vld [vmem:[%s2315_s7 + $0x48] sm:$0xff] (!%p737_p8)   ;;  %v1871_v12 = vld [vmem:[%s2315_s7 + $0x50] sm:$0xff] (!%p737_p8)  }
  0x6e   : > { %v1864_v5 = vld [vmem:[%s2315_s7 + $0xc0] sm:$0xff] (!%p737_p8)   ;;  %1735 = vmatprep.subr.bf16.mxu0 (!%p737_p8), %v1863_v4  ;;  %v1868_v9 = vld [vmem:[%s2315_s7 + $0xc8] sm:$0xff] (!%p737_p8)   ;;  %v1872_v13 = vld [vmem:[%s2315_s7 + $0xd0] sm:$0xff] (!%p737_p8)  }
  0x6f   : > { %v1865_v6 = vld [vmem:[%s2315_s7] sm:$0xff] (!%p737_p8)   ;;  %1757 = vmatprep.subr.bf16.mxu1 (!%p737_p8), %v1864_v5  ;;  %v1869_v10 = vld [vmem:[%s2315_s7 + $0x8] sm:$0xff] (!%p737_p8)   ;;  %v1873_v14 = vld [vmem:[%s2315_s7 + $0x10] sm:$0xff] (!%p737_p8)  }
  0x70   : > { %v1866_v7 = vld [vmem:[%s2315_s7 + $0x80] sm:$0xff] (!%p737_p8)   ;;  %1736 = vmatpush3.bf16.msra.mxu0 (!%p737_p8), %v1865_v6  ;;  %v1870_v11 = vld [vmem:[%s2315_s7 + $0x88] sm:$0xff] (!%p737_p8)   ;;  %v1874_v15 = vld [vmem:[%s2315_s7 + $0x90] sm:$0xff] (!%p737_p8)  }
  0x71   : > { %1758 = vmatpush3.bf16.msra.mxu1 (!%p737_p8), %v1866_v7  ;;  %1737 = vmatprep.subr.bf16.mxu0 (!%p737_p8), %v1867_v8  ;;  %v1875_v16 = vld [vmem:[%s2315_s7 + $0x58] sm:$0xff] (!%p737_p8)   ;;  %v1879_v20 = vld [vmem:[%s2315_s7 + $0x60] sm:$0xff] (!%p737_p8)   ;;  %v1883_v24 = vld [vmem:[%s2315_s7 + $0x68] sm:$0xff] (!%p737_p8)  }
  0x72   : > { %1759 = vmatprep.subr.bf16.mxu1 %v1868_v9  ;;  %v1876_v17 = vld [vmem:[%s2315_s7 + $0xd8] sm:$0xff]   ;;  %v1880_v21 = vld [vmem:[%s2315_s7 + $0xe0] sm:$0xff]   ;;  %v1884_v25 = vld [vmem:[%s2315_s7 + $0xe8] sm:$0xff]   ;;  %s2437_s14 = smov (!%p792_p9, %s1965_s14), 3 }
  0x73   : > { %v1877_v18 = vld [vmem:[%s2315_s7 + $0x18] sm:$0xff]   ;;  %v1881_v22 = vld [vmem:[%s2315_s7 + $0x20] sm:$0xff]   ;;  %v1885_v26 = vld [vmem:[%s2315_s7 + $0x28] sm:$0xff]   ;;  %s794_s19 = scalar_lea.vmem %s2428_s2, %s2437_s14  ;;  %s1659_s21 = sshll.u32 %s2437_s14, 2 }
  0x74   : > { %1738 = vmatpush3.bf16.msra.mxu0 %v1869_v10  ;;  %v1878_v19 = vld [vmem:[%s2315_s7 + $0x98] sm:$0xff]   ;;  %v1882_v23 = vld [vmem:[%s2315_s7 + $0xa0] sm:$0xff]   ;;  %v1886_v27 = vld [vmem:[%s2315_s7 + $0xa8] sm:$0xff]   ;;  %v1664_v10 = vcombine.low %v2349_v33, %v2349_v33  ;;  %s802_s24 = scalar_lea.vmem %s2429_s3, %s1659_s21 }
  0x75   : > { %1760 = vmatpush3.bf16.msra.mxu1 %v1870_v11  ;;  %1739 = vmatprep.subr.bf16.mxu0 %v1871_v12  ;;  %v1887_v28 = vld [vmem:[%s2315_s7 + $0x70] sm:$0xff]   ;;  %v1891_v32 = vld [vmem:[%s2315_s7 + $0x78] sm:$0xff]   ;;  %v1899_v40 = vld [vmem:[%s2315_s7 + $0x140] sm:$0xff]   ;;  %v1666_v11 = vcombine.low %v2355_v35, %v2355_v35 }
  0x76   : > { %1761 = vmatprep.subr.bf16.mxu1 %v1872_v13  ;;  %v1888_v29 = vld [vmem:[%s2315_s7 + $0xf0] sm:$0xff]   ;;  %v1892_v34 = vld [vmem:[%s2315_s7 + $0xf8] sm:$0xff]   ;;  %v1900_v41 = vld [vmem:[%s2315_s7 + $0x1c0] sm:$0xff]  }
  0x77   : > { %v1889_v30 = vld [vmem:[%s2315_s7 + $0x30] sm:$0xff]   ;;  %v1893_v36 = vld [vmem:[%s2315_s7 + $0x38] sm:$0xff]   ;;  %v1901_v43 = vld [vmem:[%s2315_s7 + $0x100] sm:$0xff]  }
  0x78   : > { %1740 = vmatpush3.bf16.msra.mxu0 %v1873_v14  ;;  %v1890_v31 = vld [vmem:[%s2315_s7 + $0xb0] sm:$0xff]   ;;  %v1894_v37 = vld [vmem:[%s2315_s7 + $0xb8] sm:$0xff]   ;;  %v1902_v45 = vld [vmem:[%s2315_s7 + $0x180] sm:$0xff]  }
  0x79   : > { %1762 = vmatpush3.bf16.msra.mxu1 %v1874_v15  ;;  %1741 = vmatprep.subr.bf16.mxu0 %v1875_v16  ;;  %v1903_v46 = vld [vmem:[%s2315_s7 + $0x148] sm:$0xff]   ;;  %v1907_v50 = vld [vmem:[%s2315_s7 + $0x150] sm:$0xff]   ;;  %v1911_v54 = vld [vmem:[%s2315_s7 + $0x158] sm:$0xff]  }
  0x7a   : > { %1763 = vmatprep.subr.bf16.mxu1 %v1876_v17  ;;  %v1904_v47 = vld [vmem:[%s2315_s7 + $0x1c8] sm:$0xff]   ;;  %v1908_v51 = vld [vmem:[%s2315_s7 + $0x1d0] sm:$0xff]   ;;  %v1912_v55 = vld [vmem:[%s2315_s7 + $0x1d8] sm:$0xff]  }
  0x7b   : > { %v1905_v48 = vld [vmem:[%s2315_s7 + $0x108] sm:$0xff]   ;;  %v1909_v52 = vld [vmem:[%s2315_s7 + $0x110] sm:$0xff]   ;;  %v1913_v56 = vld [vmem:[%s2315_s7 + $0x118] sm:$0xff]  }
  0x7c   : > { %1742 = vmatpush3.bf16.msra.mxu0 %v1877_v18  ;;  %v1906_v49 = vld [vmem:[%s2315_s7 + $0x188] sm:$0xff]   ;;  %v1910_v53 = vld [vmem:[%s2315_s7 + $0x190] sm:$0xff]   ;;  %v1914_v57 = vld [vmem:[%s2315_s7 + $0x198] sm:$0xff]  }
  0x7d   : > { %1764 = vmatpush3.bf16.msra.mxu1 %v1878_v19  ;;  %1743 = vmatprep.subr.bf16.mxu0 %v1879_v20  ;;  %v1915_v58 = vld [vmem:[%s2315_s7 + $0x160] sm:$0xff]   ;;  %v1919_v62 = vld [vmem:[%s2315_s7 + $0x168] sm:$0xff]   ;;  %v1923_v2 = vld [vmem:[%s2315_s7 + $0x170] sm:$0xff]  }
  0x7e   : > { %1765 = vmatprep.subr.bf16.mxu1 %v1880_v21  ;;  %v1916_v59 = vld [vmem:[%s2315_s7 + $0x1e0] sm:$0xff]   ;;  %v1920_v63 = vld [vmem:[%s2315_s7 + $0x1e8] sm:$0xff]   ;;  %v1924_v3 = vld [vmem:[%s2315_s7 + $0x1f0] sm:$0xff]  }
  0x7f   : > { %v1917_v60 = vld [vmem:[%s2315_s7 + $0x120] sm:$0xff]   ;;  %v1921_v0 = vld [vmem:[%s2315_s7 + $0x128] sm:$0xff]   ;;  %v1925_v4 = vld [vmem:[%s2315_s7 + $0x130] sm:$0xff]  }
  0x80   : > { %1744 = vmatpush3.bf16.msra.mxu0 %v1881_v22  ;;  %v1918_v61 = vld [vmem:[%s2315_s7 + $0x1a0] sm:$0xff]   ;;  %v1922_v1 = vld [vmem:[%s2315_s7 + $0x1a8] sm:$0xff]   ;;  %v1926_v5 = vld [vmem:[%s2315_s7 + $0x1b0] sm:$0xff]  }
  0x81   : > { %1766 = vmatpush3.bf16.msra.mxu1 %v1882_v23  ;;  %1745 = vmatprep.subr.bf16.mxu0 %v1883_v24  ;;  %v1927_v6 = vld [vmem:[%s2315_s7 + $0x178] sm:$0xff]  }
  0x82   : > { %1767 = vmatprep.subr.bf16.mxu1 %v1884_v25  ;;  %v1928_v7 = vld [vmem:[%s2315_s7 + $0x1f8] sm:$0xff]  }
  0x83   : > { %v1929_v8 = vld [vmem:[%s2315_s7 + $0x138] sm:$0xff]  }
  0x84   : > { %1746 = vmatpush3.bf16.msra.mxu0 %v1885_v26  ;;  %v1930_v9 = vld [vmem:[%s2315_s7 + $0x1b8] sm:$0xff]  }
  0x85   : > { %1768 = vmatpush3.bf16.msra.mxu1 %v1886_v27  ;;  %1747 = vmatprep.subr.bf16.mxu0 %v1887_v28 }
  0x86   : > { %1769 = vmatprep.subr.bf16.mxu1 %v1888_v29 }
  0x88   : > { %1748 = vmatpush3.bf16.msra.mxu0 %v1889_v30 }
  0x89   : > { %1770 = vmatpush3.bf16.msra.mxu1 %v1890_v31  ;;  %1749 = vmatprep.subr.bf16.mxu0 %v1891_v32 }
  0x8a   : > { %1771 = vmatprep.subr.bf16.mxu1 %v1892_v34  ;;  %v1732_v34 = vld [vmem:[%s794_s19] ss:$0 sm:$0xff] }
  0x8c   : > { %1750 = vmatpush3.bf16.msra.mxu0 %v1893_v36 }
  0x8d   : > { %1772 = vmatpush3.bf16.msra.mxu1 %v1894_v37  ;;  %1779 = vmatprep.subr.bf16.mxu0 %v1899_v40 }
  0x8e   : > { %1801 = vmatprep.subr.bf16.mxu1 %v1900_v41 }
  0x8f   : > { %1387 = vmatmul.mubr.bf16.vlgmr.msra.gmra.mrb[0].mxu0 %v1660_v38 }
  0x90   : > { %1427 = vmatmul.mubr.bf16.vlgmr.msra.gmra.mrb[0].mxu1 %v1662_v39  ;;  %1780 = vmatpush3.bf16.msra.mxu0 %v1901_v43 }
  0x91   : > { %1802 = vmatpush3.bf16.msra.mxu1 %v1902_v45  ;;  %1466 = vmatprep.mubr.bf16.mxu0 %v1665_v42 }
  0x92   : > { %1781 = vmatprep.subr.bf16.mxu0 %v1903_v46  ;;  %1506 = vmatprep.mubr.bf16.mxu1 %v1667_v44 }
  0x93   : > { %1803 = vmatprep.subr.bf16.mxu1 %v1904_v47 }
  0x94   : > { %1782 = vmatpush3.bf16.msra.mxu0 %v1905_v48 }
  0x95   : > { %1804 = vmatpush3.bf16.msra.mxu1 %v1906_v49  ;;  %1783 = vmatprep.subr.bf16.mxu0 %v1907_v50 }
  0x96   : > { %1805 = vmatprep.subr.bf16.mxu1 %v1908_v51 }
  0x98   : > { %1784 = vmatpush3.bf16.msra.mxu0 %v1909_v52 }
  0x99   : > { %1806 = vmatpush3.bf16.msra.mxu1 %v1910_v53  ;;  %1785 = vmatprep.subr.bf16.mxu0 %v1911_v54 }
  0x9a   : > { %1807 = vmatprep.subr.bf16.mxu1 %v1912_v55 }
  0x9c   : > { %1786 = vmatpush3.bf16.msra.mxu0 %v1913_v56 }
  0x9d   : > { %1808 = vmatpush3.bf16.msra.mxu1 %v1914_v57  ;;  %1787 = vmatprep.subr.bf16.mxu0 %v1915_v58 }
  0x9e   : > { %1809 = vmatprep.subr.bf16.mxu1 %v1916_v59 }
  0xa0   : > { %1788 = vmatpush3.bf16.msra.mxu0 %v1917_v60 }
  0xa1   : > { %1810 = vmatpush3.bf16.msra.mxu1 %v1918_v61  ;;  %1789 = vmatprep.subr.bf16.mxu0 %v1919_v62 }
  0xa2   : > { %1811 = vmatprep.subr.bf16.mxu1 %v1920_v63 }
  0xa4   : > { %1790 = vmatpush3.bf16.msra.mxu0 %v1921_v0 }
  0xa5   : > { %1812 = vmatpush3.bf16.msra.mxu1 %v1922_v1  ;;  %1791 = vmatprep.subr.bf16.mxu0 %v1923_v2 }
  0xa6   : > { %1813 = vmatprep.subr.bf16.mxu1 %v1924_v3 }
  0xa8   : > { %1792 = vmatpush3.bf16.msra.mxu0 %v1925_v4 }
  0xa9   : > { %1814 = vmatpush3.bf16.msra.mxu1 %v1926_v5  ;;  %1793 = vmatprep.subr.bf16.mxu0 %v1927_v6 }
  0xaa   : > { %1815 = vmatprep.subr.bf16.mxu1 %v1928_v7 }
  0xac   : > { %1794 = vmatpush3.bf16.msra.mxu0 %v1929_v8 }
  0xad   : > { %1816 = vmatpush3.bf16.msra.mxu1 %v1930_v9 }
  0xaf   : > { %1467 = vmatmul.mubr.bf16.vlgmr.msra.gmra.mrb[4].mxu0 %v1664_v10 }
  0xb0   : > { %1507 = vmatmul.mubr.bf16.vlgmr.msra.gmra.mrb[4].mxu1 %v1666_v11 }
 0x162   : > { %v1751_v12 = vpop.f32.mrb[0].mxu0 }
 0x163   : > { %v1773_v13 = vpop.f32.mrb[0].mxu1  ;;  %v1752_v14 = vpop.f32.mrb[1].mxu0 }
 0x164   : > { %v1753_v15 = vadd.f32 %v1752_v14, %v1751_v12  ;;  %v1774_v16 = vpop.f32.mrb[1].mxu1  ;;  %v1754_v17 = vpop.f32.mrb[2].mxu0 }
 0x165   : > { %v1775_v18 = vadd.f32 %v1774_v16, %v1773_v13  ;;  %v1776_v19 = vpop.f32.mrb[2].mxu1  ;;  %v1755_v20 = vpop.f32.mrb[3].mxu0 }
 0x166   : > { %v1777_v21 = vpop.f32.mrb[3].mxu1 }
 0x167   : > { %v1429_v22 = vadd.f32 %v1775_v18, %v1753_v15 }
 0x182   : > { %v1795_v23 = vpop.f32.mrb[4].mxu0 }
 0x183   : > { %v1817_v24 = vpop.f32.mrb[4].mxu1  ;;  %v1796_v25 = vpop.f32.mrb[5].mxu0 }
 0x184   : > { %v1797_v26 = vadd.f32 %v1796_v25, %v1795_v23  ;;  %v1818_v27 = vpop.f32.mrb[5].mxu1  ;;  %v1798_v28 = vpop.f32.mrb[6].mxu0 }
 0x185   : > { %v1819_v29 = vadd.f32 %v1818_v27, %v1817_v24  ;;  %v1820_v30 = vpop.f32.mrb[6].mxu1  ;;  %v1799_v31 = vpop.f32.mrb[7].mxu0 }
 0x186   : > { %v1469_v32 = vadd.f32 %v1797_v26, %v1429_v22  ;;  %v1821_v33 = vpop.f32.mrb[7].mxu1 }
 0x188   : > { %v1509_v35 = vadd.f32 %v1819_v29, %v1469_v32 }
 0x18a   : > { %v1527_v36 = vadd.f32 %v1732_v34, %v1509_v35 }
 0x18c   : > { %v1528_v37 = vmax.f32 %v1527_v36, 0.0 }
 0x18e   : > { %v1529_v38 = vpack.c.bf16 %v1528_v37, %v1528_v37 }
 0x190   : > { %1530 = vst [vmem:[%s802_s24] sm:$0xf] %v1529_v38 }
 0x191 PF: > { %s13_s16 = sadd.s32 1, %s1973_s16   ;;  %s2430_s12 = smov %s1961_s13 }
 0x192   : > { %p10_p10 = scmp.ge.s32.totalorder %s13_s16, 6   ;;  %s2431_s13 = smov %s2030_s20 }
 0x193   : > { %s2432_s14 = smov %s1969_s15  ;;  %s2433_s15 = smov %s2435_s17 }
 0x194   :  { %12 = sbr.rel (!%p10_p10) target bundleno = 3 (0x3), region = 122 }

// kernel: unet_forward.35
= control target key start
LH: loop header
LB: loop body
LE: loop exit
PB: predicated region body
PF: predicated region fallthrough
CT: control target
= control target key end

     0   :  { %s1270_s12 = smov 0   ;;  %s1272_s13 = smov 0   ;;  %s1523_s0 = inlined_call_operand.vmem [shape: bf16[8,512], index: 0, kind: input, shape index: {}]   ;;  %s1524_s1 = inlined_call_operand.vmem [shape: bf16[512,256], index: 1, kind: input, shape index: {}]   ;;  %s1525_s2 = inlined_call_operand.vmem [shape: f32[1,256], index: 2, kind: input, shape index: {}]   ;;  %s1526_s3 = inlined_call_operand.vmem [shape: bf16[8,256], index: 3, kind: output, shape index: {}]  }
   0x1   :  { %s1274_s14 = smov 0   ;;  %s1276_s15 = smov 0  }
   0x2   :  { %s1278_s16 = smov 0  }
   0x3 LB: > { %s28_s17 = sadd.s32 1, %s1244_s15  ;;  %p76_p1 = scmp.ne.s32.totalorder %s1236_s13, %s1232_s12  ;;  %s1248_s16 = sphi %s1278_s16, %s13_s16   ;;  %s1244_s15 = sphi %s1276_s15, %s1530_s15   ;;  %s1240_s14 = sphi %s1274_s14, %s1529_s14   ;;  %s1236_s13 = sphi %s1272_s13, %s1528_s13   ;;  %s1232_s12 = sphi %s1270_s12, %s1527_s12  }
   0x4   : > { %p30_p0 = scmp.ge.s32.totalorder %s28_s17, 2  ;;  %p77_p2 = scmp.eq.s32.totalorder %s1248_s16, 0 }
   0x5   : > { %s69_s19 = sadd.s32 1, %s1236_s13  ;;  %p1045_p5 = scmp.ge.s32.totalorder %s1248_s16, 2 }
   0x6   : > { %s1532_s17 = smov (%p30_p0, %s28_s17), 0  ;;  %p78_p3 = por %p77_p2, %p76_p1 }
   0x7   : > { %s65_s18 = ssub.s32 %s1244_s15, %s1532_s17  ;;  %169 = sbr.rel (%p1045_p5) target bundleno = 60 (0x3c), region = 20 }
   0x8   : > { %p67_p4 = scmp.eq.s32.totalorder %s65_s18, 0 }
   0xa   : > { %s1305_s20 = scalar_select %p67_p4, %s1236_s13, %s69_s19  }
   0xe   : > { %172 = sbr.rel (!%p78_p3) target bundleno = 60 (0x3c), region = 24  ;;  %s174_s21 = sand.u32 (%p78_p3), 1, %s1236_s13  }
   0xf   : > { %s1047_s22 = sshll.u32 (%p78_p3), %s1244_s15, 2  ;;  %s1046_s23 = sshll.u32 (%p78_p3), %s174_s21, 8 }
  0x10   : > { %s1313_s26 = scalar_lea.vmem (%p78_p3), %s1524_s1, %s1047_s22  ;;  %s1317_s27 = scalar_lea.vmem (%p78_p3), [#allocation3], %s1046_s23 }
  0x11   : > { %v197_v0 = vld [vmem:[%s1313_s26] sm:$0xf] (%p78_p3)  ;;  %v199_v1 = vld [vmem:[%s1313_s26 + $0x8] sm:$0xf] (%p78_p3)  ;;  %v201_v2 = vld [vmem:[%s1313_s26 + $0x10] sm:$0xf] (%p78_p3) }
  0x12   : > { %198 = vst [vmem:[%s1317_s27] sm:$0xf] (%p78_p3), %v197_v0  ;;  %200 = vst [vmem:[%s1317_s27 + $0x4] sm:$0xf] (%p78_p3), %v199_v1  ;;  %v203_v3 = vld [vmem:[%s1313_s26 + $0x18] sm:$0xf] (%p78_p3) }
  0x13   : > { %v205_v4 = vld [vmem:[%s1313_s26 + $0x20] sm:$0xf] (%p78_p3)  ;;  %202 = vst [vmem:[%s1317_s27 + $0x8] sm:$0xf] (%p78_p3), %v201_v2  ;;  %204 = vst [vmem:[%s1317_s27 + $0xc] sm:$0xf] (%p78_p3), %v203_v3 }
  0x14   : > { %206 = vst [vmem:[%s1317_s27 + $0x10] sm:$0xf] (%p78_p3), %v205_v4  ;;  %v207_v5 = vld [vmem:[%s1313_s26 + $0x28] sm:$0xf] (%p78_p3)  ;;  %v209_v6 = vld [vmem:[%s1313_s26 + $0x30] sm:$0xf] (%p78_p3) }
  0x15   : > { %v211_v7 = vld [vmem:[%s1313_s26 + $0x38] sm:$0xf]  ;;  %208 = vst [vmem:[%s1317_s27 + $0x14] sm:$0xf] %v207_v5  ;;  %210 = vst [vmem:[%s1317_s27 + $0x18] sm:$0xf] %v209_v6 }
  0x16   : > { %212 = vst [vmem:[%s1317_s27 + $0x1c] sm:$0xf] %v211_v7  ;;  %v213_v8 = vld [vmem:[%s1313_s26 + $0x40] sm:$0xf]  ;;  %v215_v9 = vld [vmem:[%s1313_s26 + $0x48] sm:$0xf] }
  0x17   : > { %v217_v10 = vld [vmem:[%s1313_s26 + $0x50] sm:$0xf]  ;;  %214 = vst [vmem:[%s1317_s27 + $0x20] sm:$0xf] %v213_v8  ;;  %216 = vst [vmem:[%s1317_s27 + $0x24] sm:$0xf] %v215_v9 }
  0x18   : > { %218 = vst [vmem:[%s1317_s27 + $0x28] sm:$0xf] %v217_v10  ;;  %v219_v11 = vld [vmem:[%s1313_s26 + $0x58] sm:$0xf]  ;;  %v221_v12 = vld [vmem:[%s1313_s26 + $0x60] sm:$0xf] }
  0x19   : > { %v223_v13 = vld [vmem:[%s1313_s26 + $0x68] sm:$0xf]  ;;  %220 = vst [vmem:[%s1317_s27 + $0x2c] sm:$0xf] %v219_v11  ;;  %222 = vst [vmem:[%s1317_s27 + $0x30] sm:$0xf] %v221_v12 }
  0x1a   : > { %224 = vst [vmem:[%s1317_s27 + $0x34] sm:$0xf] %v223_v13  ;;  %v225_v14 = vld [vmem:[%s1313_s26 + $0x70] sm:$0xf]  ;;  %v227_v15 = vld [vmem:[%s1313_s26 + $0x78] sm:$0xf] }
  0x1b   : > { %v229_v16 = vld [vmem:[%s1313_s26 + $0x80] sm:$0xf]  ;;  %226 = vst [vmem:[%s1317_s27 + $0x38] sm:$0xf] %v225_v14  ;;  %228 = vst [vmem:[%s1317_s27 + $0x3c] sm:$0xf] %v227_v15 }
  0x1c   : > { %230 = vst [vmem:[%s1317_s27 + $0x40] sm:$0xf] %v229_v16  ;;  %v231_v17 = vld [vmem:[%s1313_s26 + $0x88] sm:$0xf]  ;;  %v233_v18 = vld [vmem:[%s1313_s26 + $0x90] sm:$0xf] }
  0x1d   : > { %v235_v19 = vld [vmem:[%s1313_s26 + $0x98] sm:$0xf]  ;;  %232 = vst [vmem:[%s1317_s27 + $0x44] sm:$0xf] %v231_v17  ;;  %234 = vst [vmem:[%s1317_s27 + $0x48] sm:$0xf] %v233_v18 }
  0x1e   : > { %236 = vst [vmem:[%s1317_s27 + $0x4c] sm:$0xf] %v235_v19  ;;  %v237_v20 = vld [vmem:[%s1313_s26 + $0xa0] sm:$0xf]  ;;  %v239_v21 = vld [vmem:[%s1313_s26 + $0xa8] sm:$0xf] }
  0x1f   : > { %v241_v22 = vld [vmem:[%s1313_s26 + $0xb0] sm:$0xf]  ;;  %238 = vst [vmem:[%s1317_s27 + $0x50] sm:$0xf] %v237_v20  ;;  %240 = vst [vmem:[%s1317_s27 + $0x54] sm:$0xf] %v239_v21 }
  0x20   : > { %242 = vst [vmem:[%s1317_s27 + $0x58] sm:$0xf] %v241_v22  ;;  %v243_v23 = vld [vmem:[%s1313_s26 + $0xb8] sm:$0xf]  ;;  %v245_v24 = vld [vmem:[%s1313_s26 + $0xc0] sm:$0xf] }
  0x21   : > { %v247_v25 = vld [vmem:[%s1313_s26 + $0xc8] sm:$0xf]  ;;  %244 = vst [vmem:[%s1317_s27 + $0x5c] sm:$0xf] %v243_v23  ;;  %246 = vst [vmem:[%s1317_s27 + $0x60] sm:$0xf] %v245_v24 }
  0x22   : > { %248 = vst [vmem:[%s1317_s27 + $0x64] sm:$0xf] %v247_v25  ;;  %v249_v26 = vld [vmem:[%s1313_s26 + $0xd0] sm:$0xf]  ;;  %v251_v27 = vld [vmem:[%s1313_s26 + $0xd8] sm:$0xf] }
  0x23   : > { %v253_v28 = vld [vmem:[%s1313_s26 + $0xe0] sm:$0xf]  ;;  %250 = vst [vmem:[%s1317_s27 + $0x68] sm:$0xf] %v249_v26  ;;  %252 = vst [vmem:[%s1317_s27 + $0x6c] sm:$0xf] %v251_v27 }
  0x24   : > { %254 = vst [vmem:[%s1317_s27 + $0x70] sm:$0xf] %v253_v28  ;;  %v255_v29 = vld [vmem:[%s1313_s26 + $0xe8] sm:$0xf]  ;;  %v257_v30 = vld [vmem:[%s1313_s26 + $0xf0] sm:$0xf] }
  0x25   : > { %v259_v31 = vld [vmem:[%s1313_s26 + $0xf8] sm:$0xf]  ;;  %256 = vst [vmem:[%s1317_s27 + $0x74] sm:$0xf] %v255_v29  ;;  %258 = vst [vmem:[%s1317_s27 + $0x78] sm:$0xf] %v257_v30 }
  0x26   : > { %260 = vst [vmem:[%s1317_s27 + $0x7c] sm:$0xf] %v259_v31  ;;  %v261_v32 = vld [vmem:[%s1313_s26 + $0x100] sm:$0xf]  ;;  %v263_v33 = vld [vmem:[%s1313_s26 + $0x108] sm:$0xf] }
  0x27   : > { %v265_v34 = vld [vmem:[%s1313_s26 + $0x110] sm:$0xf]  ;;  %262 = vst [vmem:[%s1317_s27 + $0x80] sm:$0xf] %v261_v32  ;;  %264 = vst [vmem:[%s1317_s27 + $0x84] sm:$0xf] %v263_v33 }
  0x28   : > { %266 = vst [vmem:[%s1317_s27 + $0x88] sm:$0xf] %v265_v34  ;;  %v267_v35 = vld [vmem:[%s1313_s26 + $0x118] sm:$0xf]  ;;  %v269_v36 = vld [vmem:[%s1313_s26 + $0x120] sm:$0xf] }
  0x29   : > { %v271_v37 = vld [vmem:[%s1313_s26 + $0x128] sm:$0xf]  ;;  %268 = vst [vmem:[%s1317_s27 + $0x8c] sm:$0xf] %v267_v35  ;;  %270 = vst [vmem:[%s1317_s27 + $0x90] sm:$0xf] %v269_v36 }
  0x2a   : > { %272 = vst [vmem:[%s1317_s27 + $0x94] sm:$0xf] %v271_v37  ;;  %v273_v38 = vld [vmem:[%s1313_s26 + $0x130] sm:$0xf]  ;;  %v275_v39 = vld [vmem:[%s1313_s26 + $0x138] sm:$0xf] }
  0x2b   : > { %v277_v40 = vld [vmem:[%s1313_s26 + $0x140] sm:$0xf]  ;;  %274 = vst [vmem:[%s1317_s27 + $0x98] sm:$0xf] %v273_v38  ;;  %276 = vst [vmem:[%s1317_s27 + $0x9c] sm:$0xf] %v275_v39 }
  0x2c   : > { %278 = vst [vmem:[%s1317_s27 + $0xa0] sm:$0xf] %v277_v40  ;;  %v279_v41 = vld [vmem:[%s1313_s26 + $0x148] sm:$0xf]  ;;  %v281_v42 = vld [vmem:[%s1313_s26 + $0x150] sm:$0xf] }
  0x2d   : > { %v283_v43 = vld [vmem:[%s1313_s26 + $0x158] sm:$0xf]  ;;  %280 = vst [vmem:[%s1317_s27 + $0xa4] sm:$0xf] %v279_v41  ;;  %282 = vst [vmem:[%s1317_s27 + $0xa8] sm:$0xf] %v281_v42 }
  0x2e   : > { %284 = vst [vmem:[%s1317_s27 + $0xac] sm:$0xf] %v283_v43  ;;  %v285_v44 = vld [vmem:[%s1313_s26 + $0x160] sm:$0xf]  ;;  %v287_v45 = vld [vmem:[%s1313_s26 + $0x168] sm:$0xf] }
  0x2f   : > { %v289_v46 = vld [vmem:[%s1313_s26 + $0x170] sm:$0xf]  ;;  %286 = vst [vmem:[%s1317_s27 + $0xb0] sm:$0xf] %v285_v44  ;;  %288 = vst [vmem:[%s1317_s27 + $0xb4] sm:$0xf] %v287_v45 }
  0x30   : > { %290 = vst [vmem:[%s1317_s27 + $0xb8] sm:$0xf] %v289_v46  ;;  %v291_v47 = vld [vmem:[%s1313_s26 + $0x178] sm:$0xf]  ;;  %v293_v48 = vld [vmem:[%s1313_s26 + $0x180] sm:$0xf] }
  0x31   : > { %v295_v49 = vld [vmem:[%s1313_s26 + $0x188] sm:$0xf]  ;;  %292 = vst [vmem:[%s1317_s27 + $0xbc] sm:$0xf] %v291_v47  ;;  %294 = vst [vmem:[%s1317_s27 + $0xc0] sm:$0xf] %v293_v48 }
  0x32   : > { %296 = vst [vmem:[%s1317_s27 + $0xc4] sm:$0xf] %v295_v49  ;;  %v297_v50 = vld [vmem:[%s1313_s26 + $0x190] sm:$0xf]  ;;  %v299_v51 = vld [vmem:[%s1313_s26 + $0x198] sm:$0xf] }
  0x33   : > { %v301_v52 = vld [vmem:[%s1313_s26 + $0x1a0] sm:$0xf]  ;;  %298 = vst [vmem:[%s1317_s27 + $0xc8] sm:$0xf] %v297_v50  ;;  %300 = vst [vmem:[%s1317_s27 + $0xcc] sm:$0xf] %v299_v51 }
  0x34   : > { %302 = vst [vmem:[%s1317_s27 + $0xd0] sm:$0xf] %v301_v52  ;;  %v303_v53 = vld [vmem:[%s1313_s26 + $0x1a8] sm:$0xf]  ;;  %v305_v54 = vld [vmem:[%s1313_s26 + $0x1b0] sm:$0xf] }
  0x35   : > { %v307_v55 = vld [vmem:[%s1313_s26 + $0x1b8] sm:$0xf]  ;;  %304 = vst [vmem:[%s1317_s27 + $0xd4] sm:$0xf] %v303_v53  ;;  %306 = vst [vmem:[%s1317_s27 + $0xd8] sm:$0xf] %v305_v54 }
  0x36   : > { %308 = vst [vmem:[%s1317_s27 + $0xdc] sm:$0xf] %v307_v55  ;;  %v309_v56 = vld [vmem:[%s1313_s26 + $0x1c0] sm:$0xf]  ;;  %v311_v57 = vld [vmem:[%s1313_s26 + $0x1c8] sm:$0xf] }
  0x37   : > { %v313_v58 = vld [vmem:[%s1313_s26 + $0x1d0] sm:$0xf]  ;;  %310 = vst [vmem:[%s1317_s27 + $0xe0] sm:$0xf] %v309_v56  ;;  %312 = vst [vmem:[%s1317_s27 + $0xe4] sm:$0xf] %v311_v57 }
  0x38   : > { %314 = vst [vmem:[%s1317_s27 + $0xe8] sm:$0xf] %v313_v58  ;;  %v315_v59 = vld [vmem:[%s1313_s26 + $0x1d8] sm:$0xf]  ;;  %v317_v60 = vld [vmem:[%s1313_s26 + $0x1e0] sm:$0xf] }
  0x39   : > { %v319_v61 = vld [vmem:[%s1313_s26 + $0x1e8] sm:$0xf]  ;;  %316 = vst [vmem:[%s1317_s27 + $0xec] sm:$0xf] %v315_v59  ;;  %318 = vst [vmem:[%s1317_s27 + $0xf0] sm:$0xf] %v317_v60 }
  0x3a   : > { %320 = vst [vmem:[%s1317_s27 + $0xf4] sm:$0xf] %v319_v61  ;;  %v321_v62 = vld [vmem:[%s1313_s26 + $0x1f0] sm:$0xf]  ;;  %v323_v63 = vld [vmem:[%s1313_s26 + $0x1f8] sm:$0xf] }
  0x3b   : > { %322 = vst [vmem:[%s1317_s27 + $0xf8] sm:$0xf] %v321_v62  ;;  %324 = vst [vmem:[%s1317_s27 + $0xfc] sm:$0xf] %v323_v63 }
  0x3c PF: > { %p1048_p6 = scmp.ge.s32.totalorder %s1248_s16, 1  ;;  %p480_p7 = scmp.lt.s32.totalorder %s1248_s16, 3 }
  0x3e   : > { %p481_p8 = pnand %p1048_p6, %p480_p7 }
  0x3f   : > { %s487_s28 = sand.u32 (!%p481_p8), 1, %s1232_s12   ;;  %v1451_v0 = vld [vmem:[%s1523_s0] sm:$0xff] (!%p481_p8)  ;;  %v1456_v1 = vld [vmem:[%s1523_s0 + $0x8] sm:$0xff] (!%p481_p8)  ;;  %p536_p9 = scmp.lt.s32.totalorder (!%p481_p8), %s1240_s14, 1 }
  0x40   : > { %484 = sbr.rel (%p481_p8) target bundleno = 323 (0x143), region = 69  ;;  %s1049_s6 = sshll.u32 (!%p481_p8), %s487_s28, 8  ;;  %v1052_v2 = vcombine.high (!%p481_p8), %v1451_v0, %v1451_v0  ;;  %v1054_v3 = vcombine.high (!%p481_p8), %v1456_v1, %v1456_v1  ;;  %v1051_v36 = vcombine.low (!%p481_p8), %v1451_v0, %v1451_v0  ;;  %v1053_v37 = vcombine.low (!%p481_p8), %v1456_v1, %v1456_v1 }
  0x41   : > { %s1462_s7 = scalar_lea.vmem (!%p481_p8), [#allocation3], %s1049_s6 }
  0x42   : > { %v1174_v4 = vld [vmem:[%s1462_s7 + $0x40] sm:$0xff] (!%p481_p8)   ;;  %858 = vmatprep.mubr.bf16.mxu0 (!%p481_p8), %v1052_v2  ;;  %898 = vmatprep.mubr.bf16.mxu1 (!%p481_p8), %v1054_v3  ;;  %v1178_v8 = vld [vmem:[%s1462_s7 + $0x48] sm:$0xff] (!%p481_p8)   ;;  %v1182_v12 = vld [vmem:[%s1462_s7 + $0x50] sm:$0xff] (!%p481_p8)  }
  0x43   : > { %v1175_v5 = vld [vmem:[%s1462_s7 + $0xc0] sm:$0xff] (!%p481_p8)   ;;  %1090 = vmatprep.subr.bf16.mxu0 (!%p481_p8), %v1174_v4  ;;  %v1179_v9 = vld [vmem:[%s1462_s7 + $0xc8] sm:$0xff] (!%p481_p8)   ;;  %v1183_v13 = vld [vmem:[%s1462_s7 + $0xd0] sm:$0xff] (!%p481_p8)  }
  0x44   : > { %v1176_v6 = vld [vmem:[%s1462_s7] sm:$0xff] (!%p481_p8)   ;;  %1112 = vmatprep.subr.bf16.mxu1 (!%p481_p8), %v1175_v5  ;;  %v1180_v10 = vld [vmem:[%s1462_s7 + $0x8] sm:$0xff] (!%p481_p8)   ;;  %v1184_v14 = vld [vmem:[%s1462_s7 + $0x10] sm:$0xff] (!%p481_p8)  }
  0x45   : > { %v1177_v7 = vld [vmem:[%s1462_s7 + $0x80] sm:$0xff] (!%p481_p8)   ;;  %1091 = vmatpush3.bf16.msra.mxu0 (!%p481_p8), %v1176_v6  ;;  %v1181_v11 = vld [vmem:[%s1462_s7 + $0x88] sm:$0xff] (!%p481_p8)   ;;  %v1185_v15 = vld [vmem:[%s1462_s7 + $0x90] sm:$0xff] (!%p481_p8)  }
  0x46   : > { %1113 = vmatpush3.bf16.msra.mxu1 (!%p481_p8), %v1177_v7  ;;  %1092 = vmatprep.subr.bf16.mxu0 (!%p481_p8), %v1178_v8  ;;  %v1186_v16 = vld [vmem:[%s1462_s7 + $0x58] sm:$0xff] (!%p481_p8)   ;;  %v1190_v20 = vld [vmem:[%s1462_s7 + $0x60] sm:$0xff] (!%p481_p8)   ;;  %v1194_v24 = vld [vmem:[%s1462_s7 + $0x68] sm:$0xff] (!%p481_p8)  }
  0x47   : > { %1114 = vmatprep.subr.bf16.mxu1 %v1179_v9  ;;  %v1187_v17 = vld [vmem:[%s1462_s7 + $0xd8] sm:$0xff]   ;;  %v1191_v21 = vld [vmem:[%s1462_s7 + $0xe0] sm:$0xff]   ;;  %v1195_v25 = vld [vmem:[%s1462_s7 + $0xe8] sm:$0xff]   ;;  %s1534_s14 = smov (!%p536_p9, %s1240_s14), 1 }
  0x48   : > { %v1188_v18 = vld [vmem:[%s1462_s7 + $0x18] sm:$0xff]   ;;  %v1192_v22 = vld [vmem:[%s1462_s7 + $0x20] sm:$0xff]   ;;  %v1196_v26 = vld [vmem:[%s1462_s7 + $0x28] sm:$0xff]   ;;  %s538_s10 = scalar_lea.vmem %s1525_s2, %s1534_s14  ;;  %s1050_s11 = sshll.u32 %s1534_s14, 2 }
  0x49   : > { %1093 = vmatpush3.bf16.msra.mxu0 %v1180_v10  ;;  %v1189_v19 = vld [vmem:[%s1462_s7 + $0x98] sm:$0xff]   ;;  %v1193_v23 = vld [vmem:[%s1462_s7 + $0xa0] sm:$0xff]   ;;  %v1197_v27 = vld [vmem:[%s1462_s7 + $0xa8] sm:$0xff]   ;;  %s546_s19 = scalar_lea.vmem %s1526_s3, %s1050_s11 }
  0x4a   : > { %1115 = vmatpush3.bf16.msra.mxu1 %v1181_v11  ;;  %1094 = vmatprep.subr.bf16.mxu0 %v1182_v12  ;;  %v1198_v28 = vld [vmem:[%s1462_s7 + $0x70] sm:$0xff]   ;;  %v1202_v32 = vld [vmem:[%s1462_s7 + $0x78] sm:$0xff]   ;;  %v1087_v47 = vld [vmem:[%s538_s10] ss:$0 sm:$0xff] }
  0x4b   : > { %1116 = vmatprep.subr.bf16.mxu1 %v1183_v13  ;;  %v1199_v29 = vld [vmem:[%s1462_s7 + $0xf0] sm:$0xff]   ;;  %v1203_v33 = vld [vmem:[%s1462_s7 + $0xf8] sm:$0xff]  }
  0x4c   : > { %v1200_v30 = vld [vmem:[%s1462_s7 + $0x30] sm:$0xff]   ;;  %v1204_v34 = vld [vmem:[%s1462_s7 + $0x38] sm:$0xff]  }
  0x4d   : > { %1095 = vmatpush3.bf16.msra.mxu0 %v1184_v14  ;;  %v1201_v31 = vld [vmem:[%s1462_s7 + $0xb0] sm:$0xff]   ;;  %v1205_v35 = vld [vmem:[%s1462_s7 + $0xb8] sm:$0xff]  }
  0x4e   : > { %1117 = vmatpush3.bf16.msra.mxu1 %v1185_v15  ;;  %1096 = vmatprep.subr.bf16.mxu0 %v1186_v16 }
  0x4f   : > { %1118 = vmatprep.subr.bf16.mxu1 %v1187_v17 }
  0x51   : > { %1097 = vmatpush3.bf16.msra.mxu0 %v1188_v18 }
  0x52   : > { %1119 = vmatpush3.bf16.msra.mxu1 %v1189_v19  ;;  %1098 = vmatprep.subr.bf16.mxu0 %v1190_v20 }
  0x53   : > { %1120 = vmatprep.subr.bf16.mxu1 %v1191_v21 }
  0x55   : > { %1099 = vmatpush3.bf16.msra.mxu0 %v1192_v22 }
  0x56   : > { %1121 = vmatpush3.bf16.msra.mxu1 %v1193_v23  ;;  %1100 = vmatprep.subr.bf16.mxu0 %v1194_v24 }
  0x57   : > { %1122 = vmatprep.subr.bf16.mxu1 %v1195_v25 }
  0x59   : > { %1101 = vmatpush3.bf16.msra.mxu0 %v1196_v26 }
  0x5a   : > { %1123 = vmatpush3.bf16.msra.mxu1 %v1197_v27  ;;  %1102 = vmatprep.subr.bf16.mxu0 %v1198_v28 }
  0x5b   : > { %1124 = vmatprep.subr.bf16.mxu1 %v1199_v29 }
  0x5d   : > { %1103 = vmatpush3.bf16.msra.mxu0 %v1200_v30 }
  0x5e   : > { %1125 = vmatpush3.bf16.msra.mxu1 %v1201_v31  ;;  %1104 = vmatprep.subr.bf16.mxu0 %v1202_v32 }
  0x5f   : > { %1126 = vmatprep.subr.bf16.mxu1 %v1203_v33 }
  0x61   : > { %1105 = vmatpush3.bf16.msra.mxu0 %v1204_v34 }
  0x62   : > { %1127 = vmatpush3.bf16.msra.mxu1 %v1205_v35 }
  0x64   : > { %859 = vmatmul.mubr.bf16.vlgmr.msra.gmra.mrb[0].mxu0 %v1051_v36 }
  0x65   : > { %899 = vmatmul.mubr.bf16.vlgmr.msra.gmra.mrb[0].mxu1 %v1053_v37 }
 0x137   : > { %v1106_v38 = vpop.f32.mrb[0].mxu0 }
 0x138   : > { %v1128_v39 = vpop.f32.mrb[0].mxu1  ;;  %v1107_v40 = vpop.f32.mrb[1].mxu0 }
 0x139   : > { %v1108_v41 = vadd.f32 %v1107_v40, %v1106_v38  ;;  %v1129_v42 = vpop.f32.mrb[1].mxu1  ;;  %v1109_v43 = vpop.f32.mrb[2].mxu0 }
 0x13a   : > { %v1130_v44 = vadd.f32 %v1129_v42, %v1128_v39  ;;  %v1131_v45 = vpop.f32.mrb[2].mxu1  ;;  %v1110_v46 = vpop.f32.mrb[3].mxu0 }
 0x13b   : > { %v1132_v48 = vpop.f32.mrb[3].mxu1 }
 0x13c   : > { %v901_v49 = vadd.f32 %v1130_v44, %v1108_v41 }
 0x13e   : > { %v919_v50 = vadd.f32 %v1087_v47, %v901_v49 }
 0x140   : > { %v920_v51 = vpack.c.bf16 %v919_v50, %v919_v50 }
 0x142   : > { %921 = vst [vmem:[%s546_s19] sm:$0xf] %v920_v51 }
 0x143 PF: > { %s13_s16 = sadd.s32 1, %s1248_s16   ;;  %s1527_s12 = smov %s1236_s13 }
 0x144   : > { %p10_p10 = scmp.ge.s32.totalorder %s13_s16, 4   ;;  %s1528_s13 = smov %s1305_s20 }
 0x145   : > { %s1529_s14 = smov %s1244_s15  ;;  %s1530_s15 = smov %s1532_s17 }
 0x146   :  { %12 = sbr.rel (!%p10_p10) target bundleno = 3 (0x3), region = 122 }

// kernel: unet_forward.36
= control target key start
LH: loop header
LB: loop body
LE: loop exit
PB: predicated region body
PF: predicated region fallthrough
CT: control target
= control target key end

     0   :  { %s1036_s1 = inlined_call_operand.vmem [shape: bf16[640,128], index: 1, kind: input, shape index: {}]   ;;  %s1037_s0 = inlined_call_operand.vmem [shape: bf16[32,640], index: 0, kind: input, shape index: {}]   ;;  %s1038_s2 = inlined_call_operand.vmem [shape: f32[1,128], index: 2, kind: input, shape index: {}]   ;;  %s1039_s3 = inlined_call_operand.vmem [shape: bf16[32,128], index: 3, kind: input, shape index: {}]   ;;  %s1040_s4 = inlined_call_operand.vmem [shape: bf16[32,128], index: 4, kind: output, shape index: {}]  }
   0x1   :  { %v792_v0 = vld [vmem:[%s1036_s1 + $0x40] sm:$0xff]   ;;  %v796_v4 = vld [vmem:[%s1036_s1 + $0x48] sm:$0xff]   ;;  %v800_v8 = vld [vmem:[%s1036_s1 + $0x50] sm:$0xff]  }
   0x2   :  { %v793_v1 = vld [vmem:[%s1036_s1 + $0xc0] sm:$0xff]   ;;  %706 = vmatprep.subr.bf16.mxu0 %v792_v0  ;;  %v797_v5 = vld [vmem:[%s1036_s1 + $0xc8] sm:$0xff]   ;;  %v801_v9 = vld [vmem:[%s1036_s1 + $0xd0] sm:$0xff]  }
   0x3   :  { %v794_v2 = vld [vmem:[%s1036_s1] sm:$0xff]   ;;  %734 = vmatprep.subr.bf16.mxu1 %v793_v1  ;;  %v798_v6 = vld [vmem:[%s1036_s1 + $0x8] sm:$0xff]   ;;  %v802_v10 = vld [vmem:[%s1036_s1 + $0x10] sm:$0xff]  }
   0x4   :  { %v795_v3 = vld [vmem:[%s1036_s1 + $0x80] sm:$0xff]   ;;  %707 = vmatpush3.bf16.msra.mxu0 %v794_v2  ;;  %v799_v7 = vld [vmem:[%s1036_s1 + $0x88] sm:$0xff]   ;;  %v803_v11 = vld [vmem:[%s1036_s1 + $0x90] sm:$0xff]  }
   0x5   :  { %735 = vmatpush3.bf16.msra.mxu1 %v795_v3  ;;  %708 = vmatprep.subr.bf16.mxu0 %v796_v4  ;;  %v804_v12 = vld [vmem:[%s1036_s1 + $0x58] sm:$0xff]   ;;  %v808_v16 = vld [vmem:[%s1036_s1 + $0x60] sm:$0xff]   ;;  %v812_v20 = vld [vmem:[%s1036_s1 + $0x68] sm:$0xff]  }
   0x6   :  { %736 = vmatprep.subr.bf16.mxu1 %v797_v5  ;;  %v805_v13 = vld [vmem:[%s1036_s1 + $0xd8] sm:$0xff]   ;;  %v809_v17 = vld [vmem:[%s1036_s1 + $0xe0] sm:$0xff]   ;;  %v813_v21 = vld [vmem:[%s1036_s1 + $0xe8] sm:$0xff]  }
   0x7   :  { %v806_v14 = vld [vmem:[%s1036_s1 + $0x18] sm:$0xff]   ;;  %v810_v18 = vld [vmem:[%s1036_s1 + $0x20] sm:$0xff]   ;;  %v814_v22 = vld [vmem:[%s1036_s1 + $0x28] sm:$0xff]  }
   0x8   :  { %709 = vmatpush3.bf16.msra.mxu0 %v798_v6  ;;  %v807_v15 = vld [vmem:[%s1036_s1 + $0x98] sm:$0xff]   ;;  %v811_v19 = vld [vmem:[%s1036_s1 + $0xa0] sm:$0xff]   ;;  %v815_v23 = vld [vmem:[%s1036_s1 + $0xa8] sm:$0xff]  }
   0x9   :  { %737 = vmatpush3.bf16.msra.mxu1 %v799_v7  ;;  %710 = vmatprep.subr.bf16.mxu0 %v800_v8  ;;  %v816_v24 = vld [vmem:[%s1036_s1 + $0x70] sm:$0xff]   ;;  %v820_v28 = vld [vmem:[%s1036_s1 + $0x78] sm:$0xff]   ;;  %v829_v35 = vld [vmem:[%s1037_s0 + $0xc] ss:$20 sps:$4 sm:$0xff]  }
   0xa   :  { %738 = vmatprep.subr.bf16.mxu1 %v801_v9  ;;  %v817_v25 = vld [vmem:[%s1036_s1 + $0xf0] sm:$0xff]   ;;  %v821_v29 = vld [vmem:[%s1036_s1 + $0xf8] sm:$0xff]   ;;  %v830_v36 = vld [vmem:[%s1036_s1 + $0x100] sm:$0xff]   ;;  %495 = vmatprep.mubr.bf16.mxu1 %v829_v35 }
   0xb   :  { %v818_v26 = vld [vmem:[%s1036_s1 + $0x30] sm:$0xff]   ;;  %v822_v30 = vld [vmem:[%s1036_s1 + $0x38] sm:$0xff]   ;;  %v831_v37 = vld [vmem:[%s1036_s1 + $0x108] sm:$0xff]  }
   0xc   :  { %711 = vmatpush3.bf16.msra.mxu0 %v802_v10  ;;  %v819_v27 = vld [vmem:[%s1036_s1 + $0xb0] sm:$0xff]   ;;  %v823_v31 = vld [vmem:[%s1036_s1 + $0xb8] sm:$0xff]   ;;  %v835_v39 = vld [vmem:[%s1037_s0 + $0x2c] ss:$20 sps:$4 sm:$0xff]  }
   0xd   :  { %739 = vmatpush3.bf16.msra.mxu1 %v803_v11  ;;  %712 = vmatprep.subr.bf16.mxu0 %v804_v12  ;;  %v824_v32 = vld [vmem:[%s1037_s0] ss:$20 sps:$4 sm:$0xff]   ;;  %v826_v33 = vld [vmem:[%s1037_s0 + $0x4] ss:$20 sps:$4 sm:$0xff]   ;;  %v827_v34 = vld [vmem:[%s1037_s0 + $0x8] ss:$20 sps:$4 sm:$0xff]  }
   0xe   :  { %740 = vmatprep.subr.bf16.mxu1 %v805_v13  ;;  %446 = vmatprep.mubr.bf16.mxu0 %v826_v33  ;;  %v832_v38 = vld [vmem:[%s1036_s1 + $0x110] sm:$0xff]   ;;  %v833_v41 = vld [vmem:[%s1036_s1 + $0x118] sm:$0xff]   ;;  %v834_v45 = vld [vmem:[%s1036_s1 + $0x120] sm:$0xff]  }
   0xf   :  { %v837_v40 = vld [vmem:[%s1037_s0 + $0x34] ss:$20 sps:$4 sm:$0xff]   ;;  %v841_v43 = vld [vmem:[%s1037_s0 + $0x30] ss:$20 sps:$4 sm:$0xff]   ;;  %v843_v48 = vld [vmem:[%s1036_s1 + $0x138] sm:$0xff]  }
  0x10   :  { %713 = vmatpush3.bf16.msra.mxu0 %v806_v14  ;;  %v840_v42 = vld [vmem:[%s1037_s0 + $0x28] ss:$20 sps:$4 sm:$0xff]   ;;  %v844_v44 = vld [vmem:[%s1037_s0 + $0x10] ss:$20 sps:$4 sm:$0xff]   ;;  %v845_v49 = vld [vmem:[%s1037_s0 + $0x38] ss:$20 sps:$4 sm:$0xff]  }
  0x11   :  { %741 = vmatpush3.bf16.msra.mxu1 %v807_v15  ;;  %714 = vmatprep.subr.bf16.mxu0 %v808_v16  ;;  %v839_v46 = vld [vmem:[%s1036_s1 + $0x128] sm:$0xff]   ;;  %v842_v47 = vld [vmem:[%s1036_s1 + $0x130] sm:$0xff]   ;;  %v677_v15 = vld [vmem:[%s1038_s2] ss:$0 sm:$0xff] }
  0x12   :  { %742 = vmatprep.subr.bf16.mxu1 %v809_v17 }
  0x14   :  { %715 = vmatpush3.bf16.msra.mxu0 %v810_v18  ;;  %v704_v18 = vld [vmem:[%s1039_s3 + $0x8] sm:$0xff]  }
  0x15   :  { %743 = vmatpush3.bf16.msra.mxu1 %v811_v19  ;;  %716 = vmatprep.subr.bf16.mxu0 %v812_v20 }
  0x16   :  { %744 = vmatprep.subr.bf16.mxu1 %v813_v21 }
  0x18   :  { %717 = vmatpush3.bf16.msra.mxu0 %v814_v22  ;;  %v687_v22 = vld [vmem:[%s1039_s3] sm:$0xff]  }
  0x19   :  { %745 = vmatpush3.bf16.msra.mxu1 %v815_v23  ;;  %718 = vmatprep.subr.bf16.mxu0 %v816_v24 }
  0x1a   :  { %746 = vmatprep.subr.bf16.mxu1 %v817_v25 }
  0x1c   :  { %719 = vmatpush3.bf16.msra.mxu0 %v818_v26 }
  0x1d   :  { %747 = vmatpush3.bf16.msra.mxu1 %v819_v27  ;;  %720 = vmatprep.subr.bf16.mxu0 %v820_v28  ;;  %v692_v28 = vunpack.c.l.bf16 %v704_v18 }
  0x1e   :  { %748 = vmatprep.subr.bf16.mxu1 %v821_v29 }
  0x20   :  { %721 = vmatpush3.bf16.msra.mxu0 %v822_v30  ;;  %v693_v30 = vunpack.c.h.bf16 %v704_v18 }
  0x21   :  { %749 = vmatpush3.bf16.msra.mxu1 %v823_v31  ;;  %772 = vmatprep.subr.bf16.mxu0 %v830_v36 }
  0x23   :  { %447 = vmatmul.mubr.bf16.vlgmr.msra.gmra.mrb[0].mxu0 %v824_v32  ;;  %v688_v32 = vunpack.c.l.bf16 %v687_v22 }
  0x24   :  { %496 = vmatmul.mubr.bf16.vlgmr.msra.gmra.mrb[0].mxu1 %v827_v34  ;;  %773 = vmatpush3.bf16.msra.mxu0 %v830_v36  ;;  %v689_v34 = vunpack.c.h.bf16 %v687_v22 }
  0x25   :  { %774 = vmatprep.subr.bf16.mxu0 %v831_v37  ;;  %454 = vmatprep.mubr.bf16.mxu0 %v835_v39 }
  0x26   :  { %503 = vmatprep.mubr.bf16.mxu1 %v837_v40 }
  0x28   :  { %775 = vmatpush3.bf16.msra.mxu0 %v831_v37 }
  0x29   :  { %776 = vmatprep.subr.bf16.mxu0 %v832_v38 }
  0x2b   :  { %455 = vmatmul.mubr.bf16.gmra.mrb[4].mxu0 %v840_v42 }
  0x2c   :  { %504 = vmatmul.mubr.bf16.gmra.mrb[4].mxu1 %v841_v43  ;;  %777 = vmatpush3.bf16.msra.mxu0 %v832_v38 }
  0x2d   :  { %778 = vmatprep.subr.bf16.mxu0 %v833_v41  ;;  %788 = vmatprep.mubr.bf16.mxu0 %v844_v44 }
  0x30   :  { %779 = vmatpush3.bf16.msra.mxu0 %v833_v41 }
  0x31   :  { %780 = vmatprep.subr.bf16.mxu0 %v834_v45 }
  0x34   :  { %781 = vmatpush3.bf16.msra.mxu0 %v834_v45 }
  0x35   :  { %782 = vmatprep.subr.bf16.mxu0 %v839_v46 }
  0x38   :  { %783 = vmatpush3.bf16.msra.mxu0 %v839_v46 }
  0x39   :  { %784 = vmatprep.subr.bf16.mxu0 %v842_v47 }
  0x3c   :  { %785 = vmatpush3.bf16.msra.mxu0 %v842_v47 }
  0x3d   :  { %786 = vmatprep.subr.bf16.mxu0 %v843_v48 }
  0x40   :  { %787 = vmatpush3.bf16.msra.mxu0 %v843_v48 }
  0x43   :  { %789 = vmatmul.mubr.bf16.vlgmr.msra.gmra.mrb[8].mxu0 %v845_v49 }
  0xf6   :  { %v722_v50 = vpop.f32.mrb[0].mxu0 }
  0xf7   :  { %v750_v51 = vpop.f32.mrb[0].mxu1  ;;  %v723_v52 = vpop.f32.mrb[1].mxu0 }
  0xf8   :  { %v724_v53 = vadd.f32 %v723_v52, %v722_v50  ;;  %v751_v54 = vpop.f32.mrb[1].mxu1  ;;  %v725_v55 = vpop.f32.mrb[2].mxu0 }
  0xf9   :  { %v752_v56 = vadd.f32 %v751_v54, %v750_v51  ;;  %v753_v57 = vpop.f32.mrb[2].mxu1  ;;  %v726_v58 = vpop.f32.mrb[3].mxu0 }
  0xfa   :  { %v727_v59 = vadd.f32 %v726_v58, %v725_v55  ;;  %v754_v60 = vpop.f32.mrb[3].mxu1 }
  0xfb   :  { %v755_v61 = vadd.f32 %v754_v60, %v753_v57  ;;  %v498_v62 = vadd.f32 %v752_v56, %v724_v53 }
  0xfd   :  { %v501_v63 = vadd.f32 %v755_v61, %v727_v59 }
  0xfe   :  { %v728_v0 = vpop.f32.mrb[4].mxu0 }
  0xff   :  { %v756_v1 = vpop.f32.mrb[4].mxu1  ;;  %v729_v2 = vpop.f32.mrb[5].mxu0 }
 0x100   :  { %v730_v3 = vadd.f32 %v729_v2, %v728_v0  ;;  %v757_v4 = vpop.f32.mrb[5].mxu1  ;;  %v731_v5 = vpop.f32.mrb[6].mxu0 }
 0x101   :  { %v758_v6 = vadd.f32 %v757_v4, %v756_v1  ;;  %v759_v7 = vpop.f32.mrb[6].mxu1  ;;  %v732_v8 = vpop.f32.mrb[7].mxu0 }
 0x102   :  { %v733_v9 = vadd.f32 %v732_v8, %v731_v5  ;;  %v760_v10 = vpop.f32.mrb[7].mxu1 }
 0x103   :  { %v761_v11 = vadd.f32 %v760_v10, %v759_v7  ;;  %v506_v12 = vadd.f32 %v758_v6, %v730_v3 }
 0x105   :  { %v509_v13 = vadd.f32 %v761_v11, %v733_v9 }
 0x116   :  { %v790_v14 = vpop.f32.mrb[8].mxu0 }
 0x117   :  { %v555_v16 = vadd.f32 %v790_v14, %v506_v12  ;;  %v546_v17 = vpop.f32.mrb[9].mxu0 }
 0x118   :  { %v547_v19 = vadd.f32 %v546_v17, %v498_v62  ;;  %v791_v20 = vpop.f32.mrb[10].mxu0 }
 0x119   :  { %v585_v21 = vadd.f32 %v677_v15, %v555_v16  ;;  %v558_v23 = vadd.f32 %v791_v20, %v509_v13  ;;  %v549_v24 = vpop.f32.mrb[11].mxu0 }
 0x11a   :  { %v583_v25 = vadd.f32 %v677_v15, %v547_v19  ;;  %v550_v26 = vadd.f32 %v549_v24, %v501_v63 }
 0x11b   :  { %v589_v27 = vmax.f32 %v585_v21, 0.0  ;;  %v586_v29 = vadd.f32 %v677_v15, %v558_v23 }
 0x11c   :  { %v587_v31 = vmax.f32 %v583_v25, 0.0  ;;  %v584_v33 = vadd.f32 %v677_v15, %v550_v26 }
 0x11d   :  { %v590_v35 = vmax.f32 %v586_v29, 0.0  ;;  %v601_v37 = vadd.f32 %v692_v28, %v589_v27 }
 0x11e   :  { %v588_v36 = vmax.f32 %v584_v33, 0.0  ;;  %v599_v39 = vadd.f32 %v688_v32, %v587_v31 }
 0x11f   :  { %v602_v38 = vadd.f32 %v693_v30, %v590_v35 }
 0x120   :  { %v600_v40 = vadd.f32 %v689_v34, %v588_v36 }
 0x121   :  { %v702_v41 = vpack.c.bf16 %v602_v38, %v601_v37 }
 0x122   :  { %v697_v42 = vpack.c.bf16 %v600_v40, %v599_v39 }
 0x123   :  { %705 = vst [vmem:[%s1040_s4 + $0x8] sm:$0xff] %v702_v41  }
 0x124   :  { %698 = vst [vmem:[%s1040_s4] sm:$0xff] %v697_v42  }

// kernel: unet_forward.37
= control target key start
LH: loop header
LB: loop body
LE: loop exit
PB: predicated region body
PF: predicated region fallthrough
CT: control target
= control target key end

     0   :  { %s473_s1 = inlined_call_operand.vmem [shape: bf16[256,128], index: 1, kind: input, shape index: {}]   ;;  %s474_s0 = inlined_call_operand.vmem [shape: bf16[32,256], index: 0, kind: input, shape index: {}]   ;;  %s475_s2 = inlined_call_operand.vmem [shape: f32[1,128], index: 2, kind: input, shape index: {}]   ;;  %s476_s3 = inlined_call_operand.vmem [shape: bf16[32,128], index: 3, kind: output, shape index: {}]  }
   0x1   :  { %v362_v0 = vld [vmem:[%s473_s1 + $0x40] sm:$0xff]   ;;  %v364_v2 = vld [vmem:[%s473_s1 + $0x48] sm:$0xff]   ;;  %v366_v4 = vld [vmem:[%s473_s1 + $0x50] sm:$0xff]  }
   0x2   :  { %v363_v1 = vld [vmem:[%s473_s1] sm:$0xff]   ;;  %318 = vmatprep.subr.bf16.mxu0 %v362_v0  ;;  %346 = vmatprep.subr.bf16.mxu1 %v362_v0  ;;  %v365_v3 = vld [vmem:[%s473_s1 + $0x8] sm:$0xff]   ;;  %v367_v5 = vld [vmem:[%s473_s1 + $0x10] sm:$0xff]  }
   0x3   :  { %319 = vmatpush3.bf16.msra.mxu0 %v363_v1  ;;  %354 = vmatpush3.bf16.msra.mxu1 %v363_v1  ;;  %v368_v6 = vld [vmem:[%s473_s1 + $0x58] sm:$0xff]   ;;  %v370_v8 = vld [vmem:[%s473_s1 + $0x60] sm:$0xff]   ;;  %v372_v10 = vld [vmem:[%s473_s1 + $0x68] sm:$0xff]  }
   0x4   :  { %320 = vmatprep.subr.bf16.mxu0 %v364_v2  ;;  %347 = vmatprep.subr.bf16.mxu1 %v364_v2  ;;  %v369_v7 = vld [vmem:[%s473_s1 + $0x18] sm:$0xff]   ;;  %v371_v9 = vld [vmem:[%s473_s1 + $0x20] sm:$0xff]   ;;  %v373_v13 = vld [vmem:[%s473_s1 + $0x28] sm:$0xff]  }
   0x5   :  { %v380_v11 = vld [vmem:[%s474_s0 + $0x4] ss:$8 sps:$4 sm:$0xff]   ;;  %v383_v12 = vld [vmem:[%s474_s0 + $0x14] ss:$8 sps:$4 sm:$0xff]   ;;  %v378_v18 = vld [vmem:[%s474_s0] ss:$8 sps:$4 sm:$0xff]  }
   0x6   :  { %v374_v14 = vld [vmem:[%s473_s1 + $0x70] sm:$0xff]   ;;  %211 = vmatprep.mubr.bf16.mxu0 %v380_v11  ;;  %219 = vmatprep.mubr.bf16.mxu1 %v383_v12  ;;  %v376_v16 = vld [vmem:[%s473_s1 + $0x78] sm:$0xff]   ;;  %v298_v28 = vld [vmem:[%s475_s2] ss:$0 sm:$0xff] }
   0x7   :  { %321 = vmatpush3.bf16.msra.mxu0 %v365_v3  ;;  %355 = vmatpush3.bf16.msra.mxu1 %v365_v3  ;;  %v375_v15 = vld [vmem:[%s473_s1 + $0x30] sm:$0xff]   ;;  %v377_v17 = vld [vmem:[%s473_s1 + $0x38] sm:$0xff]  }
   0x8   :  { %322 = vmatprep.subr.bf16.mxu0 %v366_v4  ;;  %348 = vmatprep.subr.bf16.mxu1 %v366_v4  ;;  %v381_v19 = vld [vmem:[%s474_s0 + $0x10] ss:$8 sps:$4 sm:$0xff]  }
   0xb   :  { %323 = vmatpush3.bf16.msra.mxu0 %v367_v5  ;;  %356 = vmatpush3.bf16.msra.mxu1 %v367_v5 }
   0xc   :  { %324 = vmatprep.subr.bf16.mxu0 %v368_v6  ;;  %349 = vmatprep.subr.bf16.mxu1 %v368_v6 }
   0xf   :  { %325 = vmatpush3.bf16.msra.mxu0 %v369_v7  ;;  %357 = vmatpush3.bf16.msra.mxu1 %v369_v7 }
  0x10   :  { %326 = vmatprep.subr.bf16.mxu0 %v370_v8  ;;  %350 = vmatprep.subr.bf16.mxu1 %v370_v8 }
  0x13   :  { %327 = vmatpush3.bf16.msra.mxu0 %v371_v9  ;;  %358 = vmatpush3.bf16.msra.mxu1 %v371_v9 }
  0x14   :  { %328 = vmatprep.subr.bf16.mxu0 %v372_v10  ;;  %351 = vmatprep.subr.bf16.mxu1 %v372_v10 }
  0x17   :  { %329 = vmatpush3.bf16.msra.mxu0 %v373_v13  ;;  %359 = vmatpush3.bf16.msra.mxu1 %v373_v13 }
  0x18   :  { %330 = vmatprep.subr.bf16.mxu0 %v374_v14  ;;  %352 = vmatprep.subr.bf16.mxu1 %v374_v14 }
  0x1b   :  { %331 = vmatpush3.bf16.msra.mxu0 %v375_v15  ;;  %360 = vmatpush3.bf16.msra.mxu1 %v375_v15 }
  0x1c   :  { %332 = vmatprep.subr.bf16.mxu0 %v376_v16  ;;  %353 = vmatprep.subr.bf16.mxu1 %v376_v16 }
  0x1f   :  { %333 = vmatpush3.bf16.msra.mxu0 %v377_v17  ;;  %361 = vmatpush3.bf16.msra.mxu1 %v377_v17 }
  0x22   :  { %212 = vmatmul.mubr.bf16.vlgmr.msra.gmra.mrb[0].mxu0 %v378_v18  ;;  %220 = vmatmul.mubr.bf16.vlgmr.msra.gmra.mrb[0].mxu1 %v381_v19 }
  0xf5   :  { %v334_v20 = vpop.f32.mrb[0].mxu0  ;;  %v340_v21 = vpop.f32.mrb[0].mxu1 }
  0xf6   :  { %v335_v22 = vpop.f32.mrb[1].mxu0  ;;  %v341_v23 = vpop.f32.mrb[1].mxu1 }
  0xf7   :  { %v336_v24 = vadd.f32 %v335_v22, %v334_v20  ;;  %v342_v25 = vadd.f32 %v341_v23, %v340_v21  ;;  %v337_v26 = vpop.f32.mrb[2].mxu0  ;;  %v343_v27 = vpop.f32.mrb[2].mxu1 }
  0xf8   :  { %v338_v29 = vpop.f32.mrb[3].mxu0  ;;  %v344_v30 = vpop.f32.mrb[3].mxu1 }
  0xf9   :  { %v339_v31 = vadd.f32 %v338_v29, %v337_v26  ;;  %v345_v32 = vadd.f32 %v344_v30, %v343_v27  ;;  %v250_v33 = vadd.f32 %v336_v24, %v298_v28  ;;  %v252_v34 = vadd.f32 %v342_v25, %v298_v28 }
  0xfb   :  { %v251_v35 = vadd.f32 %v339_v31, %v298_v28  ;;  %v253_v36 = vadd.f32 %v345_v32, %v298_v28 }
  0xfd   :  { %v310_v37 = vpack.c.bf16 %v251_v35, %v250_v33  ;;  %v315_v38 = vpack.c.bf16 %v253_v36, %v252_v34 }
  0xff   :  { %311 = vst [vmem:[%s476_s3] sm:$0xff] %v310_v37   ;;  %317 = vst [vmem:[%s476_s3 + $0x8] sm:$0xff] %v315_v38  }

// kernel: unet_forward.39
= control target key start
LH: loop header
LB: loop body
LE: loop exit
PB: predicated region body
PF: predicated region fallthrough
CT: control target
= control target key end

     0   :  { %s705_s1 = inlined_call_operand.vmem [shape: bf16[128,128], index: 1, kind: input, shape index: {}]   ;;  %s706_s0 = inlined_call_operand.vmem [shape: bf16[128,128], index: 0, kind: input, shape index: {}]   ;;  %s707_s2 = inlined_call_operand.vmem [shape: f32[1,128], index: 2, kind: input, shape index: {}]   ;;  %s708_s3 = inlined_call_operand.vmem [shape: bf16[128,128], index: 3, kind: output, shape index: {}]  }
   0x1   :  { %v594_v0 = vld [vmem:[%s705_s1] sm:$0xff]   ;;  %v595_v1 = vld [vmem:[%s705_s1 + $0x8] sm:$0xff]   ;;  %v596_v2 = vld [vmem:[%s705_s1 + $0x10] sm:$0xff]  }
   0x2   :  { %546 = vmatprep.subr.bf16.mxu0 %v594_v0  ;;  %578 = vmatprep.subr.bf16.mxu1 %v594_v0  ;;  %v597_v3 = vld [vmem:[%s705_s1 + $0x18] sm:$0xff]   ;;  %v602_v4 = vld [vmem:[%s706_s0] sm:$0xff]   ;;  %v599_v7 = vld [vmem:[%s705_s1 + $0x28] sm:$0xff]  }
   0x3   :  { %547 = vmatpush3.bf16.msra.mxu0 %v594_v0  ;;  %586 = vmatpush3.bf16.msra.mxu1 %v594_v0  ;;  %v603_v5 = vld [vmem:[%s706_s0 + $0x20] sm:$0xff]   ;;  %v600_v8 = vld [vmem:[%s705_s1 + $0x30] sm:$0xff]   ;;  %v601_v9 = vld [vmem:[%s705_s1 + $0x38] sm:$0xff]  }
   0x4   :  { %548 = vmatprep.subr.bf16.mxu0 %v595_v1  ;;  %579 = vmatprep.subr.bf16.mxu1 %v595_v1  ;;  %v598_v6 = vld [vmem:[%s705_s1 + $0x20] sm:$0xff]   ;;  %v604_v10 = vld [vmem:[%s706_s0 + $0x8] sm:$0xff]   ;;  %v606_v12 = vld [vmem:[%s706_s0 + $0x10] sm:$0xff]  }
   0x5   :  { %562 = vmatprep.mubr.bf16.mxu0 %v602_v4  ;;  %570 = vmatprep.mubr.bf16.mxu1 %v603_v5  ;;  %v605_v11 = vld [vmem:[%s706_s0 + $0x28] sm:$0xff]   ;;  %v607_v13 = vld [vmem:[%s706_s0 + $0x30] sm:$0xff]   ;;  %v608_v14 = vld [vmem:[%s706_s0 + $0x18] sm:$0xff]  }
   0x6   :  { %v609_v15 = vld [vmem:[%s706_s0 + $0x38] sm:$0xff]   ;;  %v450_v17 = vld [vmem:[%s707_s2] ss:$0 sm:$0xff] }
   0x7   :  { %549 = vmatpush3.bf16.msra.mxu0 %v595_v1  ;;  %587 = vmatpush3.bf16.msra.mxu1 %v595_v1 }
   0x8   :  { %550 = vmatprep.subr.bf16.mxu0 %v596_v2  ;;  %580 = vmatprep.subr.bf16.mxu1 %v596_v2 }
   0xb   :  { %551 = vmatpush3.bf16.msra.mxu0 %v596_v2  ;;  %588 = vmatpush3.bf16.msra.mxu1 %v596_v2 }
   0xc   :  { %552 = vmatprep.subr.bf16.mxu0 %v597_v3  ;;  %581 = vmatprep.subr.bf16.mxu1 %v597_v3 }
   0xf   :  { %553 = vmatpush3.bf16.msra.mxu0 %v597_v3  ;;  %589 = vmatpush3.bf16.msra.mxu1 %v597_v3 }
  0x10   :  { %554 = vmatprep.subr.bf16.mxu0 %v598_v6  ;;  %582 = vmatprep.subr.bf16.mxu1 %v598_v6 }
  0x13   :  { %555 = vmatpush3.bf16.msra.mxu0 %v598_v6  ;;  %590 = vmatpush3.bf16.msra.mxu1 %v598_v6 }
  0x14   :  { %556 = vmatprep.subr.bf16.mxu0 %v599_v7  ;;  %583 = vmatprep.subr.bf16.mxu1 %v599_v7 }
  0x17   :  { %557 = vmatpush3.bf16.msra.mxu0 %v599_v7  ;;  %591 = vmatpush3.bf16.msra.mxu1 %v599_v7 }
  0x18   :  { %558 = vmatprep.subr.bf16.mxu0 %v600_v8  ;;  %584 = vmatprep.subr.bf16.mxu1 %v600_v8 }
  0x1b   :  { %559 = vmatpush3.bf16.msra.mxu0 %v600_v8  ;;  %592 = vmatpush3.bf16.msra.mxu1 %v600_v8 }
  0x1c   :  { %560 = vmatprep.subr.bf16.mxu0 %v601_v9  ;;  %585 = vmatprep.subr.bf16.mxu1 %v601_v9 }
  0x1f   :  { %561 = vmatpush3.bf16.msra.mxu0 %v601_v9  ;;  %593 = vmatpush3.bf16.msra.mxu1 %v601_v9 }
  0x22   :  { %563 = vmatmul.mubr.bf16.vlgmr.msra.gmra.mrb[0].mxu0 %v604_v10  ;;  %571 = vmatmul.mubr.bf16.vlgmr.msra.gmra.mrb[0].mxu1 %v605_v11 }
  0x23   :  { %566 = vmatprep.mubr.bf16.mxu0 %v606_v12  ;;  %574 = vmatprep.mubr.bf16.mxu1 %v607_v13 }
  0x2a   :  { %567 = vmatmul.mubr.bf16.gmra.mrb[4].mxu0 %v608_v14  ;;  %575 = vmatmul.mubr.bf16.gmra.mrb[4].mxu1 %v609_v15 }
  0xf5   :  { %v564_v16 = vpop.f32.mrb[0].mxu0  ;;  %v572_v18 = vpop.f32.mrb[0].mxu1 }
  0xf6   :  { %v213_v19 = vpop.f32.mrb[1].mxu0  ;;  %v245_v20 = vpop.f32.mrb[1].mxu1  ;;  %v336_v23 = vadd.f32 %v564_v16, %v450_v17  ;;  %v344_v24 = vadd.f32 %v572_v18, %v450_v17 }
  0xf7   :  { %v565_v21 = vpop.f32.mrb[2].mxu0  ;;  %v573_v22 = vpop.f32.mrb[2].mxu1  ;;  %v334_v29 = vadd.f32 %v450_v17, %v213_v19  ;;  %v342_v30 = vadd.f32 %v450_v17, %v245_v20 }
  0xf8   :  { %v337_v25 = vadd.f32 %v565_v21, %v450_v17  ;;  %v345_v26 = vadd.f32 %v573_v22, %v450_v17  ;;  %v216_v27 = vpop.f32.mrb[3].mxu0  ;;  %v248_v28 = vpop.f32.mrb[3].mxu1 }
  0xf9   :  { %v335_v31 = vadd.f32 %v450_v17, %v216_v27  ;;  %v343_v32 = vadd.f32 %v450_v17, %v248_v28 }
  0xfa   :  { %v491_v33 = vpack.c.bf16 %v337_v25, %v336_v23  ;;  %v511_v34 = vpack.c.bf16 %v345_v26, %v344_v24 }
  0xfb   :  { %v486_v35 = vpack.c.bf16 %v335_v31, %v334_v29  ;;  %v506_v36 = vpack.c.bf16 %v343_v32, %v342_v30 }
  0xfc   :  { %523 = vst [vmem:[%s708_s3 + $0x8] sm:$0xff] %v491_v33   ;;  %527 = vst [vmem:[%s708_s3 + $0x28] sm:$0xff] %v511_v34  }
  0xfd   :  { %487 = vst [vmem:[%s708_s3] sm:$0xff] %v486_v35   ;;  %526 = vst [vmem:[%s708_s3 + $0x20] sm:$0xff] %v506_v36   ;;  %v568_v37 = vpop.f32.mrb[4].mxu0  ;;  %v576_v38 = vpop.f32.mrb[4].mxu1 }
  0xfe   :  { %v229_v39 = vpop.f32.mrb[5].mxu0  ;;  %v261_v40 = vpop.f32.mrb[5].mxu1  ;;  %v340_v43 = vadd.f32 %v568_v37, %v450_v17  ;;  %v348_v44 = vadd.f32 %v576_v38, %v450_v17 }
  0xff   :  { %v569_v41 = vpop.f32.mrb[6].mxu0  ;;  %v577_v42 = vpop.f32.mrb[6].mxu1  ;;  %v338_v49 = vadd.f32 %v450_v17, %v229_v39  ;;  %v346_v50 = vadd.f32 %v450_v17, %v261_v40 }
 0x100   :  { %v341_v45 = vadd.f32 %v569_v41, %v450_v17  ;;  %v349_v46 = vadd.f32 %v577_v42, %v450_v17  ;;  %v232_v47 = vpop.f32.mrb[7].mxu0  ;;  %v264_v48 = vpop.f32.mrb[7].mxu1 }
 0x101   :  { %v339_v51 = vadd.f32 %v450_v17, %v232_v47  ;;  %v347_v52 = vadd.f32 %v450_v17, %v264_v48 }
 0x102   :  { %v501_v53 = vpack.c.bf16 %v341_v45, %v340_v43  ;;  %v521_v54 = vpack.c.bf16 %v349_v46, %v348_v44 }
 0x103   :  { %v496_v55 = vpack.c.bf16 %v339_v51, %v338_v49  ;;  %v516_v56 = vpack.c.bf16 %v347_v52, %v346_v50 }
 0x104   :  { %525 = vst [vmem:[%s708_s3 + $0x18] sm:$0xff] %v501_v53   ;;  %529 = vst [vmem:[%s708_s3 + $0x38] sm:$0xff] %v521_v54  }
 0x105   :  { %524 = vst [vmem:[%s708_s3 + $0x10] sm:$0xff] %v496_v55   ;;  %528 = vst [vmem:[%s708_s3 + $0x30] sm:$0xff] %v516_v56  }

// kernel: unet_forward.38
= control target key start
LH: loop header
LB: loop body
LE: loop exit
PB: predicated region body
PF: predicated region fallthrough
CT: control target
= control target key end

     0   :  { %s1410_s1 = inlined_call_operand.vmem [shape: bf16[384,128], index: 1, kind: input, shape index: {}]   ;;  %s1411_s0 = inlined_call_operand.vmem [shape: bf16[128,384], index: 0, kind: input, shape index: {}]   ;;  %s1412_s2 = inlined_call_operand.vmem [shape: f32[1,128], index: 2, kind: input, shape index: {}]   ;;  %s1413_s3 = inlined_call_operand.vmem [shape: bf16[128,128], index: 3, kind: input, shape index: {}]   ;;  %s1414_s4 = inlined_call_operand.vmem [shape: bf16[128,128], index: 4, kind: output, shape index: {}]  }
   0x1   :  { %v1101_v0 = vld [vmem:[%s1410_s1 + $0x40] sm:$0xff]   ;;  %v1104_v3 = vld [vmem:[%s1410_s1 + $0x48] sm:$0xff]   ;;  %v1107_v6 = vld [vmem:[%s1410_s1 + $0x50] sm:$0xff]  }
   0x2   :  { %v1102_v1 = vld [vmem:[%s1410_s1] sm:$0xff]   ;;  %989 = vmatprep.subr.bf16.mxu0 %v1101_v0  ;;  %v1105_v4 = vld [vmem:[%s1410_s1 + $0x8] sm:$0xff]   ;;  %v1108_v7 = vld [vmem:[%s1410_s1 + $0x10] sm:$0xff]  }
   0x3   :  { %v1103_v2 = vld [vmem:[%s1410_s1 + $0x80] sm:$0xff]   ;;  %990 = vmatpush3.bf16.msra.mxu0 %v1102_v1  ;;  %v1106_v5 = vld [vmem:[%s1410_s1 + $0x88] sm:$0xff]   ;;  %v1109_v8 = vld [vmem:[%s1410_s1 + $0x90] sm:$0xff]  }
   0x4   :  { %1069 = vmatprep.subr.bf16.mxu1 %v1103_v2  ;;  %991 = vmatprep.subr.bf16.mxu0 %v1104_v3  ;;  %v1110_v9 = vld [vmem:[%s1410_s1 + $0x58] sm:$0xff]   ;;  %v1113_v12 = vld [vmem:[%s1410_s1 + $0x60] sm:$0xff]   ;;  %v1116_v15 = vld [vmem:[%s1410_s1 + $0x68] sm:$0xff]  }
   0x5   :  { %1070 = vmatpush3.bf16.msra.mxu1 %v1103_v2  ;;  %v1111_v10 = vld [vmem:[%s1410_s1 + $0x18] sm:$0xff]   ;;  %v1115_v13 = vld [vmem:[%s1410_s1 + $0xa0] sm:$0xff]   ;;  %v1118_v16 = vld [vmem:[%s1410_s1 + $0xa8] sm:$0xff]  }
   0x6   :  { %1071 = vmatprep.subr.bf16.mxu1 %v1106_v5  ;;  %v1112_v11 = vld [vmem:[%s1410_s1 + $0x98] sm:$0xff]   ;;  %v1114_v14 = vld [vmem:[%s1410_s1 + $0x20] sm:$0xff]   ;;  %v1117_v17 = vld [vmem:[%s1410_s1 + $0x28] sm:$0xff]  }
   0x7   :  { %992 = vmatpush3.bf16.msra.mxu0 %v1105_v4  ;;  %v1119_v18 = vld [vmem:[%s1410_s1 + $0x70] sm:$0xff]   ;;  %v1122_v21 = vld [vmem:[%s1410_s1 + $0x78] sm:$0xff]   ;;  %v1125_v26 = vld [vmem:[%s1411_s0] ss:$12 sps:$4 sm:$0xff]  }
   0x8   :  { %993 = vmatprep.subr.bf16.mxu0 %v1107_v6  ;;  %v1120_v19 = vld [vmem:[%s1410_s1 + $0x30] sm:$0xff]   ;;  %v1124_v22 = vld [vmem:[%s1410_s1 + $0xb8] sm:$0xff]   ;;  %v1129_v28 = vld [vmem:[%s1411_s0 + $0x20] ss:$12 sps:$4 sm:$0xff]  }
   0x9   :  { %1072 = vmatpush3.bf16.msra.mxu1 %v1106_v5  ;;  %v1121_v20 = vld [vmem:[%s1410_s1 + $0xb0] sm:$0xff]   ;;  %v1123_v25 = vld [vmem:[%s1410_s1 + $0x38] sm:$0xff]   ;;  %v1145_v36 = vld [vmem:[%s1411_s0 + $0x80] ss:$12 sps:$4 sm:$0xff]  }
   0xa   :  { %1073 = vmatprep.subr.bf16.mxu1 %v1109_v8  ;;  %v1127_v23 = vld [vmem:[%s1411_s0 + $0x4] ss:$12 sps:$4 sm:$0xff]   ;;  %v1128_v24 = vld [vmem:[%s1411_s0 + $0x8] ss:$12 sps:$4 sm:$0xff]   ;;  %v1138_v35 = vld [vmem:[%s1411_s0 + $0x4c] ss:$12 sps:$4 sm:$0xff]  }
   0xb   :  { %994 = vmatpush3.bf16.msra.mxu0 %v1108_v7  ;;  %438 = vmatprep.mubr.bf16.mxu0 %v1127_v23  ;;  %v1130_v27 = vld [vmem:[%s1411_s0 + $0x1c] ss:$12 sps:$4 sm:$0xff]   ;;  %v1136_v29 = vld [vmem:[%s1411_s0 + $0x38] ss:$12 sps:$4 sm:$0xff]   ;;  %v1133_v31 = vld [vmem:[%s1411_s0 + $0x34] ss:$12 sps:$4 sm:$0xff]  }
   0xc   :  { %995 = vmatprep.subr.bf16.mxu0 %v1110_v9  ;;  %1085 = vmatprep.mubr.bf16.mxu1 %v1128_v24  ;;  %v1132_v30 = vld [vmem:[%s1411_s0 + $0x18] ss:$12 sps:$4 sm:$0xff]   ;;  %v1137_v32 = vld [vmem:[%s1411_s0 + $0x50] ss:$12 sps:$4 sm:$0xff]   ;;  %v1144_v33 = vld [vmem:[%s1411_s0 + $0x68] ss:$12 sps:$4 sm:$0xff]  }
   0xd   :  { %1074 = vmatpush3.bf16.msra.mxu1 %v1109_v8  ;;  %v1135_v34 = vld [vmem:[%s1411_s0 + $0x30] ss:$12 sps:$4 sm:$0xff]   ;;  %v1152_v37 = vld [vmem:[%s1411_s0 + $0x98] ss:$12 sps:$4 sm:$0xff]   ;;  %v1140_v38 = vld [vmem:[%s1411_s0 + $0x48] ss:$12 sps:$4 sm:$0xff]  }
   0xe   :  { %1075 = vmatprep.subr.bf16.mxu1 %v1112_v11  ;;  %v1141_v39 = vld [vmem:[%s1411_s0 + $0x64] ss:$12 sps:$4 sm:$0xff]   ;;  %v1143_v41 = vld [vmem:[%s1411_s0 + $0x60] ss:$12 sps:$4 sm:$0xff]   ;;  %v1146_v42 = vld [vmem:[%s1411_s0 + $0x7c] ss:$12 sps:$4 sm:$0xff]  }
   0xf   :  { %996 = vmatpush3.bf16.msra.mxu0 %v1111_v10  ;;  %v1153_v40 = vld [vmem:[%s1411_s0 + $0xb0] ss:$12 sps:$4 sm:$0xff]   ;;  %v1148_v43 = vld [vmem:[%s1411_s0 + $0x78] ss:$12 sps:$4 sm:$0xff]   ;;  %v1149_v44 = vld [vmem:[%s1411_s0 + $0x94] ss:$12 sps:$4 sm:$0xff]  }
  0x10   :  { %997 = vmatprep.subr.bf16.mxu0 %v1113_v12  ;;  %v1151_v45 = vld [vmem:[%s1411_s0 + $0x90] ss:$12 sps:$4 sm:$0xff]   ;;  %v1154_v46 = vld [vmem:[%s1411_s0 + $0xac] ss:$12 sps:$4 sm:$0xff]   ;;  %v1156_v47 = vld [vmem:[%s1411_s0 + $0xa8] ss:$12 sps:$4 sm:$0xff]  }
  0x11   :  { %1076 = vmatpush3.bf16.msra.mxu1 %v1112_v11  ;;  %v1329_v55 = vld [vmem:[%s1412_s2] ss:$0 sm:$0xff] }
  0x12   :  { %1077 = vmatprep.subr.bf16.mxu1 %v1115_v13  ;;  %v904_v59 = vld [vmem:[%s1413_s3] sm:$0xff]  }
  0x13   :  { %998 = vmatpush3.bf16.msra.mxu0 %v1114_v14  ;;  %v905_v0 = vunpack.c.l.bf16 %v904_v59  ;;  %v906_v2 = vunpack.c.h.bf16 %v904_v59 }
  0x14   :  { %999 = vmatprep.subr.bf16.mxu0 %v1116_v15 }
  0x15   :  { %1078 = vmatpush3.bf16.msra.mxu1 %v1115_v13 }
  0x16   :  { %1079 = vmatprep.subr.bf16.mxu1 %v1118_v16 }
  0x17   :  { %1000 = vmatpush3.bf16.msra.mxu0 %v1117_v17 }
  0x18   :  { %1001 = vmatprep.subr.bf16.mxu0 %v1119_v18 }
  0x19   :  { %1080 = vmatpush3.bf16.msra.mxu1 %v1118_v16  ;;  %v975_v16 = vld [vmem:[%s1413_s3 + $0x8] sm:$0xff]  }
  0x1a   :  { %1081 = vmatprep.subr.bf16.mxu1 %v1121_v20  ;;  %v910_v24 = vunpack.c.h.bf16 %v975_v16 }
  0x1b   :  { %1002 = vmatpush3.bf16.msra.mxu0 %v1120_v19 }
  0x1c   :  { %1003 = vmatprep.subr.bf16.mxu0 %v1122_v21 }
  0x1d   :  { %1082 = vmatpush3.bf16.msra.mxu1 %v1121_v20 }
  0x1e   :  { %1083 = vmatprep.subr.bf16.mxu1 %v1124_v22 }
  0x1f   :  { %1004 = vmatpush3.bf16.msra.mxu0 %v1123_v25 }
  0x21   :  { %1084 = vmatpush3.bf16.msra.mxu1 %v1124_v22  ;;  %v909_v22 = vunpack.c.l.bf16 %v975_v16 }
  0x22   :  { %439 = vmatmul.mubr.bf16.vlgmr.msra.gmra.mrb[0].mxu0 %v1125_v26 }
  0x23   :  { %446 = vmatprep.mubr.bf16.mxu0 %v1130_v27 }
  0x24   :  { %1086 = vmatmul.mubr.bf16.vlgmr.msra.gmra.mrb[0].mxu1 %v1129_v28 }
  0x25   :  { %1089 = vmatprep.mubr.bf16.mxu1 %v1136_v29 }
  0x2a   :  { %447 = vmatmul.mubr.bf16.gmra.mrb[4].mxu0 %v1132_v30 }
  0x2b   :  { %454 = vmatprep.mubr.bf16.mxu0 %v1133_v31 }
  0x2c   :  { %1090 = vmatmul.mubr.bf16.gmra.mrb[4].mxu1 %v1137_v32 }
  0x2d   :  { %1093 = vmatprep.mubr.bf16.mxu1 %v1144_v33 }
  0x32   :  { %455 = vmatmul.mubr.bf16.gmra.mrb[8].mxu0 %v1135_v34 }
  0x33   :  { %462 = vmatprep.mubr.bf16.mxu0 %v1138_v35 }
  0x34   :  { %1094 = vmatmul.mubr.bf16.gmra.mrb[8].mxu1 %v1145_v36 }
  0x35   :  { %1097 = vmatprep.mubr.bf16.mxu1 %v1152_v37 }
  0x3a   :  { %463 = vmatmul.mubr.bf16.gmra.mrb[12].mxu0 %v1140_v38  ;;  %v976_v38 = vld [vmem:[%s1413_s3 + $0x10] sm:$0xff]  }
  0x3b   :  { %470 = vmatprep.mubr.bf16.mxu0 %v1141_v39 }
  0x3c   :  { %1098 = vmatmul.mubr.bf16.gmra.mrb[12].mxu1 %v1153_v40 }
  0x42   :  { %471 = vmatmul.mubr.bf16.gmra.mrb[16].mxu0 %v1143_v41 }
  0x43   :  { %478 = vmatprep.mubr.bf16.mxu0 %v1146_v42 }
  0x4a   :  { %479 = vmatmul.mubr.bf16.gmra.mrb[20].mxu0 %v1148_v43 }
  0x4b   :  { %486 = vmatprep.mubr.bf16.mxu0 %v1149_v44  ;;  %v913_v44 = vunpack.c.l.bf16 %v976_v38 }
  0x52   :  { %487 = vmatmul.mubr.bf16.gmra.mrb[24].mxu0 %v1151_v45 }
  0x53   :  { %494 = vmatprep.mubr.bf16.mxu0 %v1154_v46  ;;  %v914_v46 = vunpack.c.h.bf16 %v976_v38 }
  0x5a   :  { %495 = vmatmul.mubr.bf16.gmra.mrb[28].mxu0 %v1156_v47 }
  0xf5   :  { %v1005_v48 = vpop.f32.mrb[0].mxu0 }
  0xf6   :  { %v1006_v49 = vpop.f32.mrb[1].mxu0 }
  0xf7   :  { %v1007_v50 = vadd.f32 %v1006_v49, %v1005_v48  ;;  %v1008_v51 = vpop.f32.mrb[2].mxu0  ;;  %v1087_v52 = vpop.f32.mrb[0].mxu1 }
  0xf8   :  { %v1009_v53 = vpop.f32.mrb[3].mxu0  ;;  %v537_v54 = vpop.f32.mrb[1].mxu1 }
  0xf9   :  { %v1010_v56 = vadd.f32 %v1009_v53, %v1008_v51  ;;  %v538_v57 = vadd.f32 %v1007_v50, %v537_v54  ;;  %v1088_v58 = vpop.f32.mrb[2].mxu1 }
  0xfa   :  { %v540_v60 = vpop.f32.mrb[3].mxu1 }
  0xfb   :  { %v658_v61 = vadd.f32 %v1329_v55, %v538_v57  ;;  %v541_v62 = vadd.f32 %v1010_v56, %v540_v60 }
  0xfd   :  { %v674_v63 = vmax.f32 %v658_v61, 0.0  ;;  %v659_v1 = vadd.f32 %v1329_v55, %v541_v62  ;;  %v1011_v3 = vpop.f32.mrb[4].mxu0  ;;  %v977_v61 = vld [vmem:[%s1413_s3 + $0x18] sm:$0xff]  }
  0xfe   :  { %v1012_v4 = vpop.f32.mrb[5].mxu0 }
  0xff   :  { %v675_v5 = vmax.f32 %v659_v1, 0.0  ;;  %v1013_v6 = vadd.f32 %v1012_v4, %v1011_v3  ;;  %v1014_v7 = vpop.f32.mrb[6].mxu0  ;;  %v1091_v8 = vpop.f32.mrb[4].mxu1  ;;  %v722_v11 = vadd.f32 %v905_v0, %v674_v63  ;;  %v917_v3 = vunpack.c.l.bf16 %v977_v61 }
 0x100   :  { %v1015_v9 = vpop.f32.mrb[7].mxu0  ;;  %v553_v10 = vpop.f32.mrb[5].mxu1 }
 0x101   :  { %v723_v12 = vadd.f32 %v906_v2, %v675_v5  ;;  %v546_v13 = vadd.f32 %v1087_v52, %v1013_v6  ;;  %v1016_v14 = vadd.f32 %v1015_v9, %v1014_v7  ;;  %v1092_v15 = vpop.f32.mrb[6].mxu1  ;;  %v918_v5 = vunpack.c.h.bf16 %v977_v61 }
 0x102   :  { %v556_v17 = vpop.f32.mrb[7].mxu1 }
 0x103   :  { %v938_v18 = vpack.c.bf16 %v723_v12, %v722_v11  ;;  %v660_v19 = vadd.f32 %v1329_v55, %v546_v13  ;;  %v549_v20 = vadd.f32 %v1088_v58, %v1016_v14 }
 0x105   :  { %939 = vst [vmem:[%s1414_s4] sm:$0xff] %v938_v18   ;;  %v676_v21 = vmax.f32 %v660_v19, 0.0  ;;  %v661_v23 = vadd.f32 %v1329_v55, %v549_v20  ;;  %v1017_v25 = vpop.f32.mrb[8].mxu0 }
 0x106   :  { %v1018_v26 = vpop.f32.mrb[9].mxu0 }
 0x107   :  { %v677_v27 = vmax.f32 %v661_v23, 0.0  ;;  %v1019_v28 = vadd.f32 %v1018_v26, %v1017_v25  ;;  %v1020_v29 = vpop.f32.mrb[10].mxu0  ;;  %v1344_v30 = vpop.f32.mrb[8].mxu1  ;;  %v724_v33 = vadd.f32 %v909_v22, %v676_v21 }
 0x108   :  { %v1021_v31 = vpop.f32.mrb[11].mxu0  ;;  %v569_v32 = vpop.f32.mrb[9].mxu1 }
 0x109   :  { %v725_v34 = vadd.f32 %v910_v24, %v677_v27  ;;  %v1022_v35 = vadd.f32 %v1021_v31, %v1020_v29  ;;  %v554_v36 = vadd.f32 %v1019_v28, %v553_v10  ;;  %v1346_v37 = vpop.f32.mrb[10].mxu1 }
 0x10a   :  { %v572_v39 = vpop.f32.mrb[11].mxu1 }
 0x10b   :  { %v943_v40 = vpack.c.bf16 %v725_v34, %v724_v33  ;;  %v662_v41 = vadd.f32 %v1329_v55, %v554_v36  ;;  %v557_v42 = vadd.f32 %v1022_v35, %v556_v17  ;;  %v979_v35 = vld [vmem:[%s1413_s3 + $0x28] sm:$0xff]  }
 0x10d   :  { %982 = vst [vmem:[%s1414_s4 + $0x8] sm:$0xff] %v943_v40   ;;  %v678_v43 = vmax.f32 %v662_v41, 0.0  ;;  %v663_v45 = vadd.f32 %v1329_v55, %v557_v42  ;;  %v1023_v47 = vpop.f32.mrb[12].mxu0  ;;  %v925_v41 = vunpack.c.l.bf16 %v979_v35 }
 0x10e   :  { %v1024_v48 = vpop.f32.mrb[13].mxu0 }
 0x10f   :  { %v679_v49 = vmax.f32 %v663_v45, 0.0  ;;  %v1025_v50 = vadd.f32 %v1024_v48, %v1023_v47  ;;  %v1026_v51 = vpop.f32.mrb[14].mxu0  ;;  %v1356_v52 = vpop.f32.mrb[12].mxu1  ;;  %v726_v56 = vadd.f32 %v913_v44, %v678_v43  ;;  %v926_v43 = vunpack.c.h.bf16 %v979_v35 }
 0x110   :  { %v1027_v53 = vpop.f32.mrb[15].mxu0  ;;  %v1358_v54 = vpop.f32.mrb[13].mxu1 }
 0x111   :  { %v727_v57 = vadd.f32 %v914_v46, %v679_v49  ;;  %v562_v58 = vadd.f32 %v1091_v8, %v1025_v50  ;;  %v1028_v59 = vadd.f32 %v1027_v53, %v1026_v51  ;;  %v1360_v60 = vpop.f32.mrb[14].mxu1  ;;  %v980_v53 = vld [vmem:[%s1413_s3 + $0x30] sm:$0xff]  }
 0x112   :  { %v588_v62 = vpop.f32.mrb[15].mxu1  ;;  %v929_v61 = vunpack.c.l.bf16 %v980_v53 }
 0x113   :  { %v948_v63 = vpack.c.bf16 %v727_v57, %v726_v56  ;;  %v664_v0 = vadd.f32 %v1329_v55, %v562_v58  ;;  %v565_v1 = vadd.f32 %v1092_v15, %v1028_v59  ;;  %v978_v15 = vld [vmem:[%s1413_s3 + $0x20] sm:$0xff]  }
 0x114   :  { %v921_v21 = vunpack.c.l.bf16 %v978_v15  ;;  %v922_v23 = vunpack.c.h.bf16 %v978_v15 }
 0x115   :  { %983 = vst [vmem:[%s1414_s4 + $0x10] sm:$0xff] %v948_v63   ;;  %v680_v2 = vmax.f32 %v664_v0, 0.0  ;;  %v665_v4 = vadd.f32 %v1329_v55, %v565_v1  ;;  %v1029_v6 = vpop.f32.mrb[16].mxu0  ;;  %v930_v0 = vunpack.c.h.bf16 %v980_v53 }
 0x116   :  { %v1030_v7 = vpop.f32.mrb[17].mxu0 }
 0x117   :  { %v681_v8 = vmax.f32 %v665_v4, 0.0  ;;  %v1031_v9 = vadd.f32 %v1030_v7, %v1029_v6  ;;  %v1032_v10 = vpop.f32.mrb[18].mxu0  ;;  %v728_v12 = vadd.f32 %v917_v3, %v680_v2 }
 0x118   :  { %v1033_v11 = vpop.f32.mrb[19].mxu0 }
 0x119   :  { %v729_v13 = vadd.f32 %v918_v5, %v681_v8  ;;  %v1034_v14 = vadd.f32 %v1033_v11, %v1032_v10  ;;  %v570_v16 = vadd.f32 %v1031_v9, %v569_v32  ;;  %v981_v9 = vld [vmem:[%s1413_s3 + $0x38] sm:$0xff]  }
 0x11a   :  { %v934_v15 = vunpack.c.h.bf16 %v981_v9 }
 0x11b   :  { %v953_v17 = vpack.c.bf16 %v729_v13, %v728_v12  ;;  %v666_v18 = vadd.f32 %v1329_v55, %v570_v16  ;;  %v573_v19 = vadd.f32 %v1034_v14, %v572_v39  ;;  %v933_v14 = vunpack.c.l.bf16 %v981_v9 }
 0x11d   :  { %984 = vst [vmem:[%s1414_s4 + $0x18] sm:$0xff] %v953_v17   ;;  %v682_v20 = vmax.f32 %v666_v18, 0.0  ;;  %v667_v22 = vadd.f32 %v1329_v55, %v573_v19  ;;  %v1035_v24 = vpop.f32.mrb[20].mxu0 }
 0x11e   :  { %v1036_v25 = vpop.f32.mrb[21].mxu0 }
 0x11f   :  { %v683_v26 = vmax.f32 %v667_v22, 0.0  ;;  %v1037_v27 = vadd.f32 %v1036_v25, %v1035_v24  ;;  %v1038_v28 = vpop.f32.mrb[22].mxu0  ;;  %v730_v31 = vadd.f32 %v921_v21, %v682_v20 }
 0x120   :  { %v1039_v29 = vpop.f32.mrb[23].mxu0 }
 0x121   :  { %v731_v32 = vadd.f32 %v922_v23, %v683_v26  ;;  %v578_v33 = vadd.f32 %v1344_v30, %v1037_v27  ;;  %v1040_v34 = vadd.f32 %v1039_v29, %v1038_v28 }
 0x123   :  { %v958_v36 = vpack.c.bf16 %v731_v32, %v730_v31  ;;  %v668_v38 = vadd.f32 %v1329_v55, %v578_v33  ;;  %v581_v39 = vadd.f32 %v1346_v37, %v1040_v34 }
 0x125   :  { %985 = vst [vmem:[%s1414_s4 + $0x20] sm:$0xff] %v958_v36   ;;  %v684_v40 = vmax.f32 %v668_v38, 0.0  ;;  %v669_v42 = vadd.f32 %v1329_v55, %v581_v39  ;;  %v1041_v30 = vpop.f32.mrb[24].mxu0 }
 0x126   :  { %v1042_v44 = vpop.f32.mrb[25].mxu0 }
 0x127   :  { %v685_v45 = vmax.f32 %v669_v42, 0.0  ;;  %v1043_v46 = vadd.f32 %v1042_v44, %v1041_v30  ;;  %v1044_v47 = vpop.f32.mrb[26].mxu0  ;;  %v732_v49 = vadd.f32 %v925_v41, %v684_v40 }
 0x128   :  { %v1045_v48 = vpop.f32.mrb[27].mxu0 }
 0x129   :  { %v733_v50 = vadd.f32 %v926_v43, %v685_v45  ;;  %v1046_v51 = vadd.f32 %v1045_v48, %v1044_v47  ;;  %v586_v37 = vadd.f32 %v1043_v46, %v1358_v54 }
 0x12b   :  { %v963_v56 = vpack.c.bf16 %v733_v50, %v732_v49  ;;  %v670_v57 = vadd.f32 %v1329_v55, %v586_v37  ;;  %v589_v58 = vadd.f32 %v1046_v51, %v588_v62 }
 0x12d   :  { %986 = vst [vmem:[%s1414_s4 + $0x28] sm:$0xff] %v963_v56   ;;  %v686_v59 = vmax.f32 %v670_v57, 0.0  ;;  %v671_v63 = vadd.f32 %v1329_v55, %v589_v58  ;;  %v1047_v1 = vpop.f32.mrb[28].mxu0 }
 0x12e   :  { %v1048_v2 = vpop.f32.mrb[29].mxu0 }
 0x12f   :  { %v687_v54 = vmax.f32 %v671_v63, 0.0  ;;  %v1049_v3 = vadd.f32 %v1048_v2, %v1047_v1  ;;  %v1050_v4 = vpop.f32.mrb[30].mxu0  ;;  %v734_v6 = vadd.f32 %v929_v61, %v686_v59 }
 0x130   :  { %v1051_v5 = vpop.f32.mrb[31].mxu0 }
 0x131   :  { %v735_v7 = vadd.f32 %v930_v0, %v687_v54  ;;  %v594_v8 = vadd.f32 %v1356_v52, %v1049_v3  ;;  %v1052_v62 = vadd.f32 %v1051_v5, %v1050_v4 }
 0x133   :  { %v968_v10 = vpack.c.bf16 %v735_v7, %v734_v6  ;;  %v672_v11 = vadd.f32 %v1329_v55, %v594_v8  ;;  %v597_v12 = vadd.f32 %v1360_v60, %v1052_v62 }
 0x135   :  { %987 = vst [vmem:[%s1414_s4 + $0x30] sm:$0xff] %v968_v10   ;;  %v688_v13 = vmax.f32 %v672_v11, 0.0  ;;  %v673_v16 = vadd.f32 %v1329_v55, %v597_v12 }
 0x137   :  { %v689_v52 = vmax.f32 %v673_v16, 0.0  ;;  %v736_v17 = vadd.f32 %v933_v14, %v688_v13 }
 0x139   :  { %v737_v18 = vadd.f32 %v934_v15, %v689_v52 }
 0x13b   :  { %v973_v19 = vpack.c.bf16 %v737_v18, %v736_v17 }
 0x13d   :  { %988 = vst [vmem:[%s1414_s4 + $0x38] sm:$0xff] %v973_v19  }

// kernel: unet_forward.40
= control target key start
LH: loop header
LB: loop body
LE: loop exit
PB: predicated region body
PF: predicated region fallthrough
CT: control target
= control target key end

     0   :  { %v2501_v0 = vmov 0   ;;  %s3060_s1 = inlined_call_operand.vmem [shape: bf16[256,128], index: 1, kind: input, shape index: {}]   ;;  %s3061_s0 = inlined_call_operand.vmem [shape: bf16[512,256], index: 0, kind: input, shape index: {}]   ;;  %s3062_s2 = inlined_call_operand.vmem [shape: f32[1,128], index: 2, kind: input, shape index: {}]   ;;  %s3063_s3 = inlined_call_operand.vmem [shape: bf16[512,128], index: 3, kind: input, shape index: {}]   ;;  %s3064_s4 = inlined_call_operand.vmem [shape: bf16[512,128], index: 4, kind: output, shape index: {}]  }
   0x1   :  { %662 = vmatprep.subr.bf16.mxu0 %v2501_v0  ;;  %2356 = vmatprep.subr.bf16.mxu1 %v2501_v0  ;;  %v2389_v1 = vld [vmem:[%s3060_s1] sm:$0xff]   ;;  %v2390_v2 = vld [vmem:[%s3060_s1 + $0x8] sm:$0xff]   ;;  %v2391_v3 = vld [vmem:[%s3060_s1 + $0x10] sm:$0xff]  }
   0x2   :  { %663 = vmatpush1.bf16.msra.mxu0 %v2389_v1  ;;  %2372 = vmatpush1.bf16.msra.mxu1 %v2389_v1  ;;  %v2392_v4 = vld [vmem:[%s3060_s1 + $0x18] sm:$0xff]   ;;  %v2393_v5 = vld [vmem:[%s3060_s1 + $0x20] sm:$0xff]   ;;  %v2394_v7 = vld [vmem:[%s3060_s1 + $0x28] sm:$0xff]  }
   0x3   :  { %664 = vmatprep.subr.bf16.mxu0 %v2501_v0  ;;  %2357 = vmatprep.subr.bf16.mxu1 %v2501_v0  ;;  %v2407_v6 = vld [vmem:[%s3061_s0 + $0x4] ss:$8 sps:$4 sm:$0xff]   ;;  %v2395_v9 = vld [vmem:[%s3060_s1 + $0x30] sm:$0xff]   ;;  %v2396_v10 = vld [vmem:[%s3060_s1 + $0x38] sm:$0xff]  }
   0x4   :  { %v2410_v8 = vld [vmem:[%s3061_s0 + $0x104] ss:$8 sps:$4 sm:$0xff]   ;;  %694 = vmatprep.mubr.bf16.mxu0 %v2407_v6  ;;  %v2399_v13 = vld [vmem:[%s3060_s1 + $0x50] sm:$0xff]   ;;  %v2400_v14 = vld [vmem:[%s3060_s1 + $0x58] sm:$0xff]  }
   0x5   :  { %822 = vmatprep.mubr.bf16.mxu1 %v2410_v8  ;;  %v2397_v11 = vld [vmem:[%s3060_s1 + $0x40] sm:$0xff]   ;;  %v2398_v12 = vld [vmem:[%s3060_s1 + $0x48] sm:$0xff]   ;;  %v2403_v17 = vld [vmem:[%s3060_s1 + $0x70] sm:$0xff]  }
   0x6   :  { %665 = vmatpush1.bf16.msra.mxu0 %v2390_v2  ;;  %2373 = vmatpush1.bf16.msra.mxu1 %v2390_v2  ;;  %v2401_v15 = vld [vmem:[%s3060_s1 + $0x60] sm:$0xff]   ;;  %v2402_v16 = vld [vmem:[%s3060_s1 + $0x68] sm:$0xff]   ;;  %v2404_v18 = vld [vmem:[%s3060_s1 + $0x78] sm:$0xff]  }
   0x7   :  { %666 = vmatprep.subr.bf16.mxu0 %v2501_v0  ;;  %2358 = vmatprep.subr.bf16.mxu1 %v2501_v0  ;;  %v2405_v19 = vld [vmem:[%s3061_s0] ss:$8 sps:$4 sm:$0xff]   ;;  %v2411_v21 = vld [vmem:[%s3061_s0 + $0x14] ss:$8 sps:$4 sm:$0xff]   ;;  %v2415_v23 = vld [vmem:[%s3061_s0 + $0x10] ss:$8 sps:$4 sm:$0xff]  }
   0x8   :  { %v2408_v20 = vld [vmem:[%s3061_s0 + $0x100] ss:$8 sps:$4 sm:$0xff]   ;;  %v2413_v22 = vld [vmem:[%s3061_s0 + $0x114] ss:$8 sps:$4 sm:$0xff]   ;;  %v2416_v24 = vld [vmem:[%s3061_s0 + $0x110] ss:$8 sps:$4 sm:$0xff]  }
   0x9   :  { %v2417_v25 = vld [vmem:[%s3061_s0 + $0x24] ss:$8 sps:$4 sm:$0xff]   ;;  %v2421_v27 = vld [vmem:[%s3061_s0 + $0x20] ss:$8 sps:$4 sm:$0xff]   ;;  %v2423_v29 = vld [vmem:[%s3061_s0 + $0x34] ss:$8 sps:$4 sm:$0xff]  }
   0xa   :  { %667 = vmatpush1.bf16.msra.mxu0 %v2391_v3  ;;  %2374 = vmatpush1.bf16.msra.mxu1 %v2391_v3  ;;  %v2419_v26 = vld [vmem:[%s3061_s0 + $0x124] ss:$8 sps:$4 sm:$0xff]   ;;  %v2422_v28 = vld [vmem:[%s3061_s0 + $0x120] ss:$8 sps:$4 sm:$0xff]   ;;  %v2425_v30 = vld [vmem:[%s3061_s0 + $0x134] ss:$8 sps:$4 sm:$0xff]  }
   0xb   :  { %668 = vmatprep.subr.bf16.mxu0 %v2501_v0  ;;  %2359 = vmatprep.subr.bf16.mxu1 %v2501_v0  ;;  %v2427_v31 = vld [vmem:[%s3061_s0 + $0x30] ss:$8 sps:$4 sm:$0xff]   ;;  %v2429_v33 = vld [vmem:[%s3061_s0 + $0x44] ss:$8 sps:$4 sm:$0xff]   ;;  %v2433_v35 = vld [vmem:[%s3061_s0 + $0x40] ss:$8 sps:$4 sm:$0xff]  }
   0xc   :  { %v2428_v32 = vld [vmem:[%s3061_s0 + $0x130] ss:$8 sps:$4 sm:$0xff]   ;;  %v2431_v34 = vld [vmem:[%s3061_s0 + $0x144] ss:$8 sps:$4 sm:$0xff]   ;;  %v2434_v36 = vld [vmem:[%s3061_s0 + $0x140] ss:$8 sps:$4 sm:$0xff]  }
   0xd   :  { %v2435_v37 = vld [vmem:[%s3061_s0 + $0x54] ss:$8 sps:$4 sm:$0xff]   ;;  %v2439_v39 = vld [vmem:[%s3061_s0 + $0x50] ss:$8 sps:$4 sm:$0xff]   ;;  %v2441_v41 = vld [vmem:[%s3061_s0 + $0x64] ss:$8 sps:$4 sm:$0xff]  }
   0xe   :  { %669 = vmatpush1.bf16.msra.mxu0 %v2392_v4  ;;  %2375 = vmatpush1.bf16.msra.mxu1 %v2392_v4  ;;  %v2437_v38 = vld [vmem:[%s3061_s0 + $0x154] ss:$8 sps:$4 sm:$0xff]   ;;  %v2440_v40 = vld [vmem:[%s3061_s0 + $0x150] ss:$8 sps:$4 sm:$0xff]   ;;  %v2443_v42 = vld [vmem:[%s3061_s0 + $0x164] ss:$8 sps:$4 sm:$0xff]  }
   0xf   :  { %670 = vmatprep.subr.bf16.mxu0 %v2501_v0  ;;  %2360 = vmatprep.subr.bf16.mxu1 %v2501_v0  ;;  %v2445_v43 = vld [vmem:[%s3061_s0 + $0x60] ss:$8 sps:$4 sm:$0xff]   ;;  %v2447_v45 = vld [vmem:[%s3061_s0 + $0x74] ss:$8 sps:$4 sm:$0xff]   ;;  %v2451_v47 = vld [vmem:[%s3061_s0 + $0x70] ss:$8 sps:$4 sm:$0xff]  }
  0x10   :  { %v2446_v44 = vld [vmem:[%s3061_s0 + $0x160] ss:$8 sps:$4 sm:$0xff]   ;;  %v2449_v46 = vld [vmem:[%s3061_s0 + $0x174] ss:$8 sps:$4 sm:$0xff]   ;;  %v2452_v48 = vld [vmem:[%s3061_s0 + $0x170] ss:$8 sps:$4 sm:$0xff]  }
  0x11   :  { %v2453_v49 = vld [vmem:[%s3061_s0 + $0x84] ss:$8 sps:$4 sm:$0xff]   ;;  %v2457_v51 = vld [vmem:[%s3061_s0 + $0x80] ss:$8 sps:$4 sm:$0xff]   ;;  %v2459_v53 = vld [vmem:[%s3061_s0 + $0x94] ss:$8 sps:$4 sm:$0xff]  }
  0x12   :  { %671 = vmatpush1.bf16.msra.mxu0 %v2393_v5  ;;  %2376 = vmatpush1.bf16.msra.mxu1 %v2393_v5  ;;  %v2455_v50 = vld [vmem:[%s3061_s0 + $0x184] ss:$8 sps:$4 sm:$0xff]   ;;  %v2458_v52 = vld [vmem:[%s3061_s0 + $0x180] ss:$8 sps:$4 sm:$0xff]   ;;  %v2461_v54 = vld [vmem:[%s3061_s0 + $0x194] ss:$8 sps:$4 sm:$0xff]  }
  0x13   :  { %672 = vmatprep.subr.bf16.mxu0 %v2501_v0  ;;  %2361 = vmatprep.subr.bf16.mxu1 %v2501_v0  ;;  %v2463_v55 = vld [vmem:[%s3061_s0 + $0x90] ss:$8 sps:$4 sm:$0xff]   ;;  %v2465_v57 = vld [vmem:[%s3061_s0 + $0xa4] ss:$8 sps:$4 sm:$0xff]   ;;  %v2469_v59 = vld [vmem:[%s3061_s0 + $0xa0] ss:$8 sps:$4 sm:$0xff]  }
  0x14   :  { %v2464_v56 = vld [vmem:[%s3061_s0 + $0x190] ss:$8 sps:$4 sm:$0xff]   ;;  %v2467_v58 = vld [vmem:[%s3061_s0 + $0x1a4] ss:$8 sps:$4 sm:$0xff]   ;;  %v2470_v60 = vld [vmem:[%s3061_s0 + $0x1a0] ss:$8 sps:$4 sm:$0xff]  }
  0x15   :  { %v2471_v61 = vld [vmem:[%s3061_s0 + $0xb4] ss:$8 sps:$4 sm:$0xff]   ;;  %v2475_v63 = vld [vmem:[%s3061_s0 + $0xb0] ss:$8 sps:$4 sm:$0xff]   ;;  %v2477_v1 = vld [vmem:[%s3061_s0 + $0xc4] ss:$8 sps:$4 sm:$0xff]  }
  0x16   :  { %673 = vmatpush1.bf16.msra.mxu0 %v2394_v7  ;;  %2377 = vmatpush1.bf16.msra.mxu1 %v2394_v7  ;;  %v2473_v62 = vld [vmem:[%s3061_s0 + $0x1b4] ss:$8 sps:$4 sm:$0xff]   ;;  %v2479_v2 = vld [vmem:[%s3061_s0 + $0x1c4] ss:$8 sps:$4 sm:$0xff]   ;;  %v2481_v3 = vld [vmem:[%s3061_s0 + $0xc0] ss:$8 sps:$4 sm:$0xff]  }
  0x17   :  { %674 = vmatprep.subr.bf16.mxu0 %v2501_v0  ;;  %2362 = vmatprep.subr.bf16.mxu1 %v2501_v0  ;;  %v2482_v4 = vld [vmem:[%s3061_s0 + $0x1c0] ss:$8 sps:$4 sm:$0xff]   ;;  %v2483_v5 = vld [vmem:[%s3061_s0 + $0xd4] ss:$8 sps:$4 sm:$0xff]   ;;  %v2487_v7 = vld [vmem:[%s3061_s0 + $0xd0] ss:$8 sps:$4 sm:$0xff]  }
  0x18   :  { %v2485_v6 = vld [vmem:[%s3061_s0 + $0x1d4] ss:$8 sps:$4 sm:$0xff]   ;;  %v2488_v8 = vld [vmem:[%s3061_s0 + $0x1d0] ss:$8 sps:$4 sm:$0xff]  }
  0x1a   :  { %675 = vmatpush1.bf16.msra.mxu0 %v2395_v9  ;;  %2378 = vmatpush1.bf16.msra.mxu1 %v2395_v9  ;;  %v2489_v9 = vld [vmem:[%s3061_s0 + $0xe4] ss:$8 sps:$4 sm:$0xff]  }
  0x1b   :  { %676 = vmatprep.subr.bf16.mxu0 %v2501_v0  ;;  %2363 = vmatprep.subr.bf16.mxu1 %v2501_v0 }
  0x1e   :  { %677 = vmatpush1.bf16.msra.mxu0 %v2396_v10  ;;  %2379 = vmatpush1.bf16.msra.mxu1 %v2396_v10  ;;  %v2491_v10 = vld [vmem:[%s3061_s0 + $0x1e4] ss:$8 sps:$4 sm:$0xff]  }
  0x1f   :  { %678 = vmatprep.subr.bf16.mxu0 %v2501_v0  ;;  %2364 = vmatprep.subr.bf16.mxu1 %v2501_v0 }
  0x22   :  { %679 = vmatpush1.bf16.msra.mxu0 %v2397_v11  ;;  %2380 = vmatpush1.bf16.msra.mxu1 %v2397_v11  ;;  %v2493_v11 = vld [vmem:[%s3061_s0 + $0xe0] ss:$8 sps:$4 sm:$0xff]  }
  0x23   :  { %680 = vmatprep.subr.bf16.mxu0 %v2501_v0  ;;  %2365 = vmatprep.subr.bf16.mxu1 %v2501_v0 }
  0x26   :  { %681 = vmatpush1.bf16.msra.mxu0 %v2398_v12  ;;  %2381 = vmatpush1.bf16.msra.mxu1 %v2398_v12  ;;  %v2494_v12 = vld [vmem:[%s3061_s0 + $0x1e0] ss:$8 sps:$4 sm:$0xff]  }
  0x27   :  { %682 = vmatprep.subr.bf16.mxu0 %v2501_v0  ;;  %2366 = vmatprep.subr.bf16.mxu1 %v2501_v0 }
  0x2a   :  { %683 = vmatpush1.bf16.msra.mxu0 %v2399_v13  ;;  %2382 = vmatpush1.bf16.msra.mxu1 %v2399_v13  ;;  %v2495_v13 = vld [vmem:[%s3061_s0 + $0xf4] ss:$8 sps:$4 sm:$0xff]  }
  0x2b   :  { %684 = vmatprep.subr.bf16.mxu0 %v2501_v0  ;;  %2367 = vmatprep.subr.bf16.mxu1 %v2501_v0 }
  0x2e   :  { %685 = vmatpush1.bf16.msra.mxu0 %v2400_v14  ;;  %2383 = vmatpush1.bf16.msra.mxu1 %v2400_v14  ;;  %v2497_v14 = vld [vmem:[%s3061_s0 + $0x1f4] ss:$8 sps:$4 sm:$0xff]  }
  0x2f   :  { %686 = vmatprep.subr.bf16.mxu0 %v2501_v0  ;;  %2368 = vmatprep.subr.bf16.mxu1 %v2501_v0 }
  0x32   :  { %687 = vmatpush1.bf16.msra.mxu0 %v2401_v15  ;;  %2384 = vmatpush1.bf16.msra.mxu1 %v2401_v15  ;;  %v2499_v15 = vld [vmem:[%s3061_s0 + $0xf0] ss:$8 sps:$4 sm:$0xff]  }
  0x33   :  { %688 = vmatprep.subr.bf16.mxu0 %v2501_v0  ;;  %2369 = vmatprep.subr.bf16.mxu1 %v2501_v0 }
  0x36   :  { %689 = vmatpush1.bf16.msra.mxu0 %v2402_v16  ;;  %2385 = vmatpush1.bf16.msra.mxu1 %v2402_v16  ;;  %v2500_v16 = vld [vmem:[%s3061_s0 + $0x1f0] ss:$8 sps:$4 sm:$0xff]  }
  0x37   :  { %690 = vmatprep.subr.bf16.mxu0 %v2501_v0  ;;  %2370 = vmatprep.subr.bf16.mxu1 %v2501_v0 }
  0x3a   :  { %691 = vmatpush1.bf16.msra.mxu0 %v2403_v17  ;;  %2386 = vmatpush1.bf16.msra.mxu1 %v2403_v17  ;;  %v2802_v17 = vld [vmem:[%s3062_s2] ss:$0 sm:$0xff] }
  0x3b   :  { %692 = vmatprep.subr.bf16.mxu0 %v2501_v0  ;;  %2371 = vmatprep.subr.bf16.mxu1 %v2501_v0  ;;  %v2476_v0 = vld [vmem:[%s3061_s0 + $0x1b0] ss:$8 sps:$4 sm:$0xff]  }
  0x3e   :  { %693 = vmatpush1.bf16.msra.mxu0 %v2404_v18  ;;  %2387 = vmatpush1.bf16.msra.mxu1 %v2404_v18  ;;  %v2007_v18 = vld [vmem:[%s3063_s3] sm:$0xff]  }
  0x41   :  { %695 = vmatmul.mubr.bf16.vlgmr.msra.gmra.mrb[0].mxu0 %v2405_v19  ;;  %823 = vmatmul.mubr.bf16.vlgmr.msra.gmra.mrb[0].mxu1 %v2408_v20  ;;  %v2309_v19 = vld [vmem:[%s3063_s3 + $0x80] sm:$0xff]  }
  0x42   :  { %702 = vmatprep.mubr.bf16.mxu0 %v2411_v21  ;;  %830 = vmatprep.mubr.bf16.mxu1 %v2413_v22 }
  0x49   :  { %703 = vmatmul.mubr.bf16.gmra.mrb[4].mxu0 %v2415_v23  ;;  %831 = vmatmul.mubr.bf16.gmra.mrb[4].mxu1 %v2416_v24 }
  0x4a   :  { %710 = vmatprep.mubr.bf16.mxu0 %v2417_v25  ;;  %838 = vmatprep.mubr.bf16.mxu1 %v2419_v26  ;;  %v2008_v26 = vunpack.c.l.bf16 %v2007_v18 }
  0x51   :  { %711 = vmatmul.mubr.bf16.gmra.mrb[8].mxu0 %v2421_v27  ;;  %839 = vmatmul.mubr.bf16.gmra.mrb[8].mxu1 %v2422_v28  ;;  %v2072_v27 = vunpack.c.l.bf16 %v2309_v19 }
  0x52   :  { %718 = vmatprep.mubr.bf16.mxu0 %v2423_v29  ;;  %846 = vmatprep.mubr.bf16.mxu1 %v2425_v30  ;;  %v2009_v29 = vunpack.c.h.bf16 %v2007_v18 }
  0x59   :  { %719 = vmatmul.mubr.bf16.gmra.mrb[12].mxu0 %v2427_v31  ;;  %847 = vmatmul.mubr.bf16.gmra.mrb[12].mxu1 %v2428_v32  ;;  %v2073_v31 = vunpack.c.h.bf16 %v2309_v19 }
  0x5a   :  { %726 = vmatprep.mubr.bf16.mxu0 %v2429_v33  ;;  %854 = vmatprep.mubr.bf16.mxu1 %v2431_v34 }
  0x61   :  { %727 = vmatmul.mubr.bf16.gmra.mrb[16].mxu0 %v2433_v35  ;;  %855 = vmatmul.mubr.bf16.gmra.mrb[16].mxu1 %v2434_v36 }
  0x62   :  { %734 = vmatprep.mubr.bf16.mxu0 %v2435_v37  ;;  %862 = vmatprep.mubr.bf16.mxu1 %v2437_v38 }
  0x69   :  { %735 = vmatmul.mubr.bf16.gmra.mrb[20].mxu0 %v2439_v39  ;;  %863 = vmatmul.mubr.bf16.gmra.mrb[20].mxu1 %v2440_v40 }
  0x6a   :  { %742 = vmatprep.mubr.bf16.mxu0 %v2441_v41  ;;  %870 = vmatprep.mubr.bf16.mxu1 %v2443_v42 }
  0x71   :  { %743 = vmatmul.mubr.bf16.gmra.mrb[24].mxu0 %v2445_v43  ;;  %871 = vmatmul.mubr.bf16.gmra.mrb[24].mxu1 %v2446_v44  ;;  %v2294_v44 = vld [vmem:[%s3063_s3 + $0x8] sm:$0xff]  }
  0x72   :  { %750 = vmatprep.mubr.bf16.mxu0 %v2447_v45  ;;  %878 = vmatprep.mubr.bf16.mxu1 %v2449_v46  ;;  %v2310_v45 = vld [vmem:[%s3063_s3 + $0x88] sm:$0xff]  }
  0x79   :  { %751 = vmatmul.mubr.bf16.gmra.mrb[28].mxu0 %v2451_v47  ;;  %879 = vmatmul.mubr.bf16.gmra.mrb[28].mxu1 %v2452_v48 }
  0x7a   :  { %758 = vmatprep.mubr.bf16.mxu0 %v2453_v49  ;;  %886 = vmatprep.mubr.bf16.mxu1 %v2455_v50 }
  0x81   :  { %759 = vmatmul.mubr.bf16.gmra.mrb[32].mxu0 %v2457_v51  ;;  %887 = vmatmul.mubr.bf16.gmra.mrb[32].mxu1 %v2458_v52 }
  0x82   :  { %766 = vmatprep.mubr.bf16.mxu0 %v2459_v53  ;;  %894 = vmatprep.mubr.bf16.mxu1 %v2461_v54  ;;  %v2012_v54 = vunpack.c.l.bf16 %v2294_v44 }
  0x89   :  { %767 = vmatmul.mubr.bf16.gmra.mrb[36].mxu0 %v2463_v55  ;;  %895 = vmatmul.mubr.bf16.gmra.mrb[36].mxu1 %v2464_v56  ;;  %v2076_v55 = vunpack.c.l.bf16 %v2310_v45 }
  0x8a   :  { %774 = vmatprep.mubr.bf16.mxu0 %v2465_v57  ;;  %902 = vmatprep.mubr.bf16.mxu1 %v2467_v58  ;;  %v2013_v57 = vunpack.c.h.bf16 %v2294_v44 }
  0x91   :  { %775 = vmatmul.mubr.bf16.gmra.mrb[40].mxu0 %v2469_v59  ;;  %903 = vmatmul.mubr.bf16.gmra.mrb[40].mxu1 %v2470_v60  ;;  %v2077_v59 = vunpack.c.h.bf16 %v2310_v45 }
  0x92   :  { %782 = vmatprep.mubr.bf16.mxu0 %v2471_v61  ;;  %910 = vmatprep.mubr.bf16.mxu1 %v2473_v62 }
  0x99   :  { %783 = vmatmul.mubr.bf16.gmra.mrb[44].mxu0 %v2475_v63  ;;  %911 = vmatmul.mubr.bf16.gmra.mrb[44].mxu1 %v2476_v0 }
  0x9a   :  { %790 = vmatprep.mubr.bf16.mxu0 %v2477_v1  ;;  %918 = vmatprep.mubr.bf16.mxu1 %v2479_v2 }
  0xa1   :  { %791 = vmatmul.mubr.bf16.gmra.mrb[48].mxu0 %v2481_v3  ;;  %919 = vmatmul.mubr.bf16.gmra.mrb[48].mxu1 %v2482_v4 }
  0xa2   :  { %798 = vmatprep.mubr.bf16.mxu0 %v2483_v5  ;;  %926 = vmatprep.mubr.bf16.mxu1 %v2485_v6 }
  0xa9   :  { %799 = vmatmul.mubr.bf16.gmra.mrb[52].mxu0 %v2487_v7  ;;  %927 = vmatmul.mubr.bf16.gmra.mrb[52].mxu1 %v2488_v8  ;;  %v2295_v8 = vld [vmem:[%s3063_s3 + $0x10] sm:$0xff]  }
  0xaa   :  { %806 = vmatprep.mubr.bf16.mxu0 %v2489_v9  ;;  %934 = vmatprep.mubr.bf16.mxu1 %v2491_v10  ;;  %v2311_v9 = vld [vmem:[%s3063_s3 + $0x90] sm:$0xff]   ;;  %v2016_v19 = vunpack.c.l.bf16 %v2295_v8 }
  0xb1   :  { %807 = vmatmul.mubr.bf16.gmra.mrb[56].mxu0 %v2493_v11  ;;  %935 = vmatmul.mubr.bf16.gmra.mrb[56].mxu1 %v2494_v12 }
  0xb2   :  { %814 = vmatprep.mubr.bf16.mxu0 %v2495_v13  ;;  %942 = vmatprep.mubr.bf16.mxu1 %v2497_v14 }
  0xb9   :  { %815 = vmatmul.mubr.bf16.gmra.mrb[60].mxu0 %v2499_v15  ;;  %943 = vmatmul.mubr.bf16.gmra.mrb[60].mxu1 %v2500_v16 }
 0x114   :  { %v696_v20 = vpop.f32.mrb[0].mxu0  ;;  %v824_v21 = vpop.f32.mrb[0].mxu1 }
 0x115   :  { %v1153_v22 = vadd.f32 %v2802_v17, %v696_v20  ;;  %v1185_v23 = vadd.f32 %v2802_v17, %v824_v21  ;;  %v698_v24 = vpop.f32.mrb[1].mxu0  ;;  %v826_v25 = vpop.f32.mrb[1].mxu1  ;;  %v2080_v20 = vunpack.c.l.bf16 %v2311_v9 }
 0x116   :  { %v699_v28 = vpop.f32.mrb[2].mxu0  ;;  %v827_v30 = vpop.f32.mrb[2].mxu1  ;;  %v2081_v24 = vunpack.c.h.bf16 %v2311_v9 }
 0x117   :  { %v1217_v32 = vmax.f32 %v1153_v22, 0.0  ;;  %v1249_v33 = vmax.f32 %v1185_v23, 0.0  ;;  %v1154_v34 = vadd.f32 %v2802_v17, %v699_v28  ;;  %v1186_v35 = vadd.f32 %v2802_v17, %v827_v30  ;;  %v701_v36 = vpop.f32.mrb[3].mxu0  ;;  %v829_v37 = vpop.f32.mrb[3].mxu1 }
 0x118   :  { %v2017_v22 = vunpack.c.h.bf16 %v2295_v8  ;;  %v2296_v37 = vld [vmem:[%s3063_s3 + $0x18] sm:$0xff]  }
 0x119   :  { %v1218_v38 = vmax.f32 %v1154_v34, 0.0  ;;  %v1250_v39 = vmax.f32 %v1186_v35, 0.0  ;;  %v1409_v40 = vadd.f32 %v2008_v26, %v1217_v32  ;;  %v1441_v41 = vadd.f32 %v2072_v27, %v1249_v33 }
 0x11b   :  { %v1410_v42 = vadd.f32 %v2009_v29, %v1218_v38  ;;  %v1442_v43 = vadd.f32 %v2073_v31, %v1250_v39  ;;  %v2312_v38 = vld [vmem:[%s3063_s3 + $0x98] sm:$0xff]  }
 0x11c   :  { %v704_v46 = vpop.f32.mrb[4].mxu0  ;;  %v832_v47 = vpop.f32.mrb[4].mxu1 }
 0x11d   :  { %v2137_v48 = vpack.c.bf16 %v1410_v42, %v1409_v40  ;;  %v2217_v49 = vpack.c.bf16 %v1442_v43, %v1441_v41  ;;  %v1155_v50 = vadd.f32 %v2802_v17, %v704_v46  ;;  %v1187_v51 = vadd.f32 %v2802_v17, %v832_v47  ;;  %v706_v52 = vpop.f32.mrb[5].mxu0  ;;  %v834_v53 = vpop.f32.mrb[5].mxu1 }
 0x11e   :  { %v707_v56 = vpop.f32.mrb[6].mxu0  ;;  %v835_v58 = vpop.f32.mrb[6].mxu1  ;;  %v2020_v47 = vunpack.c.l.bf16 %v2296_v37  ;;  %v2085_v52 = vunpack.c.h.bf16 %v2312_v38 }
 0x11f   :  { %2138 = vst [vmem:[%s3064_s4] sm:$0xff] %v2137_v48   ;;  %2340 = vst [vmem:[%s3064_s4 + $0x80] sm:$0xff] %v2217_v49   ;;  %v1219_v60 = vmax.f32 %v1155_v50, 0.0  ;;  %v1251_v61 = vmax.f32 %v1187_v51, 0.0  ;;  %v1156_v62 = vadd.f32 %v2802_v17, %v707_v56  ;;  %v1188_v63 = vadd.f32 %v2802_v17, %v835_v58  ;;  %v709_v0 = vpop.f32.mrb[7].mxu0  ;;  %v837_v1 = vpop.f32.mrb[7].mxu1 }
 0x120   :  { %v2084_v48 = vunpack.c.l.bf16 %v2312_v38  ;;  %v2021_v50 = vunpack.c.h.bf16 %v2296_v37  ;;  %v2297_v1 = vld [vmem:[%s3063_s3 + $0x20] sm:$0xff]  }
 0x121   :  { %v1220_v2 = vmax.f32 %v1156_v62, 0.0  ;;  %v1252_v3 = vmax.f32 %v1188_v63, 0.0  ;;  %v1411_v4 = vadd.f32 %v2012_v54, %v1219_v60  ;;  %v1443_v5 = vadd.f32 %v2076_v55, %v1251_v61 }
 0x123   :  { %v1412_v6 = vadd.f32 %v2013_v57, %v1220_v2  ;;  %v1444_v7 = vadd.f32 %v2077_v59, %v1252_v3  ;;  %v2313_v2 = vld [vmem:[%s3063_s3 + $0xa0] sm:$0xff]  }
 0x124   :  { %v712_v10 = vpop.f32.mrb[8].mxu0  ;;  %v840_v11 = vpop.f32.mrb[8].mxu1 }
 0x125   :  { %v2142_v12 = vpack.c.bf16 %v1412_v6, %v1411_v4  ;;  %v2222_v13 = vpack.c.bf16 %v1444_v7, %v1443_v5  ;;  %v1157_v14 = vadd.f32 %v2802_v17, %v712_v10  ;;  %v1189_v15 = vadd.f32 %v2802_v17, %v840_v11  ;;  %v714_v16 = vpop.f32.mrb[9].mxu0  ;;  %v842_v18 = vpop.f32.mrb[9].mxu1 }
 0x126   :  { %v715_v21 = vpop.f32.mrb[10].mxu0  ;;  %v843_v23 = vpop.f32.mrb[10].mxu1  ;;  %v2024_v11 = vunpack.c.l.bf16 %v2297_v1  ;;  %v2089_v16 = vunpack.c.h.bf16 %v2313_v2 }
 0x127   :  { %2325 = vst [vmem:[%s3064_s4 + $0x8] sm:$0xff] %v2142_v12   ;;  %2341 = vst [vmem:[%s3064_s4 + $0x88] sm:$0xff] %v2222_v13   ;;  %v1221_v25 = vmax.f32 %v1157_v14, 0.0  ;;  %v1253_v26 = vmax.f32 %v1189_v15, 0.0  ;;  %v1158_v27 = vadd.f32 %v2802_v17, %v715_v21  ;;  %v1190_v28 = vadd.f32 %v2802_v17, %v843_v23  ;;  %v717_v29 = vpop.f32.mrb[11].mxu0  ;;  %v845_v30 = vpop.f32.mrb[11].mxu1 }
 0x128   :  { %v2088_v12 = vunpack.c.l.bf16 %v2313_v2  ;;  %v2025_v14 = vunpack.c.h.bf16 %v2297_v1  ;;  %v2298_v30 = vld [vmem:[%s3063_s3 + $0x28] sm:$0xff]  }
 0x129   :  { %v1222_v31 = vmax.f32 %v1158_v27, 0.0  ;;  %v1254_v32 = vmax.f32 %v1190_v28, 0.0  ;;  %v1413_v33 = vadd.f32 %v2016_v19, %v1221_v25  ;;  %v1445_v34 = vadd.f32 %v2080_v20, %v1253_v26 }
 0x12b   :  { %v1414_v35 = vadd.f32 %v2017_v22, %v1222_v31  ;;  %v1446_v36 = vadd.f32 %v2081_v24, %v1254_v32  ;;  %v2314_v31 = vld [vmem:[%s3063_s3 + $0xa8] sm:$0xff]  }
 0x12c   :  { %v720_v39 = vpop.f32.mrb[12].mxu0  ;;  %v848_v40 = vpop.f32.mrb[12].mxu1 }
 0x12d   :  { %v2147_v41 = vpack.c.bf16 %v1414_v35, %v1413_v33  ;;  %v2227_v42 = vpack.c.bf16 %v1446_v36, %v1445_v34  ;;  %v1159_v43 = vadd.f32 %v2802_v17, %v720_v39  ;;  %v1191_v44 = vadd.f32 %v2802_v17, %v848_v40  ;;  %v722_v45 = vpop.f32.mrb[13].mxu0  ;;  %v850_v46 = vpop.f32.mrb[13].mxu1 }
 0x12e   :  { %v723_v49 = vpop.f32.mrb[14].mxu0  ;;  %v851_v51 = vpop.f32.mrb[14].mxu1  ;;  %v2028_v40 = vunpack.c.l.bf16 %v2298_v30  ;;  %v2093_v45 = vunpack.c.h.bf16 %v2314_v31 }
 0x12f   :  { %2326 = vst [vmem:[%s3064_s4 + $0x10] sm:$0xff] %v2147_v41   ;;  %2342 = vst [vmem:[%s3064_s4 + $0x90] sm:$0xff] %v2227_v42   ;;  %v1223_v53 = vmax.f32 %v1159_v43, 0.0  ;;  %v1255_v54 = vmax.f32 %v1191_v44, 0.0  ;;  %v1160_v55 = vadd.f32 %v2802_v17, %v723_v49  ;;  %v1192_v56 = vadd.f32 %v2802_v17, %v851_v51  ;;  %v725_v57 = vpop.f32.mrb[15].mxu0  ;;  %v853_v58 = vpop.f32.mrb[15].mxu1 }
 0x130   :  { %v2092_v41 = vunpack.c.l.bf16 %v2314_v31  ;;  %v2029_v43 = vunpack.c.h.bf16 %v2298_v30  ;;  %v2299_v58 = vld [vmem:[%s3063_s3 + $0x30] sm:$0xff]  }
 0x131   :  { %v1224_v59 = vmax.f32 %v1160_v55, 0.0  ;;  %v1256_v60 = vmax.f32 %v1192_v56, 0.0  ;;  %v1415_v61 = vadd.f32 %v2020_v47, %v1223_v53  ;;  %v1447_v62 = vadd.f32 %v2084_v48, %v1255_v54 }
 0x133   :  { %v1416_v63 = vadd.f32 %v2021_v50, %v1224_v59  ;;  %v1448_v0 = vadd.f32 %v2085_v52, %v1256_v60  ;;  %v2315_v59 = vld [vmem:[%s3063_s3 + $0xb0] sm:$0xff]  }
 0x134   :  { %v728_v3 = vpop.f32.mrb[16].mxu0  ;;  %v856_v4 = vpop.f32.mrb[16].mxu1 }
 0x135   :  { %v2152_v5 = vpack.c.bf16 %v1416_v63, %v1415_v61  ;;  %v2232_v6 = vpack.c.bf16 %v1448_v0, %v1447_v62  ;;  %v1161_v7 = vadd.f32 %v2802_v17, %v728_v3  ;;  %v1193_v8 = vadd.f32 %v2802_v17, %v856_v4  ;;  %v730_v9 = vpop.f32.mrb[17].mxu0  ;;  %v858_v10 = vpop.f32.mrb[17].mxu1 }
 0x136   :  { %v731_v13 = vpop.f32.mrb[18].mxu0  ;;  %v859_v15 = vpop.f32.mrb[18].mxu1  ;;  %v2032_v4 = vunpack.c.l.bf16 %v2299_v58  ;;  %v2097_v9 = vunpack.c.h.bf16 %v2315_v59 }
 0x137   :  { %2327 = vst [vmem:[%s3064_s4 + $0x18] sm:$0xff] %v2152_v5   ;;  %2343 = vst [vmem:[%s3064_s4 + $0x98] sm:$0xff] %v2232_v6   ;;  %v1225_v18 = vmax.f32 %v1161_v7, 0.0  ;;  %v1257_v19 = vmax.f32 %v1193_v8, 0.0  ;;  %v1162_v20 = vadd.f32 %v2802_v17, %v731_v13  ;;  %v1194_v21 = vadd.f32 %v2802_v17, %v859_v15  ;;  %v733_v22 = vpop.f32.mrb[19].mxu0  ;;  %v861_v23 = vpop.f32.mrb[19].mxu1 }
 0x138   :  { %v2096_v5 = vunpack.c.l.bf16 %v2315_v59  ;;  %v2033_v7 = vunpack.c.h.bf16 %v2299_v58  ;;  %v2300_v23 = vld [vmem:[%s3063_s3 + $0x38] sm:$0xff]  }
 0x139   :  { %v1226_v24 = vmax.f32 %v1162_v20, 0.0  ;;  %v1258_v25 = vmax.f32 %v1194_v21, 0.0  ;;  %v1417_v26 = vadd.f32 %v2024_v11, %v1225_v18  ;;  %v1449_v27 = vadd.f32 %v2088_v12, %v1257_v19 }
 0x13b   :  { %v1418_v28 = vadd.f32 %v2025_v14, %v1226_v24  ;;  %v1450_v29 = vadd.f32 %v2089_v16, %v1258_v25  ;;  %v2316_v24 = vld [vmem:[%s3063_s3 + $0xb8] sm:$0xff]  }
 0x13c   :  { %v736_v32 = vpop.f32.mrb[20].mxu0  ;;  %v864_v33 = vpop.f32.mrb[20].mxu1 }
 0x13d   :  { %v2157_v34 = vpack.c.bf16 %v1418_v28, %v1417_v26  ;;  %v2237_v35 = vpack.c.bf16 %v1450_v29, %v1449_v27  ;;  %v1163_v36 = vadd.f32 %v2802_v17, %v736_v32  ;;  %v1195_v37 = vadd.f32 %v2802_v17, %v864_v33  ;;  %v738_v38 = vpop.f32.mrb[21].mxu0  ;;  %v866_v39 = vpop.f32.mrb[21].mxu1 }
 0x13e   :  { %v739_v42 = vpop.f32.mrb[22].mxu0  ;;  %v867_v44 = vpop.f32.mrb[22].mxu1  ;;  %v2036_v33 = vunpack.c.l.bf16 %v2300_v23  ;;  %v2101_v38 = vunpack.c.h.bf16 %v2316_v24 }
 0x13f   :  { %2328 = vst [vmem:[%s3064_s4 + $0x20] sm:$0xff] %v2157_v34   ;;  %2344 = vst [vmem:[%s3064_s4 + $0xa0] sm:$0xff] %v2237_v35   ;;  %v1227_v46 = vmax.f32 %v1163_v36, 0.0  ;;  %v1259_v47 = vmax.f32 %v1195_v37, 0.0  ;;  %v1164_v48 = vadd.f32 %v2802_v17, %v739_v42  ;;  %v1196_v49 = vadd.f32 %v2802_v17, %v867_v44  ;;  %v741_v50 = vpop.f32.mrb[23].mxu0  ;;  %v869_v51 = vpop.f32.mrb[23].mxu1 }
 0x140   :  { %v2100_v34 = vunpack.c.l.bf16 %v2316_v24  ;;  %v2037_v36 = vunpack.c.h.bf16 %v2300_v23  ;;  %v2301_v51 = vld [vmem:[%s3063_s3 + $0x40] sm:$0xff]  }
 0x141   :  { %v1228_v52 = vmax.f32 %v1164_v48, 0.0  ;;  %v1260_v53 = vmax.f32 %v1196_v49, 0.0  ;;  %v1419_v54 = vadd.f32 %v2028_v40, %v1227_v46  ;;  %v1451_v55 = vadd.f32 %v2092_v41, %v1259_v47 }
 0x143   :  { %v1420_v56 = vadd.f32 %v2029_v43, %v1228_v52  ;;  %v1452_v57 = vadd.f32 %v2093_v45, %v1260_v53  ;;  %v2317_v52 = vld [vmem:[%s3063_s3 + $0xc0] sm:$0xff]  }
 0x144   :  { %v744_v60 = vpop.f32.mrb[24].mxu0  ;;  %v872_v61 = vpop.f32.mrb[24].mxu1 }
 0x145   :  { %v2162_v62 = vpack.c.bf16 %v1420_v56, %v1419_v54  ;;  %v2242_v63 = vpack.c.bf16 %v1452_v57, %v1451_v55  ;;  %v1165_v0 = vadd.f32 %v2802_v17, %v744_v60  ;;  %v1197_v1 = vadd.f32 %v2802_v17, %v872_v61  ;;  %v746_v2 = vpop.f32.mrb[25].mxu0  ;;  %v874_v3 = vpop.f32.mrb[25].mxu1 }
 0x146   :  { %v747_v6 = vpop.f32.mrb[26].mxu0  ;;  %v875_v8 = vpop.f32.mrb[26].mxu1  ;;  %v2040_v61 = vunpack.c.l.bf16 %v2301_v51  ;;  %v2105_v2 = vunpack.c.h.bf16 %v2317_v52 }
 0x147   :  { %2329 = vst [vmem:[%s3064_s4 + $0x28] sm:$0xff] %v2162_v62   ;;  %2345 = vst [vmem:[%s3064_s4 + $0xa8] sm:$0xff] %v2242_v63   ;;  %v1229_v10 = vmax.f32 %v1165_v0, 0.0  ;;  %v1261_v11 = vmax.f32 %v1197_v1, 0.0  ;;  %v1166_v12 = vadd.f32 %v2802_v17, %v747_v6  ;;  %v1198_v13 = vadd.f32 %v2802_v17, %v875_v8  ;;  %v749_v14 = vpop.f32.mrb[27].mxu0  ;;  %v877_v15 = vpop.f32.mrb[27].mxu1 }
 0x148   :  { %v2104_v62 = vunpack.c.l.bf16 %v2317_v52  ;;  %v2041_v0 = vunpack.c.h.bf16 %v2301_v51  ;;  %v2302_v15 = vld [vmem:[%s3063_s3 + $0x48] sm:$0xff]  }
 0x149   :  { %v1230_v16 = vmax.f32 %v1166_v12, 0.0  ;;  %v1262_v18 = vmax.f32 %v1198_v13, 0.0  ;;  %v1421_v19 = vadd.f32 %v2032_v4, %v1229_v10  ;;  %v1453_v20 = vadd.f32 %v2096_v5, %v1261_v11 }
 0x14b   :  { %v1422_v21 = vadd.f32 %v2033_v7, %v1230_v16  ;;  %v1454_v22 = vadd.f32 %v2097_v9, %v1262_v18  ;;  %v2318_v16 = vld [vmem:[%s3063_s3 + $0xc8] sm:$0xff]  }
 0x14c   :  { %v752_v25 = vpop.f32.mrb[28].mxu0  ;;  %v880_v26 = vpop.f32.mrb[28].mxu1 }
 0x14d   :  { %v2167_v27 = vpack.c.bf16 %v1422_v21, %v1421_v19  ;;  %v2247_v28 = vpack.c.bf16 %v1454_v22, %v1453_v20  ;;  %v1167_v29 = vadd.f32 %v2802_v17, %v752_v25  ;;  %v1199_v30 = vadd.f32 %v2802_v17, %v880_v26  ;;  %v754_v31 = vpop.f32.mrb[29].mxu0  ;;  %v882_v32 = vpop.f32.mrb[29].mxu1 }
 0x14e   :  { %v755_v35 = vpop.f32.mrb[30].mxu0  ;;  %v883_v37 = vpop.f32.mrb[30].mxu1  ;;  %v2044_v26 = vunpack.c.l.bf16 %v2302_v15  ;;  %v2109_v31 = vunpack.c.h.bf16 %v2318_v16 }
 0x14f   :  { %2330 = vst [vmem:[%s3064_s4 + $0x30] sm:$0xff] %v2167_v27   ;;  %2346 = vst [vmem:[%s3064_s4 + $0xb0] sm:$0xff] %v2247_v28   ;;  %v1231_v39 = vmax.f32 %v1167_v29, 0.0  ;;  %v1263_v40 = vmax.f32 %v1199_v30, 0.0  ;;  %v1168_v41 = vadd.f32 %v2802_v17, %v755_v35  ;;  %v1200_v42 = vadd.f32 %v2802_v17, %v883_v37  ;;  %v757_v43 = vpop.f32.mrb[31].mxu0  ;;  %v885_v44 = vpop.f32.mrb[31].mxu1 }
 0x150   :  { %v2108_v27 = vunpack.c.l.bf16 %v2318_v16  ;;  %v2045_v29 = vunpack.c.h.bf16 %v2302_v15  ;;  %v2303_v44 = vld [vmem:[%s3063_s3 + $0x50] sm:$0xff]  }
 0x151   :  { %v1232_v45 = vmax.f32 %v1168_v41, 0.0  ;;  %v1264_v46 = vmax.f32 %v1200_v42, 0.0  ;;  %v1423_v47 = vadd.f32 %v2036_v33, %v1231_v39  ;;  %v1455_v48 = vadd.f32 %v2100_v34, %v1263_v40 }
 0x153   :  { %v1424_v49 = vadd.f32 %v2037_v36, %v1232_v45  ;;  %v1456_v50 = vadd.f32 %v2101_v38, %v1264_v46  ;;  %v2319_v45 = vld [vmem:[%s3063_s3 + $0xd0] sm:$0xff]  }
 0x154   :  { %v760_v53 = vpop.f32.mrb[32].mxu0  ;;  %v888_v54 = vpop.f32.mrb[32].mxu1 }
 0x155   :  { %v2172_v55 = vpack.c.bf16 %v1424_v49, %v1423_v47  ;;  %v2252_v56 = vpack.c.bf16 %v1456_v50, %v1455_v48  ;;  %v1169_v57 = vadd.f32 %v2802_v17, %v760_v53  ;;  %v1201_v58 = vadd.f32 %v2802_v17, %v888_v54  ;;  %v762_v59 = vpop.f32.mrb[33].mxu0  ;;  %v890_v60 = vpop.f32.mrb[33].mxu1 }
 0x156   :  { %v763_v63 = vpop.f32.mrb[34].mxu0  ;;  %v891_v1 = vpop.f32.mrb[34].mxu1  ;;  %v2048_v54 = vunpack.c.l.bf16 %v2303_v44  ;;  %v2113_v59 = vunpack.c.h.bf16 %v2319_v45 }
 0x157   :  { %2331 = vst [vmem:[%s3064_s4 + $0x38] sm:$0xff] %v2172_v55   ;;  %2347 = vst [vmem:[%s3064_s4 + $0xb8] sm:$0xff] %v2252_v56   ;;  %v1233_v3 = vmax.f32 %v1169_v57, 0.0  ;;  %v1265_v4 = vmax.f32 %v1201_v58, 0.0  ;;  %v1170_v5 = vadd.f32 %v2802_v17, %v763_v63  ;;  %v1202_v6 = vadd.f32 %v2802_v17, %v891_v1  ;;  %v765_v7 = vpop.f32.mrb[35].mxu0  ;;  %v893_v8 = vpop.f32.mrb[35].mxu1 }
 0x158   :  { %v2112_v55 = vunpack.c.l.bf16 %v2319_v45  ;;  %v2049_v57 = vunpack.c.h.bf16 %v2303_v44  ;;  %v2304_v8 = vld [vmem:[%s3063_s3 + $0x58] sm:$0xff]  }
 0x159   :  { %v1234_v9 = vmax.f32 %v1170_v5, 0.0  ;;  %v1266_v10 = vmax.f32 %v1202_v6, 0.0  ;;  %v1425_v11 = vadd.f32 %v2040_v61, %v1233_v3  ;;  %v1457_v12 = vadd.f32 %v2104_v62, %v1265_v4 }
 0x15b   :  { %v1426_v13 = vadd.f32 %v2041_v0, %v1234_v9  ;;  %v1458_v14 = vadd.f32 %v2105_v2, %v1266_v10  ;;  %v2320_v9 = vld [vmem:[%s3063_s3 + $0xd8] sm:$0xff]  }
 0x15c   :  { %v768_v18 = vpop.f32.mrb[36].mxu0  ;;  %v896_v19 = vpop.f32.mrb[36].mxu1 }
 0x15d   :  { %v2177_v20 = vpack.c.bf16 %v1426_v13, %v1425_v11  ;;  %v2257_v21 = vpack.c.bf16 %v1458_v14, %v1457_v12  ;;  %v1171_v22 = vadd.f32 %v2802_v17, %v768_v18  ;;  %v1203_v23 = vadd.f32 %v2802_v17, %v896_v19  ;;  %v770_v24 = vpop.f32.mrb[37].mxu0  ;;  %v898_v25 = vpop.f32.mrb[37].mxu1 }
 0x15e   :  { %v771_v28 = vpop.f32.mrb[38].mxu0  ;;  %v899_v30 = vpop.f32.mrb[38].mxu1  ;;  %v2052_v19 = vunpack.c.l.bf16 %v2304_v8  ;;  %v2117_v24 = vunpack.c.h.bf16 %v2320_v9 }
 0x15f   :  { %2332 = vst [vmem:[%s3064_s4 + $0x40] sm:$0xff] %v2177_v20   ;;  %2348 = vst [vmem:[%s3064_s4 + $0xc0] sm:$0xff] %v2257_v21   ;;  %v1235_v32 = vmax.f32 %v1171_v22, 0.0  ;;  %v1267_v33 = vmax.f32 %v1203_v23, 0.0  ;;  %v1172_v34 = vadd.f32 %v2802_v17, %v771_v28  ;;  %v1204_v35 = vadd.f32 %v2802_v17, %v899_v30  ;;  %v773_v36 = vpop.f32.mrb[39].mxu0  ;;  %v901_v37 = vpop.f32.mrb[39].mxu1 }
 0x160   :  { %v2116_v20 = vunpack.c.l.bf16 %v2320_v9  ;;  %v2053_v22 = vunpack.c.h.bf16 %v2304_v8  ;;  %v2305_v37 = vld [vmem:[%s3063_s3 + $0x60] sm:$0xff]  }
 0x161   :  { %v1236_v38 = vmax.f32 %v1172_v34, 0.0  ;;  %v1268_v39 = vmax.f32 %v1204_v35, 0.0  ;;  %v1427_v40 = vadd.f32 %v2044_v26, %v1235_v32  ;;  %v1459_v41 = vadd.f32 %v2108_v27, %v1267_v33 }
 0x163   :  { %v1428_v42 = vadd.f32 %v2045_v29, %v1236_v38  ;;  %v1460_v43 = vadd.f32 %v2109_v31, %v1268_v39  ;;  %v2321_v38 = vld [vmem:[%s3063_s3 + $0xe0] sm:$0xff]  }
 0x164   :  { %v776_v46 = vpop.f32.mrb[40].mxu0  ;;  %v904_v47 = vpop.f32.mrb[40].mxu1 }
 0x165   :  { %v2182_v48 = vpack.c.bf16 %v1428_v42, %v1427_v40  ;;  %v2262_v49 = vpack.c.bf16 %v1460_v43, %v1459_v41  ;;  %v1173_v50 = vadd.f32 %v2802_v17, %v776_v46  ;;  %v1205_v51 = vadd.f32 %v2802_v17, %v904_v47  ;;  %v778_v52 = vpop.f32.mrb[41].mxu0  ;;  %v906_v53 = vpop.f32.mrb[41].mxu1 }
 0x166   :  { %v779_v56 = vpop.f32.mrb[42].mxu0  ;;  %v907_v58 = vpop.f32.mrb[42].mxu1  ;;  %v2056_v47 = vunpack.c.l.bf16 %v2305_v37  ;;  %v2121_v52 = vunpack.c.h.bf16 %v2321_v38 }
 0x167   :  { %2333 = vst [vmem:[%s3064_s4 + $0x48] sm:$0xff] %v2182_v48   ;;  %2349 = vst [vmem:[%s3064_s4 + $0xc8] sm:$0xff] %v2262_v49   ;;  %v1237_v60 = vmax.f32 %v1173_v50, 0.0  ;;  %v1269_v61 = vmax.f32 %v1205_v51, 0.0  ;;  %v1174_v62 = vadd.f32 %v2802_v17, %v779_v56  ;;  %v1206_v63 = vadd.f32 %v2802_v17, %v907_v58  ;;  %v781_v0 = vpop.f32.mrb[43].mxu0  ;;  %v909_v1 = vpop.f32.mrb[43].mxu1 }
 0x168   :  { %v2120_v48 = vunpack.c.l.bf16 %v2321_v38  ;;  %v2057_v50 = vunpack.c.h.bf16 %v2305_v37  ;;  %v2306_v1 = vld [vmem:[%s3063_s3 + $0x68] sm:$0xff]  }
 0x169   :  { %v1238_v2 = vmax.f32 %v1174_v62, 0.0  ;;  %v1270_v3 = vmax.f32 %v1206_v63, 0.0  ;;  %v1429_v4 = vadd.f32 %v2048_v54, %v1237_v60  ;;  %v1461_v5 = vadd.f32 %v2112_v55, %v1269_v61 }
 0x16b   :  { %v1430_v6 = vadd.f32 %v2049_v57, %v1238_v2  ;;  %v1462_v7 = vadd.f32 %v2113_v59, %v1270_v3  ;;  %v2322_v2 = vld [vmem:[%s3063_s3 + $0xe8] sm:$0xff]  }
 0x16c   :  { %v784_v10 = vpop.f32.mrb[44].mxu0  ;;  %v912_v11 = vpop.f32.mrb[44].mxu1 }
 0x16d   :  { %v2187_v12 = vpack.c.bf16 %v1430_v6, %v1429_v4  ;;  %v2267_v13 = vpack.c.bf16 %v1462_v7, %v1461_v5  ;;  %v1175_v14 = vadd.f32 %v2802_v17, %v784_v10  ;;  %v1207_v15 = vadd.f32 %v2802_v17, %v912_v11  ;;  %v786_v16 = vpop.f32.mrb[45].mxu0  ;;  %v914_v18 = vpop.f32.mrb[45].mxu1 }
 0x16e   :  { %v787_v21 = vpop.f32.mrb[46].mxu0  ;;  %v915_v23 = vpop.f32.mrb[46].mxu1  ;;  %v2060_v11 = vunpack.c.l.bf16 %v2306_v1  ;;  %v2125_v16 = vunpack.c.h.bf16 %v2322_v2 }
 0x16f   :  { %2334 = vst [vmem:[%s3064_s4 + $0x50] sm:$0xff] %v2187_v12   ;;  %2350 = vst [vmem:[%s3064_s4 + $0xd0] sm:$0xff] %v2267_v13   ;;  %v1239_v25 = vmax.f32 %v1175_v14, 0.0  ;;  %v1271_v26 = vmax.f32 %v1207_v15, 0.0  ;;  %v1176_v27 = vadd.f32 %v2802_v17, %v787_v21  ;;  %v1208_v28 = vadd.f32 %v2802_v17, %v915_v23  ;;  %v789_v29 = vpop.f32.mrb[47].mxu0  ;;  %v917_v30 = vpop.f32.mrb[47].mxu1 }
 0x170   :  { %v2124_v12 = vunpack.c.l.bf16 %v2322_v2  ;;  %v2061_v14 = vunpack.c.h.bf16 %v2306_v1  ;;  %v2307_v30 = vld [vmem:[%s3063_s3 + $0x70] sm:$0xff]  }
 0x171   :  { %v1240_v31 = vmax.f32 %v1176_v27, 0.0  ;;  %v1272_v32 = vmax.f32 %v1208_v28, 0.0  ;;  %v1431_v33 = vadd.f32 %v2052_v19, %v1239_v25  ;;  %v1463_v34 = vadd.f32 %v2116_v20, %v1271_v26 }
 0x173   :  { %v1432_v35 = vadd.f32 %v2053_v22, %v1240_v31  ;;  %v1464_v36 = vadd.f32 %v2117_v24, %v1272_v32  ;;  %v2323_v31 = vld [vmem:[%s3063_s3 + $0xf0] sm:$0xff]  }
 0x174   :  { %v792_v39 = vpop.f32.mrb[48].mxu0  ;;  %v920_v40 = vpop.f32.mrb[48].mxu1 }
 0x175   :  { %v2192_v41 = vpack.c.bf16 %v1432_v35, %v1431_v33  ;;  %v2272_v42 = vpack.c.bf16 %v1464_v36, %v1463_v34  ;;  %v1177_v43 = vadd.f32 %v2802_v17, %v792_v39  ;;  %v1209_v44 = vadd.f32 %v2802_v17, %v920_v40  ;;  %v794_v45 = vpop.f32.mrb[49].mxu0  ;;  %v922_v46 = vpop.f32.mrb[49].mxu1 }
 0x176   :  { %v795_v49 = vpop.f32.mrb[50].mxu0  ;;  %v923_v51 = vpop.f32.mrb[50].mxu1  ;;  %v2064_v40 = vunpack.c.l.bf16 %v2307_v30  ;;  %v2129_v45 = vunpack.c.h.bf16 %v2323_v31 }
 0x177   :  { %2335 = vst [vmem:[%s3064_s4 + $0x58] sm:$0xff] %v2192_v41   ;;  %2351 = vst [vmem:[%s3064_s4 + $0xd8] sm:$0xff] %v2272_v42   ;;  %v1241_v53 = vmax.f32 %v1177_v43, 0.0  ;;  %v1273_v54 = vmax.f32 %v1209_v44, 0.0  ;;  %v1178_v55 = vadd.f32 %v2802_v17, %v795_v49  ;;  %v1210_v56 = vadd.f32 %v2802_v17, %v923_v51  ;;  %v797_v57 = vpop.f32.mrb[51].mxu0  ;;  %v925_v58 = vpop.f32.mrb[51].mxu1 }
 0x178   :  { %v2128_v41 = vunpack.c.l.bf16 %v2323_v31  ;;  %v2065_v43 = vunpack.c.h.bf16 %v2307_v30  ;;  %v2308_v58 = vld [vmem:[%s3063_s3 + $0x78] sm:$0xff]  }
 0x179   :  { %v1242_v59 = vmax.f32 %v1178_v55, 0.0  ;;  %v1274_v60 = vmax.f32 %v1210_v56, 0.0  ;;  %v1433_v61 = vadd.f32 %v2056_v47, %v1241_v53  ;;  %v1465_v62 = vadd.f32 %v2120_v48, %v1273_v54 }
 0x17b   :  { %v1434_v63 = vadd.f32 %v2057_v50, %v1242_v59  ;;  %v1466_v0 = vadd.f32 %v2121_v52, %v1274_v60  ;;  %v2324_v59 = vld [vmem:[%s3063_s3 + $0xf8] sm:$0xff]  }
 0x17c   :  { %v800_v3 = vpop.f32.mrb[52].mxu0  ;;  %v928_v4 = vpop.f32.mrb[52].mxu1 }
 0x17d   :  { %v2197_v5 = vpack.c.bf16 %v1434_v63, %v1433_v61  ;;  %v2277_v6 = vpack.c.bf16 %v1466_v0, %v1465_v62  ;;  %v1179_v7 = vadd.f32 %v2802_v17, %v800_v3  ;;  %v1211_v8 = vadd.f32 %v2802_v17, %v928_v4  ;;  %v802_v9 = vpop.f32.mrb[53].mxu0  ;;  %v930_v10 = vpop.f32.mrb[53].mxu1 }
 0x17e   :  { %v803_v13 = vpop.f32.mrb[54].mxu0  ;;  %v931_v15 = vpop.f32.mrb[54].mxu1  ;;  %v2068_v4 = vunpack.c.l.bf16 %v2308_v58  ;;  %v2133_v9 = vunpack.c.h.bf16 %v2324_v59 }
 0x17f   :  { %2336 = vst [vmem:[%s3064_s4 + $0x60] sm:$0xff] %v2197_v5   ;;  %2352 = vst [vmem:[%s3064_s4 + $0xe0] sm:$0xff] %v2277_v6   ;;  %v1243_v18 = vmax.f32 %v1179_v7, 0.0  ;;  %v1275_v19 = vmax.f32 %v1211_v8, 0.0  ;;  %v1180_v20 = vadd.f32 %v2802_v17, %v803_v13  ;;  %v1212_v21 = vadd.f32 %v2802_v17, %v931_v15  ;;  %v805_v22 = vpop.f32.mrb[55].mxu0  ;;  %v933_v23 = vpop.f32.mrb[55].mxu1 }
 0x180   :  { %v2132_v5 = vunpack.c.l.bf16 %v2324_v59  ;;  %v2069_v7 = vunpack.c.h.bf16 %v2308_v58 }
 0x181   :  { %v1244_v24 = vmax.f32 %v1180_v20, 0.0  ;;  %v1276_v25 = vmax.f32 %v1212_v21, 0.0  ;;  %v1435_v26 = vadd.f32 %v2060_v11, %v1243_v18  ;;  %v1467_v27 = vadd.f32 %v2124_v12, %v1275_v19 }
 0x183   :  { %v1436_v28 = vadd.f32 %v2061_v14, %v1244_v24  ;;  %v1468_v29 = vadd.f32 %v2125_v16, %v1276_v25 }
 0x184   :  { %v808_v32 = vpop.f32.mrb[56].mxu0  ;;  %v936_v33 = vpop.f32.mrb[56].mxu1 }
 0x185   :  { %v2202_v34 = vpack.c.bf16 %v1436_v28, %v1435_v26  ;;  %v2282_v35 = vpack.c.bf16 %v1468_v29, %v1467_v27  ;;  %v1181_v36 = vadd.f32 %v2802_v17, %v808_v32  ;;  %v1213_v37 = vadd.f32 %v2802_v17, %v936_v33  ;;  %v810_v38 = vpop.f32.mrb[57].mxu0  ;;  %v938_v39 = vpop.f32.mrb[57].mxu1 }
 0x186   :  { %v811_v42 = vpop.f32.mrb[58].mxu0  ;;  %v939_v44 = vpop.f32.mrb[58].mxu1 }
 0x187   :  { %2337 = vst [vmem:[%s3064_s4 + $0x68] sm:$0xff] %v2202_v34   ;;  %2353 = vst [vmem:[%s3064_s4 + $0xe8] sm:$0xff] %v2282_v35   ;;  %v1245_v46 = vmax.f32 %v1181_v36, 0.0  ;;  %v1277_v47 = vmax.f32 %v1213_v37, 0.0  ;;  %v1182_v48 = vadd.f32 %v2802_v17, %v811_v42  ;;  %v1214_v49 = vadd.f32 %v2802_v17, %v939_v44  ;;  %v813_v50 = vpop.f32.mrb[59].mxu0  ;;  %v941_v51 = vpop.f32.mrb[59].mxu1 }
 0x189   :  { %v1246_v52 = vmax.f32 %v1182_v48, 0.0  ;;  %v1278_v53 = vmax.f32 %v1214_v49, 0.0  ;;  %v1437_v54 = vadd.f32 %v2064_v40, %v1245_v46  ;;  %v1469_v55 = vadd.f32 %v2128_v41, %v1277_v47 }
 0x18b   :  { %v1438_v56 = vadd.f32 %v2065_v43, %v1246_v52  ;;  %v1470_v57 = vadd.f32 %v2129_v45, %v1278_v53 }
 0x18c   :  { %v816_v60 = vpop.f32.mrb[60].mxu0  ;;  %v944_v61 = vpop.f32.mrb[60].mxu1 }
 0x18d   :  { %v2207_v62 = vpack.c.bf16 %v1438_v56, %v1437_v54  ;;  %v2287_v63 = vpack.c.bf16 %v1470_v57, %v1469_v55  ;;  %v1183_v0 = vadd.f32 %v2802_v17, %v816_v60  ;;  %v1215_v1 = vadd.f32 %v2802_v17, %v944_v61  ;;  %v818_v2 = vpop.f32.mrb[61].mxu0  ;;  %v946_v3 = vpop.f32.mrb[61].mxu1 }
 0x18e   :  { %v819_v6 = vpop.f32.mrb[62].mxu0  ;;  %v947_v8 = vpop.f32.mrb[62].mxu1 }
 0x18f   :  { %2338 = vst [vmem:[%s3064_s4 + $0x70] sm:$0xff] %v2207_v62   ;;  %2354 = vst [vmem:[%s3064_s4 + $0xf0] sm:$0xff] %v2287_v63   ;;  %v1247_v10 = vmax.f32 %v1183_v0, 0.0  ;;  %v1279_v11 = vmax.f32 %v1215_v1, 0.0  ;;  %v1184_v12 = vadd.f32 %v2802_v17, %v819_v6  ;;  %v1216_v13 = vadd.f32 %v2802_v17, %v947_v8  ;;  %v821_v14 = vpop.f32.mrb[63].mxu0  ;;  %v949_v15 = vpop.f32.mrb[63].mxu1 }
 0x191   :  { %v1248_v16 = vmax.f32 %v1184_v12, 0.0  ;;  %v1280_v18 = vmax.f32 %v1216_v13, 0.0  ;;  %v1439_v19 = vadd.f32 %v2068_v4, %v1247_v10  ;;  %v1471_v20 = vadd.f32 %v2132_v5, %v1279_v11 }
 0x193   :  { %v1440_v21 = vadd.f32 %v2069_v7, %v1248_v16  ;;  %v1472_v22 = vadd.f32 %v2133_v9, %v1280_v18 }
 0x195   :  { %v2212_v23 = vpack.c.bf16 %v1440_v21, %v1439_v19  ;;  %v2292_v24 = vpack.c.bf16 %v1472_v22, %v1471_v20 }
 0x197   :  { %2339 = vst [vmem:[%s3064_s4 + $0x78] sm:$0xff] %v2212_v23   ;;  %2355 = vst [vmem:[%s3064_s4 + $0xf8] sm:$0xff] %v2292_v24  }

// kernel: unet_forward.43
= control target key start
LH: loop header
LB: loop body
LE: loop exit
PB: predicated region body
PF: predicated region fallthrough
CT: control target
= control target key end

     0   :  { %s2315_s12 = smov 0   ;;  %s2317_s13 = smov 0   ;;  %s2516_s0 = inlined_call_operand.vmem [shape: bf16[2048,128], index: 0, kind: input, shape index: {}]   ;;  %s2517_s1 = inlined_call_operand.vmem [shape: bf16[128,128], index: 1, kind: input, shape index: {}]   ;;  %s2518_s2 = inlined_call_operand.vmem [shape: f32[1,128], index: 2, kind: input, shape index: {}]   ;;  %s2519_s3 = inlined_call_operand.vmem [shape: bf16[2048,128], index: 3, kind: output, shape index: {}]  }
   0x1   :  { %s2319_s14 = smov 0  }
   0x2 LB: > { %s32_s15 = sadd.s32 1, %s2289_s13  ;;  %p1704_p0 = scmp.ge.s32.totalorder %s2293_s14, 1  ;;  %s2293_s14 = sphi %s2319_s14, %s13_s14   ;;  %s2289_s13 = sphi %s2317_s13, %s2521_s13   ;;  %s2285_s12 = sphi %s2315_s12, %s2520_s12  }
   0x3   : > { %p34_p1 = scmp.ge.s32.totalorder %s32_s15, 4  ;;  %p188_p2 = scmp.lt.s32.totalorder %s2293_s14, 5 }
   0x5   : > { %s2523_s15 = smov (%p34_p1, %s32_s15), 0  ;;  %p189_p3 = pnand %p1704_p0, %p188_p2 }
   0x6   : > { %v2231_v0 = vld [vmem:[%s2517_s1] sm:$0xff] (!%p189_p3)   ;;  %s1705_s18 = sshll.u32 (!%p189_p3), %s2285_s12, 6  ;;  %v2232_v1 = vld [vmem:[%s2517_s1 + $0x8] sm:$0xff] (!%p189_p3)   ;;  %v2233_v2 = vld [vmem:[%s2517_s1 + $0x10] sm:$0xff] (!%p189_p3)  }
   0x7   : > { %192 = sbr.rel (%p189_p3) target bundleno = 315 (0x13b), region = 32  ;;  %p230_p4 = scmp.lt.s32.totalorder (!%p189_p3), %s1705_s18, 255  ;;  %2111 = vmatprep.subr.bf16.mxu0 (!%p189_p3), %v2231_v0  ;;  %2191 = vmatprep.subr.bf16.mxu1 (!%p189_p3), %v2231_v0  ;;  %v2234_v3 = vld [vmem:[%s2517_s1 + $0x18] sm:$0xff] (!%p189_p3)   ;;  %v2235_v6 = vld [vmem:[%s2517_s1 + $0x20] sm:$0xff] (!%p189_p3)   ;;  %v2236_v7 = vld [vmem:[%s2517_s1 + $0x28] sm:$0xff] (!%p189_p3)  }
   0x8   : > { %2112 = vmatpush3.bf16.msra.mxu0 (!%p189_p3), %v2231_v0  ;;  %2199 = vmatpush3.bf16.msra.mxu1 (!%p189_p3), %v2231_v0  ;;  %v2237_v8 = vld [vmem:[%s2517_s1 + $0x30] sm:$0xff] (!%p189_p3)   ;;  %v2238_v9 = vld [vmem:[%s2517_s1 + $0x38] sm:$0xff] (!%p189_p3)   ;;  %v2402_v41 = vld [vmem:[%s2518_s2] ss:$0 sm:$0xff] (!%p189_p3) }
   0x9   : > { %2113 = vmatprep.subr.bf16.mxu0 (!%p189_p3), %v2232_v1  ;;  %2192 = vmatprep.subr.bf16.mxu1 (!%p189_p3), %v2232_v1 }
   0xc   : > { %2114 = vmatpush3.bf16.msra.mxu0 (!%p189_p3), %v2232_v1  ;;  %2200 = vmatpush3.bf16.msra.mxu1 (!%p189_p3), %v2232_v1 }
   0xd   : > { %2115 = vmatprep.subr.bf16.mxu0 (!%p189_p3), %v2233_v2  ;;  %2193 = vmatprep.subr.bf16.mxu1 (!%p189_p3), %v2233_v2 }
   0xe   : > { %s2525_s18 = smov (!%p230_p4, %s1705_s18), 255 }
   0xf   : > { %s1706_s23 = sshll.u32 %s2525_s18, 2 }
  0x10   : > { %s2350_s26 = scalar_lea.vmem %s2516_s0, %s1706_s23  ;;  %2116 = vmatpush3.bf16.msra.mxu0 %v2233_v2  ;;  %2201 = vmatpush3.bf16.msra.mxu1 %v2233_v2  ;;  %s2415_s17 = scalar_lea.vmem %s2519_s3, %s1706_s23 }
  0x11   : > { %v2239_v4 = vld [vmem:[%s2350_s26] sm:$0xff]   ;;  %2117 = vmatprep.subr.bf16.mxu0 %v2234_v3  ;;  %2194 = vmatprep.subr.bf16.mxu1 %v2234_v3  ;;  %v2241_v10 = vld [vmem:[%s2350_s26 + $0x8] sm:$0xff]   ;;  %v2243_v12 = vld [vmem:[%s2350_s26 + $0x10] sm:$0xff]  }
  0x12   : > { %v2240_v5 = vld [vmem:[%s2350_s26 + $0x80] sm:$0xff]   ;;  %2127 = vmatprep.mubr.bf16.mxu0 %v2239_v4  ;;  %v2242_v11 = vld [vmem:[%s2350_s26 + $0x88] sm:$0xff]   ;;  %v2244_v13 = vld [vmem:[%s2350_s26 + $0x90] sm:$0xff]  }
  0x13   : > { %2159 = vmatprep.mubr.bf16.mxu1 %v2240_v5  ;;  %v2245_v14 = vld [vmem:[%s2350_s26 + $0x18] sm:$0xff]   ;;  %v2247_v16 = vld [vmem:[%s2350_s26 + $0x20] sm:$0xff]   ;;  %v2249_v18 = vld [vmem:[%s2350_s26 + $0x28] sm:$0xff]  }
  0x14   : > { %2118 = vmatpush3.bf16.msra.mxu0 %v2234_v3  ;;  %2202 = vmatpush3.bf16.msra.mxu1 %v2234_v3  ;;  %v2246_v15 = vld [vmem:[%s2350_s26 + $0x98] sm:$0xff]   ;;  %v2248_v17 = vld [vmem:[%s2350_s26 + $0xa0] sm:$0xff]   ;;  %v2250_v19 = vld [vmem:[%s2350_s26 + $0xa8] sm:$0xff]  }
  0x15   : > { %2119 = vmatprep.subr.bf16.mxu0 %v2235_v6  ;;  %2195 = vmatprep.subr.bf16.mxu1 %v2235_v6  ;;  %v2251_v20 = vld [vmem:[%s2350_s26 + $0x30] sm:$0xff]   ;;  %v2253_v22 = vld [vmem:[%s2350_s26 + $0x38] sm:$0xff]   ;;  %v2255_v24 = vld [vmem:[%s2350_s26 + $0x40] sm:$0xff]  }
  0x16   : > { %v2252_v21 = vld [vmem:[%s2350_s26 + $0xb0] sm:$0xff]   ;;  %v2254_v23 = vld [vmem:[%s2350_s26 + $0xb8] sm:$0xff]   ;;  %v2256_v25 = vld [vmem:[%s2350_s26 + $0xc0] sm:$0xff]  }
  0x17   : > { %v2257_v26 = vld [vmem:[%s2350_s26 + $0x48] sm:$0xff]   ;;  %v2259_v28 = vld [vmem:[%s2350_s26 + $0x50] sm:$0xff]   ;;  %v2261_v30 = vld [vmem:[%s2350_s26 + $0x58] sm:$0xff]  }
  0x18   : > { %2120 = vmatpush3.bf16.msra.mxu0 %v2235_v6  ;;  %2203 = vmatpush3.bf16.msra.mxu1 %v2235_v6  ;;  %v2258_v27 = vld [vmem:[%s2350_s26 + $0xc8] sm:$0xff]   ;;  %v2260_v29 = vld [vmem:[%s2350_s26 + $0xd0] sm:$0xff]   ;;  %v2262_v31 = vld [vmem:[%s2350_s26 + $0xd8] sm:$0xff]  }
  0x19   : > { %2121 = vmatprep.subr.bf16.mxu0 %v2236_v7  ;;  %2196 = vmatprep.subr.bf16.mxu1 %v2236_v7  ;;  %v2263_v32 = vld [vmem:[%s2350_s26 + $0x60] sm:$0xff]   ;;  %v2265_v34 = vld [vmem:[%s2350_s26 + $0x68] sm:$0xff]   ;;  %v2267_v36 = vld [vmem:[%s2350_s26 + $0x70] sm:$0xff]  }
  0x1a   : > { %v2264_v33 = vld [vmem:[%s2350_s26 + $0xe0] sm:$0xff]   ;;  %v2266_v35 = vld [vmem:[%s2350_s26 + $0xe8] sm:$0xff]   ;;  %v2268_v37 = vld [vmem:[%s2350_s26 + $0xf0] sm:$0xff]  }
  0x1b   : > { %v2269_v38 = vld [vmem:[%s2350_s26 + $0x78] sm:$0xff]  }
  0x1c   : > { %2122 = vmatpush3.bf16.msra.mxu0 %v2236_v7  ;;  %2204 = vmatpush3.bf16.msra.mxu1 %v2236_v7  ;;  %v2270_v39 = vld [vmem:[%s2350_s26 + $0xf8] sm:$0xff]  }
  0x1d   : > { %2123 = vmatprep.subr.bf16.mxu0 %v2237_v8  ;;  %2197 = vmatprep.subr.bf16.mxu1 %v2237_v8 }
  0x20   : > { %2124 = vmatpush3.bf16.msra.mxu0 %v2237_v8  ;;  %2205 = vmatpush3.bf16.msra.mxu1 %v2237_v8 }
  0x21   : > { %2125 = vmatprep.subr.bf16.mxu0 %v2238_v9  ;;  %2198 = vmatprep.subr.bf16.mxu1 %v2238_v9 }
  0x24   : > { %2126 = vmatpush3.bf16.msra.mxu0 %v2238_v9  ;;  %2206 = vmatpush3.bf16.msra.mxu1 %v2238_v9 }
  0x27   : > { %2128 = vmatmul.mubr.bf16.vlgmr.msra.gmra.mrb[0].mxu0 %v2241_v10  ;;  %2160 = vmatmul.mubr.bf16.vlgmr.msra.gmra.mrb[0].mxu1 %v2242_v11 }
  0x28   : > { %2131 = vmatprep.mubr.bf16.mxu0 %v2243_v12  ;;  %2163 = vmatprep.mubr.bf16.mxu1 %v2244_v13 }
  0x2f   : > { %2132 = vmatmul.mubr.bf16.gmra.mrb[4].mxu0 %v2245_v14  ;;  %2164 = vmatmul.mubr.bf16.gmra.mrb[4].mxu1 %v2246_v15 }
  0x30   : > { %2135 = vmatprep.mubr.bf16.mxu0 %v2247_v16  ;;  %2167 = vmatprep.mubr.bf16.mxu1 %v2248_v17 }
  0x37   : > { %2136 = vmatmul.mubr.bf16.gmra.mrb[8].mxu0 %v2249_v18  ;;  %2168 = vmatmul.mubr.bf16.gmra.mrb[8].mxu1 %v2250_v19 }
  0x38   : > { %2139 = vmatprep.mubr.bf16.mxu0 %v2251_v20  ;;  %2171 = vmatprep.mubr.bf16.mxu1 %v2252_v21 }
  0x3f   : > { %2140 = vmatmul.mubr.bf16.gmra.mrb[12].mxu0 %v2253_v22  ;;  %2172 = vmatmul.mubr.bf16.gmra.mrb[12].mxu1 %v2254_v23 }
  0x40   : > { %2143 = vmatprep.mubr.bf16.mxu0 %v2255_v24  ;;  %2175 = vmatprep.mubr.bf16.mxu1 %v2256_v25 }
  0x47   : > { %2144 = vmatmul.mubr.bf16.gmra.mrb[16].mxu0 %v2257_v26  ;;  %2176 = vmatmul.mubr.bf16.gmra.mrb[16].mxu1 %v2258_v27 }
  0x48   : > { %2147 = vmatprep.mubr.bf16.mxu0 %v2259_v28  ;;  %2179 = vmatprep.mubr.bf16.mxu1 %v2260_v29 }
  0x4f   : > { %2148 = vmatmul.mubr.bf16.gmra.mrb[20].mxu0 %v2261_v30  ;;  %2180 = vmatmul.mubr.bf16.gmra.mrb[20].mxu1 %v2262_v31 }
  0x50   : > { %2151 = vmatprep.mubr.bf16.mxu0 %v2263_v32  ;;  %2183 = vmatprep.mubr.bf16.mxu1 %v2264_v33 }
  0x57   : > { %2152 = vmatmul.mubr.bf16.gmra.mrb[24].mxu0 %v2265_v34  ;;  %2184 = vmatmul.mubr.bf16.gmra.mrb[24].mxu1 %v2266_v35 }
  0x58   : > { %2155 = vmatprep.mubr.bf16.mxu0 %v2267_v36  ;;  %2187 = vmatprep.mubr.bf16.mxu1 %v2268_v37 }
  0x5f   : > { %2156 = vmatmul.mubr.bf16.gmra.mrb[28].mxu0 %v2269_v38  ;;  %2188 = vmatmul.mubr.bf16.gmra.mrb[28].mxu1 %v2270_v39 }
  0xfa   : > { %v2129_v40 = vpop.f32.mrb[0].mxu0  ;;  %v2161_v42 = vpop.f32.mrb[0].mxu1 }
  0xfb   : > { %v746_v43 = vpop.f32.mrb[1].mxu0  ;;  %v874_v44 = vpop.f32.mrb[1].mxu1  ;;  %v1205_v47 = vadd.f32 %v2129_v40, %v2402_v41  ;;  %v1237_v48 = vadd.f32 %v2161_v42, %v2402_v41 }
  0xfc   : > { %v2130_v45 = vpop.f32.mrb[2].mxu0  ;;  %v2162_v46 = vpop.f32.mrb[2].mxu1  ;;  %v1203_v53 = vadd.f32 %v2402_v41, %v746_v43  ;;  %v1235_v54 = vadd.f32 %v2402_v41, %v874_v44 }
  0xfd   : > { %v1206_v49 = vadd.f32 %v2130_v45, %v2402_v41  ;;  %v1238_v50 = vadd.f32 %v2162_v46, %v2402_v41  ;;  %v749_v51 = vpop.f32.mrb[3].mxu0  ;;  %v877_v52 = vpop.f32.mrb[3].mxu1 }
  0xfe   : > { %v1204_v55 = vadd.f32 %v2402_v41, %v749_v51  ;;  %v1236_v56 = vadd.f32 %v2402_v41, %v877_v52 }
  0xff   : > { %v1888_v57 = vpack.c.bf16 %v1206_v49, %v1205_v47  ;;  %v1968_v58 = vpack.c.bf16 %v1238_v50, %v1237_v48 }
 0x100   : > { %v1883_v59 = vpack.c.bf16 %v1204_v55, %v1203_v53  ;;  %v1963_v60 = vpack.c.bf16 %v1236_v56, %v1235_v54 }
 0x101   : > { %2040 = vst [vmem:[%s2415_s17 + $0x8] sm:$0xff] %v1888_v57   ;;  %2056 = vst [vmem:[%s2415_s17 + $0x88] sm:$0xff] %v1968_v58  }
 0x102   : > { %1884 = vst [vmem:[%s2415_s17] sm:$0xff] %v1883_v59   ;;  %2055 = vst [vmem:[%s2415_s17 + $0x80] sm:$0xff] %v1963_v60   ;;  %v2133_v61 = vpop.f32.mrb[4].mxu0  ;;  %v2165_v62 = vpop.f32.mrb[4].mxu1 }
 0x103   : > { %v762_v63 = vpop.f32.mrb[5].mxu0  ;;  %v890_v0 = vpop.f32.mrb[5].mxu1  ;;  %v1209_v3 = vadd.f32 %v2133_v61, %v2402_v41  ;;  %v1241_v4 = vadd.f32 %v2165_v62, %v2402_v41 }
 0x104   : > { %v2134_v1 = vpop.f32.mrb[6].mxu0  ;;  %v2166_v2 = vpop.f32.mrb[6].mxu1  ;;  %v1207_v9 = vadd.f32 %v2402_v41, %v762_v63  ;;  %v1239_v10 = vadd.f32 %v2402_v41, %v890_v0 }
 0x105   : > { %v1210_v5 = vadd.f32 %v2134_v1, %v2402_v41  ;;  %v1242_v6 = vadd.f32 %v2166_v2, %v2402_v41  ;;  %v765_v7 = vpop.f32.mrb[7].mxu0  ;;  %v893_v8 = vpop.f32.mrb[7].mxu1 }
 0x106   : > { %v1208_v11 = vadd.f32 %v2402_v41, %v765_v7  ;;  %v1240_v12 = vadd.f32 %v2402_v41, %v893_v8 }
 0x107   : > { %v1898_v13 = vpack.c.bf16 %v1210_v5, %v1209_v3  ;;  %v1978_v14 = vpack.c.bf16 %v1242_v6, %v1241_v4 }
 0x108   : > { %v1893_v15 = vpack.c.bf16 %v1208_v11, %v1207_v9  ;;  %v1973_v16 = vpack.c.bf16 %v1240_v12, %v1239_v10 }
 0x109   : > { %2042 = vst [vmem:[%s2415_s17 + $0x18] sm:$0xff] %v1898_v13   ;;  %2058 = vst [vmem:[%s2415_s17 + $0x98] sm:$0xff] %v1978_v14  }
 0x10a   : > { %2041 = vst [vmem:[%s2415_s17 + $0x10] sm:$0xff] %v1893_v15   ;;  %2057 = vst [vmem:[%s2415_s17 + $0x90] sm:$0xff] %v1973_v16   ;;  %v2137_v17 = vpop.f32.mrb[8].mxu0  ;;  %v2169_v18 = vpop.f32.mrb[8].mxu1 }
 0x10b   : > { %v778_v19 = vpop.f32.mrb[9].mxu0  ;;  %v906_v20 = vpop.f32.mrb[9].mxu1  ;;  %v1213_v23 = vadd.f32 %v2137_v17, %v2402_v41  ;;  %v1245_v24 = vadd.f32 %v2169_v18, %v2402_v41 }
 0x10c   : > { %v2138_v21 = vpop.f32.mrb[10].mxu0  ;;  %v2170_v22 = vpop.f32.mrb[10].mxu1  ;;  %v1211_v29 = vadd.f32 %v2402_v41, %v778_v19  ;;  %v1243_v30 = vadd.f32 %v2402_v41, %v906_v20 }
 0x10d   : > { %v1214_v25 = vadd.f32 %v2138_v21, %v2402_v41  ;;  %v1246_v26 = vadd.f32 %v2170_v22, %v2402_v41  ;;  %v781_v27 = vpop.f32.mrb[11].mxu0  ;;  %v909_v28 = vpop.f32.mrb[11].mxu1 }
 0x10e   : > { %v1212_v31 = vadd.f32 %v2402_v41, %v781_v27  ;;  %v1244_v32 = vadd.f32 %v2402_v41, %v909_v28 }
 0x10f   : > { %v1908_v33 = vpack.c.bf16 %v1214_v25, %v1213_v23  ;;  %v1988_v34 = vpack.c.bf16 %v1246_v26, %v1245_v24 }
 0x110   : > { %v1903_v35 = vpack.c.bf16 %v1212_v31, %v1211_v29  ;;  %v1983_v36 = vpack.c.bf16 %v1244_v32, %v1243_v30 }
 0x111   : > { %2044 = vst [vmem:[%s2415_s17 + $0x28] sm:$0xff] %v1908_v33   ;;  %2060 = vst [vmem:[%s2415_s17 + $0xa8] sm:$0xff] %v1988_v34  }
 0x112   : > { %2043 = vst [vmem:[%s2415_s17 + $0x20] sm:$0xff] %v1903_v35   ;;  %2059 = vst [vmem:[%s2415_s17 + $0xa0] sm:$0xff] %v1983_v36   ;;  %v2141_v37 = vpop.f32.mrb[12].mxu0  ;;  %v2173_v38 = vpop.f32.mrb[12].mxu1 }
 0x113   : > { %v794_v39 = vpop.f32.mrb[13].mxu0  ;;  %v922_v40 = vpop.f32.mrb[13].mxu1  ;;  %v1217_v44 = vadd.f32 %v2141_v37, %v2402_v41  ;;  %v1249_v45 = vadd.f32 %v2173_v38, %v2402_v41 }
 0x114   : > { %v2142_v42 = vpop.f32.mrb[14].mxu0  ;;  %v2174_v43 = vpop.f32.mrb[14].mxu1  ;;  %v1215_v50 = vadd.f32 %v2402_v41, %v794_v39  ;;  %v1247_v51 = vadd.f32 %v2402_v41, %v922_v40 }
 0x115   : > { %v1218_v46 = vadd.f32 %v2142_v42, %v2402_v41  ;;  %v1250_v47 = vadd.f32 %v2174_v43, %v2402_v41  ;;  %v797_v48 = vpop.f32.mrb[15].mxu0  ;;  %v925_v49 = vpop.f32.mrb[15].mxu1 }
 0x116   : > { %v1216_v52 = vadd.f32 %v2402_v41, %v797_v48  ;;  %v1248_v53 = vadd.f32 %v2402_v41, %v925_v49 }
 0x117   : > { %v1918_v54 = vpack.c.bf16 %v1218_v46, %v1217_v44  ;;  %v1998_v55 = vpack.c.bf16 %v1250_v47, %v1249_v45 }
 0x118   : > { %v1913_v56 = vpack.c.bf16 %v1216_v52, %v1215_v50  ;;  %v1993_v57 = vpack.c.bf16 %v1248_v53, %v1247_v51 }
 0x119   : > { %2046 = vst [vmem:[%s2415_s17 + $0x38] sm:$0xff] %v1918_v54   ;;  %2062 = vst [vmem:[%s2415_s17 + $0xb8] sm:$0xff] %v1998_v55  }
 0x11a   : > { %2045 = vst [vmem:[%s2415_s17 + $0x30] sm:$0xff] %v1913_v56   ;;  %2061 = vst [vmem:[%s2415_s17 + $0xb0] sm:$0xff] %v1993_v57   ;;  %v2145_v58 = vpop.f32.mrb[16].mxu0  ;;  %v2177_v59 = vpop.f32.mrb[16].mxu1 }
 0x11b   : > { %v810_v60 = vpop.f32.mrb[17].mxu0  ;;  %v938_v61 = vpop.f32.mrb[17].mxu1  ;;  %v1221_v0 = vadd.f32 %v2145_v58, %v2402_v41  ;;  %v1253_v1 = vadd.f32 %v2177_v59, %v2402_v41 }
 0x11c   : > { %v2146_v62 = vpop.f32.mrb[18].mxu0  ;;  %v2178_v63 = vpop.f32.mrb[18].mxu1  ;;  %v1219_v6 = vadd.f32 %v2402_v41, %v810_v60  ;;  %v1251_v7 = vadd.f32 %v2402_v41, %v938_v61 }
 0x11d   : > { %v1222_v2 = vadd.f32 %v2146_v62, %v2402_v41  ;;  %v1254_v3 = vadd.f32 %v2178_v63, %v2402_v41  ;;  %v813_v4 = vpop.f32.mrb[19].mxu0  ;;  %v941_v5 = vpop.f32.mrb[19].mxu1 }
 0x11e   : > { %v1220_v8 = vadd.f32 %v2402_v41, %v813_v4  ;;  %v1252_v9 = vadd.f32 %v2402_v41, %v941_v5 }
 0x11f   : > { %v1928_v10 = vpack.c.bf16 %v1222_v2, %v1221_v0  ;;  %v2008_v11 = vpack.c.bf16 %v1254_v3, %v1253_v1 }
 0x120   : > { %v1923_v12 = vpack.c.bf16 %v1220_v8, %v1219_v6  ;;  %v2003_v13 = vpack.c.bf16 %v1252_v9, %v1251_v7 }
 0x121   : > { %2048 = vst [vmem:[%s2415_s17 + $0x48] sm:$0xff] %v1928_v10   ;;  %2064 = vst [vmem:[%s2415_s17 + $0xc8] sm:$0xff] %v2008_v11  }
 0x122   : > { %2047 = vst [vmem:[%s2415_s17 + $0x40] sm:$0xff] %v1923_v12   ;;  %2063 = vst [vmem:[%s2415_s17 + $0xc0] sm:$0xff] %v2003_v13   ;;  %v2149_v14 = vpop.f32.mrb[20].mxu0  ;;  %v2181_v15 = vpop.f32.mrb[20].mxu1 }
 0x123   : > { %v826_v16 = vpop.f32.mrb[21].mxu0  ;;  %v954_v17 = vpop.f32.mrb[21].mxu1  ;;  %v1225_v20 = vadd.f32 %v2149_v14, %v2402_v41  ;;  %v1257_v21 = vadd.f32 %v2181_v15, %v2402_v41 }
 0x124   : > { %v2150_v18 = vpop.f32.mrb[22].mxu0  ;;  %v2182_v19 = vpop.f32.mrb[22].mxu1  ;;  %v1223_v26 = vadd.f32 %v2402_v41, %v826_v16  ;;  %v1255_v27 = vadd.f32 %v2402_v41, %v954_v17 }
 0x125   : > { %v1226_v22 = vadd.f32 %v2150_v18, %v2402_v41  ;;  %v1258_v23 = vadd.f32 %v2182_v19, %v2402_v41  ;;  %v829_v24 = vpop.f32.mrb[23].mxu0  ;;  %v957_v25 = vpop.f32.mrb[23].mxu1 }
 0x126   : > { %v1224_v28 = vadd.f32 %v2402_v41, %v829_v24  ;;  %v1256_v29 = vadd.f32 %v2402_v41, %v957_v25 }
 0x127   : > { %v1938_v30 = vpack.c.bf16 %v1226_v22, %v1225_v20  ;;  %v2018_v31 = vpack.c.bf16 %v1258_v23, %v1257_v21 }
 0x128   : > { %v1933_v32 = vpack.c.bf16 %v1224_v28, %v1223_v26  ;;  %v2013_v33 = vpack.c.bf16 %v1256_v29, %v1255_v27 }
 0x129   : > { %2050 = vst [vmem:[%s2415_s17 + $0x58] sm:$0xff] %v1938_v30   ;;  %2066 = vst [vmem:[%s2415_s17 + $0xd8] sm:$0xff] %v2018_v31  }
 0x12a   : > { %2049 = vst [vmem:[%s2415_s17 + $0x50] sm:$0xff] %v1933_v32   ;;  %2065 = vst [vmem:[%s2415_s17 + $0xd0] sm:$0xff] %v2013_v33   ;;  %v2153_v34 = vpop.f32.mrb[24].mxu0  ;;  %v2185_v35 = vpop.f32.mrb[24].mxu1 }
 0x12b   : > { %v842_v36 = vpop.f32.mrb[25].mxu0  ;;  %v970_v37 = vpop.f32.mrb[25].mxu1  ;;  %v1229_v40 = vadd.f32 %v2153_v34, %v2402_v41  ;;  %v1261_v42 = vadd.f32 %v2185_v35, %v2402_v41 }
 0x12c   : > { %v2154_v38 = vpop.f32.mrb[26].mxu0  ;;  %v2186_v39 = vpop.f32.mrb[26].mxu1  ;;  %v1227_v47 = vadd.f32 %v2402_v41, %v842_v36  ;;  %v1259_v48 = vadd.f32 %v2402_v41, %v970_v37 }
 0x12d   : > { %v1230_v43 = vadd.f32 %v2154_v38, %v2402_v41  ;;  %v1262_v44 = vadd.f32 %v2186_v39, %v2402_v41  ;;  %v845_v45 = vpop.f32.mrb[27].mxu0  ;;  %v973_v46 = vpop.f32.mrb[27].mxu1 }
 0x12e   : > { %v1228_v49 = vadd.f32 %v2402_v41, %v845_v45  ;;  %v1260_v50 = vadd.f32 %v2402_v41, %v973_v46 }
 0x12f   : > { %v1948_v51 = vpack.c.bf16 %v1230_v43, %v1229_v40  ;;  %v2028_v52 = vpack.c.bf16 %v1262_v44, %v1261_v42 }
 0x130   : > { %v1943_v53 = vpack.c.bf16 %v1228_v49, %v1227_v47  ;;  %v2023_v54 = vpack.c.bf16 %v1260_v50, %v1259_v48 }
 0x131   : > { %2052 = vst [vmem:[%s2415_s17 + $0x68] sm:$0xff] %v1948_v51   ;;  %2068 = vst [vmem:[%s2415_s17 + $0xe8] sm:$0xff] %v2028_v52  }
 0x132   : > { %2051 = vst [vmem:[%s2415_s17 + $0x60] sm:$0xff] %v1943_v53   ;;  %2067 = vst [vmem:[%s2415_s17 + $0xe0] sm:$0xff] %v2023_v54   ;;  %v2157_v55 = vpop.f32.mrb[28].mxu0  ;;  %v2189_v56 = vpop.f32.mrb[28].mxu1 }
 0x133   : > { %v858_v57 = vpop.f32.mrb[29].mxu0  ;;  %v986_v58 = vpop.f32.mrb[29].mxu1  ;;  %v1233_v61 = vadd.f32 %v2157_v55, %v2402_v41  ;;  %v1265_v62 = vadd.f32 %v2189_v56, %v2402_v41 }
 0x134   : > { %v2158_v59 = vpop.f32.mrb[30].mxu0  ;;  %v2190_v60 = vpop.f32.mrb[30].mxu1  ;;  %v1231_v3 = vadd.f32 %v2402_v41, %v858_v57  ;;  %v1263_v4 = vadd.f32 %v2402_v41, %v986_v58 }
 0x135   : > { %v1234_v63 = vadd.f32 %v2158_v59, %v2402_v41  ;;  %v1266_v0 = vadd.f32 %v2190_v60, %v2402_v41  ;;  %v861_v1 = vpop.f32.mrb[31].mxu0  ;;  %v989_v2 = vpop.f32.mrb[31].mxu1 }
 0x136   : > { %v1232_v5 = vadd.f32 %v2402_v41, %v861_v1  ;;  %v1264_v6 = vadd.f32 %v2402_v41, %v989_v2 }
 0x137   : > { %v1958_v7 = vpack.c.bf16 %v1234_v63, %v1233_v61  ;;  %v2038_v8 = vpack.c.bf16 %v1266_v0, %v1265_v62 }
 0x138   : > { %v1953_v9 = vpack.c.bf16 %v1232_v5, %v1231_v3  ;;  %v2033_v10 = vpack.c.bf16 %v1264_v6, %v1263_v4 }
 0x139   : > { %2054 = vst [vmem:[%s2415_s17 + $0x78] sm:$0xff] %v1958_v7   ;;  %2070 = vst [vmem:[%s2415_s17 + $0xf8] sm:$0xff] %v2038_v8  }
 0x13a   : > { %2053 = vst [vmem:[%s2415_s17 + $0x70] sm:$0xff] %v1953_v9   ;;  %2069 = vst [vmem:[%s2415_s17 + $0xf0] sm:$0xff] %v2033_v10  }
 0x13b PF: > { %s13_s14 = sadd.s32 1, %s2293_s14   ;;  %s2520_s12 = smov %s2289_s13 }
 0x13c   : > { %p10_p5 = scmp.ge.s32.totalorder %s13_s14, 6   ;;  %s2521_s13 = smov %s2523_s15 }
 0x13e   :  { %12 = sbr.rel (!%p10_p5) target bundleno = 2 (0x2), region = 76 }

</bundles_post_ra>
